<compile_context>
chip_gen: v5e
topology: v5e:2x2
jax: 0.10.0
libtpu: 0.0.40
codegen_flags: <defaults>
</compile_context>

<pallas_src>
import functools

import jax
import jax.numpy as jnp
from jax.experimental import pallas as pl
from jax.experimental.pallas import tpu as pltpu


D_IN = 1024          # nn.Linear(1024, d_in=1024)
LN_EPS = 1e-6


def _round_up(x, m):
    return (x + m - 1) // m * m


def _head_kernel(x_ref, w_ref, b_ref, g_ref, beta_ref, o_ref, *, use_bf16):
    # x_ref: (tm, K) ; w_ref: (K, N) ; b/g/beta: (1, N) ; o_ref: (tm, N)
    x = x_ref[...]
    w = w_ref[...]
    if use_bf16:
        # bf16-native MXU path (v6e/v7x); accumulation stays f32.
        x = x.astype(jnp.bfloat16)
        w = w.astype(jnp.bfloat16)

    # --- fc: x @ W^T + b (W pre-transposed to (K, N)) ---
    y = jnp.dot(x, w, preferred_element_type=jnp.float32)
    y = y + b_ref[...]

    # --- LayerNorm over last dim (biased variance, eps=1e-6), one-pass stats ---
    inv_n = jnp.float32(1.0 / y.shape[-1])
    s = jnp.sum(y, axis=-1, keepdims=True)
    s2 = jnp.sum(y * y, axis=-1, keepdims=True)
    mean = s * inv_n
    var = jnp.maximum(s2 * inv_n - mean * mean, 0.0)
    y = (y - mean) * jax.lax.rsqrt(var + LN_EPS)
    y = y * g_ref[...] + beta_ref[...]

    # --- ReLU (dropout = identity in eval) ---
    o_ref[...] = jnp.maximum(y, 0.0).astype(o_ref.dtype)


def _vmem_limit_bytes(tm, K, N, w_itemsize):
    # Conservative budget: double-buffered x/out tiles + (up to) double-buffered
    # constants + 2 MiB slack for compiler scratch. Fits v5e's 16 MiB scoped default
    # at tm=256/f32 and stays well under v7x's 64 MiB physical VMEM per TensorCore.
    tiles = 2 * (tm * K * 4 + tm * N * 4)
    consts = 2 * (K * N * w_itemsize + 3 * N * 4)
    return int(tiles + consts + (2 << 20))


def _make_forward(single_buffer_consts):
    @functools.partial(jax.jit, static_argnames=("tm", "use_bf16_matmul"))
    def forward(x, w_kn, b, gamma, beta, *, tm=256, use_bf16_matmul=False):
        M, K = x.shape
        N = w_kn.shape[1]

        # Clamp tile to the problem size for small M (single grid step), otherwise
        # pad rows up to a multiple of tm (padded rows are sliced off afterwards).
        tm_eff = min(tm, _round_up(M, 8))
        M_pad = _round_up(M, tm_eff)
        x_p = x if M_pad == M else jnp.pad(x, ((0, M_pad - M), (0, 0)))
        grid = (M_pad // tm_eff,)

        def const_spec(shape):
            if single_buffer_consts:
                # Constant index_map -> never re-DMA'd; single buffer saves VMEM.
                return pl.BlockSpec(shape, lambda i: (0, 0),
                                    pipeline_mode=pl.Buffered(1))
            return pl.BlockSpec(shape, lambda i: (0, 0))

        out = pl.pallas_call(
            functools.partial(_head_kernel, use_bf16=use_bf16_matmul),
            out_shape=jax.ShapeDtypeStruct((M_pad, N), x.dtype),
            grid_spec=pltpu.PrefetchScalarGridSpec(
                num_scalar_prefetch=0,
                grid=grid,
                in_specs=[
                    pl.BlockSpec((tm_eff, K), lambda i: (i, 0)),   # x row tile
                    const_spec((K, N)),                            # weight, resident
                    const_spec((1, N)),                            # bias
                    const_spec((1, N)),                            # ln gamma
                    const_spec((1, N)),                            # ln beta
                ],
                out_specs=pl.BlockSpec((tm_eff, N), lambda i: (i, 0)),
            ),
            compiler_params=pltpu.CompilerParams(
                dimension_semantics=("parallel",),
                vmem_limit_bytes=_vmem_limit_bytes(tm_eff, K, N,
                                                   w_kn.dtype.itemsize),
            ),
        )(x_p, w_kn, b, gamma, beta)
        return out if M_pad == M else out[:M]

    return forward


_FORWARD_SINGLE_BUF = _make_forward(True)
_FORWARD_DOUBLE_BUF = _make_forward(False)


def i3d_head_forward(x, w_kn, b, gamma, beta, *, tm=256, use_bf16_matmul=False):
    """x: (rows, 1024) f32. w_kn: (1024, d_in) (already transposed). Returns (rows, d_in)."""
    try:
        return _FORWARD_SINGLE_BUF(x, w_kn, b, gamma, beta,
                                   tm=tm, use_bf16_matmul=use_bf16_matmul)
    except Exception:
        # Fallback: identical kernel with default double-buffered constant operands,
        # in case pipeline_mode=pl.Buffered(1) is unavailable in this jax build.
        return _FORWARD_DOUBLE_BUF(x, w_kn, b, gamma, beta,
                                   tm=tm, use_bf16_matmul=use_bf16_matmul)


def _reference(x, w_kn, b, gamma, beta):
    y = x @ w_kn + b
    mean = jnp.mean(y, axis=-1, keepdims=True)
    var = jnp.mean((y - mean) ** 2, axis=-1, keepdims=True)
    y = (y - mean) / jnp.sqrt(var + LN_EPS)
    y = y * gamma + beta
    return jnp.maximum(y, 0.0)


if __name__ == "__main__":
    # Small shapes consistent with the module: batch=2, seq=8, feature dim fixed at
    # 1024 by the nn.Linear(1024, 1024) definition.
    B, T = 2, 8
    key = jax.random.PRNGKey(0)
    kx, kw, kb, kg, kbeta, kx2 = jax.random.split(key, 6)

    x = jax.random.normal(kx, (B, T, D_IN), dtype=jnp.float32)

    # Deterministic synthetic parameters (shapes from the module __init__).
    # PyTorch fc weight is (out, in) = (d_in, 1024); we store its transpose (in, out).
    w_oi = jax.random.normal(kw, (D_IN, D_IN), dtype=jnp.float32) * (1.0 / jnp.sqrt(D_IN))
    w_kn = jnp.asarray(w_oi.T)
    b = jax.random.normal(kb, (1, D_IN), dtype=jnp.float32) * 0.02
    gamma = 1.0 + 0.05 * jax.random.normal(kg, (1, D_IN), dtype=jnp.float32)
    beta = 0.02 * jax.random.normal(kbeta, (1, D_IN), dtype=jnp.float32)

    # Case 1: module-sized input (B*T = 16 rows) -> single grid step (tm clamped to 16).
    x2d = x.reshape(B * T, D_IN)
    out = jax.block_until_ready(i3d_head_forward(x2d, w_kn, b, gamma, beta))
    ref = _reference(x2d, w_kn, b, gamma, beta)
    assert out.shape == (B * T, D_IN)
    assert jnp.allclose(out, ref, atol=1e-3, rtol=1e-3), "mismatch vs reference (small)"

    # Case 2: larger row count exercising the tm=256 tiled + row-padded path.
    M2 = 600
    xb = jax.random.normal(kx2, (M2, D_IN), dtype=jnp.float32)
    out2 = jax.block_until_ready(i3d_head_forward(xb, w_kn, b, gamma, beta, tm=256))
    ref2 = _reference(xb, w_kn, b, gamma, beta)
    assert out2.shape == (M2, D_IN)
    assert jnp.allclose(out2, ref2, atol=1e-3, rtol=1e-3), "mismatch vs reference (tiled)"

    print("KERNEL_OK")
</pallas_src>

<mosaic_0001>
module attributes {stable_mosaic.version = 11 : i64} {
  func.func @_head_kernel(%arg0: i32, %arg1: memref<16x1024xf32, #tpu.memory_space<vmem>>, %arg2: memref<1024x1024xf32, #tpu.memory_space<vmem>>, %arg3: memref<1x1024xf32, #tpu.memory_space<vmem>>, %arg4: memref<1x1024xf32, #tpu.memory_space<vmem>>, %arg5: memref<1x1024xf32, #tpu.memory_space<vmem>>, %arg6: memref<16x1024xf32, #tpu.memory_space<vmem>>) attributes {dimension_semantics = [#tpu.dimension_semantics<parallel>], iteration_bounds = array<i64: 1>, scalar_prefetch = 0 : i64, scratch_operands = 0 : i64, tpu.core_type = #tpu.core_type<tc>, window_params = [{transform_indices = @transform_0, window_bounds = array<i64: 16, 1024>}, {pipeline_mode = #tpu.pipeline_mode<synchronous>, transform_indices = @transform_1, window_bounds = array<i64: 1024, 1024>}, {pipeline_mode = #tpu.pipeline_mode<synchronous>, transform_indices = @transform_2, window_bounds = array<i64: 1, 1024>}, {pipeline_mode = #tpu.pipeline_mode<synchronous>, transform_indices = @transform_3, window_bounds = array<i64: 1, 1024>}, {pipeline_mode = #tpu.pipeline_mode<synchronous>, transform_indices = @transform_4, window_bounds = array<i64: 1, 1024>}, {transform_indices = @transform_5, window_bounds = array<i64: 16, 1024>}]} {
    %c0 = arith.constant 0 : index
    %c0_0 = arith.constant 0 : index
    %0 = vector.load %arg1[%c0, %c0_0] : memref<16x1024xf32, #tpu.memory_space<vmem>>, vector<16x1024xf32>
    %c0_1 = arith.constant 0 : index
    %c0_2 = arith.constant 0 : index
    %1 = vector.load %arg2[%c0_1, %c0_2] : memref<1024x1024xf32, #tpu.memory_space<vmem>>, vector<1024x1024xf32>
    %cst = arith.constant dense<0.000000e+00> : vector<16x1024xf32>
    %2 = tpu.matmul %0, %1, %cst {dimension_numbers = #tpu.dot_dimension_numbers<[1], [0], [0], [1], [0, 0, 1, 1], [], []>} : vector<16x1024xf32>, vector<1024x1024xf32>, vector<16x1024xf32> -> vector<16x1024xf32>
    %c0_3 = arith.constant 0 : index
    %c0_4 = arith.constant 0 : index
    %3 = vector.load %arg3[%c0_3, %c0_4] : memref<1x1024xf32, #tpu.memory_space<vmem>>, vector<1x1024xf32>
    %4 = vector.broadcast %3 : vector<1x1024xf32> to vector<16x1024xf32>
    %5 = arith.addf %2, %4 : vector<16x1024xf32>
    %cst_5 = arith.constant dense<0.000000e+00> : vector<16xf32>
    %6 = vector.multi_reduction <add>, %5, %cst_5 [1] : vector<16x1024xf32> to vector<16xf32>
    %7 = vector.shape_cast %6 : vector<16xf32> to vector<16x1xf32>
    %8 = arith.mulf %5, %5 : vector<16x1024xf32>
    %cst_6 = arith.constant dense<0.000000e+00> : vector<16xf32>
    %9 = vector.multi_reduction <add>, %8, %cst_6 [1] : vector<16x1024xf32> to vector<16xf32>
    %10 = vector.shape_cast %9 : vector<16xf32> to vector<16x1xf32>
    %cst_7 = arith.constant 9.765625E-4 : f32
    %11 = vector.broadcast %cst_7 : f32 to vector<16x1xf32>
    %12 = arith.mulf %7, %11 : vector<16x1xf32>
    %cst_8 = arith.constant 9.765625E-4 : f32
    %13 = vector.broadcast %cst_8 : f32 to vector<16x1xf32>
    %14 = arith.mulf %10, %13 : vector<16x1xf32>
    %15 = arith.mulf %12, %12 : vector<16x1xf32>
    %16 = arith.subf %14, %15 : vector<16x1xf32>
    %cst_9 = arith.constant 0.000000e+00 : f32
    %17 = vector.broadcast %cst_9 : f32 to vector<16x1xf32>
    %18 = arith.maximumf %16, %17 : vector<16x1xf32>
    %19 = vector.broadcast %12 : vector<16x1xf32> to vector<16x1024xf32>
    %20 = arith.subf %5, %19 : vector<16x1024xf32>
    %cst_10 = arith.constant 9.99999997E-7 : f32
    %21 = vector.broadcast %cst_10 : f32 to vector<16x1xf32>
    %22 = arith.addf %18, %21 : vector<16x1xf32>
    %23 = math.rsqrt %22 : vector<16x1xf32>
    %24 = vector.broadcast %23 : vector<16x1xf32> to vector<16x1024xf32>
    %25 = arith.mulf %20, %24 : vector<16x1024xf32>
    %c0_11 = arith.constant 0 : index
    %c0_12 = arith.constant 0 : index
    %26 = vector.load %arg4[%c0_11, %c0_12] : memref<1x1024xf32, #tpu.memory_space<vmem>>, vector<1x1024xf32>
    %27 = vector.broadcast %26 : vector<1x1024xf32> to vector<16x1024xf32>
    %28 = arith.mulf %25, %27 : vector<16x1024xf32>
    %c0_13 = arith.constant 0 : index
    %c0_14 = arith.constant 0 : index
    %29 = vector.load %arg5[%c0_13, %c0_14] : memref<1x1024xf32, #tpu.memory_space<vmem>>, vector<1x1024xf32>
    %30 = vector.broadcast %29 : vector<1x1024xf32> to vector<16x1024xf32>
    %31 = arith.addf %28, %30 : vector<16x1024xf32>
    %cst_15 = arith.constant 0.000000e+00 : f32
    %32 = vector.broadcast %cst_15 : f32 to vector<16x1024xf32>
    %33 = arith.maximumf %31, %32 : vector<16x1024xf32>
    %c0_16 = arith.constant 0 : index
    %c0_17 = arith.constant 0 : index
    %34 = vector.load %arg6[%c0_16, %c0_17] : memref<16x1024xf32, #tpu.memory_space<vmem>>, vector<16x1024xf32>
    tpu.vector_store %arg6[%c0_16, %c0_17], %33 {strides = array<i32>} : memref<16x1024xf32, #tpu.memory_space<vmem>>, vector<16x1024xf32>,
    return
  }
  func.func @transform_0(%arg0: i32) -> (i32, i32) {
    %c0_i32 = arith.constant 0 : i32
    %c0_i32_0 = arith.constant 0 : i32
    return %arg0, %c0_i32 : i32, i32
  }
  func.func @transform_1(%arg0: i32) -> (i32, i32) {
    %c0_i32 = arith.constant 0 : i32
    %c0_i32_0 = arith.constant 0 : i32
    %c0_i32_1 = arith.constant 0 : i32
    return %c0_i32, %c0_i32_0 : i32, i32
  }
  func.func @transform_2(%arg0: i32) -> (i32, i32) {
    %c0_i32 = arith.constant 0 : i32
    %c0_i32_0 = arith.constant 0 : i32
    %c0_i32_1 = arith.constant 0 : i32
    return %c0_i32, %c0_i32_0 : i32, i32
  }
  func.func @transform_3(%arg0: i32) -> (i32, i32) {
    %c0_i32 = arith.constant 0 : i32
    %c0_i32_0 = arith.constant 0 : i32
    %c0_i32_1 = arith.constant 0 : i32
    return %c0_i32, %c0_i32_0 : i32, i32
  }
  func.func @transform_4(%arg0: i32) -> (i32, i32) {
    %c0_i32 = arith.constant 0 : i32
    %c0_i32_0 = arith.constant 0 : i32
    %c0_i32_1 = arith.constant 0 : i32
    return %c0_i32, %c0_i32_0 : i32, i32
  }
  func.func @transform_5(%arg0: i32) -> (i32, i32) {
    %c0_i32 = arith.constant 0 : i32
    %c0_i32_0 = arith.constant 0 : i32
    return %arg0, %c0_i32 : i32, i32
  }
}

module attributes {stable_mosaic.version = 11 : i64} {
  func.func @_head_kernel(%arg0: i32, %arg1: memref<16x1024xf32, #tpu.memory_space<vmem>>, %arg2: memref<1024x1024xf32, #tpu.memory_space<vmem>>, %arg3: memref<1x1024xf32, #tpu.memory_space<vmem>>, %arg4: memref<1x1024xf32, #tpu.memory_space<vmem>>, %arg5: memref<1x1024xf32, #tpu.memory_space<vmem>>, %arg6: memref<16x1024xf32, #tpu.memory_space<vmem>>) attributes {dimension_semantics = [#tpu.dimension_semantics<parallel>], iteration_bounds = array<i64: 1>, scalar_prefetch = 0 : i64, scratch_operands = 0 : i64, tpu.core_type = #tpu.core_type<tc>, window_params = [{transform_indices = @transform_0, window_bounds = array<i64: 16, 1024>}, {pipeline_mode = #tpu.pipeline_mode<synchronous>, transform_indices = @transform_1, window_bounds = array<i64: 1024, 1024>}, {pipeline_mode = #tpu.pipeline_mode<synchronous>, transform_indices = @transform_2, window_bounds = array<i64: 1, 1024>}, {pipeline_mode = #tpu.pipeline_mode<synchronous>, transform_indices = @transform_3, window_bounds = array<i64: 1, 1024>}, {pipeline_mode = #tpu.pipeline_mode<synchronous>, transform_indices = @transform_4, window_bounds = array<i64: 1, 1024>}, {transform_indices = @transform_5, window_bounds = array<i64: 16, 1024>}]} {
    %c0 = arith.constant 0 : index
    %c0_0 = arith.constant 0 : index
    %0 = vector.load %arg1[%c0, %c0_0] : memref<16x1024xf32, #tpu.memory_space<vmem>>, vector<16x1024xf32>
    %c0_1 = arith.constant 0 : index
    %c0_2 = arith.constant 0 : index
    %1 = vector.load %arg2[%c0_1, %c0_2] : memref<1024x1024xf32, #tpu.memory_space<vmem>>, vector<1024x1024xf32>
    %cst = arith.constant dense<0.000000e+00> : vector<16x1024xf32>
    %2 = tpu.matmul %0, %1, %cst {dimension_numbers = #tpu.dot_dimension_numbers<[1], [0], [0], [1], [0, 0, 1, 1], [], []>} : vector<16x1024xf32>, vector<1024x1024xf32>, vector<16x1024xf32> -> vector<16x1024xf32>
    %c0_3 = arith.constant 0 : index
    %c0_4 = arith.constant 0 : index
    %3 = vector.load %arg3[%c0_3, %c0_4] : memref<1x1024xf32, #tpu.memory_space<vmem>>, vector<1x1024xf32>
    %4 = vector.broadcast %3 : vector<1x1024xf32> to vector<16x1024xf32>
    %5 = arith.addf %2, %4 : vector<16x1024xf32>
    %cst_5 = arith.constant dense<0.000000e+00> : vector<16xf32>
    %6 = vector.multi_reduction <add>, %5, %cst_5 [1] : vector<16x1024xf32> to vector<16xf32>
    %7 = vector.shape_cast %6 : vector<16xf32> to vector<16x1xf32>
    %8 = arith.mulf %5, %5 : vector<16x1024xf32>
    %cst_6 = arith.constant dense<0.000000e+00> : vector<16xf32>
    %9 = vector.multi_reduction <add>, %8, %cst_6 [1] : vector<16x1024xf32> to vector<16xf32>
    %10 = vector.shape_cast %9 : vector<16xf32> to vector<16x1xf32>
    %cst_7 = arith.constant 9.765625E-4 : f32
    %11 = vector.broadcast %cst_7 : f32 to vector<16x1xf32>
    %12 = arith.mulf %7, %11 : vector<16x1xf32>
    %cst_8 = arith.constant 9.765625E-4 : f32
    %13 = vector.broadcast %cst_8 : f32 to vector<16x1xf32>
    %14 = arith.mulf %10, %13 : vector<16x1xf32>
    %15 = arith.mulf %12, %12 : vector<16x1xf32>
    %16 = arith.subf %14, %15 : vector<16x1xf32>
    %cst_9 = arith.constant 0.000000e+00 : f32
    %17 = vector.broadcast %cst_9 : f32 to vector<16x1xf32>
    %18 = arith.maximumf %16, %17 : vector<16x1xf32>
    %19 = vector.broadcast %12 : vector<16x1xf32> to vector<16x1024xf32>
    %20 = arith.subf %5, %19 : vector<16x1024xf32>
    %cst_10 = arith.constant 9.99999997E-7 : f32
    %21 = vector.broadcast %cst_10 : f32 to vector<16x1xf32>
    %22 = arith.addf %18, %21 : vector<16x1xf32>
    %23 = math.rsqrt %22 : vector<16x1xf32>
    %24 = vector.broadcast %23 : vector<16x1xf32> to vector<16x1024xf32>
    %25 = arith.mulf %20, %24 : vector<16x1024xf32>
    %c0_11 = arith.constant 0 : index
    %c0_12 = arith.constant 0 : index
    %26 = vector.load %arg4[%c0_11, %c0_12] : memref<1x1024xf32, #tpu.memory_space<vmem>>, vector<1x1024xf32>
    %27 = vector.broadcast %26 : vector<1x1024xf32> to vector<16x1024xf32>
    %28 = arith.mulf %25, %27 : vector<16x1024xf32>
    %c0_13 = arith.constant 0 : index
    %c0_14 = arith.constant 0 : index
    %29 = vector.load %arg5[%c0_13, %c0_14] : memref<1x1024xf32, #tpu.memory_space<vmem>>, vector<1x1024xf32>
    %30 = vector.broadcast %29 : vector<1x1024xf32> to vector<16x1024xf32>
    %31 = arith.addf %28, %30 : vector<16x1024xf32>
    %cst_15 = arith.constant 0.000000e+00 : f32
    %32 = vector.broadcast %cst_15 : f32 to vector<16x1024xf32>
    %33 = arith.maximumf %31, %32 : vector<16x1024xf32>
    %c0_16 = arith.constant 0 : index
    %c0_17 = arith.constant 0 : index
    %34 = vector.load %arg6[%c0_16, %c0_17] : memref<16x1024xf32, #tpu.memory_space<vmem>>, vector<16x1024xf32>
    tpu.vector_store %arg6[%c0_16, %c0_17], %33 {strides = array<i32>} : memref<16x1024xf32, #tpu.memory_space<vmem>>, vector<16x1024xf32>,
    return
  }
  func.func @transform_0(%arg0: i32) -> (i32, i32) {
    %c0_i32 = arith.constant 0 : i32
    %c0_i32_0 = arith.constant 0 : i32
    return %arg0, %c0_i32 : i32, i32
  }
  func.func @transform_1(%arg0: i32) -> (i32, i32) {
    %c0_i32 = arith.constant 0 : i32
    %c0_i32_0 = arith.constant 0 : i32
    %c0_i32_1 = arith.constant 0 : i32
    return %c0_i32, %c0_i32_0 : i32, i32
  }
  func.func @transform_2(%arg0: i32) -> (i32, i32) {
    %c0_i32 = arith.constant 0 : i32
    %c0_i32_0 = arith.constant 0 : i32
    %c0_i32_1 = arith.constant 0 : i32
    return %c0_i32, %c0_i32_0 : i32, i32
  }
  func.func @transform_3(%arg0: i32) -> (i32, i32) {
    %c0_i32 = arith.constant 0 : i32
    %c0_i32_0 = arith.constant 0 : i32
    %c0_i32_1 = arith.constant 0 : i32
    return %c0_i32, %c0_i32_0 : i32, i32
  }
  func.func @transform_4(%arg0: i32) -> (i32, i32) {
    %c0_i32 = arith.constant 0 : i32
    %c0_i32_0 = arith.constant 0 : i32
    %c0_i32_1 = arith.constant 0 : i32
    return %c0_i32, %c0_i32_0 : i32, i32
  }
  func.func @transform_5(%arg0: i32) -> (i32, i32) {
    %c0_i32 = arith.constant 0 : i32
    %c0_i32_0 = arith.constant 0 : i32
    return %arg0, %c0_i32 : i32, i32
  }
}

</mosaic_0001>

<bundles_post_ra>
// kernel: forward.1
= control target key start
LH: loop header
LB: loop body
LE: loop exit
PB: predicated region body
PF: predicated region fallthrough
CT: control target
= control target key end

     0   :  { %10 = vsyncpa [#allocation3], 0  ;;  %s3770_s0 = inlined_call_operand.hbm [shape: f32[16,1024], index: 0, kind: input, shape index: {}]   ;;  %s3771_s1 = inlined_call_operand.hbm [shape: f32[1024,1024], index: 1, kind: input, shape index: {}]   ;;  %s3772_s2 = inlined_call_operand.hbm [shape: f32[1,1024], index: 2, kind: input, shape index: {}]   ;;  %s3773_s3 = inlined_call_operand.hbm [shape: f32[1,1024], index: 3, kind: input, shape index: {}]   ;;  %s3774_s4 = inlined_call_operand.hbm [shape: f32[1,1024], index: 4, kind: input, shape index: {}]   ;;  %s3775_s5 = inlined_call_operand.hbm [shape: f32[16,1024], index: 5, kind: output, shape index: {}]  }
   0x1   :  { %11 = vsyncpa [#allocation6], 0 }
   0x2   :  { %12 = vsyncpa [#allocation9], 0 }
   0x3   :  { %13 = vsyncpa [#allocation4], 0  ;;  %s31_s20 = sshll.u32 %s3771_s1, 4  ;;  %s3074_s21 = smov [#allocation5]   ;;  %s32_s20 = int_to_ptr.hbm [resolvable:$true] %s31_s20 }
   0x4   :  { %s33_s22 = sshll.u32 %s3074_s21, 4  ;;  %s56_s25 = sshll.u32 %s3773_s3, 4  ;;  %s34_s22 = int_to_ptr.vmem [resolvable:$true] %s33_s22  ;;  %s57_s25 = int_to_ptr.hbm [resolvable:$true] %s56_s25 }
   0x5   :  { %s3075_s26 = smov 1024   ;;  %s3076_s27 = smov 64  }
   0x6   :  { %39 = dma.hbm_to_vmem [thread:$0]  %s32_s20, 131072, %s34_s22, [#allocation6], %s3075_s26, %s3075_s26, %s3076_s27  }
   0x7   :  { %s3077_s28 = smov [#allocation8]   ;;  %s18_s1 = sshll.u32 %s3770_s0, 4  ;;  %s19_s1 = int_to_ptr.hbm [resolvable:$true] %s18_s1 }
   0x8   :  { %s58_s29 = sshll.u32 %s3077_s28, 4  ;;  %s45_s3 = sshll.u32 %s3772_s2, 4  ;;  %s59_s29 = int_to_ptr.vmem [resolvable:$true] %s58_s29  ;;  %s46_s3 = int_to_ptr.hbm [resolvable:$true] %s45_s3 }
   0x9   :  { %61 = dma.hbm_to_vmem [thread:$0]  %s57_s25, 128, %s59_s29, [#allocation9]  }
   0xa   :  { %s3078_s9 = smov [#allocation2]   ;;  %s3079_s11 = smov [#allocation7]  }
   0xb   :  { %s20_s10 = sshll.u32 %s3078_s9, 4  ;;  %s47_s12 = sshll.u32 %s3079_s11, 4  ;;  %s21_s10 = int_to_ptr.vmem [resolvable:$true] %s20_s10  ;;  %s48_s12 = int_to_ptr.vmem [resolvable:$true] %s47_s12 }
   0xc   :  { %26 = dma.hbm_to_vmem [thread:$0]  %s19_s1, 2048, %s21_s10, [#allocation3], %s3075_s26, %s3075_s26, %s3076_s27  }
   0xd   :  { %s67_s0 = sshll.u32 %s3774_s4, 4  ;;  %s3080_s15 = smov [#allocation10]   ;;  %s68_s0 = int_to_ptr.hbm [resolvable:$true] %s67_s0 }
   0xe   :  { %50 = dma.hbm_to_vmem [thread:$0]  %s46_s3, 128, %s48_s12, [#allocation6]  }
   0xf   :  { %s69_s16 = sshll.u32 %s3080_s15, 4  ;;  %s70_s16 = int_to_ptr.vmem [resolvable:$true] %s69_s16 }
  0x10   :  { %72 = dma.hbm_to_vmem [thread:$0]  %s68_s0, 128, %s70_s16, [#allocation9]  }
  0x11   :  { %3066 = dma.done.wait [#allocation3], 2048  }
  0x12   :  { %3067 = vsyncadd [#allocation3], 4294965248 }
  0x13   :  { %3068 = dma.done.wait [#allocation6], 131200  }
  0x14   :  { %3069 = vsyncadd [#allocation6], 4294836096 }
  0x15   :  { %3070 = dma.done.wait [#allocation9], 256  }
  0x16   :  { %3071 = vsyncadd [#allocation9], 4294967040  ;;  %v229_v0 = vld [vmem:[#allocation5 + $0x3c0] sm:$0xff]  ;;  %s3081_s2 = smov [#allocation11]   ;;  %s2845_s19 = sshll.u32 %s3775_s5, 4  ;;  %s2846_s19 = int_to_ptr.hbm [resolvable:$true] %s2845_s19 }
  0x17   :  { %v485_v1 = vld [vmem:[#allocation5 + $0xbc0] sm:$0xff]  ;;  %1151 = vmatpush.msra.mxu0 %v229_v0  ;;  %s2843_s4 = sshll.u32 %s3081_s2, 4  ;;  %s2844_s4 = int_to_ptr.vmem [resolvable:$true] %s2843_s4 }
  0x18   :  { %v221_v2 = vld [vmem:[#allocation5 + $0x380] sm:$0xff]  ;;  %1197 = vmatpush.msra.mxu2 %v485_v1 }
  0x19   :  { %v357_v3 = vld [vmem:[#allocation5 + $0x7c0] sm:$0xff]  ;;  %1152 = vmatpush.msra.mxu0 %v221_v2 }
  0x1a   :  { %v477_v4 = vld [vmem:[#allocation5 + $0xb80] sm:$0xff]  ;;  %1174 = vmatpush.msra.mxu1 %v357_v3 }
  0x1b   :  { %v613_v5 = vld [vmem:[#allocation5 + $0xfc0] sm:$0xff]  ;;  %1198 = vmatpush.msra.mxu2 %v477_v4 }
  0x1c   :  { %1220 = vmatpush.msra.mxu3 %v613_v5  ;;  %v213_v6 = vld [vmem:[#allocation5 + $0x340] sm:$0xff] }
  0x1d   :  { %v349_v7 = vld [vmem:[#allocation5 + $0x780] sm:$0xff]  ;;  %1153 = vmatpush.msra.mxu0 %v213_v6 }
  0x1e   :  { %v469_v8 = vld [vmem:[#allocation5 + $0xb40] sm:$0xff]  ;;  %1175 = vmatpush.msra.mxu1 %v349_v7 }
  0x1f   :  { %v605_v9 = vld [vmem:[#allocation5 + $0xf80] sm:$0xff]  ;;  %1199 = vmatpush.msra.mxu2 %v469_v8 }
  0x20   :  { %v341_v10 = vld [vmem:[#allocation5 + $0x740] sm:$0xff]  ;;  %1221 = vmatpush.msra.mxu3 %v605_v9 }
  0x21   :  { %v205_v11 = vld [vmem:[#allocation5 + $0x300] sm:$0xff]  ;;  %1176 = vmatpush.msra.mxu1 %v341_v10 }
  0x22   :  { %v461_v12 = vld [vmem:[#allocation5 + $0xb00] sm:$0xff]  ;;  %1154 = vmatpush.msra.mxu0 %v205_v11 }
  0x23   :  { %v597_v13 = vld [vmem:[#allocation5 + $0xf40] sm:$0xff]  ;;  %1200 = vmatpush.msra.mxu2 %v461_v12 }
  0x24   :  { %v333_v14 = vld [vmem:[#allocation5 + $0x700] sm:$0xff]  ;;  %1222 = vmatpush.msra.mxu3 %v597_v13 }
  0x25   :  { %v589_v15 = vld [vmem:[#allocation5 + $0xf00] sm:$0xff]  ;;  %1177 = vmatpush.msra.mxu1 %v333_v14 }
  0x26   :  { %v197_v16 = vld [vmem:[#allocation5 + $0x2c0] sm:$0xff]  ;;  %1223 = vmatpush.msra.mxu3 %v589_v15 }
  0x27   :  { %v453_v17 = vld [vmem:[#allocation5 + $0xac0] sm:$0xff]  ;;  %1155 = vmatpush.msra.mxu0 %v197_v16 }
  0x28   :  { %v325_v18 = vld [vmem:[#allocation5 + $0x6c0] sm:$0xff]  ;;  %1201 = vmatpush.msra.mxu2 %v453_v17 }
  0x29   :  { %v581_v19 = vld [vmem:[#allocation5 + $0xec0] sm:$0xff]  ;;  %1178 = vmatpush.msra.mxu1 %v325_v18 }
  0x2a   :  { %v189_v20 = vld [vmem:[#allocation5 + $0x280] sm:$0xff]  ;;  %1224 = vmatpush.msra.mxu3 %v581_v19 }
  0x2b   :  { %v445_v21 = vld [vmem:[#allocation5 + $0xa80] sm:$0xff]  ;;  %1156 = vmatpush.msra.mxu0 %v189_v20 }
  0x2c   :  { %v317_v22 = vld [vmem:[#allocation5 + $0x680] sm:$0xff]  ;;  %1202 = vmatpush.msra.mxu2 %v445_v21 }
  0x2d   :  { %v573_v23 = vld [vmem:[#allocation5 + $0xe80] sm:$0xff]  ;;  %1179 = vmatpush.msra.mxu1 %v317_v22 }
  0x2e   :  { %v181_v24 = vld [vmem:[#allocation5 + $0x240] sm:$0xff]  ;;  %1225 = vmatpush.msra.mxu3 %v573_v23 }
  0x2f   :  { %v437_v25 = vld [vmem:[#allocation5 + $0xa40] sm:$0xff]  ;;  %1157 = vmatpush.msra.mxu0 %v181_v24 }
  0x30   :  { %v309_v26 = vld [vmem:[#allocation5 + $0x640] sm:$0xff]  ;;  %1203 = vmatpush.msra.mxu2 %v437_v25 }
  0x31   :  { %v565_v27 = vld [vmem:[#allocation5 + $0xe40] sm:$0xff]  ;;  %1180 = vmatpush.msra.mxu1 %v309_v26 }
  0x32   :  { %v173_v28 = vld [vmem:[#allocation5 + $0x200] sm:$0xff]  ;;  %1226 = vmatpush.msra.mxu3 %v565_v27 }
  0x33   :  { %v429_v29 = vld [vmem:[#allocation5 + $0xa00] sm:$0xff]  ;;  %1158 = vmatpush.msra.mxu0 %v173_v28 }
  0x34   :  { %v301_v30 = vld [vmem:[#allocation5 + $0x600] sm:$0xff]  ;;  %1204 = vmatpush.msra.mxu2 %v429_v29 }
  0x35   :  { %v557_v31 = vld [vmem:[#allocation5 + $0xe00] sm:$0xff]  ;;  %1181 = vmatpush.msra.mxu1 %v301_v30 }
  0x36   :  { %v165_v32 = vld [vmem:[#allocation5 + $0x1c0] sm:$0xff]  ;;  %1227 = vmatpush.msra.mxu3 %v557_v31 }
  0x37   :  { %v421_v33 = vld [vmem:[#allocation5 + $0x9c0] sm:$0xff]  ;;  %1159 = vmatpush.msra.mxu0 %v165_v32 }
  0x38   :  { %v293_v34 = vld [vmem:[#allocation5 + $0x5c0] sm:$0xff]  ;;  %1205 = vmatpush.msra.mxu2 %v421_v33 }
  0x39   :  { %v549_v35 = vld [vmem:[#allocation5 + $0xdc0] sm:$0xff]  ;;  %1182 = vmatpush.msra.mxu1 %v293_v34 }
  0x3a   :  { %v157_v36 = vld [vmem:[#allocation5 + $0x180] sm:$0xff]  ;;  %1228 = vmatpush.msra.mxu3 %v549_v35 }
  0x3b   :  { %v413_v37 = vld [vmem:[#allocation5 + $0x980] sm:$0xff]  ;;  %1160 = vmatpush.msra.mxu0 %v157_v36 }
  0x3c   :  { %v285_v38 = vld [vmem:[#allocation5 + $0x580] sm:$0xff]  ;;  %1206 = vmatpush.msra.mxu2 %v413_v37 }
  0x3d   :  { %v541_v39 = vld [vmem:[#allocation5 + $0xd80] sm:$0xff]  ;;  %1183 = vmatpush.msra.mxu1 %v285_v38 }
  0x3e   :  { %v149_v40 = vld [vmem:[#allocation5 + $0x140] sm:$0xff]  ;;  %1229 = vmatpush.msra.mxu3 %v541_v39 }
  0x3f   :  { %v405_v41 = vld [vmem:[#allocation5 + $0x940] sm:$0xff]  ;;  %1161 = vmatpush.msra.mxu0 %v149_v40 }
  0x40   :  { %v277_v42 = vld [vmem:[#allocation5 + $0x540] sm:$0xff]  ;;  %1207 = vmatpush.msra.mxu2 %v405_v41 }
  0x41   :  { %v533_v43 = vld [vmem:[#allocation5 + $0xd40] sm:$0xff]  ;;  %1184 = vmatpush.msra.mxu1 %v277_v42 }
  0x42   :  { %v141_v44 = vld [vmem:[#allocation5 + $0x100] sm:$0xff]  ;;  %1230 = vmatpush.msra.mxu3 %v533_v43 }
  0x43   :  { %v397_v45 = vld [vmem:[#allocation5 + $0x900] sm:$0xff]  ;;  %1162 = vmatpush.msra.mxu0 %v141_v44 }
  0x44   :  { %v269_v46 = vld [vmem:[#allocation5 + $0x500] sm:$0xff]  ;;  %1208 = vmatpush.msra.mxu2 %v397_v45 }
  0x45   :  { %v525_v47 = vld [vmem:[#allocation5 + $0xd00] sm:$0xff]  ;;  %1185 = vmatpush.msra.mxu1 %v269_v46  ;;  %v3133_v46 = vld [vmem:[#allocation2 + $0x10] sm:$0xff] }
  0x46   :  { %v133_v48 = vld [vmem:[#allocation5 + $0xc0] sm:$0xff]  ;;  %1231 = vmatpush.msra.mxu3 %v525_v47 }
  0x47   :  { %v389_v49 = vld [vmem:[#allocation5 + $0x8c0] sm:$0xff]  ;;  %1163 = vmatpush.msra.mxu0 %v133_v48 }
  0x48   :  { %v261_v50 = vld [vmem:[#allocation5 + $0x4c0] sm:$0xff]  ;;  %1209 = vmatpush.msra.mxu2 %v389_v49 }
  0x49   :  { %v517_v51 = vld [vmem:[#allocation5 + $0xcc0] sm:$0xff]  ;;  %1186 = vmatpush.msra.mxu1 %v261_v50 }
  0x4a   :  { %v125_v52 = vld [vmem:[#allocation5 + $0x80] sm:$0xff]  ;;  %1232 = vmatpush.msra.mxu3 %v517_v51 }
  0x4b   :  { %v381_v53 = vld [vmem:[#allocation5 + $0x880] sm:$0xff]  ;;  %1164 = vmatpush.msra.mxu0 %v125_v52  ;;  %v3138_v52 = vld [vmem:[#allocation2 + $0x18] sm:$0xff] }
  0x4c   :  { %v253_v54 = vld [vmem:[#allocation5 + $0x480] sm:$0xff]  ;;  %1210 = vmatpush.msra.mxu2 %v381_v53 }
  0x4d   :  { %v509_v55 = vld [vmem:[#allocation5 + $0xc80] sm:$0xff]  ;;  %1187 = vmatpush.msra.mxu1 %v253_v54 }
  0x4e   :  { %v117_v56 = vld [vmem:[#allocation5 + $0x40] sm:$0xff]  ;;  %1233 = vmatpush.msra.mxu3 %v509_v55 }
  0x4f   :  { %v373_v57 = vld [vmem:[#allocation5 + $0x840] sm:$0xff]  ;;  %1165 = vmatpush.msra.mxu0 %v117_v56 }
  0x50   :  { %v245_v58 = vld [vmem:[#allocation5 + $0x440] sm:$0xff]  ;;  %1211 = vmatpush.msra.mxu2 %v373_v57  ;;  %v3141_v57 = vld [vmem:[#allocation2 + $0x8] sm:$0xff] }
  0x51   :  { %v501_v59 = vld [vmem:[#allocation5 + $0xc40] sm:$0xff]  ;;  %1188 = vmatpush.msra.mxu1 %v245_v58 }
  0x52   :  { %v109_v60 = vld [vmem:[#allocation5] sm:$0xff]  ;;  %1234 = vmatpush.msra.mxu3 %v501_v59 }
  0x53   :  { %v365_v61 = vld [vmem:[#allocation5 + $0x800] sm:$0xff]  ;;  %1166 = vmatpush.msra.mxu0 %v109_v60 }
  0x54   :  { %v741_v62 = vld [vmem:[#allocation5 + $0x13c0] sm:$0xff]  ;;  %1212 = vmatpush.msra.mxu2 %v365_v61 }
  0x55   :  { %v997_v63 = vld [vmem:[#allocation5 + $0x1bc0] sm:$0xff]  ;;  %1243 = vmatpush.msrb.mxu0 %v741_v62  ;;  %1213 = vmatmul.f32.vlgmr.msra.gmra.mxu2 %v3133_v46 }
  0x56   :  { %v237_v0 = vld [vmem:[#allocation5 + $0x400] sm:$0xff]  ;;  %1289 = vmatpush.msrb.mxu2 %v997_v63 }
  0x57   :  { %v493_v1 = vld [vmem:[#allocation5 + $0xc00] sm:$0xff]  ;;  %1189 = vmatpush.msra.mxu1 %v237_v0 }
  0x58   :  { %v733_v2 = vld [vmem:[#allocation5 + $0x1380] sm:$0xff]  ;;  %1235 = vmatpush.msra.mxu3 %v493_v1  ;;  %1190 = vmatmul.f32.vlgmr.msra.gmra.mxu1 %v3141_v57 }
  0x59   :  { %v869_v3 = vld [vmem:[#allocation5 + $0x17c0] sm:$0xff]  ;;  %1244 = vmatpush.msrb.mxu0 %v733_v2  ;;  %1236 = vmatmul.f32.vlgmr.msra.gmra.mxu3 %v3138_v52  ;;  %v3145_v2 = vld [vmem:[#allocation2 + $0x50] sm:$0xff] }
  0x5a   :  { %v989_v4 = vld [vmem:[#allocation5 + $0x1b80] sm:$0xff]  ;;  %1266 = vmatpush.msrb.mxu1 %v869_v3  ;;  %v230_v3 = vld [vmem:[#allocation5 + $0x3c8] sm:$0xff] }
  0x5b   :  { %v1125_v5 = vld [vmem:[#allocation5 + $0x1fc0] sm:$0xff]  ;;  %1290 = vmatpush.msrb.mxu2 %v989_v4  ;;  %v486_v4 = vld [vmem:[#allocation5 + $0xbc8] sm:$0xff] }
  0x5c   :  { %v725_v6 = vld [vmem:[#allocation5 + $0x1340] sm:$0xff]  ;;  %1312 = vmatpush.msrb.mxu3 %v1125_v5 }
  0x5d   :  { %v861_v7 = vld [vmem:[#allocation5 + $0x1780] sm:$0xff]  ;;  %1245 = vmatpush.msrb.mxu0 %v725_v6  ;;  %1216 = vmatmul.f32.gmra.mxu2 %v3145_v2 }
  0x5e   :  { %v981_v8 = vld [vmem:[#allocation5 + $0x1b40] sm:$0xff]  ;;  %1267 = vmatpush.msrb.mxu1 %v861_v7 }
  0x5f   :  { %v1117_v9 = vld [vmem:[#allocation5 + $0x1f80] sm:$0xff]  ;;  %1291 = vmatpush.msrb.mxu2 %v981_v8  ;;  %v3150_v8 = vld [vmem:[#allocation2 + $0x58] sm:$0xff] }
  0x60   :  { %v717_v10 = vld [vmem:[#allocation5 + $0x1300] sm:$0xff]  ;;  %1313 = vmatpush.msrb.mxu3 %v1117_v9  ;;  %v222_v9 = vld [vmem:[#allocation5 + $0x388] sm:$0xff] }
  0x61   :  { %v853_v11 = vld [vmem:[#allocation5 + $0x1740] sm:$0xff]  ;;  %1246 = vmatpush.msrb.mxu0 %v717_v10  ;;  %v358_v10 = vld [vmem:[#allocation5 + $0x7c8] sm:$0xff]  ;;  %1239 = vmatmul.f32.gmra.mxu3 %v3150_v8 }
  0x62   :  { %v973_v12 = vld [vmem:[#allocation5 + $0x1b00] sm:$0xff]  ;;  %1268 = vmatpush.msrb.mxu1 %v853_v11  ;;  %v478_v11 = vld [vmem:[#allocation5 + $0xb88] sm:$0xff] }
  0x63   :  { %v1109_v13 = vld [vmem:[#allocation5 + $0x1f40] sm:$0xff]  ;;  %1292 = vmatpush.msrb.mxu2 %v973_v12  ;;  %v614_v12 = vld [vmem:[#allocation5 + $0xfc8] sm:$0xff] }
  0x64   :  { %v709_v14 = vld [vmem:[#allocation5 + $0x12c0] sm:$0xff]  ;;  %1314 = vmatpush.msrb.mxu3 %v1109_v13  ;;  %v3153_v13 = vld [vmem:[#allocation2 + $0x48] sm:$0xff] }
  0x65   :  { %v845_v15 = vld [vmem:[#allocation5 + $0x1700] sm:$0xff]  ;;  %1247 = vmatpush.msrb.mxu0 %v709_v14  ;;  %v214_v14 = vld [vmem:[#allocation5 + $0x348] sm:$0xff]  ;;  %1193 = vmatmul.f32.gmra.mxu1 %v3153_v13 }
  0x66   :  { %v965_v16 = vld [vmem:[#allocation5 + $0x1ac0] sm:$0xff]  ;;  %1269 = vmatpush.msrb.mxu1 %v845_v15  ;;  %v350_v15 = vld [vmem:[#allocation5 + $0x788] sm:$0xff] }
  0x67   :  { %v1101_v17 = vld [vmem:[#allocation5 + $0x1f00] sm:$0xff]  ;;  %1293 = vmatpush.msrb.mxu2 %v965_v16  ;;  %v470_v16 = vld [vmem:[#allocation5 + $0xb48] sm:$0xff] }
  0x68   :  { %v701_v18 = vld [vmem:[#allocation5 + $0x1280] sm:$0xff]  ;;  %1315 = vmatpush.msrb.mxu3 %v1101_v17  ;;  %v606_v17 = vld [vmem:[#allocation5 + $0xf88] sm:$0xff] }
  0x69   :  { %v837_v19 = vld [vmem:[#allocation5 + $0x16c0] sm:$0xff]  ;;  %1248 = vmatpush.msrb.mxu0 %v701_v18  ;;  %v206_v18 = vld [vmem:[#allocation5 + $0x308] sm:$0xff] }
  0x6a   :  { %v957_v20 = vld [vmem:[#allocation5 + $0x1a80] sm:$0xff]  ;;  %1270 = vmatpush.msrb.mxu1 %v837_v19  ;;  %v342_v19 = vld [vmem:[#allocation5 + $0x748] sm:$0xff] }
  0x6b   :  { %v1093_v21 = vld [vmem:[#allocation5 + $0x1ec0] sm:$0xff]  ;;  %1294 = vmatpush.msrb.mxu2 %v957_v20  ;;  %v462_v20 = vld [vmem:[#allocation5 + $0xb08] sm:$0xff] }
  0x6c   :  { %v693_v22 = vld [vmem:[#allocation5 + $0x1240] sm:$0xff]  ;;  %1316 = vmatpush.msrb.mxu3 %v1093_v21  ;;  %v598_v21 = vld [vmem:[#allocation5 + $0xf48] sm:$0xff] }
  0x6d   :  { %v829_v23 = vld [vmem:[#allocation5 + $0x1680] sm:$0xff]  ;;  %1249 = vmatpush.msrb.mxu0 %v693_v22  ;;  %v3157_v22 = vld [vmem:[#allocation2 + $0x30] sm:$0xff] }
  0x6e   :  { %v949_v24 = vld [vmem:[#allocation5 + $0x1a40] sm:$0xff]  ;;  %1271 = vmatpush.msrb.mxu1 %v829_v23  ;;  %v198_v23 = vld [vmem:[#allocation5 + $0x2c8] sm:$0xff] }
  0x6f   :  { %v1085_v25 = vld [vmem:[#allocation5 + $0x1e80] sm:$0xff]  ;;  %1295 = vmatpush.msrb.mxu2 %v949_v24  ;;  %v334_v24 = vld [vmem:[#allocation5 + $0x708] sm:$0xff] }
  0x70   :  { %v685_v26 = vld [vmem:[#allocation5 + $0x1200] sm:$0xff]  ;;  %1317 = vmatpush.msrb.mxu3 %v1085_v25  ;;  %v454_v25 = vld [vmem:[#allocation5 + $0xac8] sm:$0xff] }
  0x71   :  { %v821_v27 = vld [vmem:[#allocation5 + $0x1640] sm:$0xff]  ;;  %1250 = vmatpush.msrb.mxu0 %v685_v26  ;;  %v590_v26 = vld [vmem:[#allocation5 + $0xf08] sm:$0xff] }
  0x72   :  { %v941_v28 = vld [vmem:[#allocation5 + $0x1a00] sm:$0xff]  ;;  %1272 = vmatpush.msrb.mxu1 %v821_v27 }
  0x73   :  { %v1077_v29 = vld [vmem:[#allocation5 + $0x1e40] sm:$0xff]  ;;  %1296 = vmatpush.msrb.mxu2 %v941_v28  ;;  %v3162_v28 = vld [vmem:[#allocation2 + $0x38] sm:$0xff] }
  0x74   :  { %v677_v30 = vld [vmem:[#allocation5 + $0x11c0] sm:$0xff]  ;;  %1318 = vmatpush.msrb.mxu3 %v1077_v29  ;;  %v190_v29 = vld [vmem:[#allocation5 + $0x288] sm:$0xff] }
  0x75   :  { %v813_v31 = vld [vmem:[#allocation5 + $0x1600] sm:$0xff]  ;;  %1251 = vmatpush.msrb.mxu0 %v677_v30  ;;  %v326_v30 = vld [vmem:[#allocation5 + $0x6c8] sm:$0xff] }
  0x76   :  { %v933_v32 = vld [vmem:[#allocation5 + $0x19c0] sm:$0xff]  ;;  %1273 = vmatpush.msrb.mxu1 %v813_v31  ;;  %v446_v31 = vld [vmem:[#allocation5 + $0xa88] sm:$0xff] }
  0x77   :  { %v1069_v33 = vld [vmem:[#allocation5 + $0x1e00] sm:$0xff]  ;;  %1297 = vmatpush.msrb.mxu2 %v933_v32  ;;  %v582_v32 = vld [vmem:[#allocation5 + $0xec8] sm:$0xff] }
  0x78   :  { %v669_v34 = vld [vmem:[#allocation5 + $0x1180] sm:$0xff]  ;;  %1319 = vmatpush.msrb.mxu3 %v1069_v33  ;;  %v3165_v33 = vld [vmem:[#allocation2 + $0x28] sm:$0xff] }
  0x79   :  { %v805_v35 = vld [vmem:[#allocation5 + $0x15c0] sm:$0xff]  ;;  %1252 = vmatpush.msrb.mxu0 %v669_v34  ;;  %v182_v34 = vld [vmem:[#allocation5 + $0x248] sm:$0xff] }
  0x7a   :  { %v925_v36 = vld [vmem:[#allocation5 + $0x1980] sm:$0xff]  ;;  %1274 = vmatpush.msrb.mxu1 %v805_v35  ;;  %v318_v35 = vld [vmem:[#allocation5 + $0x688] sm:$0xff] }
  0x7b   :  { %v1061_v37 = vld [vmem:[#allocation5 + $0x1dc0] sm:$0xff]  ;;  %1298 = vmatpush.msrb.mxu2 %v925_v36  ;;  %v438_v36 = vld [vmem:[#allocation5 + $0xa48] sm:$0xff] }
  0x7c   :  { %v661_v38 = vld [vmem:[#allocation5 + $0x1140] sm:$0xff]  ;;  %1320 = vmatpush.msrb.mxu3 %v1061_v37  ;;  %v574_v37 = vld [vmem:[#allocation5 + $0xe88] sm:$0xff] }
  0x7d   :  { %v797_v39 = vld [vmem:[#allocation5 + $0x1580] sm:$0xff]  ;;  %1253 = vmatpush.msrb.mxu0 %v661_v38  ;;  %v174_v38 = vld [vmem:[#allocation5 + $0x208] sm:$0xff] }
  0x7e   :  { %v917_v40 = vld [vmem:[#allocation5 + $0x1940] sm:$0xff]  ;;  %1275 = vmatpush.msrb.mxu1 %v797_v39  ;;  %v310_v39 = vld [vmem:[#allocation5 + $0x648] sm:$0xff] }
  0x7f   :  { %v1053_v41 = vld [vmem:[#allocation5 + $0x1d80] sm:$0xff]  ;;  %1299 = vmatpush.msrb.mxu2 %v917_v40  ;;  %v430_v40 = vld [vmem:[#allocation5 + $0xa08] sm:$0xff] }
  0x80   :  { %v653_v42 = vld [vmem:[#allocation5 + $0x1100] sm:$0xff]  ;;  %1321 = vmatpush.msrb.mxu3 %v1053_v41  ;;  %v566_v41 = vld [vmem:[#allocation5 + $0xe48] sm:$0xff] }
  0x81   :  { %v789_v43 = vld [vmem:[#allocation5 + $0x1540] sm:$0xff]  ;;  %1254 = vmatpush.msrb.mxu0 %v653_v42  ;;  %v166_v42 = vld [vmem:[#allocation5 + $0x1c8] sm:$0xff] }
  0x82   :  { %v909_v44 = vld [vmem:[#allocation5 + $0x1900] sm:$0xff]  ;;  %1276 = vmatpush.msrb.mxu1 %v789_v43  ;;  %v302_v43 = vld [vmem:[#allocation5 + $0x608] sm:$0xff] }
  0x83   :  { %v1045_v45 = vld [vmem:[#allocation5 + $0x1d40] sm:$0xff]  ;;  %1300 = vmatpush.msrb.mxu2 %v909_v44  ;;  %v422_v44 = vld [vmem:[#allocation5 + $0x9c8] sm:$0xff] }
  0x84   :  { %v645_v47 = vld [vmem:[#allocation5 + $0x10c0] sm:$0xff]  ;;  %1322 = vmatpush.msrb.mxu3 %v1045_v45  ;;  %v558_v45 = vld [vmem:[#allocation5 + $0xe08] sm:$0xff] }
  0x85   :  { %v781_v48 = vld [vmem:[#allocation5 + $0x1500] sm:$0xff]  ;;  %1255 = vmatpush.msrb.mxu0 %v645_v47  ;;  %v158_v47 = vld [vmem:[#allocation5 + $0x188] sm:$0xff] }
  0x86   :  { %v901_v49 = vld [vmem:[#allocation5 + $0x18c0] sm:$0xff]  ;;  %1277 = vmatpush.msrb.mxu1 %v781_v48  ;;  %v294_v48 = vld [vmem:[#allocation5 + $0x5c8] sm:$0xff] }
  0x87   :  { %v1037_v50 = vld [vmem:[#allocation5 + $0x1d00] sm:$0xff]  ;;  %1301 = vmatpush.msrb.mxu2 %v901_v49  ;;  %v414_v49 = vld [vmem:[#allocation5 + $0x988] sm:$0xff] }
  0x88   :  { %v3135_v51 = vld [vmem:[#allocation2] sm:$0xff]  ;;  %1323 = vmatpush.msrb.mxu3 %v1037_v50  ;;  %v550_v50 = vld [vmem:[#allocation5 + $0xdc8] sm:$0xff] }
  0x89   :  { %v637_v53 = vld [vmem:[#allocation5 + $0x1080] sm:$0xff]  ;;  %1167 = vmatmul.f32.vlgmr.msra.gmra.mxu0 %v3135_v51 }
  0x8a   :  { %v773_v54 = vld [vmem:[#allocation5 + $0x14c0] sm:$0xff]  ;;  %1256 = vmatpush.msrb.mxu0 %v637_v53  ;;  %v150_v53 = vld [vmem:[#allocation5 + $0x148] sm:$0xff] }
  0x8b   :  { %v893_v55 = vld [vmem:[#allocation5 + $0x1880] sm:$0xff]  ;;  %1278 = vmatpush.msrb.mxu1 %v773_v54  ;;  %v286_v54 = vld [vmem:[#allocation5 + $0x588] sm:$0xff] }
  0x8c   :  { %v1029_v56 = vld [vmem:[#allocation5 + $0x1cc0] sm:$0xff]  ;;  %1302 = vmatpush.msrb.mxu2 %v893_v55  ;;  %v406_v55 = vld [vmem:[#allocation5 + $0x948] sm:$0xff] }
  0x8d   :  { %v629_v58 = vld [vmem:[#allocation5 + $0x1040] sm:$0xff]  ;;  %1324 = vmatpush.msrb.mxu3 %v1029_v56  ;;  %v542_v56 = vld [vmem:[#allocation5 + $0xd88] sm:$0xff] }
  0x8e   :  { %v765_v59 = vld [vmem:[#allocation5 + $0x1480] sm:$0xff]  ;;  %1257 = vmatpush.msrb.mxu0 %v629_v58  ;;  %v142_v58 = vld [vmem:[#allocation5 + $0x108] sm:$0xff] }
  0x8f   :  { %v885_v60 = vld [vmem:[#allocation5 + $0x1840] sm:$0xff]  ;;  %1279 = vmatpush.msrb.mxu1 %v765_v59  ;;  %v278_v59 = vld [vmem:[#allocation5 + $0x548] sm:$0xff] }
  0x90   :  { %v1021_v61 = vld [vmem:[#allocation5 + $0x1c80] sm:$0xff]  ;;  %1303 = vmatpush.msrb.mxu2 %v885_v60  ;;  %v398_v60 = vld [vmem:[#allocation5 + $0x908] sm:$0xff] }
  0x91   :  { %v621_v62 = vld [vmem:[#allocation5 + $0x1000] sm:$0xff]  ;;  %1325 = vmatpush.msrb.mxu3 %v1021_v61  ;;  %v534_v61 = vld [vmem:[#allocation5 + $0xd48] sm:$0xff] }
  0x92   :  { %v757_v63 = vld [vmem:[#allocation5 + $0x1440] sm:$0xff]  ;;  %1258 = vmatpush.msrb.mxu0 %v621_v62  ;;  %v134_v62 = vld [vmem:[#allocation5 + $0xc8] sm:$0xff] }
  0x93   :  { %v877_v0 = vld [vmem:[#allocation5 + $0x1800] sm:$0xff]  ;;  %1280 = vmatpush.msrb.mxu1 %v757_v63  ;;  %v270_v63 = vld [vmem:[#allocation5 + $0x508] sm:$0xff] }
  0x94   :  { %v1013_v1 = vld [vmem:[#allocation5 + $0x1c40] sm:$0xff]  ;;  %1304 = vmatpush.msrb.mxu2 %v877_v0  ;;  %1335 = vmatpush.msra.mxu0 %v230_v3  ;;  %v390_v0 = vld [vmem:[#allocation5 + $0x8c8] sm:$0xff] }
  0x95   :  { %v749_v5 = vld [vmem:[#allocation5 + $0x1400] sm:$0xff]  ;;  %1326 = vmatpush.msrb.mxu3 %v1013_v1  ;;  %1305 = vmatmul.f32.vlgmr.msrb.gmra.mxu2 %v3157_v22  ;;  %v526_v1 = vld [vmem:[#allocation5 + $0xd08] sm:$0xff] }
  0x96   :  { %v1005_v6 = vld [vmem:[#allocation5 + $0x1c00] sm:$0xff]  ;;  %1381 = vmatpush.msra.mxu2 %v486_v4  ;;  %1281 = vmatpush.msrb.mxu1 %v749_v5  ;;  %v126_v3 = vld [vmem:[#allocation5 + $0x88] sm:$0xff] }
  0x97   :  { %v3147_v7 = vld [vmem:[#allocation2 + $0x40] sm:$0xff]  ;;  %1327 = vmatpush.msrb.mxu3 %v1005_v6  ;;  %1336 = vmatpush.msra.mxu0 %v222_v9  ;;  %v262_v4 = vld [vmem:[#allocation5 + $0x4c8] sm:$0xff] }
  0x98   :  { %1170 = vmatmul.f32.gmra.mxu0 %v3147_v7  ;;  %1358 = vmatpush.msra.mxu1 %v358_v10  ;;  %v3159_v27 = vld [vmem:[#allocation2 + $0x20] sm:$0xff]  ;;  %v382_v5 = vld [vmem:[#allocation5 + $0x888] sm:$0xff] }
  0x99   :  { %1382 = vmatpush.msra.mxu2 %v478_v11  ;;  %1404 = vmatpush.msra.mxu3 %v614_v12  ;;  %v518_v6 = vld [vmem:[#allocation5 + $0xcc8] sm:$0xff] }
  0x9a   :  { %1337 = vmatpush.msra.mxu0 %v214_v14  ;;  %1359 = vmatpush.msra.mxu1 %v350_v15  ;;  %v118_v9 = vld [vmem:[#allocation5 + $0x48] sm:$0xff] }
  0x9b   :  { %1383 = vmatpush.msra.mxu2 %v470_v16  ;;  %1405 = vmatpush.msra.mxu3 %v606_v17  ;;  %v254_v10 = vld [vmem:[#allocation5 + $0x488] sm:$0xff] }
  0x9c   :  { %1338 = vmatpush.msra.mxu0 %v206_v18  ;;  %1360 = vmatpush.msra.mxu1 %v342_v19  ;;  %v374_v11 = vld [vmem:[#allocation5 + $0x848] sm:$0xff]  ;;  %v3169_v18 = vld [vmem:[#allocation2 + $0x70] sm:$0xff] }
  0x9d   :  { %1384 = vmatpush.msra.mxu2 %v462_v20  ;;  %1406 = vmatpush.msra.mxu3 %v598_v21  ;;  %v510_v12 = vld [vmem:[#allocation5 + $0xc88] sm:$0xff] }
  0x9e   :  { %1339 = vmatpush.msra.mxu0 %v198_v23  ;;  %1361 = vmatpush.msra.mxu1 %v334_v24  ;;  %v110_v14 = vld [vmem:[#allocation5 + $0x8] sm:$0xff]  ;;  %v3171_v24 = vld [vmem:[#allocation2 + $0x60] sm:$0xff] }
  0x9f   :  { %1385 = vmatpush.msra.mxu2 %v454_v25  ;;  %1407 = vmatpush.msra.mxu3 %v590_v26  ;;  %v246_v15 = vld [vmem:[#allocation5 + $0x448] sm:$0xff]  ;;  %v3174_v25 = vld [vmem:[#allocation2 + $0x78] sm:$0xff] }
  0xa0   :  { %1259 = vmatmul.f32.vlgmr.msrb.gmra.mxu0 %v3159_v27  ;;  %1328 = vmatmul.f32.vlgmr.msrb.gmra.mxu3 %v3162_v28  ;;  %v366_v16 = vld [vmem:[#allocation5 + $0x808] sm:$0xff] }
  0xa1   :  { %1340 = vmatpush.msra.mxu0 %v190_v29  ;;  %1362 = vmatpush.msra.mxu1 %v326_v30  ;;  %v502_v17 = vld [vmem:[#allocation5 + $0xc48] sm:$0xff] }
  0xa2   :  { %1386 = vmatpush.msra.mxu2 %v446_v31  ;;  %1408 = vmatpush.msra.mxu3 %v582_v32  ;;  %v742_v19 = vld [vmem:[#allocation5 + $0x13c8] sm:$0xff] }
  0xa3   :  { %1282 = vmatmul.f32.vlgmr.msrb.gmra.mxu1 %v3165_v33  ;;  %1341 = vmatpush.msra.mxu0 %v182_v34  ;;  %v998_v20 = vld [vmem:[#allocation5 + $0x1bc8] sm:$0xff] }
  0xa4   :  { %1363 = vmatpush.msra.mxu1 %v318_v35  ;;  %1387 = vmatpush.msra.mxu2 %v438_v36  ;;  %v238_v21 = vld [vmem:[#allocation5 + $0x408] sm:$0xff] }
  0xa5   :  { %1409 = vmatpush.msra.mxu3 %v574_v37  ;;  %1342 = vmatpush.msra.mxu0 %v174_v38  ;;  %v494_v23 = vld [vmem:[#allocation5 + $0xc08] sm:$0xff] }
  0xa6   :  { %1364 = vmatpush.msra.mxu1 %v310_v39  ;;  %1388 = vmatpush.msra.mxu2 %v430_v40  ;;  %v734_v26 = vld [vmem:[#allocation5 + $0x1388] sm:$0xff] }
  0xa7   :  { %1410 = vmatpush.msra.mxu3 %v566_v41  ;;  %1343 = vmatpush.msra.mxu0 %v166_v42  ;;  %v870_v29 = vld [vmem:[#allocation5 + $0x17c8] sm:$0xff] }
  0xa8   :  { %1365 = vmatpush.msra.mxu1 %v302_v43  ;;  %1389 = vmatpush.msra.mxu2 %v422_v44  ;;  %v990_v30 = vld [vmem:[#allocation5 + $0x1b88] sm:$0xff] }
  0xa9   :  { %1411 = vmatpush.msra.mxu3 %v558_v45  ;;  %1344 = vmatpush.msra.mxu0 %v158_v47  ;;  %v1126_v31 = vld [vmem:[#allocation5 + $0x1fc8] sm:$0xff] }
  0xaa   :  { %1366 = vmatpush.msra.mxu1 %v294_v48  ;;  %1390 = vmatpush.msra.mxu2 %v414_v49  ;;  %v3177_v32 = vld [vmem:[#allocation2 + $0x68] sm:$0xff] }
  0xab   :  { %1412 = vmatpush.msra.mxu3 %v550_v50  ;;  %1345 = vmatpush.msra.mxu0 %v150_v53  ;;  %v726_v34 = vld [vmem:[#allocation5 + $0x1348] sm:$0xff] }
  0xac   :  { %1367 = vmatpush.msra.mxu1 %v286_v54  ;;  %1391 = vmatpush.msra.mxu2 %v406_v55  ;;  %v862_v35 = vld [vmem:[#allocation5 + $0x1788] sm:$0xff] }
  0xad   :  { %1413 = vmatpush.msra.mxu3 %v542_v56  ;;  %1346 = vmatpush.msra.mxu0 %v142_v58  ;;  %v982_v36 = vld [vmem:[#allocation5 + $0x1b48] sm:$0xff] }
  0xae   :  { %1368 = vmatpush.msra.mxu1 %v278_v59  ;;  %1392 = vmatpush.msra.mxu2 %v398_v60  ;;  %v1118_v37 = vld [vmem:[#allocation5 + $0x1f88] sm:$0xff] }
  0xaf   :  { %1414 = vmatpush.msra.mxu3 %v534_v61  ;;  %1347 = vmatpush.msra.mxu0 %v134_v62  ;;  %v718_v38 = vld [vmem:[#allocation5 + $0x1308] sm:$0xff] }
  0xb0   :  { %1369 = vmatpush.msra.mxu1 %v270_v63  ;;  %1393 = vmatpush.msra.mxu2 %v390_v0  ;;  %v854_v39 = vld [vmem:[#allocation5 + $0x1748] sm:$0xff] }
  0xb1   :  { %1415 = vmatpush.msra.mxu3 %v526_v1  ;;  %1348 = vmatpush.msra.mxu0 %v126_v3  ;;  %v974_v40 = vld [vmem:[#allocation5 + $0x1b08] sm:$0xff] }
  0xb2   :  { %1370 = vmatpush.msra.mxu1 %v262_v4  ;;  %1394 = vmatpush.msra.mxu2 %v382_v5  ;;  %v1110_v41 = vld [vmem:[#allocation5 + $0x1f48] sm:$0xff] }
  0xb3   :  { %1416 = vmatpush.msra.mxu3 %v518_v6  ;;  %1349 = vmatpush.msra.mxu0 %v118_v9  ;;  %v710_v42 = vld [vmem:[#allocation5 + $0x12c8] sm:$0xff] }
  0xb4   :  { %1371 = vmatpush.msra.mxu1 %v254_v10  ;;  %1395 = vmatpush.msra.mxu2 %v374_v11  ;;  %v846_v43 = vld [vmem:[#allocation5 + $0x1708] sm:$0xff] }
  0xb5   :  { %1417 = vmatpush.msra.mxu3 %v510_v12  ;;  %1350 = vmatpush.msra.mxu0 %v110_v14  ;;  %v966_v44 = vld [vmem:[#allocation5 + $0x1ac8] sm:$0xff] }
  0xb6   :  { %1372 = vmatpush.msra.mxu1 %v246_v15  ;;  %1396 = vmatpush.msra.mxu2 %v366_v16  ;;  %v1102_v45 = vld [vmem:[#allocation5 + $0x1f08] sm:$0xff] }
  0xb7   :  { %1418 = vmatpush.msra.mxu3 %v502_v17  ;;  %1308 = vmatmul.f32.gmra.mxu2 %v3169_v18  ;;  %v702_v47 = vld [vmem:[#allocation5 + $0x1288] sm:$0xff] }
  0xb8   :  { %1427 = vmatpush.msrb.mxu0 %v742_v19  ;;  %1473 = vmatpush.msrb.mxu2 %v998_v20  ;;  %v838_v48 = vld [vmem:[#allocation5 + $0x16c8] sm:$0xff] }
  0xb9   :  { %1373 = vmatpush.msra.mxu1 %v238_v21  ;;  %1419 = vmatpush.msra.mxu3 %v494_v23  ;;  %v958_v49 = vld [vmem:[#allocation5 + $0x1a88] sm:$0xff] }
  0xba   :  { %1262 = vmatmul.f32.gmra.mxu0 %v3171_v24  ;;  %1331 = vmatmul.f32.gmra.mxu3 %v3174_v25  ;;  %v1094_v50 = vld [vmem:[#allocation5 + $0x1ec8] sm:$0xff] }
  0xbb   :  { %1428 = vmatpush.msrb.mxu0 %v734_v26  ;;  %1450 = vmatpush.msrb.mxu1 %v870_v29  ;;  %v694_v53 = vld [vmem:[#allocation5 + $0x1248] sm:$0xff] }
  0xbc   :  { %1474 = vmatpush.msrb.mxu2 %v990_v30  ;;  %1496 = vmatpush.msrb.mxu3 %v1126_v31  ;;  %v830_v54 = vld [vmem:[#allocation5 + $0x1688] sm:$0xff] }
  0xbd   :  { %1285 = vmatmul.f32.gmra.mxu1 %v3177_v32  ;;  %1429 = vmatpush.msrb.mxu0 %v726_v34  ;;  %v950_v55 = vld [vmem:[#allocation5 + $0x1a48] sm:$0xff] }
  0xbe   :  { %1451 = vmatpush.msrb.mxu1 %v862_v35  ;;  %1475 = vmatpush.msrb.mxu2 %v982_v36  ;;  %v1086_v56 = vld [vmem:[#allocation5 + $0x1e88] sm:$0xff] }
  0xbf   :  { %1497 = vmatpush.msrb.mxu3 %v1118_v37  ;;  %1430 = vmatpush.msrb.mxu0 %v718_v38  ;;  %v686_v58 = vld [vmem:[#allocation5 + $0x1208] sm:$0xff] }
  0xc0   :  { %1452 = vmatpush.msrb.mxu1 %v854_v39  ;;  %1476 = vmatpush.msrb.mxu2 %v974_v40  ;;  %v822_v59 = vld [vmem:[#allocation5 + $0x1648] sm:$0xff]  ;;  %v359_v39 = vld [vmem:[#allocation5 + $0x7d0] sm:$0xff] }
  0xc1   :  { %1498 = vmatpush.msrb.mxu3 %v1110_v41  ;;  %1431 = vmatpush.msrb.mxu0 %v710_v42  ;;  %v942_v60 = vld [vmem:[#allocation5 + $0x1a08] sm:$0xff]  ;;  %v479_v40 = vld [vmem:[#allocation5 + $0xb90] sm:$0xff] }
  0xc2   :  { %1453 = vmatpush.msrb.mxu1 %v846_v43  ;;  %1477 = vmatpush.msrb.mxu2 %v966_v44  ;;  %v1078_v61 = vld [vmem:[#allocation5 + $0x1e48] sm:$0xff]  ;;  %v615_v41 = vld [vmem:[#allocation5 + $0xfd0] sm:$0xff] }
  0xc3   :  { %1499 = vmatpush.msrb.mxu3 %v1102_v45  ;;  %1432 = vmatpush.msrb.mxu0 %v702_v47  ;;  %v678_v62 = vld [vmem:[#allocation5 + $0x11c8] sm:$0xff]  ;;  %v215_v42 = vld [vmem:[#allocation5 + $0x350] sm:$0xff] }
  0xc4   :  { %1454 = vmatpush.msrb.mxu1 %v838_v48  ;;  %1478 = vmatpush.msrb.mxu2 %v958_v49  ;;  %v814_v63 = vld [vmem:[#allocation5 + $0x1608] sm:$0xff]  ;;  %v351_v43 = vld [vmem:[#allocation5 + $0x790] sm:$0xff] }
  0xc5   :  { %1500 = vmatpush.msrb.mxu3 %v1094_v50  ;;  %1433 = vmatpush.msrb.mxu0 %v694_v53  ;;  %v934_v0 = vld [vmem:[#allocation5 + $0x19c8] sm:$0xff]  ;;  %v471_v44 = vld [vmem:[#allocation5 + $0xb50] sm:$0xff] }
  0xc6   :  { %1455 = vmatpush.msrb.mxu1 %v830_v54  ;;  %1479 = vmatpush.msrb.mxu2 %v950_v55  ;;  %v1070_v1 = vld [vmem:[#allocation5 + $0x1e08] sm:$0xff]  ;;  %v607_v45 = vld [vmem:[#allocation5 + $0xf90] sm:$0xff] }
  0xc7   :  { %1501 = vmatpush.msrb.mxu3 %v1086_v56  ;;  %1434 = vmatpush.msrb.mxu0 %v686_v58  ;;  %v670_v3 = vld [vmem:[#allocation5 + $0x1188] sm:$0xff]  ;;  %v343_v47 = vld [vmem:[#allocation5 + $0x750] sm:$0xff] }
  0xc8   :  { %1456 = vmatpush.msrb.mxu1 %v822_v59  ;;  %1480 = vmatpush.msrb.mxu2 %v942_v60  ;;  %v806_v4 = vld [vmem:[#allocation5 + $0x15c8] sm:$0xff]  ;;  %v463_v48 = vld [vmem:[#allocation5 + $0xb10] sm:$0xff] }
  0xc9   :  { %1502 = vmatpush.msrb.mxu3 %v1078_v61  ;;  %1397 = vmatmul.f32.vlgmr.msra.gmra.mxu2 %v3133_v46  ;;  %v926_v5 = vld [vmem:[#allocation5 + $0x1988] sm:$0xff]  ;;  %v599_v49 = vld [vmem:[#allocation5 + $0xf50] sm:$0xff] }
  0xca   :  { %1435 = vmatpush.msrb.mxu0 %v678_v62  ;;  %1457 = vmatpush.msrb.mxu1 %v814_v63  ;;  %v1062_v6 = vld [vmem:[#allocation5 + $0x1dc8] sm:$0xff]  ;;  %v455_v50 = vld [vmem:[#allocation5 + $0xad0] sm:$0xff] }
  0xcb   :  { %1481 = vmatpush.msrb.mxu2 %v934_v0  ;;  %1503 = vmatpush.msrb.mxu3 %v1070_v1  ;;  %v662_v9 = vld [vmem:[#allocation5 + $0x1148] sm:$0xff]  ;;  %v591_v53 = vld [vmem:[#allocation5 + $0xf10] sm:$0xff] }
  0xcc   :  { %1351 = vmatmul.f32.vlgmr.msra.gmra.mxu0 %v3135_v51  ;;  %1420 = vmatmul.f32.vlgmr.msra.gmra.mxu3 %v3138_v52  ;;  %v798_v10 = vld [vmem:[#allocation5 + $0x1588] sm:$0xff]  ;;  %v327_v54 = vld [vmem:[#allocation5 + $0x6d0] sm:$0xff] }
  0xcd   :  { %1436 = vmatpush.msrb.mxu0 %v670_v3  ;;  %1458 = vmatpush.msrb.mxu1 %v806_v4  ;;  %v918_v11 = vld [vmem:[#allocation5 + $0x1948] sm:$0xff]  ;;  %v447_v55 = vld [vmem:[#allocation5 + $0xa90] sm:$0xff] }
  0xce   :  { %1482 = vmatpush.msrb.mxu2 %v926_v5  ;;  %v1054_v12 = vld [vmem:[#allocation5 + $0x1d88] sm:$0xff]  ;;  %1504 = vmatpush.msrb.mxu3 %v1062_v6  ;;  %v583_v56 = vld [vmem:[#allocation5 + $0xed0] sm:$0xff] }
  0xcf   :  { %1374 = vmatmul.f32.vlgmr.msra.gmra.mxu1 %v3141_v57  ;;  %v654_v46 = vld [vmem:[#allocation5 + $0x1108] sm:$0xff]  ;;  %1437 = vmatpush.msrb.mxu0 %v662_v9  ;;  %v183_v58 = vld [vmem:[#allocation5 + $0x250] sm:$0xff] }
  0xd0   :  { %v790_v14 = vld [vmem:[#allocation5 + $0x1548] sm:$0xff]  ;;  %1459 = vmatpush.msrb.mxu1 %v798_v10  ;;  %1483 = vmatpush.msrb.mxu2 %v918_v11  ;;  %v319_v59 = vld [vmem:[#allocation5 + $0x690] sm:$0xff] }
  0xd1   :  { %v910_v15 = vld [vmem:[#allocation5 + $0x1908] sm:$0xff]  ;;  %1505 = vmatpush.msrb.mxu3 %v1054_v12  ;;  %1438 = vmatpush.msrb.mxu0 %v654_v46  ;;  %v439_v60 = vld [vmem:[#allocation5 + $0xa50] sm:$0xff] }
  0xd2   :  { %v1046_v16 = vld [vmem:[#allocation5 + $0x1d48] sm:$0xff]  ;;  %1460 = vmatpush.msrb.mxu1 %v790_v14  ;;  %1484 = vmatpush.msrb.mxu2 %v910_v15  ;;  %v575_v61 = vld [vmem:[#allocation5 + $0xe90] sm:$0xff] }
  0xd3   :  { %v646_v51 = vld [vmem:[#allocation5 + $0x10c8] sm:$0xff]  ;;  %1506 = vmatpush.msrb.mxu3 %v1046_v16  ;;  %1400 = vmatmul.f32.gmra.mxu2 %v3145_v2  ;;  %v175_v62 = vld [vmem:[#allocation5 + $0x210] sm:$0xff] }
  0xd4   :  { %v782_v52 = vld [vmem:[#allocation5 + $0x1508] sm:$0xff]  ;;  %1439 = vmatpush.msrb.mxu0 %v646_v51  ;;  %1423 = vmatmul.f32.gmra.mxu3 %v3150_v8  ;;  %v487_v8 = vld [vmem:[#allocation5 + $0xbd0] sm:$0xff] }
  0xd5   :  { %v902_v17 = vld [vmem:[#allocation5 + $0x18c8] sm:$0xff]  ;;  %1461 = vmatpush.msrb.mxu1 %v782_v52  ;;  %1354 = vmatmul.f32.gmra.mxu0 %v3147_v7  ;;  %v231_v7 = vld [vmem:[#allocation5 + $0x3d0] sm:$0xff] }
  0xd6   :  { %v1038_v19 = vld [vmem:[#allocation5 + $0x1d08] sm:$0xff]  ;;  %1485 = vmatpush.msrb.mxu2 %v902_v17  ;;  %v311_v63 = vld [vmem:[#allocation5 + $0x650] sm:$0xff] }
  0xd7   :  { %v638_v57 = vld [vmem:[#allocation5 + $0x1088] sm:$0xff]  ;;  %1507 = vmatpush.msrb.mxu3 %v1038_v19  ;;  %1377 = vmatmul.f32.gmra.mxu1 %v3153_v13  ;;  %v223_v13 = vld [vmem:[#allocation5 + $0x390] sm:$0xff] }
  0xd8   :  { %v774_v20 = vld [vmem:[#allocation5 + $0x14c8] sm:$0xff]  ;;  %1440 = vmatpush.msrb.mxu0 %v638_v57  ;;  %v431_v0 = vld [vmem:[#allocation5 + $0xa10] sm:$0xff] }
  0xd9   :  { %v894_v21 = vld [vmem:[#allocation5 + $0x1888] sm:$0xff]  ;;  %1462 = vmatpush.msrb.mxu1 %v774_v20  ;;  %v567_v1 = vld [vmem:[#allocation5 + $0xe50] sm:$0xff] }
  0xda   :  { %v1030_v23 = vld [vmem:[#allocation5 + $0x1cc8] sm:$0xff]  ;;  %1486 = vmatpush.msrb.mxu2 %v894_v21  ;;  %v167_v3 = vld [vmem:[#allocation5 + $0x1d0] sm:$0xff] }
  0xdb   :  { %v630_v26 = vld [vmem:[#allocation5 + $0x1048] sm:$0xff]  ;;  %1508 = vmatpush.msrb.mxu3 %v1030_v23  ;;  %v303_v4 = vld [vmem:[#allocation5 + $0x610] sm:$0xff] }
  0xdc   :  { %v766_v29 = vld [vmem:[#allocation5 + $0x1488] sm:$0xff]  ;;  %1441 = vmatpush.msrb.mxu0 %v630_v26  ;;  %v423_v5 = vld [vmem:[#allocation5 + $0x9d0] sm:$0xff] }
  0xdd   :  { %v886_v30 = vld [vmem:[#allocation5 + $0x1848] sm:$0xff]  ;;  %1463 = vmatpush.msrb.mxu1 %v766_v29  ;;  %v559_v6 = vld [vmem:[#allocation5 + $0xe10] sm:$0xff] }
  0xde   :  { %v1022_v31 = vld [vmem:[#allocation5 + $0x1c88] sm:$0xff]  ;;  %1487 = vmatpush.msrb.mxu2 %v886_v30  ;;  %v159_v9 = vld [vmem:[#allocation5 + $0x190] sm:$0xff] }
  0xdf   :  { %v622_v2 = vld [vmem:[#allocation5 + $0x1008] sm:$0xff]  ;;  %1509 = vmatpush.msrb.mxu3 %v1022_v31  ;;  %v295_v10 = vld [vmem:[#allocation5 + $0x5d0] sm:$0xff] }
  0xe0   :  { %v758_v34 = vld [vmem:[#allocation5 + $0x1448] sm:$0xff]  ;;  %1442 = vmatpush.msrb.mxu0 %v622_v2  ;;  %v415_v11 = vld [vmem:[#allocation5 + $0x990] sm:$0xff] }
  0xe1   :  { %v878_v35 = vld [vmem:[#allocation5 + $0x1808] sm:$0xff]  ;;  %1464 = vmatpush.msrb.mxu1 %v758_v34  ;;  %1443 = vmatmul.f32.vlgmr.msrb.gmra.mxu0 %v3159_v27  ;;  %v199_v27 = vld [vmem:[#allocation5 + $0x2d0] sm:$0xff] }
  0xe2   :  { %v1014_v36 = vld [vmem:[#allocation5 + $0x1c48] sm:$0xff]  ;;  %1488 = vmatpush.msrb.mxu2 %v878_v35  ;;  %1519 = vmatpush.msra.mxu0 %v231_v7  ;;  %v551_v12 = vld [vmem:[#allocation5 + $0xdd0] sm:$0xff] }
  0xe3   :  { %v750_v37 = vld [vmem:[#allocation5 + $0x1408] sm:$0xff]  ;;  %1510 = vmatpush.msrb.mxu3 %v1014_v36  ;;  %1489 = vmatmul.f32.vlgmr.msrb.gmra.mxu2 %v3157_v22  ;;  %v207_v22 = vld [vmem:[#allocation5 + $0x310] sm:$0xff] }
  0xe4   :  { %v1006_v38 = vld [vmem:[#allocation5 + $0x1c08] sm:$0xff]  ;;  %1565 = vmatpush.msra.mxu2 %v487_v8  ;;  %1465 = vmatpush.msrb.mxu1 %v750_v37  ;;  %v151_v46 = vld [vmem:[#allocation5 + $0x150] sm:$0xff] }
  0xe5   :  { %1511 = vmatpush.msrb.mxu3 %v1006_v38  ;;  %1520 = vmatpush.msra.mxu0 %v223_v13  ;;  %v287_v14 = vld [vmem:[#allocation5 + $0x590] sm:$0xff] }
  0xe6   :  { %1512 = vmatmul.f32.vlgmr.msrb.gmra.mxu3 %v3162_v28  ;;  %1542 = vmatpush.msra.mxu1 %v359_v39  ;;  %v335_v28 = vld [vmem:[#allocation5 + $0x710] sm:$0xff] }
  0xe7   :  { %1566 = vmatpush.msra.mxu2 %v479_v40  ;;  %1588 = vmatpush.msra.mxu3 %v615_v41  ;;  %v407_v15 = vld [vmem:[#allocation5 + $0x950] sm:$0xff] }
  0xe8   :  { %1466 = vmatmul.f32.vlgmr.msrb.gmra.mxu1 %v3165_v33  ;;  %1521 = vmatpush.msra.mxu0 %v215_v42  ;;  %v191_v33 = vld [vmem:[#allocation5 + $0x290] sm:$0xff] }
  0xe9   :  { %1543 = vmatpush.msra.mxu1 %v351_v43  ;;  %1567 = vmatpush.msra.mxu2 %v471_v44  ;;  %v543_v16 = vld [vmem:[#allocation5 + $0xd90] sm:$0xff] }
  0xea   :  { %1589 = vmatpush.msra.mxu3 %v607_v45  ;;  %1522 = vmatpush.msra.mxu0 %v207_v22  ;;  %v143_v51 = vld [vmem:[#allocation5 + $0x110] sm:$0xff] }
  0xeb   :  { %1544 = vmatpush.msra.mxu1 %v343_v47  ;;  %1568 = vmatpush.msra.mxu2 %v463_v48  ;;  %v279_v52 = vld [vmem:[#allocation5 + $0x550] sm:$0xff] }
  0xec   :  { %1590 = vmatpush.msra.mxu3 %v599_v49  ;;  %1492 = vmatmul.f32.gmra.mxu2 %v3169_v18  ;;  %v399_v17 = vld [vmem:[#allocation5 + $0x910] sm:$0xff] }
  0xed   :  { %1523 = vmatpush.msra.mxu0 %v199_v27  ;;  %1545 = vmatpush.msra.mxu1 %v335_v28  ;;  %v535_v19 = vld [vmem:[#allocation5 + $0xd50] sm:$0xff] }
  0xee   :  { %1569 = vmatpush.msra.mxu2 %v455_v50  ;;  %1591 = vmatpush.msra.mxu3 %v591_v53  ;;  %v135_v57 = vld [vmem:[#allocation5 + $0xd0] sm:$0xff] }
  0xef   :  { %1446 = vmatmul.f32.gmra.mxu0 %v3171_v24  ;;  %1515 = vmatmul.f32.gmra.mxu3 %v3174_v25  ;;  %v271_v20 = vld [vmem:[#allocation5 + $0x510] sm:$0xff] }
  0xf0   :  { %1524 = vmatpush.msra.mxu0 %v191_v33  ;;  %1546 = vmatpush.msra.mxu1 %v327_v54  ;;  %v391_v21 = vld [vmem:[#allocation5 + $0x8d0] sm:$0xff] }
  0xf1   :  { %1570 = vmatpush.msra.mxu2 %v447_v55  ;;  %1592 = vmatpush.msra.mxu3 %v583_v56  ;;  %v527_v23 = vld [vmem:[#allocation5 + $0xd10] sm:$0xff] }
  0xf2   :  { %1469 = vmatmul.f32.gmra.mxu1 %v3177_v32  ;;  %1525 = vmatpush.msra.mxu0 %v183_v58  ;;  %v127_v26 = vld [vmem:[#allocation5 + $0x90] sm:$0xff] }
  0xf3   :  { %1547 = vmatpush.msra.mxu1 %v319_v59  ;;  %1571 = vmatpush.msra.mxu2 %v439_v60  ;;  %v263_v29 = vld [vmem:[#allocation5 + $0x4d0] sm:$0xff] }
  0xf4   :  { %1593 = vmatpush.msra.mxu3 %v575_v61  ;;  %1526 = vmatpush.msra.mxu0 %v175_v62  ;;  %v383_v30 = vld [vmem:[#allocation5 + $0x890] sm:$0xff] }
  0xf5   :  { %1548 = vmatpush.msra.mxu1 %v311_v63  ;;  %1572 = vmatpush.msra.mxu2 %v431_v0  ;;  %v519_v31 = vld [vmem:[#allocation5 + $0xcd0] sm:$0xff] }
  0xf6   :  { %1594 = vmatpush.msra.mxu3 %v567_v1  ;;  %1527 = vmatpush.msra.mxu0 %v167_v3  ;;  %v119_v2 = vld [vmem:[#allocation5 + $0x50] sm:$0xff] }
  0xf7   :  { %1549 = vmatpush.msra.mxu1 %v303_v4  ;;  %1573 = vmatpush.msra.mxu2 %v423_v5  ;;  %v255_v34 = vld [vmem:[#allocation5 + $0x490] sm:$0xff] }
  0xf8   :  { %1595 = vmatpush.msra.mxu3 %v559_v6  ;;  %1528 = vmatpush.msra.mxu0 %v159_v9  ;;  %v375_v35 = vld [vmem:[#allocation5 + $0x850] sm:$0xff] }
  0xf9   :  { %1550 = vmatpush.msra.mxu1 %v295_v10  ;;  %1574 = vmatpush.msra.mxu2 %v415_v11  ;;  %v511_v36 = vld [vmem:[#allocation5 + $0xc90] sm:$0xff] }
  0xfa   :  { %1596 = vmatpush.msra.mxu3 %v551_v12  ;;  %1529 = vmatpush.msra.mxu0 %v151_v46  ;;  %v111_v7 = vld [vmem:[#allocation5 + $0x10] sm:$0xff] }
  0xfb   :  { %1551 = vmatpush.msra.mxu1 %v287_v14  ;;  %1575 = vmatpush.msra.mxu2 %v407_v15  ;;  %v247_v8 = vld [vmem:[#allocation5 + $0x450] sm:$0xff] }
  0xfc   :  { %1597 = vmatpush.msra.mxu3 %v543_v16  ;;  %1530 = vmatpush.msra.mxu0 %v143_v51  ;;  %v367_v37 = vld [vmem:[#allocation5 + $0x810] sm:$0xff]  ;;  %v3200_v51 = vld [vmem:[#allocation2] sm:$0xff] }
  0xfd   :  { %1552 = vmatpush.msra.mxu1 %v279_v52  ;;  %1576 = vmatpush.msra.mxu2 %v399_v17  ;;  %v503_v38 = vld [vmem:[#allocation5 + $0xc50] sm:$0xff]  ;;  %v3203_v17 = vld [vmem:[#allocation2 + $0x18] sm:$0xff] }
  0xfe   :  { %1598 = vmatpush.msra.mxu3 %v535_v19  ;;  %1531 = vmatpush.msra.mxu0 %v135_v57  ;;  %v743_v13 = vld [vmem:[#allocation5 + $0x13d0] sm:$0xff] }
  0xff   :  { %1553 = vmatpush.msra.mxu1 %v271_v20  ;;  %1577 = vmatpush.msra.mxu2 %v391_v21  ;;  %v999_v39 = vld [vmem:[#allocation5 + $0x1bd0] sm:$0xff] }
 0x100   :  { %1599 = vmatpush.msra.mxu3 %v527_v23  ;;  %1532 = vmatpush.msra.mxu0 %v127_v26  ;;  %v239_v40 = vld [vmem:[#allocation5 + $0x410] sm:$0xff]  ;;  %v3206_v23 = vld [vmem:[#allocation2 + $0x8] sm:$0xff] }
 0x101   :  { %1554 = vmatpush.msra.mxu1 %v263_v29  ;;  %1578 = vmatpush.msra.mxu2 %v383_v30  ;;  %v495_v41 = vld [vmem:[#allocation5 + $0xc10] sm:$0xff] }
 0x102   :  { %1600 = vmatpush.msra.mxu3 %v519_v31  ;;  %1533 = vmatpush.msra.mxu0 %v119_v2  ;;  %v735_v42 = vld [vmem:[#allocation5 + $0x1390] sm:$0xff] }
 0x103   :  { %1555 = vmatpush.msra.mxu1 %v255_v34  ;;  %1579 = vmatpush.msra.mxu2 %v375_v35  ;;  %v871_v43 = vld [vmem:[#allocation5 + $0x17d0] sm:$0xff] }
 0x104   :  { %1601 = vmatpush.msra.mxu3 %v511_v36  ;;  %1534 = vmatpush.msra.mxu0 %v111_v7  ;;  %v991_v44 = vld [vmem:[#allocation5 + $0x1b90] sm:$0xff] }
 0x105   :  { %1556 = vmatpush.msra.mxu1 %v247_v8  ;;  %1580 = vmatpush.msra.mxu2 %v367_v37  ;;  %v1127_v45 = vld [vmem:[#allocation5 + $0x1fd0] sm:$0xff] }
 0x106   :  { %1602 = vmatpush.msra.mxu3 %v503_v38  ;;  %1611 = vmatpush.msrb.mxu0 %v743_v13  ;;  %v727_v22 = vld [vmem:[#allocation5 + $0x1350] sm:$0xff]  ;;  %v3212_v13 = vld [vmem:[#allocation2 + $0x40] sm:$0xff] }
 0x107   :  { %1657 = vmatpush.msrb.mxu2 %v999_v39  ;;  %1557 = vmatpush.msra.mxu1 %v239_v40  ;;  %v863_v47 = vld [vmem:[#allocation5 + $0x1790] sm:$0xff]  ;;  %v3215_v40 = vld [vmem:[#allocation2 + $0x58] sm:$0xff] }
 0x108   :  { %1603 = vmatpush.msra.mxu3 %v495_v41  ;;  %1612 = vmatpush.msrb.mxu0 %v735_v42  ;;  %v983_v48 = vld [vmem:[#allocation5 + $0x1b50] sm:$0xff] }
 0x109   :  { %1634 = vmatpush.msrb.mxu1 %v871_v43  ;;  %v1119_v49 = vld [vmem:[#allocation5 + $0x1f90] sm:$0xff]  ;;  %1658 = vmatpush.msrb.mxu2 %v991_v44 }
 0x10a   :  { %1680 = vmatpush.msrb.mxu3 %v1127_v45  ;;  %v719_v27 = vld [vmem:[#allocation5 + $0x1310] sm:$0xff]  ;;  %1613 = vmatpush.msrb.mxu0 %v727_v22  ;;  %v3218_v45 = vld [vmem:[#allocation2 + $0x48] sm:$0xff] }
 0x10b   :  { %v855_v28 = vld [vmem:[#allocation5 + $0x1750] sm:$0xff]  ;;  %1635 = vmatpush.msrb.mxu1 %v863_v47  ;;  %1659 = vmatpush.msrb.mxu2 %v983_v48 }
 0x10c   :  { %v975_v50 = vld [vmem:[#allocation5 + $0x1b10] sm:$0xff]  ;;  %1681 = vmatpush.msrb.mxu3 %v1119_v49  ;;  %1614 = vmatpush.msrb.mxu0 %v719_v27  ;;  %v232_v27 = vld [vmem:[#allocation5 + $0x3d8] sm:$0xff] }
 0x10d   :  { %v1111_v53 = vld [vmem:[#allocation5 + $0x1f50] sm:$0xff]  ;;  %1636 = vmatpush.msrb.mxu1 %v855_v28  ;;  %1660 = vmatpush.msrb.mxu2 %v975_v50  ;;  %v488_v28 = vld [vmem:[#allocation5 + $0xbd8] sm:$0xff] }
 0x10e   :  { %v711_v33 = vld [vmem:[#allocation5 + $0x12d0] sm:$0xff]  ;;  %1682 = vmatpush.msrb.mxu3 %v1111_v53  ;;  %1535 = vmatmul.f32.vlgmr.msra.gmra.mxu0 %v3200_v51 }
 0x10f   :  { %v847_v54 = vld [vmem:[#allocation5 + $0x1710] sm:$0xff]  ;;  %1615 = vmatpush.msrb.mxu0 %v711_v33  ;;  %1604 = vmatmul.f32.vlgmr.msra.gmra.mxu3 %v3203_v17 }
 0x110   :  { %v967_v55 = vld [vmem:[#allocation5 + $0x1ad0] sm:$0xff]  ;;  %1637 = vmatpush.msrb.mxu1 %v847_v54  ;;  %v224_v54 = vld [vmem:[#allocation5 + $0x398] sm:$0xff] }
 0x111   :  { %v1103_v56 = vld [vmem:[#allocation5 + $0x1f10] sm:$0xff]  ;;  %1661 = vmatpush.msrb.mxu2 %v967_v55  ;;  %1558 = vmatmul.f32.vlgmr.msra.gmra.mxu1 %v3206_v23  ;;  %v360_v55 = vld [vmem:[#allocation5 + $0x7d8] sm:$0xff] }
 0x112   :  { %v703_v58 = vld [vmem:[#allocation5 + $0x1290] sm:$0xff]  ;;  %1683 = vmatpush.msrb.mxu3 %v1103_v56  ;;  %v480_v56 = vld [vmem:[#allocation5 + $0xb98] sm:$0xff] }
 0x113   :  { %v839_v59 = vld [vmem:[#allocation5 + $0x16d0] sm:$0xff]  ;;  %1616 = vmatpush.msrb.mxu0 %v703_v58  ;;  %v3224_v58 = vld [vmem:[#allocation2 + $0x20] sm:$0xff] }
 0x114   :  { %v959_v60 = vld [vmem:[#allocation5 + $0x1a90] sm:$0xff]  ;;  %1638 = vmatpush.msrb.mxu1 %v839_v59  ;;  %v616_v59 = vld [vmem:[#allocation5 + $0xfd8] sm:$0xff] }
 0x115   :  { %v1095_v61 = vld [vmem:[#allocation5 + $0x1ed0] sm:$0xff]  ;;  %1662 = vmatpush.msrb.mxu2 %v959_v60  ;;  %v3227_v60 = vld [vmem:[#allocation2 + $0x38] sm:$0xff] }
 0x116   :  { %v695_v62 = vld [vmem:[#allocation5 + $0x1250] sm:$0xff]  ;;  %1684 = vmatpush.msrb.mxu3 %v1095_v61  ;;  %1538 = vmatmul.f32.gmra.mxu0 %v3212_v13  ;;  %v216_v61 = vld [vmem:[#allocation5 + $0x358] sm:$0xff] }
 0x117   :  { %v831_v63 = vld [vmem:[#allocation5 + $0x1690] sm:$0xff]  ;;  %1617 = vmatpush.msrb.mxu0 %v695_v62  ;;  %1607 = vmatmul.f32.gmra.mxu3 %v3215_v40  ;;  %v352_v62 = vld [vmem:[#allocation5 + $0x798] sm:$0xff] }
 0x118   :  { %v951_v0 = vld [vmem:[#allocation5 + $0x1a50] sm:$0xff]  ;;  %1639 = vmatpush.msrb.mxu1 %v831_v63  ;;  %v472_v63 = vld [vmem:[#allocation5 + $0xb58] sm:$0xff] }
 0x119   :  { %v1087_v1 = vld [vmem:[#allocation5 + $0x1e90] sm:$0xff]  ;;  %1663 = vmatpush.msrb.mxu2 %v951_v0  ;;  %1561 = vmatmul.f32.gmra.mxu1 %v3218_v45  ;;  %v608_v0 = vld [vmem:[#allocation5 + $0xf98] sm:$0xff] }
 0x11a   :  { %v687_v3 = vld [vmem:[#allocation5 + $0x1210] sm:$0xff]  ;;  %1685 = vmatpush.msrb.mxu3 %v1087_v1  ;;  %v3230_v1 = vld [vmem:[#allocation2 + $0x28] sm:$0xff] }
 0x11b   :  { %v823_v4 = vld [vmem:[#allocation5 + $0x1650] sm:$0xff]  ;;  %1618 = vmatpush.msrb.mxu0 %v687_v3  ;;  %v208_v3 = vld [vmem:[#allocation5 + $0x318] sm:$0xff] }
 0x11c   :  { %v943_v5 = vld [vmem:[#allocation5 + $0x1a10] sm:$0xff]  ;;  %1640 = vmatpush.msrb.mxu1 %v823_v4  ;;  %v344_v4 = vld [vmem:[#allocation5 + $0x758] sm:$0xff] }
 0x11d   :  { %v1079_v6 = vld [vmem:[#allocation5 + $0x1e50] sm:$0xff]  ;;  %1664 = vmatpush.msrb.mxu2 %v943_v5  ;;  %v464_v5 = vld [vmem:[#allocation5 + $0xb18] sm:$0xff] }
 0x11e   :  { %v679_v9 = vld [vmem:[#allocation5 + $0x11d0] sm:$0xff]  ;;  %1686 = vmatpush.msrb.mxu3 %v1079_v6  ;;  %v600_v6 = vld [vmem:[#allocation5 + $0xf58] sm:$0xff] }
 0x11f   :  { %v815_v10 = vld [vmem:[#allocation5 + $0x1610] sm:$0xff]  ;;  %1619 = vmatpush.msrb.mxu0 %v679_v9  ;;  %v200_v9 = vld [vmem:[#allocation5 + $0x2d8] sm:$0xff] }
 0x120   :  { %v935_v11 = vld [vmem:[#allocation5 + $0x19d0] sm:$0xff]  ;;  %1641 = vmatpush.msrb.mxu1 %v815_v10  ;;  %v336_v10 = vld [vmem:[#allocation5 + $0x718] sm:$0xff] }
 0x121   :  { %v1071_v12 = vld [vmem:[#allocation5 + $0x1e10] sm:$0xff]  ;;  %1665 = vmatpush.msrb.mxu2 %v935_v11  ;;  %v456_v11 = vld [vmem:[#allocation5 + $0xad8] sm:$0xff] }
 0x122   :  { %v3197_v46 = vld [vmem:[#allocation2 + $0x10] sm:$0xff]  ;;  %1687 = vmatpush.msrb.mxu3 %v1071_v12  ;;  %v592_v12 = vld [vmem:[#allocation5 + $0xf18] sm:$0xff] }
 0x123   :  { %1581 = vmatmul.f32.vlgmr.msra.gmra.mxu2 %v3197_v46  ;;  %v671_v14 = vld [vmem:[#allocation5 + $0x1190] sm:$0xff] }
 0x124   :  { %v807_v15 = vld [vmem:[#allocation5 + $0x15d0] sm:$0xff]  ;;  %1620 = vmatpush.msrb.mxu0 %v671_v14  ;;  %v192_v14 = vld [vmem:[#allocation5 + $0x298] sm:$0xff] }
 0x125   :  { %v927_v16 = vld [vmem:[#allocation5 + $0x1990] sm:$0xff]  ;;  %1642 = vmatpush.msrb.mxu1 %v807_v15  ;;  %v328_v15 = vld [vmem:[#allocation5 + $0x6d8] sm:$0xff] }
 0x126   :  { %v1063_v52 = vld [vmem:[#allocation5 + $0x1dd0] sm:$0xff]  ;;  %1666 = vmatpush.msrb.mxu2 %v927_v16  ;;  %v448_v16 = vld [vmem:[#allocation5 + $0xa98] sm:$0xff] }
 0x127   :  { %v663_v19 = vld [vmem:[#allocation5 + $0x1150] sm:$0xff]  ;;  %1688 = vmatpush.msrb.mxu3 %v1063_v52  ;;  %v584_v52 = vld [vmem:[#allocation5 + $0xed8] sm:$0xff] }
 0x128   :  { %v799_v57 = vld [vmem:[#allocation5 + $0x1590] sm:$0xff]  ;;  %1621 = vmatpush.msrb.mxu0 %v663_v19  ;;  %v184_v19 = vld [vmem:[#allocation5 + $0x258] sm:$0xff] }
 0x129   :  { %v919_v20 = vld [vmem:[#allocation5 + $0x1950] sm:$0xff]  ;;  %1643 = vmatpush.msrb.mxu1 %v799_v57  ;;  %v320_v57 = vld [vmem:[#allocation5 + $0x698] sm:$0xff] }
 0x12a   :  { %v1055_v21 = vld [vmem:[#allocation5 + $0x1d90] sm:$0xff]  ;;  %1667 = vmatpush.msrb.mxu2 %v919_v20  ;;  %v440_v20 = vld [vmem:[#allocation5 + $0xa58] sm:$0xff] }
 0x12b   :  { %v655_v26 = vld [vmem:[#allocation5 + $0x1110] sm:$0xff]  ;;  %1689 = vmatpush.msrb.mxu3 %v1055_v21  ;;  %v576_v21 = vld [vmem:[#allocation5 + $0xe98] sm:$0xff] }
 0x12c   :  { %v791_v29 = vld [vmem:[#allocation5 + $0x1550] sm:$0xff]  ;;  %1622 = vmatpush.msrb.mxu0 %v655_v26  ;;  %v312_v26 = vld [vmem:[#allocation5 + $0x658] sm:$0xff] }
 0x12d   :  { %v911_v30 = vld [vmem:[#allocation5 + $0x1910] sm:$0xff]  ;;  %1644 = vmatpush.msrb.mxu1 %v791_v29  ;;  %v432_v29 = vld [vmem:[#allocation5 + $0xa18] sm:$0xff] }
 0x12e   :  { %v1047_v31 = vld [vmem:[#allocation5 + $0x1d50] sm:$0xff]  ;;  %1668 = vmatpush.msrb.mxu2 %v911_v30  ;;  %v568_v30 = vld [vmem:[#allocation5 + $0xe58] sm:$0xff] }
 0x12f   :  { %v647_v2 = vld [vmem:[#allocation5 + $0x10d0] sm:$0xff]  ;;  %1690 = vmatpush.msrb.mxu3 %v1047_v31  ;;  %v424_v31 = vld [vmem:[#allocation5 + $0x9d8] sm:$0xff] }
 0x130   :  { %v783_v34 = vld [vmem:[#allocation5 + $0x1510] sm:$0xff]  ;;  %1623 = vmatpush.msrb.mxu0 %v647_v2  ;;  %v560_v2 = vld [vmem:[#allocation5 + $0xe18] sm:$0xff] }
 0x131   :  { %v903_v35 = vld [vmem:[#allocation5 + $0x18d0] sm:$0xff]  ;;  %1645 = vmatpush.msrb.mxu1 %v783_v34  ;;  %v160_v34 = vld [vmem:[#allocation5 + $0x198] sm:$0xff] }
 0x132   :  { %v1039_v36 = vld [vmem:[#allocation5 + $0x1d10] sm:$0xff]  ;;  %1669 = vmatpush.msrb.mxu2 %v903_v35  ;;  %v296_v35 = vld [vmem:[#allocation5 + $0x5d8] sm:$0xff] }
 0x133   :  { %v3209_v7 = vld [vmem:[#allocation2 + $0x50] sm:$0xff]  ;;  %1691 = vmatpush.msrb.mxu3 %v1039_v36  ;;  %v552_v36 = vld [vmem:[#allocation5 + $0xdd8] sm:$0xff] }
 0x134   :  { %1584 = vmatmul.f32.gmra.mxu2 %v3209_v7  ;;  %v639_v8 = vld [vmem:[#allocation5 + $0x1090] sm:$0xff] }
 0x135   :  { %v775_v37 = vld [vmem:[#allocation5 + $0x14d0] sm:$0xff]  ;;  %1624 = vmatpush.msrb.mxu0 %v639_v8  ;;  %v152_v8 = vld [vmem:[#allocation5 + $0x158] sm:$0xff] }
 0x136   :  { %v895_v38 = vld [vmem:[#allocation5 + $0x1890] sm:$0xff]  ;;  %1646 = vmatpush.msrb.mxu1 %v775_v37  ;;  %v288_v37 = vld [vmem:[#allocation5 + $0x598] sm:$0xff] }
 0x137   :  { %v1031_v39 = vld [vmem:[#allocation5 + $0x1cd0] sm:$0xff]  ;;  %1670 = vmatpush.msrb.mxu2 %v895_v38  ;;  %v408_v38 = vld [vmem:[#allocation5 + $0x958] sm:$0xff] }
 0x138   :  { %v631_v41 = vld [vmem:[#allocation5 + $0x1050] sm:$0xff]  ;;  %1692 = vmatpush.msrb.mxu3 %v1031_v39  ;;  %v544_v39 = vld [vmem:[#allocation5 + $0xd98] sm:$0xff] }
 0x139   :  { %v767_v42 = vld [vmem:[#allocation5 + $0x1490] sm:$0xff]  ;;  %1625 = vmatpush.msrb.mxu0 %v631_v41  ;;  %v144_v41 = vld [vmem:[#allocation5 + $0x118] sm:$0xff] }
 0x13a   :  { %v887_v43 = vld [vmem:[#allocation5 + $0x1850] sm:$0xff]  ;;  %1647 = vmatpush.msrb.mxu1 %v767_v42  ;;  %v280_v42 = vld [vmem:[#allocation5 + $0x558] sm:$0xff] }
 0x13b   :  { %v1023_v44 = vld [vmem:[#allocation5 + $0x1c90] sm:$0xff]  ;;  %1671 = vmatpush.msrb.mxu2 %v887_v43  ;;  %v400_v43 = vld [vmem:[#allocation5 + $0x918] sm:$0xff] }
 0x13c   :  { %v623_v22 = vld [vmem:[#allocation5 + $0x1010] sm:$0xff]  ;;  %1693 = vmatpush.msrb.mxu3 %v1023_v44  ;;  %v536_v44 = vld [vmem:[#allocation5 + $0xd58] sm:$0xff] }
 0x13d   :  { %v759_v47 = vld [vmem:[#allocation5 + $0x1450] sm:$0xff]  ;;  %1626 = vmatpush.msrb.mxu0 %v623_v22  ;;  %v136_v22 = vld [vmem:[#allocation5 + $0xd8] sm:$0xff] }
 0x13e   :  { %v879_v48 = vld [vmem:[#allocation5 + $0x1810] sm:$0xff]  ;;  %1648 = vmatpush.msrb.mxu1 %v759_v47  ;;  %1627 = vmatmul.f32.vlgmr.msrb.gmra.mxu0 %v3224_v58  ;;  %v272_v47 = vld [vmem:[#allocation5 + $0x518] sm:$0xff] }
 0x13f   :  { %v1015_v49 = vld [vmem:[#allocation5 + $0x1c50] sm:$0xff]  ;;  %1672 = vmatpush.msrb.mxu2 %v879_v48  ;;  %1703 = vmatpush.msra.mxu0 %v232_v27  ;;  %v392_v48 = vld [vmem:[#allocation5 + $0x8d8] sm:$0xff] }
 0x140   :  { %v751_v50 = vld [vmem:[#allocation5 + $0x1410] sm:$0xff]  ;;  %1694 = vmatpush.msrb.mxu3 %v1015_v49  ;;  %v528_v49 = vld [vmem:[#allocation5 + $0xd18] sm:$0xff] }
 0x141   :  { %v1007_v53 = vld [vmem:[#allocation5 + $0x1c10] sm:$0xff]  ;;  %1749 = vmatpush.msra.mxu2 %v488_v28  ;;  %1649 = vmatpush.msrb.mxu1 %v751_v50  ;;  %v128_v27 = vld [vmem:[#allocation5 + $0x98] sm:$0xff] }
 0x142   :  { %v3221_v33 = vld [vmem:[#allocation2 + $0x30] sm:$0xff]  ;;  %1695 = vmatpush.msrb.mxu3 %v1007_v53  ;;  %1704 = vmatpush.msra.mxu0 %v224_v54  ;;  %v264_v28 = vld [vmem:[#allocation5 + $0x4d8] sm:$0xff] }
 0x143   :  { %1673 = vmatmul.f32.vlgmr.msrb.gmra.mxu2 %v3221_v33  ;;  %1696 = vmatmul.f32.vlgmr.msrb.gmra.mxu3 %v3227_v60  ;;  %v384_v50 = vld [vmem:[#allocation5 + $0x898] sm:$0xff] }
 0x144   :  { %1726 = vmatpush.msra.mxu1 %v360_v55  ;;  %1750 = vmatpush.msra.mxu2 %v480_v56  ;;  %v520_v53 = vld [vmem:[#allocation5 + $0xcd8] sm:$0xff] }
 0x145   :  { %1772 = vmatpush.msra.mxu3 %v616_v59  ;;  %1650 = vmatmul.f32.vlgmr.msrb.gmra.mxu1 %v3230_v1  ;;  %v120_v54 = vld [vmem:[#allocation5 + $0x58] sm:$0xff] }
 0x146   :  { %1705 = vmatpush.msra.mxu0 %v216_v61  ;;  %1727 = vmatpush.msra.mxu1 %v352_v62  ;;  %v256_v55 = vld [vmem:[#allocation5 + $0x498] sm:$0xff] }
 0x147   :  { %1751 = vmatpush.msra.mxu2 %v472_v63  ;;  %1773 = vmatpush.msra.mxu3 %v608_v0  ;;  %v376_v56 = vld [vmem:[#allocation5 + $0x858] sm:$0xff] }
 0x148   :  { %1706 = vmatpush.msra.mxu0 %v208_v3  ;;  %1728 = vmatpush.msra.mxu1 %v344_v4  ;;  %v512_v59 = vld [vmem:[#allocation5 + $0xc98] sm:$0xff]  ;;  %v3237_v3 = vpop.f32.mrf.mxu0 }
 0x149   :  { %1752 = vmatpush.msra.mxu2 %v464_v5  ;;  %1774 = vmatpush.msra.mxu3 %v600_v6  ;;  %v112_v61 = vld [vmem:[#allocation5 + $0x18] sm:$0xff] }
 0x14a   :  { %1707 = vmatpush.msra.mxu0 %v200_v9  ;;  %1729 = vmatpush.msra.mxu1 %v336_v10  ;;  %v248_v62 = vld [vmem:[#allocation5 + $0x458] sm:$0xff] }
 0x14b   :  { %1676 = vmatmul.f32.gmra.mxu2 %v3169_v18  ;;  %1775 = vmatpush.msra.mxu3 %v592_v12  ;;  %v176_v18 = vld [vmem:[#allocation5 + $0x218] sm:$0xff]  ;;  %v3239_v12 = vpop.f32.mrf.mxu1 }
 0x14c   :  { %1753 = vmatpush.msra.mxu2 %v456_v11  ;;  %1630 = vmatmul.f32.gmra.mxu0 %v3171_v24  ;;  %v168_v24 = vld [vmem:[#allocation5 + $0x1d8] sm:$0xff] }
 0x14d   :  { %1699 = vmatmul.f32.gmra.mxu3 %v3174_v25  ;;  %1708 = vmatpush.msra.mxu0 %v192_v14  ;;  %v304_v25 = vld [vmem:[#allocation5 + $0x618] sm:$0xff] }
 0x14e   :  { %1730 = vmatpush.msra.mxu1 %v328_v15  ;;  %1754 = vmatpush.msra.mxu2 %v448_v16  ;;  %v368_v63 = vld [vmem:[#allocation5 + $0x818] sm:$0xff]  ;;  %v3241_v16 = vpop.f32.mrf.mxu2 }
 0x14f   :  { %1776 = vmatpush.msra.mxu3 %v584_v52  ;;  %1653 = vmatmul.f32.gmra.mxu1 %v3177_v32  ;;  %v416_v32 = vld [vmem:[#allocation5 + $0x998] sm:$0xff] }
 0x150   :  { %1709 = vmatpush.msra.mxu0 %v184_v19  ;;  %1731 = vmatpush.msra.mxu1 %v320_v57  ;;  %v504_v0 = vld [vmem:[#allocation5 + $0xc58] sm:$0xff] }
 0x151   :  { %1755 = vmatpush.msra.mxu2 %v440_v20  ;;  %1777 = vmatpush.msra.mxu3 %v576_v21  ;;  %v744_v4 = vld [vmem:[#allocation5 + $0x13d8] sm:$0xff] }
 0x152   :  { %1710 = vmatpush.msra.mxu0 %v176_v18  ;;  %1732 = vmatpush.msra.mxu1 %v312_v26  ;;  %v1000_v5 = vld [vmem:[#allocation5 + $0x1bd8] sm:$0xff]  ;;  %v3243_v26 = vpop.f32.mrf.mxu3 }
 0x153   :  { %1756 = vmatpush.msra.mxu2 %v432_v29  ;;  %1778 = vmatpush.msra.mxu3 %v568_v30  ;;  %v240_v6 = vld [vmem:[#allocation5 + $0x418] sm:$0xff] }
 0x154   :  { %1711 = vmatpush.msra.mxu0 %v168_v24  ;;  %1733 = vmatpush.msra.mxu1 %v304_v25  ;;  %v496_v9 = vld [vmem:[#allocation5 + $0xc18] sm:$0xff] }
 0x155   :  { %1757 = vmatpush.msra.mxu2 %v424_v31  ;;  %1779 = vmatpush.msra.mxu3 %v560_v2  ;;  %v736_v10 = vld [vmem:[#allocation5 + $0x1398] sm:$0xff] }
 0x156   :  { %1712 = vmatpush.msra.mxu0 %v160_v34  ;;  %1734 = vmatpush.msra.mxu1 %v296_v35  ;;  %v872_v11 = vld [vmem:[#allocation5 + $0x17d8] sm:$0xff]  ;;  %v3245_v34 = vpop.f32.mrf.mxu0 }
 0x157   :  { %1758 = vmatpush.msra.mxu2 %v416_v32  ;;  %1780 = vmatpush.msra.mxu3 %v552_v36  ;;  %v992_v14 = vld [vmem:[#allocation5 + $0x1b98] sm:$0xff] }
 0x158   :  { %1713 = vmatpush.msra.mxu0 %v152_v8  ;;  %1735 = vmatpush.msra.mxu1 %v288_v37  ;;  %v1128_v15 = vld [vmem:[#allocation5 + $0x1fd8] sm:$0xff] }
 0x159   :  { %1759 = vmatpush.msra.mxu2 %v408_v38  ;;  %1781 = vmatpush.msra.mxu3 %v544_v39  ;;  %v728_v52 = vld [vmem:[#allocation5 + $0x1358] sm:$0xff]  ;;  %v3247_v39 = vpop.f32.mrf.mxu1 }
 0x15a   :  { %1714 = vmatpush.msra.mxu0 %v144_v41  ;;  %1736 = vmatpush.msra.mxu1 %v280_v42  ;;  %v864_v19 = vld [vmem:[#allocation5 + $0x1798] sm:$0xff] }
 0x15b   :  { %1760 = vmatpush.msra.mxu2 %v400_v43  ;;  %1782 = vmatpush.msra.mxu3 %v536_v44  ;;  %v984_v57 = vld [vmem:[#allocation5 + $0x1b58] sm:$0xff]  ;;  %v3249_v43 = vpop.f32.mrf.mxu2 }
 0x15c   :  { %1715 = vmatpush.msra.mxu0 %v136_v22  ;;  %1737 = vmatpush.msra.mxu1 %v272_v47  ;;  %v1120_v20 = vld [vmem:[#allocation5 + $0x1f98] sm:$0xff] }
 0x15d   :  { %1761 = vmatpush.msra.mxu2 %v392_v48  ;;  %1783 = vmatpush.msra.mxu3 %v528_v49  ;;  %v720_v21 = vld [vmem:[#allocation5 + $0x1318] sm:$0xff] }
 0x15e   :  { %1716 = vmatpush.msra.mxu0 %v128_v27  ;;  %1738 = vmatpush.msra.mxu1 %v264_v28  ;;  %v856_v18 = vld [vmem:[#allocation5 + $0x1758] sm:$0xff]  ;;  %v3251_v27 = vpop.f32.mrf.mxu3 }
 0x15f   :  { %1762 = vmatpush.msra.mxu2 %v384_v50  ;;  %1784 = vmatpush.msra.mxu3 %v520_v53  ;;  %v976_v29 = vld [vmem:[#allocation5 + $0x1b18] sm:$0xff] }
 0x160   :  { %1717 = vmatpush.msra.mxu0 %v120_v54  ;;  %1739 = vmatpush.msra.mxu1 %v256_v55  ;;  %v1112_v30 = vld [vmem:[#allocation5 + $0x1f58] sm:$0xff]  ;;  %v3254_v55 = vpop.f32.mrf.mxu0 }
 0x161   :  { %1763 = vmatpush.msra.mxu2 %v376_v56  ;;  %1785 = vmatpush.msra.mxu3 %v512_v59  ;;  %v712_v24 = vld [vmem:[#allocation5 + $0x12d8] sm:$0xff] }
 0x162   :  { %1718 = vmatpush.msra.mxu0 %v112_v61  ;;  %1740 = vmatpush.msra.mxu1 %v248_v62  ;;  %v848_v25 = vld [vmem:[#allocation5 + $0x1718] sm:$0xff] }
 0x163   :  { %1764 = vmatpush.msra.mxu2 %v368_v63  ;;  %1786 = vmatpush.msra.mxu3 %v504_v0  ;;  %v968_v31 = vld [vmem:[#allocation5 + $0x1ad8] sm:$0xff]  ;;  %v3258_v0 = vpop.f32.mrf.mxu1 }
 0x164   :  { %1795 = vmatpush.msrb.mxu0 %v744_v4  ;;  %1741 = vmatpush.msra.mxu1 %v240_v6  ;;  %v1104_v2 = vld [vmem:[#allocation5 + $0x1f18] sm:$0xff] }
 0x165   :  { %1841 = vmatpush.msrb.mxu2 %v1000_v5  ;;  %1787 = vmatpush.msra.mxu3 %v496_v9  ;;  %v704_v35 = vld [vmem:[#allocation5 + $0x1298] sm:$0xff]  ;;  %v3260_v5 = vpop.f32.mrf.mxu2 }
 0x166   :  { %1796 = vmatpush.msrb.mxu0 %v736_v10  ;;  %1818 = vmatpush.msrb.mxu1 %v872_v11  ;;  %v840_v32 = vld [vmem:[#allocation5 + $0x16d8] sm:$0xff]  ;;  %v3263_v11 = vpop.f32.mrf.mxu3 }
 0x167   :  { %1842 = vmatpush.msrb.mxu2 %v992_v14  ;;  %1864 = vmatpush.msrb.mxu3 %v1128_v15  ;;  %v960_v36 = vld [vmem:[#allocation5 + $0x1a98] sm:$0xff] }
 0x168   :  { %1797 = vmatpush.msrb.mxu0 %v728_v52  ;;  %1819 = vmatpush.msrb.mxu1 %v864_v19  ;;  %v1096_v8 = vld [vmem:[#allocation5 + $0x1ed8] sm:$0xff]  ;;  %v3265_v52 = vpop.f32.mrf.mxu0 }
 0x169   :  { %1843 = vmatpush.msrb.mxu2 %v984_v57  ;;  %1865 = vmatpush.msrb.mxu3 %v1120_v20  ;;  %v696_v37 = vld [vmem:[#allocation5 + $0x1258] sm:$0xff] }
 0x16a   :  { %1798 = vmatpush.msrb.mxu0 %v720_v21  ;;  %1820 = vmatpush.msrb.mxu1 %v856_v18  ;;  %v832_v38 = vld [vmem:[#allocation5 + $0x1698] sm:$0xff] }
 0x16b   :  { %1844 = vmatpush.msrb.mxu2 %v976_v29  ;;  %1866 = vmatpush.msrb.mxu3 %v1112_v30  ;;  %v952_v41 = vld [vmem:[#allocation5 + $0x1a58] sm:$0xff]  ;;  %v3268_v21 = vpop.f32.mrf.mxu1 }
 0x16c   :  { %1799 = vmatpush.msrb.mxu0 %v712_v24  ;;  %1821 = vmatpush.msrb.mxu1 %v848_v25  ;;  %v1088_v42 = vld [vmem:[#allocation5 + $0x1e98] sm:$0xff] }
 0x16d   :  { %1845 = vmatpush.msrb.mxu2 %v968_v31  ;;  %1867 = vmatpush.msrb.mxu3 %v1104_v2  ;;  %v688_v44 = vld [vmem:[#allocation5 + $0x1218] sm:$0xff]  ;;  %v3271_v29 = vpop.f32.mrf.mxu2 }
 0x16e   :  { %1800 = vmatpush.msrb.mxu0 %v704_v35  ;;  %1822 = vmatpush.msrb.mxu1 %v840_v32  ;;  %v824_v22 = vld [vmem:[#allocation5 + $0x1658] sm:$0xff]  ;;  %v3275_v35 = vpop.f32.mrf.mxu3 }
 0x16f   :  { %1846 = vmatpush.msrb.mxu2 %v960_v36  ;;  %1868 = vmatpush.msrb.mxu3 %v1096_v8  ;;  %v944_v47 = vld [vmem:[#allocation5 + $0x1a18] sm:$0xff]  ;;  %3783 = vst [vmem:[#allocation16_spill] sm:$0xff] %v3275_v35  ;;  %v489_v8 = vld [vmem:[#allocation5 + $0xbe0] sm:$0xff]  ;;  %v978_v35 = vld [vmem:[#allocation5 + $0x1b28] sm:$0xff] }
 0x170   :  { %1801 = vmatpush.msrb.mxu0 %v696_v37  ;;  %1823 = vmatpush.msrb.mxu1 %v832_v38  ;;  %v1080_v48 = vld [vmem:[#allocation5 + $0x1e58] sm:$0xff]  ;;  %v3277_v36 = vpop.f32.mrf.mxu0 }
 0x171   :  { %1847 = vmatpush.msrb.mxu2 %v952_v41  ;;  %1869 = vmatpush.msrb.mxu3 %v1088_v42  ;;  %v680_v49 = vld [vmem:[#allocation5 + $0x11d8] sm:$0xff]  ;;  %v225_v41 = vld [vmem:[#allocation5 + $0x3a0] sm:$0xff] }
 0x172   :  { %1802 = vmatpush.msrb.mxu0 %v688_v44  ;;  %1824 = vmatpush.msrb.mxu1 %v824_v22  ;;  %v816_v28 = vld [vmem:[#allocation5 + $0x1618] sm:$0xff]  ;;  %v361_v44 = vld [vmem:[#allocation5 + $0x7e0] sm:$0xff] }
 0x173   :  { %v936_v50 = vld [vmem:[#allocation5 + $0x19d8] sm:$0xff]  ;;  %1848 = vmatpush.msrb.mxu2 %v944_v47  ;;  %1870 = vmatpush.msrb.mxu3 %v1080_v48  ;;  %v3279_v38 = vpop.f32.mrf.mxu1  ;;  %v481_v22 = vld [vmem:[#allocation5 + $0xba0] sm:$0xff] }
 0x174   :  { %v1072_v53 = vld [vmem:[#allocation5 + $0x1e18] sm:$0xff]  ;;  %1765 = vmatmul.f32.vlgmr.msra.gmra.mxu2 %v3197_v46  ;;  %1803 = vmatpush.msrb.mxu0 %v680_v49  ;;  %v617_v47 = vld [vmem:[#allocation5 + $0xfe0] sm:$0xff] }
 0x175   :  { %v672_v54 = vld [vmem:[#allocation5 + $0x1198] sm:$0xff]  ;;  %1825 = vmatpush.msrb.mxu1 %v816_v28  ;;  %1849 = vmatpush.msrb.mxu2 %v936_v50  ;;  %v3282_v42 = vpop.f32.mrf.mxu2  ;;  %v217_v48 = vld [vmem:[#allocation5 + $0x360] sm:$0xff] }
 0x176   :  { %v808_v56 = vld [vmem:[#allocation5 + $0x15d8] sm:$0xff]  ;;  %1871 = vmatpush.msrb.mxu3 %v1072_v53  ;;  %1719 = vmatmul.f32.vlgmr.msra.gmra.mxu0 %v3200_v51  ;;  %v353_v49 = vld [vmem:[#allocation5 + $0x7a0] sm:$0xff]  ;;  %v3286_v28 = vpop.f32.mrf.mxu3 }
 0x177   :  { %v928_v59 = vld [vmem:[#allocation5 + $0x1998] sm:$0xff]  ;;  %1788 = vmatmul.f32.vlgmr.msra.gmra.mxu3 %v3203_v17  ;;  %1804 = vmatpush.msrb.mxu0 %v672_v54  ;;  %v609_v50 = vld [vmem:[#allocation5 + $0xfa0] sm:$0xff] }
 0x178   :  { %v1064_v61 = vld [vmem:[#allocation5 + $0x1dd8] sm:$0xff]  ;;  %1826 = vmatpush.msrb.mxu1 %v808_v56  ;;  %1850 = vmatpush.msrb.mxu2 %v928_v59  ;;  %v209_v53 = vld [vmem:[#allocation5 + $0x320] sm:$0xff]  ;;  %v3289_v59 = vpop.f32.mrf.mxu0 }
 0x179   :  { %v664_v62 = vld [vmem:[#allocation5 + $0x1158] sm:$0xff]  ;;  %1872 = vmatpush.msrb.mxu3 %v1064_v61  ;;  %1742 = vmatmul.f32.vlgmr.msra.gmra.mxu1 %v3206_v23  ;;  %v345_v54 = vld [vmem:[#allocation5 + $0x760] sm:$0xff] }
 0x17a   :  { %v800_v63 = vld [vmem:[#allocation5 + $0x1598] sm:$0xff]  ;;  %1805 = vmatpush.msrb.mxu0 %v664_v62  ;;  %v601_v56 = vld [vmem:[#allocation5 + $0xf60] sm:$0xff] }
 0x17b   :  { %v920_v46 = vld [vmem:[#allocation5 + $0x1958] sm:$0xff]  ;;  %1827 = vmatpush.msrb.mxu1 %v800_v63  ;;  %v337_v61 = vld [vmem:[#allocation5 + $0x720] sm:$0xff] }
 0x17c   :  { %v1056_v4 = vld [vmem:[#allocation5 + $0x1d98] sm:$0xff]  ;;  %1851 = vmatpush.msrb.mxu2 %v920_v46  ;;  %v457_v62 = vld [vmem:[#allocation5 + $0xae0] sm:$0xff]  ;;  %v3291_v46 = vpop.f32.mrf.mxu1 }
 0x17d   :  { %v656_v6 = vld [vmem:[#allocation5 + $0x1118] sm:$0xff]  ;;  %1873 = vmatpush.msrb.mxu3 %v1056_v4  ;;  %1768 = vmatmul.f32.gmra.mxu2 %v3209_v7  ;;  %v593_v63 = vld [vmem:[#allocation5 + $0xf20] sm:$0xff] }
 0x17e   :  { %v792_v9 = vld [vmem:[#allocation5 + $0x1558] sm:$0xff]  ;;  %1806 = vmatpush.msrb.mxu0 %v656_v6  ;;  %v193_v4 = vld [vmem:[#allocation5 + $0x2a0] sm:$0xff]  ;;  %v3296_v6 = vpop.f32.mrf.mxu2 }
 0x17f   :  { %v912_v51 = vld [vmem:[#allocation5 + $0x1918] sm:$0xff]  ;;  %1828 = vmatpush.msrb.mxu1 %v792_v9  ;;  %1722 = vmatmul.f32.gmra.mxu0 %v3212_v13  ;;  %v329_v9 = vld [vmem:[#allocation5 + $0x6e0] sm:$0xff] }
 0x180   :  { %v1048_v17 = vld [vmem:[#allocation5 + $0x1d58] sm:$0xff]  ;;  %1852 = vmatpush.msrb.mxu2 %v912_v51  ;;  %1791 = vmatmul.f32.gmra.mxu3 %v3215_v40  ;;  %v233_v40 = vld [vmem:[#allocation5 + $0x3e0] sm:$0xff] }
 0x181   :  { %v648_v10 = vld [vmem:[#allocation5 + $0x10d8] sm:$0xff]  ;;  %1874 = vmatpush.msrb.mxu3 %v1048_v17  ;;  %1745 = vmatmul.f32.gmra.mxu1 %v3218_v45  ;;  %v449_v51 = vld [vmem:[#allocation5 + $0xaa0] sm:$0xff] }
 0x182   :  { %v784_v14 = vld [vmem:[#allocation5 + $0x1518] sm:$0xff]  ;;  %1807 = vmatpush.msrb.mxu0 %v648_v10  ;;  %v3298_v17 = vld [vmem:[#allocation2 + $0x60] sm:$0xff] }
 0x183   :  { %v904_v15 = vld [vmem:[#allocation5 + $0x18d8] sm:$0xff]  ;;  %1829 = vmatpush.msrb.mxu1 %v784_v14  ;;  %v585_v10 = vld [vmem:[#allocation5 + $0xee0] sm:$0xff] }
 0x184   :  { %v1040_v23 = vld [vmem:[#allocation5 + $0x1d18] sm:$0xff]  ;;  %1853 = vmatpush.msrb.mxu2 %v904_v15  ;;  %v185_v15 = vld [vmem:[#allocation5 + $0x260] sm:$0xff] }
 0x185   :  { %v640_v19 = vld [vmem:[#allocation5 + $0x1098] sm:$0xff]  ;;  %1875 = vmatpush.msrb.mxu3 %v1040_v23  ;;  %v321_v23 = vld [vmem:[#allocation5 + $0x6a0] sm:$0xff] }
 0x186   :  { %v776_v57 = vld [vmem:[#allocation5 + $0x14d8] sm:$0xff]  ;;  %1808 = vmatpush.msrb.mxu0 %v640_v19  ;;  %v3304_v19 = vpop.f32.mrf.mxu3 }
 0x187   :  { %v896_v20 = vld [vmem:[#allocation5 + $0x1898] sm:$0xff]  ;;  %1830 = vmatpush.msrb.mxu1 %v776_v57  ;;  %v441_v57 = vld [vmem:[#allocation5 + $0xa60] sm:$0xff] }
 0x188   :  { %v1032_v18 = vld [vmem:[#allocation5 + $0x1cd8] sm:$0xff]  ;;  %1854 = vmatpush.msrb.mxu2 %v896_v20  ;;  %v577_v20 = vld [vmem:[#allocation5 + $0xea0] sm:$0xff] }
 0x189   :  { %v632_v30 = vld [vmem:[#allocation5 + $0x1058] sm:$0xff]  ;;  %1876 = vmatpush.msrb.mxu3 %v1032_v18  ;;  %v3306_v18 = vld [vmem:[#allocation2 + $0x68] sm:$0xff] }
 0x18a   :  { %v768_v24 = vld [vmem:[#allocation5 + $0x1498] sm:$0xff]  ;;  %1809 = vmatpush.msrb.mxu0 %v632_v30  ;;  %v177_v30 = vld [vmem:[#allocation5 + $0x220] sm:$0xff] }
 0x18b   :  { %v888_v7 = vld [vmem:[#allocation5 + $0x1858] sm:$0xff]  ;;  %1831 = vmatpush.msrb.mxu1 %v768_v24  ;;  %v313_v24 = vld [vmem:[#allocation5 + $0x660] sm:$0xff] }
 0x18c   :  { %v1024_v25 = vld [vmem:[#allocation5 + $0x1c98] sm:$0xff]  ;;  %1855 = vmatpush.msrb.mxu2 %v888_v7  ;;  %v433_v7 = vld [vmem:[#allocation5 + $0xa20] sm:$0xff] }
 0x18d   :  { %v624_v31 = vld [vmem:[#allocation5 + $0x1018] sm:$0xff]  ;;  %1877 = vmatpush.msrb.mxu3 %v1024_v25  ;;  %v569_v25 = vld [vmem:[#allocation5 + $0xe60] sm:$0xff] }
 0x18e   :  { %v760_v2 = vld [vmem:[#allocation5 + $0x1458] sm:$0xff]  ;;  %1810 = vmatpush.msrb.mxu0 %v624_v31  ;;  %v3309_v31 = vpop.f32.mrf.mxu0 }
 0x18f   :  { %v880_v13 = vld [vmem:[#allocation5 + $0x1818] sm:$0xff]  ;;  %1832 = vmatpush.msrb.mxu1 %v760_v2  ;;  %1811 = vmatmul.f32.vlgmr.msrb.gmra.mxu0 %v3224_v58  ;;  %v465_v58 = vld [vmem:[#allocation5 + $0xb20] sm:$0xff] }
 0x190   :  { %v1016_v32 = vld [vmem:[#allocation5 + $0x1c58] sm:$0xff]  ;;  %1856 = vmatpush.msrb.mxu2 %v880_v13  ;;  %1887 = vmatpush.msra.mxu0 %v233_v40  ;;  %v169_v2 = vld [vmem:[#allocation5 + $0x1e0] sm:$0xff] }
 0x191   :  { %v752_v37 = vld [vmem:[#allocation5 + $0x1418] sm:$0xff]  ;;  %1878 = vmatpush.msrb.mxu3 %v1016_v32  ;;  %1857 = vmatmul.f32.vlgmr.msrb.gmra.mxu2 %v3221_v33  ;;  %v473_v33 = vld [vmem:[#allocation5 + $0xb60] sm:$0xff] }
 0x192   :  { %v1008_v45 = vld [vmem:[#allocation5 + $0x1c18] sm:$0xff]  ;;  %1933 = vmatpush.msra.mxu2 %v489_v8  ;;  %1833 = vmatpush.msrb.mxu1 %v752_v37  ;;  %v305_v13 = vld [vmem:[#allocation5 + $0x620] sm:$0xff] }
 0x193   :  { %1879 = vmatpush.msrb.mxu3 %v1008_v45  ;;  %1888 = vmatpush.msra.mxu0 %v225_v41  ;;  %v3301_v14 = vld [vmem:[#allocation2 + $0x78] sm:$0xff]  ;;  %v425_v32 = vld [vmem:[#allocation5 + $0x9e0] sm:$0xff]  ;;  %v3311_v45 = vpop.f32.mrf.mxu1 }
 0x194   :  { %1880 = vmatmul.f32.vlgmr.msrb.gmra.mxu3 %v3227_v60  ;;  %1910 = vmatpush.msra.mxu1 %v361_v44  ;;  %v201_v60 = vld [vmem:[#allocation5 + $0x2e0] sm:$0xff] }
 0x195   :  { %1934 = vmatpush.msra.mxu2 %v481_v22  ;;  %1956 = vmatpush.msra.mxu3 %v617_v47  ;;  %v561_v40 = vld [vmem:[#allocation5 + $0xe20] sm:$0xff]  ;;  %v3313_v22 = vpop.f32.mrf.mxu2 }
 0x196   :  { %1834 = vmatmul.f32.vlgmr.msrb.gmra.mxu1 %v3230_v1  ;;  %1889 = vmatpush.msra.mxu0 %v217_v48  ;;  %v3293_v1 = vld [vmem:[#allocation2 + $0x70] sm:$0xff]  ;;  %v161_v8 = vld [vmem:[#allocation5 + $0x1a0] sm:$0xff] }
 0x197   :  { %1911 = vmatpush.msra.mxu1 %v353_v49  ;;  %1935 = vmatpush.msra.mxu2 %v473_v33  ;;  %v297_v37 = vld [vmem:[#allocation5 + $0x5e0] sm:$0xff] }
 0x198   :  { %1957 = vmatpush.msra.mxu3 %v609_v50  ;;  %1890 = vmatpush.msra.mxu0 %v209_v53  ;;  %v417_v41 = vld [vmem:[#allocation5 + $0x9a0] sm:$0xff] }
 0x199   :  { %1912 = vmatpush.msra.mxu1 %v345_v54  ;;  %1936 = vmatpush.msra.mxu2 %v465_v58  ;;  %v553_v44 = vld [vmem:[#allocation5 + $0xde0] sm:$0xff]  ;;  %v3315_v54 = vpop.f32.mrf.mxu3 }
 0x19a   :  { %1958 = vmatpush.msra.mxu3 %v601_v56  ;;  %1860 = vmatmul.f32.gmra.mxu2 %v3293_v1  ;;  %v153_v47 = vld [vmem:[#allocation5 + $0x160] sm:$0xff] }
 0x19b   :  { %1891 = vmatpush.msra.mxu0 %v201_v60  ;;  %1913 = vmatpush.msra.mxu1 %v337_v61  ;;  %v289_v48 = vld [vmem:[#allocation5 + $0x5a0] sm:$0xff] }
 0x19c   :  { %1937 = vmatpush.msra.mxu2 %v457_v62  ;;  %1959 = vmatpush.msra.mxu3 %v593_v63  ;;  %v409_v49 = vld [vmem:[#allocation5 + $0x960] sm:$0xff] }
 0x19d   :  { %1814 = vmatmul.f32.gmra.mxu0 %v3298_v17  ;;  %1883 = vmatmul.f32.gmra.mxu3 %v3301_v14  ;;  %v545_v33 = vld [vmem:[#allocation5 + $0xda0] sm:$0xff] }
 0x19e   :  { %1892 = vmatpush.msra.mxu0 %v193_v4  ;;  %1914 = vmatpush.msra.mxu1 %v329_v9  ;;  %v145_v50 = vld [vmem:[#allocation5 + $0x120] sm:$0xff]  ;;  %v3317_v4 = vpop.f32.mrf.mxu0 }
 0x19f   :  { %1938 = vmatpush.msra.mxu2 %v449_v51  ;;  %1960 = vmatpush.msra.mxu3 %v585_v10  ;;  %v281_v53 = vld [vmem:[#allocation5 + $0x560] sm:$0xff] }
 0x1a0   :  { %1837 = vmatmul.f32.gmra.mxu1 %v3306_v18  ;;  %1893 = vmatpush.msra.mxu0 %v185_v15  ;;  %v401_v58 = vld [vmem:[#allocation5 + $0x920] sm:$0xff] }
 0x1a1   :  { %1915 = vmatpush.msra.mxu1 %v321_v23  ;;  %1939 = vmatpush.msra.mxu2 %v441_v57  ;;  %v537_v56 = vld [vmem:[#allocation5 + $0xd60] sm:$0xff] }
 0x1a2   :  { %1961 = vmatpush.msra.mxu3 %v577_v20  ;;  %1894 = vmatpush.msra.mxu0 %v177_v30  ;;  %v137_v60 = vld [vmem:[#allocation5 + $0xe0] sm:$0xff]  ;;  %v3319_v20 = vpop.f32.mrf.mxu1 }
 0x1a3   :  { %1916 = vmatpush.msra.mxu1 %v313_v24  ;;  %1940 = vmatpush.msra.mxu2 %v433_v7  ;;  %v273_v61 = vld [vmem:[#allocation5 + $0x520] sm:$0xff] }
 0x1a4   :  { %1962 = vmatpush.msra.mxu3 %v569_v25  ;;  %1895 = vmatpush.msra.mxu0 %v169_v2  ;;  %v393_v62 = vld [vmem:[#allocation5 + $0x8e0] sm:$0xff]  ;;  %v3323_v25 = vpop.f32.mrf.mxu2 }
 0x1a5   :  { %1917 = vmatpush.msra.mxu1 %v305_v13  ;;  %1941 = vmatpush.msra.mxu2 %v425_v32  ;;  %v529_v63 = vld [vmem:[#allocation5 + $0xd20] sm:$0xff] }
 0x1a6   :  { %1963 = vmatpush.msra.mxu3 %v561_v40  ;;  %1896 = vmatpush.msra.mxu0 %v161_v8  ;;  %v129_v9 = vld [vmem:[#allocation5 + $0xa0] sm:$0xff] }
 0x1a7   :  { %1918 = vmatpush.msra.mxu1 %v297_v37  ;;  %1942 = vmatpush.msra.mxu2 %v417_v41  ;;  %v265_v51 = vld [vmem:[#allocation5 + $0x4e0] sm:$0xff] }
 0x1a8   :  { %1964 = vmatpush.msra.mxu3 %v553_v44  ;;  %1897 = vmatpush.msra.mxu0 %v153_v47  ;;  %v385_v10 = vld [vmem:[#allocation5 + $0x8a0] sm:$0xff]  ;;  %v3326_v44 = vpop.f32.mrf.mxu3 }
 0x1a9   :  { %1919 = vmatpush.msra.mxu1 %v289_v48  ;;  %1943 = vmatpush.msra.mxu2 %v409_v49  ;;  %v521_v15 = vld [vmem:[#allocation5 + $0xce0] sm:$0xff]  ;;  %3784 = vst [vmem:[#allocation17_spill] sm:$0xff] %v3326_v44  ;;  %v1114_v44 = vld [vmem:[#allocation5 + $0x1f68] sm:$0xff] }
 0x1aa   :  { %1965 = vmatpush.msra.mxu3 %v545_v33  ;;  %1898 = vmatpush.msra.mxu0 %v145_v50  ;;  %v121_v23 = vld [vmem:[#allocation5 + $0x60] sm:$0xff]  ;;  %v1536_v50 = vpop.f32.mrf.mxu0 }
 0x1ab   :  { %1920 = vmatpush.msra.mxu1 %v281_v53  ;;  %1944 = vmatpush.msra.mxu2 %v401_v58  ;;  %v257_v57 = vld [vmem:[#allocation5 + $0x4a0] sm:$0xff] }
 0x1ac   :  { %1966 = vmatpush.msra.mxu3 %v537_v56  ;;  %1899 = vmatpush.msra.mxu0 %v137_v60  ;;  %v377_v30 = vld [vmem:[#allocation5 + $0x860] sm:$0xff] }
 0x1ad   :  { %1921 = vmatpush.msra.mxu1 %v273_v61  ;;  %1945 = vmatpush.msra.mxu2 %v393_v62  ;;  %v513_v24 = vld [vmem:[#allocation5 + $0xca0] sm:$0xff] }
 0x1ae   :  { %1967 = vmatpush.msra.mxu3 %v529_v63  ;;  %1900 = vmatpush.msra.mxu0 %v129_v9  ;;  %v3321_v7 = vld [vmem:[#allocation7] sm:$0xff]  ;;  %v1559_v9 = vpop.f32.mrf.mxu1 }
 0x1af   :  { %1922 = vmatpush.msra.mxu1 %v265_v51  ;;  %1946 = vmatpush.msra.mxu2 %v385_v10  ;;  %v113_v2 = vld [vmem:[#allocation5 + $0x20] sm:$0xff]  ;;  %v1137_v8 = vperm.slane %v3321_v7, 2 }
 0x1b0   :  { %1968 = vmatpush.msra.mxu3 %v521_v15  ;;  %v249_v13 = vld [vmem:[#allocation5 + $0x460] sm:$0xff]  ;;  %1901 = vmatpush.msra.mxu0 %v121_v23  ;;  %v1582_v23 = vpop.f32.mrf.mxu2 }
 0x1b1   :  { %1923 = vmatpush.msra.mxu1 %v257_v57  ;;  %v369_v32 = vld [vmem:[#allocation5 + $0x820] sm:$0xff]  ;;  %1947 = vmatpush.msra.mxu2 %v377_v30  ;;  %v1537_v56 = vadd.f32 %v1536_v50, %v1137_v8 }
 0x1b2   :  { %v505_v40 = vld [vmem:[#allocation5 + $0xc60] sm:$0xff]  ;;  %1969 = vmatpush.msra.mxu3 %v513_v24  ;;  %1902 = vmatpush.msra.mxu0 %v113_v2 }
 0x1b3   :  { %v745_v37 = vld [vmem:[#allocation5 + $0x13e0] sm:$0xff]  ;;  %1924 = vmatpush.msra.mxu1 %v249_v13  ;;  %1948 = vmatpush.msra.mxu2 %v369_v32  ;;  %v1560_v15 = vadd.f32 %v1559_v9, %v1537_v56 }
 0x1b4   :  { %v1001_v41 = vld [vmem:[#allocation5 + $0x1be0] sm:$0xff]  ;;  %1970 = vmatpush.msra.mxu3 %v505_v40  ;;  %1979 = vmatpush.msrb.mxu0 %v745_v37  ;;  %v1605_v37 = vpop.f32.mrf.mxu3 }
 0x1b5   :  { %v241_v47 = vld [vmem:[#allocation5 + $0x420] sm:$0xff]  ;;  %2025 = vmatpush.msrb.mxu2 %v1001_v41  ;;  %v1583_v13 = vadd.f32 %v1582_v23, %v1560_v15 }
 0x1b6   :  { %v497_v48 = vld [vmem:[#allocation5 + $0xc20] sm:$0xff]  ;;  %1925 = vmatpush.msra.mxu1 %v241_v47 }
 0x1b7   :  { %v737_v49 = vld [vmem:[#allocation5 + $0x13a0] sm:$0xff]  ;;  %1971 = vmatpush.msra.mxu3 %v497_v48  ;;  %v1606_v48 = vadd.f32 %v1605_v37, %v1583_v13  ;;  %v3332_v13 = vld [vmem:[#allocation2 + $0x10] sm:$0xff] }
 0x1b8   :  { %v873_v33 = vld [vmem:[#allocation5 + $0x17e0] sm:$0xff]  ;;  %1980 = vmatpush.msrb.mxu0 %v737_v49  ;;  %1949 = vmatmul.f32.vlgmr.msra.gmra.mxu2 %v3332_v13 }
 0x1b9   :  { %v993_v53 = vld [vmem:[#allocation5 + $0x1ba0] sm:$0xff]  ;;  %2002 = vmatpush.msrb.mxu1 %v873_v33 }
 0x1ba   :  { %v1129_v58 = vld [vmem:[#allocation5 + $0x1fe0] sm:$0xff]  ;;  %2026 = vmatpush.msrb.mxu2 %v993_v53 }
 0x1bb   :  { %v729_v60 = vld [vmem:[#allocation5 + $0x1360] sm:$0xff]  ;;  %2048 = vmatpush.msrb.mxu3 %v1129_v58  ;;  %v1539_v58 = vpop.f32.mrf.mxu0 }
 0x1bc   :  { %v865_v61 = vld [vmem:[#allocation5 + $0x17a0] sm:$0xff]  ;;  %1981 = vmatpush.msrb.mxu0 %v729_v60 }
 0x1bd   :  { %v985_v62 = vld [vmem:[#allocation5 + $0x1b60] sm:$0xff]  ;;  %2003 = vmatpush.msrb.mxu1 %v865_v61  ;;  %v1540_v61 = vadd.f32 %v1539_v58, %v1137_v8 }
 0x1be   :  { %v1121_v63 = vld [vmem:[#allocation5 + $0x1fa0] sm:$0xff]  ;;  %2027 = vmatpush.msrb.mxu2 %v985_v62 }
 0x1bf   :  { %v721_v51 = vld [vmem:[#allocation5 + $0x1320] sm:$0xff]  ;;  %2049 = vmatpush.msrb.mxu3 %v1121_v63 }
 0x1c0   :  { %v857_v10 = vld [vmem:[#allocation5 + $0x1760] sm:$0xff]  ;;  %1982 = vmatpush.msrb.mxu0 %v721_v51 }
 0x1c1   :  { %v977_v57 = vld [vmem:[#allocation5 + $0x1b20] sm:$0xff]  ;;  %2004 = vmatpush.msrb.mxu1 %v857_v10  ;;  %v1562_v10 = vpop.f32.mrf.mxu1 }
 0x1c2   :  { %v1113_v30 = vld [vmem:[#allocation5 + $0x1f60] sm:$0xff]  ;;  %2028 = vmatpush.msrb.mxu2 %v977_v57  ;;  %v1563_v23 = vadd.f32 %v1562_v10, %v1540_v61  ;;  %v1585_v57 = vpop.f32.mrf.mxu2 }
 0x1c3   :  { %v713_v24 = vld [vmem:[#allocation5 + $0x12e0] sm:$0xff]  ;;  %2050 = vmatpush.msrb.mxu3 %v1113_v30 }
 0x1c4   :  { %v849_v2 = vld [vmem:[#allocation5 + $0x1720] sm:$0xff]  ;;  %1983 = vmatpush.msrb.mxu0 %v713_v24 }
 0x1c5   :  { %v969_v32 = vld [vmem:[#allocation5 + $0x1ae0] sm:$0xff]  ;;  %2005 = vmatpush.msrb.mxu1 %v849_v2  ;;  %v1586_v2 = vadd.f32 %v1585_v57, %v1563_v23 }
 0x1c6   :  { %v1105_v40 = vld [vmem:[#allocation5 + $0x1f20] sm:$0xff]  ;;  %2029 = vmatpush.msrb.mxu2 %v969_v32 }
 0x1c7   :  { %v705_v41 = vld [vmem:[#allocation5 + $0x12a0] sm:$0xff]  ;;  %2051 = vmatpush.msrb.mxu3 %v1105_v40  ;;  %v1608_v40 = vpop.f32.mrf.mxu3 }
 0x1c8   :  { %v841_v47 = vld [vmem:[#allocation5 + $0x16e0] sm:$0xff]  ;;  %1984 = vmatpush.msrb.mxu0 %v705_v41 }
 0x1c9   :  { %v961_v49 = vld [vmem:[#allocation5 + $0x1aa0] sm:$0xff]  ;;  %2006 = vmatpush.msrb.mxu1 %v841_v47  ;;  %v3335_v47 = vadd.f32 %v1608_v40, %v1586_v2  ;;  %v1651_v23 = vpop.f32.mrf.mxu1  ;;  %v3346_v40 = vld [vmem:[#allocation2 + $0x50] sm:$0xff] }
 0x1ca   :  { %v1097_v33 = vld [vmem:[#allocation5 + $0x1ee0] sm:$0xff]  ;;  %2030 = vmatpush.msrb.mxu2 %v961_v49 }
 0x1cb   :  { %v697_v50 = vld [vmem:[#allocation5 + $0x1260] sm:$0xff]  ;;  %2052 = vmatpush.msrb.mxu3 %v1097_v33  ;;  %1952 = vmatmul.f32.gmra.mxu2 %v3346_v40 }
 0x1cc   :  { %v833_v53 = vld [vmem:[#allocation5 + $0x16a0] sm:$0xff]  ;;  %1985 = vmatpush.msrb.mxu0 %v697_v50  ;;  %v3340_v50 = vld [vmem:[#allocation2 + $0x18] sm:$0xff] }
 0x1cd   :  { %v953_v56 = vld [vmem:[#allocation5 + $0x1a60] sm:$0xff]  ;;  %2007 = vmatpush.msrb.mxu1 %v833_v53  ;;  %1972 = vmatmul.f32.vlgmr.msra.gmra.mxu3 %v3340_v50 }
 0x1ce   :  { %v1089_v60 = vld [vmem:[#allocation5 + $0x1ea0] sm:$0xff]  ;;  %2031 = vmatpush.msrb.mxu2 %v953_v56  ;;  %v1628_v56 = vpop.f32.mrf.mxu0 }
 0x1cf   :  { %v689_v62 = vld [vmem:[#allocation5 + $0x1220] sm:$0xff]  ;;  %2053 = vmatpush.msrb.mxu3 %v1089_v60 }
 0x1d0   :  { %v825_v63 = vld [vmem:[#allocation5 + $0x1660] sm:$0xff]  ;;  %1986 = vmatpush.msrb.mxu0 %v689_v62  ;;  %v1629_v62 = vadd.f32 %v1628_v56, %v1606_v48 }
 0x1d1   :  { %v945_v9 = vld [vmem:[#allocation5 + $0x1a20] sm:$0xff]  ;;  %2008 = vmatpush.msrb.mxu1 %v825_v63  ;;  %v3343_v63 = vld [vmem:[#allocation2 + $0x8] sm:$0xff] }
 0x1d2   :  { %v1081_v51 = vld [vmem:[#allocation5 + $0x1e60] sm:$0xff]  ;;  %2032 = vmatpush.msrb.mxu2 %v945_v9  ;;  %1926 = vmatmul.f32.vlgmr.msra.gmra.mxu1 %v3343_v63 }
 0x1d3   :  { %v681_v15 = vld [vmem:[#allocation5 + $0x11e0] sm:$0xff]  ;;  %2054 = vmatpush.msrb.mxu3 %v1081_v51 }
 0x1d4   :  { %v817_v30 = vld [vmem:[#allocation5 + $0x1620] sm:$0xff]  ;;  %1987 = vmatpush.msrb.mxu0 %v681_v15 }
 0x1d5   :  { %v937_v24 = vld [vmem:[#allocation5 + $0x19e0] sm:$0xff]  ;;  %2009 = vmatpush.msrb.mxu1 %v817_v30  ;;  %v1652_v30 = vadd.f32 %v1651_v23, %v1629_v62 }
 0x1d6   :  { %v1073_v8 = vld [vmem:[#allocation5 + $0x1e20] sm:$0xff]  ;;  %2033 = vmatpush.msrb.mxu2 %v937_v24  ;;  %v1674_v24 = vpop.f32.mrf.mxu2 }
 0x1d7   :  { %v673_v32 = vld [vmem:[#allocation5 + $0x11a0] sm:$0xff]  ;;  %2055 = vmatpush.msrb.mxu3 %v1073_v8 }
 0x1d8   :  { %v809_v37 = vld [vmem:[#allocation5 + $0x15e0] sm:$0xff]  ;;  %1988 = vmatpush.msrb.mxu0 %v673_v32  ;;  %v1675_v32 = vadd.f32 %v1674_v24, %v1652_v30 }
 0x1d9   :  { %v929_v41 = vld [vmem:[#allocation5 + $0x19a0] sm:$0xff]  ;;  %2010 = vmatpush.msrb.mxu1 %v809_v37 }
 0x1da   :  { %v3337_v49 = vld [vmem:[#allocation2] sm:$0xff]  ;;  %2034 = vmatpush.msrb.mxu2 %v929_v41  ;;  %v1697_v41 = vpop.f32.mrf.mxu3 }
 0x1db   :  { %1903 = vmatmul.f32.vlgmr.msra.gmra.mxu0 %v3337_v49  ;;  %v1065_v33 = vld [vmem:[#allocation5 + $0x1de0] sm:$0xff] }
 0x1dc   :  { %v665_v53 = vld [vmem:[#allocation5 + $0x1160] sm:$0xff]  ;;  %2056 = vmatpush.msrb.mxu3 %v1065_v33 }
 0x1dd   :  { %v801_v58 = vld [vmem:[#allocation5 + $0x15a0] sm:$0xff]  ;;  %1989 = vmatpush.msrb.mxu0 %v665_v53 }
 0x1de   :  { %v921_v60 = vld [vmem:[#allocation5 + $0x1960] sm:$0xff]  ;;  %2011 = vmatpush.msrb.mxu1 %v801_v58  ;;  %v3349_v58 = vadd.f32 %v1697_v41, %v1675_v32  ;;  %v234_v32 = vld [vmem:[#allocation5 + $0x3e8] sm:$0xff]  ;;  %v1677_v41 = vpop.f32.mrf.mxu2 }
 0x1df   :  { %v1057_v61 = vld [vmem:[#allocation5 + $0x1da0] sm:$0xff]  ;;  %2035 = vmatpush.msrb.mxu2 %v921_v60 }
 0x1e0   :  { %v657_v9 = vld [vmem:[#allocation5 + $0x1120] sm:$0xff]  ;;  %2057 = vmatpush.msrb.mxu3 %v1057_v61  ;;  %v3354_v61 = vld [vmem:[#allocation2 + $0x58] sm:$0xff] }
 0x1e1   :  { %v793_v51 = vld [vmem:[#allocation5 + $0x1560] sm:$0xff]  ;;  %1990 = vmatpush.msrb.mxu0 %v657_v9  ;;  %1975 = vmatmul.f32.gmra.mxu3 %v3354_v61 }
 0x1e2   :  { %v913_v10 = vld [vmem:[#allocation5 + $0x1920] sm:$0xff]  ;;  %2012 = vmatpush.msrb.mxu1 %v793_v51  ;;  %v1631_v51 = vpop.f32.mrf.mxu0 }
 0x1e3   :  { %v1049_v15 = vld [vmem:[#allocation5 + $0x1d60] sm:$0xff]  ;;  %2036 = vmatpush.msrb.mxu2 %v913_v10  ;;  %v1632_v23 = vadd.f32 %v1631_v51, %v3335_v47  ;;  %v490_v47 = vld [vmem:[#allocation5 + $0xbe8] sm:$0xff]  ;;  %v3361_v51 = vld [vmem:[#allocation2 + $0x30] sm:$0xff] }
 0x1e4   :  { %v649_v57 = vld [vmem:[#allocation5 + $0x10e0] sm:$0xff]  ;;  %2058 = vmatpush.msrb.mxu3 %v1049_v15 }
 0x1e5   :  { %v785_v48 = vld [vmem:[#allocation5 + $0x1520] sm:$0xff]  ;;  %1991 = vmatpush.msrb.mxu0 %v649_v57  ;;  %v3358_v57 = vld [vmem:[#allocation2 + $0x48] sm:$0xff] }
 0x1e6   :  { %v905_v8 = vld [vmem:[#allocation5 + $0x18e0] sm:$0xff]  ;;  %2013 = vmatpush.msrb.mxu1 %v785_v48 }
 0x1e7   :  { %v1041_v2 = vld [vmem:[#allocation5 + $0x1d20] sm:$0xff]  ;;  %2037 = vmatpush.msrb.mxu2 %v905_v8  ;;  %1929 = vmatmul.f32.gmra.mxu1 %v3358_v57 }
 0x1e8   :  { %v641_v37 = vld [vmem:[#allocation5 + $0x10a0] sm:$0xff]  ;;  %2059 = vmatpush.msrb.mxu3 %v1041_v2  ;;  %v1654_v2 = vpop.f32.mrf.mxu1 }
 0x1e9   :  { %v777_v33 = vld [vmem:[#allocation5 + $0x14e0] sm:$0xff]  ;;  %1992 = vmatpush.msrb.mxu0 %v641_v37  ;;  %v1655_v37 = vadd.f32 %v1654_v2, %v1632_v23  ;;  %v354_v2 = vld [vmem:[#allocation5 + $0x7a8] sm:$0xff] }
 0x1ea   :  { %v897_v53 = vld [vmem:[#allocation5 + $0x18a0] sm:$0xff]  ;;  %2014 = vmatpush.msrb.mxu1 %v777_v33 }
 0x1eb   :  { %v3351_v56 = vld [vmem:[#allocation2 + $0x40] sm:$0xff]  ;;  %2038 = vmatpush.msrb.mxu2 %v897_v53 }
 0x1ec   :  { %1906 = vmatmul.f32.gmra.mxu0 %v3351_v56  ;;  %v1033_v60 = vld [vmem:[#allocation5 + $0x1ce0] sm:$0xff] }
 0x1ed   :  { %v633_v62 = vld [vmem:[#allocation5 + $0x1060] sm:$0xff]  ;;  %2060 = vmatpush.msrb.mxu3 %v1033_v60  ;;  %v1678_v60 = vadd.f32 %v1677_v41, %v1655_v37  ;;  %v610_v37 = vld [vmem:[#allocation5 + $0xfa8] sm:$0xff] }
 0x1ee   :  { %v769_v9 = vld [vmem:[#allocation5 + $0x14a0] sm:$0xff]  ;;  %1993 = vmatpush.msrb.mxu0 %v633_v62  ;;  %v226_v62 = vld [vmem:[#allocation5 + $0x3a8] sm:$0xff] }
 0x1ef   :  { %v889_v10 = vld [vmem:[#allocation5 + $0x1860] sm:$0xff]  ;;  %2015 = vmatpush.msrb.mxu1 %v769_v9  ;;  %v1700_v9 = vpop.f32.mrf.mxu3  ;;  %v3372_v41 = vld [vmem:[#allocation2 + $0x28] sm:$0xff] }
 0x1f0   :  { %v1025_v15 = vld [vmem:[#allocation5 + $0x1ca0] sm:$0xff]  ;;  %2039 = vmatpush.msrb.mxu2 %v889_v10  ;;  %v362_v10 = vld [vmem:[#allocation5 + $0x7e8] sm:$0xff]  ;;  %v3364_v23 = vadd.f32 %v1700_v9, %v1678_v60 }
 0x1f1   :  { %v625_v30 = vld [vmem:[#allocation5 + $0x1020] sm:$0xff]  ;;  %2061 = vmatpush.msrb.mxu3 %v1025_v15  ;;  %v482_v15 = vld [vmem:[#allocation5 + $0xba8] sm:$0xff] }
 0x1f2   :  { %v761_v24 = vld [vmem:[#allocation5 + $0x1460] sm:$0xff]  ;;  %1994 = vmatpush.msrb.mxu0 %v625_v30  ;;  %3785 = vst [vmem:[#allocation18_spill] sm:$0xff] %v3364_v23  ;;  %v602_v60 = vld [vmem:[#allocation5 + $0xf68] sm:$0xff] }
 0x1f3   :  { %v881_v48 = vld [vmem:[#allocation5 + $0x1820] sm:$0xff]  ;;  %2016 = vmatpush.msrb.mxu1 %v761_v24  ;;  %v618_v24 = vld [vmem:[#allocation5 + $0xfe8] sm:$0xff] }
 0x1f4   :  { %v1017_v8 = vld [vmem:[#allocation5 + $0x1c60] sm:$0xff]  ;;  %2040 = vmatpush.msrb.mxu2 %v881_v48  ;;  %2071 = vmatpush.msra.mxu0 %v234_v32  ;;  %v3369_v48 = vld [vmem:[#allocation2 + $0x38] sm:$0xff]  ;;  %v474_v32 = vld [vmem:[#allocation5 + $0xb68] sm:$0xff] }
 0x1f5   :  { %v753_v33 = vld [vmem:[#allocation5 + $0x1420] sm:$0xff]  ;;  %2062 = vmatpush.msrb.mxu3 %v1017_v8  ;;  %2041 = vmatmul.f32.vlgmr.msrb.gmra.mxu2 %v3361_v51  ;;  %v218_v8 = vld [vmem:[#allocation5 + $0x368] sm:$0xff] }
 0x1f6   :  { %v1009_v53 = vld [vmem:[#allocation5 + $0x1c20] sm:$0xff]  ;;  %2117 = vmatpush.msra.mxu2 %v490_v47  ;;  %2017 = vmatpush.msrb.mxu1 %v753_v33  ;;  %v210_v47 = vld [vmem:[#allocation5 + $0x328] sm:$0xff] }
 0x1f7   :  { %2063 = vmatpush.msrb.mxu3 %v1009_v53  ;;  %v3366_v30 = vld [vmem:[#allocation2 + $0x20] sm:$0xff]  ;;  %2072 = vmatpush.msra.mxu0 %v226_v62  ;;  %v346_v33 = vld [vmem:[#allocation5 + $0x768] sm:$0xff] }
 0x1f8   :  { %1995 = vmatmul.f32.vlgmr.msrb.gmra.mxu0 %v3366_v30  ;;  %2064 = vmatmul.f32.vlgmr.msrb.gmra.mxu3 %v3369_v48  ;;  %v466_v53 = vld [vmem:[#allocation5 + $0xb28] sm:$0xff] }
 0x1f9   :  { %2094 = vmatpush.msra.mxu1 %v362_v10  ;;  %2118 = vmatpush.msra.mxu2 %v482_v15  ;;  %v202_v62 = vld [vmem:[#allocation5 + $0x2e8] sm:$0xff] }
 0x1fa   :  { %2140 = vmatpush.msra.mxu3 %v618_v24  ;;  %2018 = vmatmul.f32.vlgmr.msrb.gmra.mxu1 %v3372_v41  ;;  %v338_v9 = vld [vmem:[#allocation5 + $0x728] sm:$0xff] }
 0x1fb   :  { %2073 = vmatpush.msra.mxu0 %v218_v8  ;;  %2095 = vmatpush.msra.mxu1 %v354_v2  ;;  %v458_v10 = vld [vmem:[#allocation5 + $0xae8] sm:$0xff] }
 0x1fc   :  { %2119 = vmatpush.msra.mxu2 %v474_v32  ;;  %2141 = vmatpush.msra.mxu3 %v610_v37  ;;  %v594_v15 = vld [vmem:[#allocation5 + $0xf28] sm:$0xff] }
 0x1fd   :  { %2074 = vmatpush.msra.mxu0 %v210_v47  ;;  %2096 = vmatpush.msra.mxu1 %v346_v33  ;;  %v194_v24 = vld [vmem:[#allocation5 + $0x2a8] sm:$0xff] }
 0x1fe   :  { %2120 = vmatpush.msra.mxu2 %v466_v53  ;;  %2142 = vmatpush.msra.mxu3 %v602_v60  ;;  %v330_v8 = vld [vmem:[#allocation5 + $0x6e8] sm:$0xff] }
 0x1ff   :  { %2044 = vmatmul.f32.gmra.mxu2 %v3293_v1  ;;  %2075 = vmatpush.msra.mxu0 %v202_v62  ;;  %v450_v2 = vld [vmem:[#allocation5 + $0xaa8] sm:$0xff] }
 0x200   :  { %2097 = vmatpush.msra.mxu1 %v338_v9  ;;  %2121 = vmatpush.msra.mxu2 %v458_v10  ;;  %v586_v32 = vld [vmem:[#allocation5 + $0xee8] sm:$0xff] }
 0x201   :  { %2143 = vmatpush.msra.mxu3 %v594_v15  ;;  %1998 = vmatmul.f32.gmra.mxu0 %v3298_v17  ;;  %v186_v37 = vld [vmem:[#allocation5 + $0x268] sm:$0xff] }
 0x202   :  { %2067 = vmatmul.f32.gmra.mxu3 %v3301_v14  ;;  %2076 = vmatpush.msra.mxu0 %v194_v24  ;;  %v322_v47 = vld [vmem:[#allocation5 + $0x6a8] sm:$0xff] }
 0x203   :  { %2098 = vmatpush.msra.mxu1 %v330_v8  ;;  %2122 = vmatpush.msra.mxu2 %v450_v2  ;;  %v442_v33 = vld [vmem:[#allocation5 + $0xa68] sm:$0xff] }
 0x204   :  { %v578_v53 = vld [vmem:[#allocation5 + $0xea8] sm:$0xff]  ;;  %2144 = vmatpush.msra.mxu3 %v586_v32  ;;  %2021 = vmatmul.f32.gmra.mxu1 %v3306_v18 }
 0x205   :  { %v178_v1 = vld [vmem:[#allocation5 + $0x228] sm:$0xff]  ;;  %2077 = vmatpush.msra.mxu0 %v186_v37  ;;  %2099 = vmatpush.msra.mxu1 %v322_v47 }
 0x206   :  { %v314_v60 = vld [vmem:[#allocation5 + $0x668] sm:$0xff]  ;;  %2123 = vmatpush.msra.mxu2 %v442_v33  ;;  %2145 = vmatpush.msra.mxu3 %v578_v53 }
 0x207   :  { %v434_v62 = vld [vmem:[#allocation5 + $0xa28] sm:$0xff]  ;;  %2078 = vmatpush.msra.mxu0 %v178_v1  ;;  %2100 = vmatpush.msra.mxu1 %v314_v60 }
 0x208   :  { %v570_v9 = vld [vmem:[#allocation5 + $0xe68] sm:$0xff]  ;;  %2124 = vmatpush.msra.mxu2 %v434_v62 }
 0x209   :  { %v170_v17 = vld [vmem:[#allocation5 + $0x1e8] sm:$0xff]  ;;  %2146 = vmatpush.msra.mxu3 %v570_v9 }
 0x20a   :  { %v306_v14 = vld [vmem:[#allocation5 + $0x628] sm:$0xff]  ;;  %2079 = vmatpush.msra.mxu0 %v170_v17 }
 0x20b   :  { %v426_v10 = vld [vmem:[#allocation5 + $0x9e8] sm:$0xff]  ;;  %2101 = vmatpush.msra.mxu1 %v306_v14 }
 0x20c   :  { %v562_v15 = vld [vmem:[#allocation5 + $0xe28] sm:$0xff]  ;;  %2125 = vmatpush.msra.mxu2 %v426_v10 }
 0x20d   :  { %v162_v24 = vld [vmem:[#allocation5 + $0x1a8] sm:$0xff]  ;;  %2147 = vmatpush.msra.mxu3 %v562_v15 }
 0x20e   :  { %v298_v8 = vld [vmem:[#allocation5 + $0x5e8] sm:$0xff]  ;;  %2080 = vmatpush.msra.mxu0 %v162_v24 }
 0x20f   :  { %v418_v18 = vld [vmem:[#allocation5 + $0x9a8] sm:$0xff]  ;;  %2102 = vmatpush.msra.mxu1 %v298_v8 }
 0x210   :  { %v554_v2 = vld [vmem:[#allocation5 + $0xde8] sm:$0xff]  ;;  %2126 = vmatpush.msra.mxu2 %v418_v18 }
 0x211   :  { %v154_v32 = vld [vmem:[#allocation5 + $0x168] sm:$0xff]  ;;  %2148 = vmatpush.msra.mxu3 %v554_v2 }
 0x212   :  { %v290_v37 = vld [vmem:[#allocation5 + $0x5a8] sm:$0xff]  ;;  %2081 = vmatpush.msra.mxu0 %v154_v32 }
 0x213   :  { %v410_v47 = vld [vmem:[#allocation5 + $0x968] sm:$0xff]  ;;  %2103 = vmatpush.msra.mxu1 %v290_v37 }
 0x214   :  { %v546_v33 = vld [vmem:[#allocation5 + $0xda8] sm:$0xff]  ;;  %2127 = vmatpush.msra.mxu2 %v410_v47 }
 0x215   :  { %v146_v53 = vld [vmem:[#allocation5 + $0x128] sm:$0xff]  ;;  %2149 = vmatpush.msra.mxu3 %v546_v33 }
 0x216   :  { %v282_v1 = vld [vmem:[#allocation5 + $0x568] sm:$0xff]  ;;  %2082 = vmatpush.msra.mxu0 %v146_v53 }
 0x217   :  { %v402_v60 = vld [vmem:[#allocation5 + $0x928] sm:$0xff]  ;;  %2104 = vmatpush.msra.mxu1 %v282_v1 }
 0x218   :  { %v538_v62 = vld [vmem:[#allocation5 + $0xd68] sm:$0xff]  ;;  %2128 = vmatpush.msra.mxu2 %v402_v60 }
 0x219   :  { %v138_v9 = vld [vmem:[#allocation5 + $0xe8] sm:$0xff]  ;;  %2150 = vmatpush.msra.mxu3 %v538_v62  ;;  %v3777_v62 = vperm.slane %v3321_v7, 3 }
 0x21a   :  { %v274_v17 = vld [vmem:[#allocation5 + $0x528] sm:$0xff]  ;;  %2083 = vmatpush.msra.mxu0 %v138_v9 }
 0x21b   :  { %v394_v14 = vld [vmem:[#allocation5 + $0x8e8] sm:$0xff]  ;;  %2105 = vmatpush.msra.mxu1 %v274_v17 }
 0x21c   :  { %v530_v10 = vld [vmem:[#allocation5 + $0xd28] sm:$0xff]  ;;  %2129 = vmatpush.msra.mxu2 %v394_v14 }
 0x21d   :  { %v130_v15 = vld [vmem:[#allocation5 + $0xa8] sm:$0xff]  ;;  %2151 = vmatpush.msra.mxu3 %v530_v10 }
 0x21e   :  { %v266_v24 = vld [vmem:[#allocation5 + $0x4e8] sm:$0xff]  ;;  %2084 = vmatpush.msra.mxu0 %v130_v15 }
 0x21f   :  { %v386_v8 = vld [vmem:[#allocation5 + $0x8a8] sm:$0xff]  ;;  %2106 = vmatpush.msra.mxu1 %v266_v24 }
 0x220   :  { %v522_v18 = vld [vmem:[#allocation5 + $0xce8] sm:$0xff]  ;;  %2130 = vmatpush.msra.mxu2 %v386_v8  ;;  %v1720_v8 = vpop.f32.mrf.mxu0 }
 0x221   :  { %v122_v2 = vld [vmem:[#allocation5 + $0x68] sm:$0xff]  ;;  %2152 = vmatpush.msra.mxu3 %v522_v18 }
 0x222   :  { %v258_v32 = vld [vmem:[#allocation5 + $0x4a8] sm:$0xff]  ;;  %2085 = vmatpush.msra.mxu0 %v122_v2 }
 0x223   :  { %v378_v37 = vld [vmem:[#allocation5 + $0x868] sm:$0xff]  ;;  %2107 = vmatpush.msra.mxu1 %v258_v32  ;;  %v1721_v32 = vadd.f32 %v1720_v8, %v3777_v62  ;;  %v1789_v62 = vpop.f32.mrf.mxu3 }
 0x224   :  { %v514_v47 = vld [vmem:[#allocation5 + $0xca8] sm:$0xff]  ;;  %2131 = vmatpush.msra.mxu2 %v378_v37 }
 0x225   :  { %v114_v33 = vld [vmem:[#allocation5 + $0x28] sm:$0xff]  ;;  %2153 = vmatpush.msra.mxu3 %v514_v47 }
 0x226   :  { %v250_v53 = vld [vmem:[#allocation5 + $0x468] sm:$0xff]  ;;  %2086 = vmatpush.msra.mxu0 %v114_v33 }
 0x227   :  { %v370_v1 = vld [vmem:[#allocation5 + $0x828] sm:$0xff]  ;;  %2108 = vmatpush.msra.mxu1 %v250_v53  ;;  %2087 = vmatmul.f32.vlgmr.msra.gmra.mxu0 %v3337_v49 }
 0x228   :  { %v506_v60 = vld [vmem:[#allocation5 + $0xc68] sm:$0xff]  ;;  %2132 = vmatpush.msra.mxu2 %v370_v1  ;;  %v1743_v1 = vpop.f32.mrf.mxu1 }
 0x229   :  { %v746_v9 = vld [vmem:[#allocation5 + $0x13e8] sm:$0xff]  ;;  %2154 = vmatpush.msra.mxu3 %v506_v60  ;;  %2133 = vmatmul.f32.vlgmr.msra.gmra.mxu2 %v3332_v13 }
 0x22a   :  { %v1002_v17 = vld [vmem:[#allocation5 + $0x1be8] sm:$0xff]  ;;  %2163 = vmatpush.msrb.mxu0 %v746_v9  ;;  %v1744_v9 = vadd.f32 %v1743_v1, %v1721_v32  ;;  %v1723_v1 = vpop.f32.mrf.mxu0 }
 0x22b   :  { %v242_v14 = vld [vmem:[#allocation5 + $0x428] sm:$0xff]  ;;  %2209 = vmatpush.msrb.mxu2 %v1002_v17  ;;  %v1766_v17 = vpop.f32.mrf.mxu2 }
 0x22c   :  { %v498_v10 = vld [vmem:[#allocation5 + $0xc28] sm:$0xff]  ;;  %2109 = vmatpush.msra.mxu1 %v242_v14  ;;  %v1767_v8 = vadd.f32 %v1766_v17, %v1744_v9  ;;  %v3786_v9 = vperm.slane %v3321_v7, 3 }
 0x22d   :  { %v738_v15 = vld [vmem:[#allocation5 + $0x13a8] sm:$0xff]  ;;  %2155 = vmatpush.msra.mxu3 %v498_v10  ;;  %2110 = vmatmul.f32.vlgmr.msra.gmra.mxu1 %v3343_v63 }
 0x22e   :  { %v874_v24 = vld [vmem:[#allocation5 + $0x17e8] sm:$0xff]  ;;  %2164 = vmatpush.msrb.mxu0 %v738_v15  ;;  %v1790_v32 = vadd.f32 %v1789_v62, %v1767_v8  ;;  %2156 = vmatmul.f32.vlgmr.msra.gmra.mxu3 %v3340_v50 }
 0x22f   :  { %v994_v18 = vld [vmem:[#allocation5 + $0x1ba8] sm:$0xff]  ;;  %2186 = vmatpush.msrb.mxu1 %v874_v24  ;;  %2090 = vmatmul.f32.gmra.mxu0 %v3351_v56 }
 0x230   :  { %v1130_v2 = vld [vmem:[#allocation5 + $0x1fe8] sm:$0xff]  ;;  %2210 = vmatpush.msrb.mxu2 %v994_v18 }
 0x231   :  { %v730_v37 = vld [vmem:[#allocation5 + $0x1368] sm:$0xff]  ;;  %2232 = vmatpush.msrb.mxu3 %v1130_v2  ;;  %2136 = vmatmul.f32.gmra.mxu2 %v3346_v40 }
 0x232   :  { %v866_v47 = vld [vmem:[#allocation5 + $0x17a8] sm:$0xff]  ;;  %2165 = vmatpush.msrb.mxu0 %v730_v37 }
 0x233   :  { %v986_v33 = vld [vmem:[#allocation5 + $0x1b68] sm:$0xff]  ;;  %2187 = vmatpush.msrb.mxu1 %v866_v47 }
 0x234   :  { %v1122_v53 = vld [vmem:[#allocation5 + $0x1fa8] sm:$0xff]  ;;  %2211 = vmatpush.msrb.mxu2 %v986_v33 }
 0x235   :  { %v722_v60 = vld [vmem:[#allocation5 + $0x1328] sm:$0xff]  ;;  %2233 = vmatpush.msrb.mxu3 %v1122_v53  ;;  %2113 = vmatmul.f32.gmra.mxu1 %v3358_v57 }
 0x236   :  { %v858_v23 = vld [vmem:[#allocation5 + $0x1768] sm:$0xff]  ;;  %2166 = vmatpush.msrb.mxu0 %v722_v60  ;;  %2212 = vmatpush.msrb.mxu2 %v978_v35  ;;  %v1724_v35 = vadd.f32 %v1723_v1, %v3786_v9 }
 0x237   :  { %v714_v14 = vld [vmem:[#allocation5 + $0x12e8] sm:$0xff]  ;;  %2188 = vmatpush.msrb.mxu1 %v858_v23  ;;  %2234 = vmatpush.msrb.mxu3 %v1114_v44 }
 0x238   :  { %v850_v10 = vld [vmem:[#allocation5 + $0x1728] sm:$0xff]  ;;  %2167 = vmatpush.msrb.mxu0 %v714_v14  ;;  %2159 = vmatmul.f32.gmra.mxu3 %v3354_v61  ;;  %v235_v61 = vld [vmem:[#allocation5 + $0x3f0] sm:$0xff] }
 0x239   :  { %v970_v15 = vld [vmem:[#allocation5 + $0x1ae8] sm:$0xff]  ;;  %2189 = vmatpush.msrb.mxu1 %v850_v10  ;;  %v1746_v10 = vpop.f32.mrf.mxu1 }
 0x23a   :  { %v1106_v24 = vld [vmem:[#allocation5 + $0x1f28] sm:$0xff]  ;;  %2213 = vmatpush.msrb.mxu2 %v970_v15  ;;  %v1747_v15 = vadd.f32 %v1746_v10, %v1724_v35 }
 0x23b   :  { %v706_v18 = vld [vmem:[#allocation5 + $0x12a8] sm:$0xff]  ;;  %2235 = vmatpush.msrb.mxu3 %v1106_v24  ;;  %v1769_v24 = vpop.f32.mrf.mxu2 }
 0x23c   :  { %v842_v2 = vld [vmem:[#allocation5 + $0x16e8] sm:$0xff]  ;;  %2168 = vmatpush.msrb.mxu0 %v706_v18 }
 0x23d   :  { %v962_v37 = vld [vmem:[#allocation5 + $0x1aa8] sm:$0xff]  ;;  %2190 = vmatpush.msrb.mxu1 %v842_v2 }
 0x23e   :  { %v1098_v47 = vld [vmem:[#allocation5 + $0x1ee8] sm:$0xff]  ;;  %2214 = vmatpush.msrb.mxu2 %v962_v37  ;;  %v1770_v37 = vadd.f32 %v1769_v24, %v1747_v15 }
 0x23f   :  { %v698_v33 = vld [vmem:[#allocation5 + $0x1268] sm:$0xff]  ;;  %2236 = vmatpush.msrb.mxu3 %v1098_v47 }
 0x240   :  { %v834_v53 = vld [vmem:[#allocation5 + $0x16a8] sm:$0xff]  ;;  %2169 = vmatpush.msrb.mxu0 %v698_v33  ;;  %v1792_v33 = vpop.f32.mrf.mxu3 }
 0x241   :  { %v954_v23 = vld [vmem:[#allocation5 + $0x1a68] sm:$0xff]  ;;  %2191 = vmatpush.msrb.mxu1 %v834_v53  ;;  %v1835_v15 = vpop.f32.mrf.mxu1 }
 0x242   :  { %v1090_v60 = vld [vmem:[#allocation5 + $0x1ea8] sm:$0xff]  ;;  %2215 = vmatpush.msrb.mxu2 %v954_v23  ;;  %v1793_v23 = vadd.f32 %v1792_v33, %v1770_v37 }
 0x243   :  { %v690_v44 = vld [vmem:[#allocation5 + $0x1228] sm:$0xff]  ;;  %2237 = vmatpush.msrb.mxu3 %v1090_v60 }
 0x244   :  { %v826_v62 = vld [vmem:[#allocation5 + $0x1668] sm:$0xff]  ;;  %2170 = vmatpush.msrb.mxu0 %v690_v44  ;;  %v1812_v44 = vpop.f32.mrf.mxu0 }
 0x245   :  { %v946_v17 = vld [vmem:[#allocation5 + $0x1a28] sm:$0xff]  ;;  %2192 = vmatpush.msrb.mxu1 %v826_v62 }
 0x246   :  { %v1082_v14 = vld [vmem:[#allocation5 + $0x1e68] sm:$0xff]  ;;  %2216 = vmatpush.msrb.mxu2 %v946_v17  ;;  %v1813_v17 = vadd.f32 %v1812_v44, %v1790_v32 }
 0x247   :  { %v682_v8 = vld [vmem:[#allocation5 + $0x11e8] sm:$0xff]  ;;  %2238 = vmatpush.msrb.mxu3 %v1082_v14 }
 0x248   :  { %v818_v18 = vld [vmem:[#allocation5 + $0x1628] sm:$0xff]  ;;  %2171 = vmatpush.msrb.mxu0 %v682_v8  ;;  %v1836_v24 = vadd.f32 %v1835_v15, %v1813_v17 }
 0x249   :  { %v938_v2 = vld [vmem:[#allocation5 + $0x19e8] sm:$0xff]  ;;  %2193 = vmatpush.msrb.mxu1 %v818_v18  ;;  %v1858_v18 = vpop.f32.mrf.mxu2 }
 0x24a   :  { %v1074_v7 = vld [vmem:[#allocation5 + $0x1e28] sm:$0xff]  ;;  %2217 = vmatpush.msrb.mxu2 %v938_v2  ;;  %v1859_v63 = vadd.f32 %v1858_v18, %v1836_v24  ;;  %v227_v18 = vld [vmem:[#allocation5 + $0x3b0] sm:$0xff] }
 0x24b   :  { %v674_v47 = vld [vmem:[#allocation5 + $0x11a8] sm:$0xff]  ;;  %2239 = vmatpush.msrb.mxu3 %v1074_v7 }
 0x24c   :  { %v810_v53 = vld [vmem:[#allocation5 + $0x15e8] sm:$0xff]  ;;  %2172 = vmatpush.msrb.mxu0 %v674_v47  ;;  %v1881_v47 = vpop.f32.mrf.mxu3  ;;  %v1815_v44 = vpop.f32.mrf.mxu0 }
 0x24d   :  { %v930_v1 = vld [vmem:[#allocation5 + $0x19a8] sm:$0xff]  ;;  %2194 = vmatpush.msrb.mxu1 %v810_v53 }
 0x24e   :  { %v1066_v60 = vld [vmem:[#allocation5 + $0x1de8] sm:$0xff]  ;;  %2218 = vmatpush.msrb.mxu2 %v930_v1  ;;  %v3389_v1 = vadd.f32 %v1881_v47, %v1859_v63  ;;  %v219_v47 = vld [vmem:[#allocation5 + $0x370] sm:$0xff] }
 0x24f   :  { %v666_v9 = vld [vmem:[#allocation5 + $0x1168] sm:$0xff]  ;;  %2240 = vmatpush.msrb.mxu3 %v1066_v60 }
 0x250   :  { %v802_v35 = vld [vmem:[#allocation5 + $0x15a8] sm:$0xff]  ;;  %2173 = vmatpush.msrb.mxu0 %v666_v9  ;;  %3787 = vst [vmem:[#allocation19_spill] sm:$0xff] %v3389_v1 }
 0x251   :  { %v922_v13 = vld [vmem:[#allocation5 + $0x1968] sm:$0xff]  ;;  %2195 = vmatpush.msrb.mxu1 %v802_v35  ;;  %v1861_v15 = vpop.f32.mrf.mxu2 }
 0x252   :  { %v1058_v62 = vld [vmem:[#allocation5 + $0x1da8] sm:$0xff]  ;;  %2219 = vmatpush.msrb.mxu2 %v922_v13 }
 0x253   :  { %v658_v14 = vld [vmem:[#allocation5 + $0x1128] sm:$0xff]  ;;  %2241 = vmatpush.msrb.mxu3 %v1058_v62  ;;  %v1816_v62 = vadd.f32 %v1815_v44, %v1793_v23  ;;  %v603_v44 = vld [vmem:[#allocation5 + $0xf70] sm:$0xff] }
 0x254   :  { %v794_v10 = vld [vmem:[#allocation5 + $0x1568] sm:$0xff]  ;;  %2174 = vmatpush.msrb.mxu0 %v658_v14 }
 0x255   :  { %v914_v49 = vld [vmem:[#allocation5 + $0x1928] sm:$0xff]  ;;  %2196 = vmatpush.msrb.mxu1 %v794_v10 }
 0x256   :  { %v1050_v8 = vld [vmem:[#allocation5 + $0x1d68] sm:$0xff]  ;;  %2220 = vmatpush.msrb.mxu2 %v914_v49  ;;  %v1838_v49 = vpop.f32.mrf.mxu1 }
 0x257   :  { %v650_v50 = vld [vmem:[#allocation5 + $0x10e8] sm:$0xff]  ;;  %2242 = vmatpush.msrb.mxu3 %v1050_v8  ;;  %v1839_v8 = vadd.f32 %v1838_v49, %v1816_v62  ;;  %v3400_v62 = vld [vmem:[#allocation2 + $0x70] sm:$0xff]  ;;  %v3406_v49 = vld [vmem:[#allocation2 + $0x78] sm:$0xff] }
 0x258   :  { %v786_v2 = vld [vmem:[#allocation5 + $0x1528] sm:$0xff]  ;;  %2175 = vmatpush.msrb.mxu0 %v650_v50  ;;  %v491_v50 = vld [vmem:[#allocation5 + $0xbf0] sm:$0xff] }
 0x259   :  { %v906_v7 = vld [vmem:[#allocation5 + $0x18e8] sm:$0xff]  ;;  %2197 = vmatpush.msrb.mxu1 %v786_v2  ;;  %v1862_v57 = vadd.f32 %v1861_v15, %v1839_v8  ;;  %v1884_v2 = vpop.f32.mrf.mxu3  ;;  %v323_v8 = vld [vmem:[#allocation5 + $0x6b0] sm:$0xff] }
 0x25a   :  { %v1042_v32 = vld [vmem:[#allocation5 + $0x1d28] sm:$0xff]  ;;  %2221 = vmatpush.msrb.mxu2 %v906_v7  ;;  %v363_v7 = vld [vmem:[#allocation5 + $0x7f0] sm:$0xff] }
 0x25b   :  { %v642_v37 = vld [vmem:[#allocation5 + $0x10a8] sm:$0xff]  ;;  %2243 = vmatpush.msrb.mxu3 %v1042_v32  ;;  %v483_v32 = vld [vmem:[#allocation5 + $0xbb0] sm:$0xff]  ;;  %v3395_v63 = vadd.f32 %v1884_v2, %v1862_v57 }
 0x25c   :  { %v778_v33 = vld [vmem:[#allocation5 + $0x14e8] sm:$0xff]  ;;  %2176 = vmatpush.msrb.mxu0 %v642_v37  ;;  %v619_v37 = vld [vmem:[#allocation5 + $0xff0] sm:$0xff] }
 0x25d   :  { %v898_v53 = vld [vmem:[#allocation5 + $0x18a8] sm:$0xff]  ;;  %2198 = vmatpush.msrb.mxu1 %v778_v33  ;;  %3788 = vst [vmem:[#allocation20_spill] sm:$0xff] %v3395_v63  ;;  %v355_v33 = vld [vmem:[#allocation5 + $0x7b0] sm:$0xff] }
 0x25e   :  { %v1034_v60 = vld [vmem:[#allocation5 + $0x1ce8] sm:$0xff]  ;;  %2222 = vmatpush.msrb.mxu2 %v898_v53  ;;  %v611_v53 = vld [vmem:[#allocation5 + $0xfb0] sm:$0xff] }
 0x25f   :  { %v634_v9 = vld [vmem:[#allocation5 + $0x1068] sm:$0xff]  ;;  %2244 = vmatpush.msrb.mxu3 %v1034_v60  ;;  %v211_v60 = vld [vmem:[#allocation5 + $0x330] sm:$0xff] }
 0x260   :  { %v770_v35 = vld [vmem:[#allocation5 + $0x14a8] sm:$0xff]  ;;  %2177 = vmatpush.msrb.mxu0 %v634_v9  ;;  %v347_v9 = vld [vmem:[#allocation5 + $0x770] sm:$0xff] }
 0x261   :  { %v890_v40 = vld [vmem:[#allocation5 + $0x1868] sm:$0xff]  ;;  %2199 = vmatpush.msrb.mxu1 %v770_v35  ;;  %v467_v35 = vld [vmem:[#allocation5 + $0xb30] sm:$0xff] }
 0x262   :  { %v1026_v13 = vld [vmem:[#allocation5 + $0x1ca8] sm:$0xff]  ;;  %2223 = vmatpush.msrb.mxu2 %v890_v40  ;;  %v459_v40 = vld [vmem:[#allocation5 + $0xaf0] sm:$0xff] }
 0x263   :  { %v626_v17 = vld [vmem:[#allocation5 + $0x1028] sm:$0xff]  ;;  %2245 = vmatpush.msrb.mxu3 %v1026_v13  ;;  %v595_v13 = vld [vmem:[#allocation5 + $0xf30] sm:$0xff] }
 0x264   :  { %v762_v14 = vld [vmem:[#allocation5 + $0x1468] sm:$0xff]  ;;  %2178 = vmatpush.msrb.mxu0 %v626_v17  ;;  %v331_v17 = vld [vmem:[#allocation5 + $0x6f0] sm:$0xff] }
 0x265   :  { %v882_v56 = vld [vmem:[#allocation5 + $0x1828] sm:$0xff]  ;;  %2200 = vmatpush.msrb.mxu1 %v762_v14  ;;  %2179 = vmatmul.f32.vlgmr.msrb.gmra.mxu0 %v3366_v30  ;;  %v203_v30 = vld [vmem:[#allocation5 + $0x2f0] sm:$0xff] }
 0x266   :  { %v1018_v10 = vld [vmem:[#allocation5 + $0x1c68] sm:$0xff]  ;;  %2224 = vmatpush.msrb.mxu2 %v882_v56  ;;  %2255 = vmatpush.msra.mxu0 %v235_v61  ;;  %v451_v14 = vld [vmem:[#allocation5 + $0xab0] sm:$0xff]  ;;  %v3403_v56 = vld [vmem:[#allocation2 + $0x60] sm:$0xff] }
 0x267   :  { %v754_v24 = vld [vmem:[#allocation5 + $0x1428] sm:$0xff]  ;;  %2246 = vmatpush.msrb.mxu3 %v1018_v10  ;;  %2225 = vmatmul.f32.vlgmr.msrb.gmra.mxu2 %v3361_v51  ;;  %v475_v51 = vld [vmem:[#allocation5 + $0xb70] sm:$0xff] }
 0x268   :  { %v1010_v23 = vld [vmem:[#allocation5 + $0x1c28] sm:$0xff]  ;;  %2301 = vmatpush.msra.mxu2 %v491_v50  ;;  %2201 = vmatpush.msrb.mxu1 %v754_v24  ;;  %v587_v10 = vld [vmem:[#allocation5 + $0xef0] sm:$0xff] }
 0x269   :  { %2247 = vmatpush.msrb.mxu3 %v1010_v23  ;;  %2256 = vmatpush.msra.mxu0 %v227_v18  ;;  %v187_v61 = vld [vmem:[#allocation5 + $0x270] sm:$0xff]  ;;  %v3409_v24 = vld [vmem:[#allocation2 + $0x68] sm:$0xff] }
 0x26a   :  { %2248 = vmatmul.f32.vlgmr.msrb.gmra.mxu3 %v3369_v48  ;;  %2278 = vmatpush.msra.mxu1 %v363_v7  ;;  %v339_v48 = vld [vmem:[#allocation5 + $0x730] sm:$0xff] }
 0x26b   :  { %2302 = vmatpush.msra.mxu2 %v483_v32  ;;  %2324 = vmatpush.msra.mxu3 %v619_v37  ;;  %v443_v15 = vld [vmem:[#allocation5 + $0xa70] sm:$0xff] }
 0x26c   :  { %2202 = vmatmul.f32.vlgmr.msrb.gmra.mxu1 %v3372_v41  ;;  %2257 = vmatpush.msra.mxu0 %v219_v47  ;;  %v195_v41 = vld [vmem:[#allocation5 + $0x2b0] sm:$0xff] }
 0x26d   :  { %2279 = vmatpush.msra.mxu1 %v355_v33  ;;  %2303 = vmatpush.msra.mxu2 %v475_v51  ;;  %v579_v50 = vld [vmem:[#allocation5 + $0xeb0] sm:$0xff] }
 0x26e   :  { %2325 = vmatpush.msra.mxu3 %v611_v53  ;;  %2258 = vmatpush.msra.mxu0 %v211_v60  ;;  %v179_v23 = vld [vmem:[#allocation5 + $0x230] sm:$0xff] }
 0x26f   :  { %2280 = vmatpush.msra.mxu1 %v347_v9  ;;  %2304 = vmatpush.msra.mxu2 %v467_v35  ;;  %v315_v57 = vld [vmem:[#allocation5 + $0x670] sm:$0xff] }
 0x270   :  { %2326 = vmatpush.msra.mxu3 %v603_v44  ;;  %2228 = vmatmul.f32.gmra.mxu2 %v3400_v62  ;;  %v435_v18 = vld [vmem:[#allocation5 + $0xa30] sm:$0xff] }
 0x271   :  { %2259 = vmatpush.msra.mxu0 %v203_v30  ;;  %2281 = vmatpush.msra.mxu1 %v339_v48  ;;  %v571_v2 = vld [vmem:[#allocation5 + $0xe70] sm:$0xff] }
 0x272   :  { %2305 = vmatpush.msra.mxu2 %v459_v40  ;;  %2327 = vmatpush.msra.mxu3 %v595_v13  ;;  %v171_v7 = vld [vmem:[#allocation5 + $0x1f0] sm:$0xff] }
 0x273   :  { %2182 = vmatmul.f32.gmra.mxu0 %v3403_v56  ;;  %2251 = vmatmul.f32.gmra.mxu3 %v3406_v49  ;;  %v307_v32 = vld [vmem:[#allocation5 + $0x630] sm:$0xff] }
 0x274   :  { %2260 = vmatpush.msra.mxu0 %v195_v41  ;;  %2282 = vmatpush.msra.mxu1 %v331_v17  ;;  %v427_v37 = vld [vmem:[#allocation5 + $0x9f0] sm:$0xff] }
 0x275   :  { %2306 = vmatpush.msra.mxu2 %v451_v14  ;;  %2328 = vmatpush.msra.mxu3 %v587_v10  ;;  %v563_v47 = vld [vmem:[#allocation5 + $0xe30] sm:$0xff] }
 0x276   :  { %2205 = vmatmul.f32.gmra.mxu1 %v3409_v24  ;;  %2261 = vmatpush.msra.mxu0 %v187_v61  ;;  %v163_v33 = vld [vmem:[#allocation5 + $0x1b0] sm:$0xff] }
 0x277   :  { %2283 = vmatpush.msra.mxu1 %v323_v8  ;;  %2307 = vmatpush.msra.mxu2 %v443_v15  ;;  %v299_v51 = vld [vmem:[#allocation5 + $0x5f0] sm:$0xff] }
 0x278   :  { %2329 = vmatpush.msra.mxu3 %v579_v50  ;;  %2262 = vmatpush.msra.mxu0 %v179_v23  ;;  %v419_v53 = vld [vmem:[#allocation5 + $0x9b0] sm:$0xff] }
 0x279   :  { %2284 = vmatpush.msra.mxu1 %v315_v57  ;;  %2308 = vmatpush.msra.mxu2 %v435_v18  ;;  %v555_v60 = vld [vmem:[#allocation5 + $0xdf0] sm:$0xff] }
 0x27a   :  { %2330 = vmatpush.msra.mxu3 %v571_v2  ;;  %2263 = vmatpush.msra.mxu0 %v171_v7  ;;  %v155_v9 = vld [vmem:[#allocation5 + $0x170] sm:$0xff] }
 0x27b   :  { %2285 = vmatpush.msra.mxu1 %v307_v32  ;;  %2309 = vmatpush.msra.mxu2 %v427_v37  ;;  %v291_v35 = vld [vmem:[#allocation5 + $0x5b0] sm:$0xff] }
 0x27c   :  { %2331 = vmatpush.msra.mxu3 %v563_v47  ;;  %2264 = vmatpush.msra.mxu0 %v163_v33  ;;  %v411_v44 = vld [vmem:[#allocation5 + $0x970] sm:$0xff] }
 0x27d   :  { %2286 = vmatpush.msra.mxu1 %v299_v51  ;;  %v547_v30 = vld [vmem:[#allocation5 + $0xdb0] sm:$0xff]  ;;  %2310 = vmatpush.msra.mxu2 %v419_v53  ;;  %v3412_v51 = vld [vmem:[#allocation7] sm:$0xff] }
 0x27e   :  { %2332 = vmatpush.msra.mxu3 %v555_v60  ;;  %v147_v48 = vld [vmem:[#allocation5 + $0x130] sm:$0xff]  ;;  %2265 = vmatpush.msra.mxu0 %v155_v9  ;;  %v1139_v53 = vperm.slane %v3412_v51, 4 }
 0x27f   :  { %v283_v40 = vld [vmem:[#allocation5 + $0x570] sm:$0xff]  ;;  %2287 = vmatpush.msra.mxu1 %v291_v35  ;;  %2311 = vmatpush.msra.mxu2 %v411_v44 }
 0x280   :  { %v403_v13 = vld [vmem:[#allocation5 + $0x930] sm:$0xff]  ;;  %2333 = vmatpush.msra.mxu3 %v547_v30  ;;  %2266 = vmatpush.msra.mxu0 %v147_v48 }
 0x281   :  { %v539_v41 = vld [vmem:[#allocation5 + $0xd70] sm:$0xff]  ;;  %2288 = vmatpush.msra.mxu1 %v283_v40  ;;  %2312 = vmatpush.msra.mxu2 %v403_v13  ;;  %v1904_v40 = vpop.f32.mrf.mxu0 }
 0x282   :  { %v139_v17 = vld [vmem:[#allocation5 + $0xf0] sm:$0xff]  ;;  %2334 = vmatpush.msra.mxu3 %v539_v41 }
 0x283   :  { %v275_v14 = vld [vmem:[#allocation5 + $0x530] sm:$0xff]  ;;  %2267 = vmatpush.msra.mxu0 %v139_v17  ;;  %v1905_v17 = vadd.f32 %v1904_v40, %v1139_v53 }
 0x284   :  { %v395_v10 = vld [vmem:[#allocation5 + $0x8f0] sm:$0xff]  ;;  %2289 = vmatpush.msra.mxu1 %v275_v14 }
 0x285   :  { %v531_v61 = vld [vmem:[#allocation5 + $0xd30] sm:$0xff]  ;;  %2313 = vmatpush.msra.mxu2 %v395_v10 }
 0x286   :  { %v131_v8 = vld [vmem:[#allocation5 + $0xb0] sm:$0xff]  ;;  %2335 = vmatpush.msra.mxu3 %v531_v61 }
 0x287   :  { %v267_v15 = vld [vmem:[#allocation5 + $0x4f0] sm:$0xff]  ;;  %2268 = vmatpush.msra.mxu0 %v131_v8 }
 0x288   :  { %v387_v50 = vld [vmem:[#allocation5 + $0x8b0] sm:$0xff]  ;;  %2290 = vmatpush.msra.mxu1 %v267_v15  ;;  %v1927_v15 = vpop.f32.mrf.mxu1 }
 0x289   :  { %v523_v23 = vld [vmem:[#allocation5 + $0xcf0] sm:$0xff]  ;;  %2314 = vmatpush.msra.mxu2 %v387_v50 }
 0x28a   :  { %v123_v57 = vld [vmem:[#allocation5 + $0x70] sm:$0xff]  ;;  %2336 = vmatpush.msra.mxu3 %v523_v23 }
 0x28b   :  { %v259_v18 = vld [vmem:[#allocation5 + $0x4b0] sm:$0xff]  ;;  %2269 = vmatpush.msra.mxu0 %v123_v57  ;;  %v1928_v57 = vadd.f32 %v1927_v15, %v1905_v17  ;;  %v1907_v17 = vpop.f32.mrf.mxu0 }
 0x28c   :  { %v379_v2 = vld [vmem:[#allocation5 + $0x870] sm:$0xff]  ;;  %2291 = vmatpush.msra.mxu1 %v259_v18  ;;  %v1950_v18 = vpop.f32.mrf.mxu2 }
 0x28d   :  { %v515_v7 = vld [vmem:[#allocation5 + $0xcb0] sm:$0xff]  ;;  %2315 = vmatpush.msra.mxu2 %v379_v2 }
 0x28e   :  { %v115_v32 = vld [vmem:[#allocation5 + $0x30] sm:$0xff]  ;;  %2337 = vmatpush.msra.mxu3 %v515_v7 }
 0x28f   :  { %v251_v37 = vld [vmem:[#allocation5 + $0x470] sm:$0xff]  ;;  %2270 = vmatpush.msra.mxu0 %v115_v32 }
 0x290   :  { %v371_v47 = vld [vmem:[#allocation5 + $0x830] sm:$0xff]  ;;  %2292 = vmatpush.msra.mxu1 %v251_v37 }
 0x291   :  { %v507_v33 = vld [vmem:[#allocation5 + $0xc70] sm:$0xff]  ;;  %2316 = vmatpush.msra.mxu2 %v371_v47  ;;  %v1951_v47 = vadd.f32 %v1950_v18, %v1928_v57  ;;  %v1930_v57 = vpop.f32.mrf.mxu1 }
 0x292   :  { %v747_v60 = vld [vmem:[#allocation5 + $0x13f0] sm:$0xff]  ;;  %2338 = vmatpush.msra.mxu3 %v507_v33 }
 0x293   :  { %v1003_v9 = vld [vmem:[#allocation5 + $0x1bf0] sm:$0xff]  ;;  %2347 = vmatpush.msrb.mxu0 %v747_v60 }
 0x294   :  { %v243_v35 = vld [vmem:[#allocation5 + $0x430] sm:$0xff]  ;;  %2393 = vmatpush.msrb.mxu2 %v1003_v9  ;;  %v1973_v9 = vpop.f32.mrf.mxu3 }
 0x295   :  { %v499_v44 = vld [vmem:[#allocation5 + $0xc30] sm:$0xff]  ;;  %2293 = vmatpush.msra.mxu1 %v243_v35 }
 0x296   :  { %v739_v30 = vld [vmem:[#allocation5 + $0x13b0] sm:$0xff]  ;;  %2339 = vmatpush.msra.mxu3 %v499_v44 }
 0x297   :  { %v875_v48 = vld [vmem:[#allocation5 + $0x17f0] sm:$0xff]  ;;  %2348 = vmatpush.msrb.mxu0 %v739_v30  ;;  %v1974_v30 = vadd.f32 %v1973_v9, %v1951_v47 }
 0x298   :  { %v995_v13 = vld [vmem:[#allocation5 + $0x1bb0] sm:$0xff]  ;;  %2370 = vmatpush.msrb.mxu1 %v875_v48 }
 0x299   :  { %v1131_v41 = vld [vmem:[#allocation5 + $0x1ff0] sm:$0xff]  ;;  %2394 = vmatpush.msrb.mxu2 %v995_v13 }
 0x29a   :  { %v731_v14 = vld [vmem:[#allocation5 + $0x1370] sm:$0xff]  ;;  %2416 = vmatpush.msrb.mxu3 %v1131_v41 }
 0x29b   :  { %v867_v10 = vld [vmem:[#allocation5 + $0x17b0] sm:$0xff]  ;;  %2349 = vmatpush.msrb.mxu0 %v731_v14 }
 0x29c   :  { %v987_v61 = vld [vmem:[#allocation5 + $0x1b70] sm:$0xff]  ;;  %2371 = vmatpush.msrb.mxu1 %v867_v10  ;;  %v1976_v9 = vpop.f32.mrf.mxu3 }
 0x29d   :  { %v1123_v8 = vld [vmem:[#allocation5 + $0x1fb0] sm:$0xff]  ;;  %2395 = vmatpush.msrb.mxu2 %v987_v61  ;;  %v1908_v61 = vadd.f32 %v1907_v17, %v1139_v53 }
 0x29e   :  { %v723_v50 = vld [vmem:[#allocation5 + $0x1330] sm:$0xff]  ;;  %2417 = vmatpush.msrb.mxu3 %v1123_v8 }
 0x29f   :  { %v859_v23 = vld [vmem:[#allocation5 + $0x1770] sm:$0xff]  ;;  %2350 = vmatpush.msrb.mxu0 %v723_v50 }
 0x2a0   :  { %v979_v2 = vld [vmem:[#allocation5 + $0x1b30] sm:$0xff]  ;;  %2372 = vmatpush.msrb.mxu1 %v859_v23 }
 0x2a1   :  { %v1115_v7 = vld [vmem:[#allocation5 + $0x1f70] sm:$0xff]  ;;  %2396 = vmatpush.msrb.mxu2 %v979_v2  ;;  %v1931_v2 = vadd.f32 %v1930_v57, %v1908_v61 }
 0x2a2   :  { %v715_v32 = vld [vmem:[#allocation5 + $0x12f0] sm:$0xff]  ;;  %2418 = vmatpush.msrb.mxu3 %v1115_v7  ;;  %v1953_v7 = vpop.f32.mrf.mxu2 }
 0x2a3   :  { %v851_v37 = vld [vmem:[#allocation5 + $0x1730] sm:$0xff]  ;;  %2351 = vmatpush.msrb.mxu0 %v715_v32  ;;  %v1954_v47 = vadd.f32 %v1953_v7, %v1931_v2  ;;  %v2019_v7 = vpop.f32.mrf.mxu1 }
 0x2a4   :  { %v971_v33 = vld [vmem:[#allocation5 + $0x1af0] sm:$0xff]  ;;  %2373 = vmatpush.msrb.mxu1 %v851_v37 }
 0x2a5   :  { %v1107_v60 = vld [vmem:[#allocation5 + $0x1f30] sm:$0xff]  ;;  %2397 = vmatpush.msrb.mxu2 %v971_v33 }
 0x2a6   :  { %v707_v35 = vld [vmem:[#allocation5 + $0x12b0] sm:$0xff]  ;;  %2419 = vmatpush.msrb.mxu3 %v1107_v60 }
 0x2a7   :  { %v843_v44 = vld [vmem:[#allocation5 + $0x16f0] sm:$0xff]  ;;  %2352 = vmatpush.msrb.mxu0 %v707_v35 }
 0x2a8   :  { %v963_v48 = vld [vmem:[#allocation5 + $0x1ab0] sm:$0xff]  ;;  %2374 = vmatpush.msrb.mxu1 %v843_v44 }
 0x2a9   :  { %v1099_v40 = vld [vmem:[#allocation5 + $0x1ef0] sm:$0xff]  ;;  %2398 = vmatpush.msrb.mxu2 %v963_v48  ;;  %v3422_v48 = vadd.f32 %v1976_v9, %v1954_v47 }
 0x2aa   :  { %v699_v13 = vld [vmem:[#allocation5 + $0x1270] sm:$0xff]  ;;  %2420 = vmatpush.msrb.mxu3 %v1099_v40  ;;  %v3424_v40 = vld [vmem:[#allocation2] sm:$0xff] }
 0x2ab   :  { %v835_v41 = vld [vmem:[#allocation5 + $0x16b0] sm:$0xff]  ;;  %2353 = vmatpush.msrb.mxu0 %v699_v13 }
 0x2ac   :  { %v955_v14 = vld [vmem:[#allocation5 + $0x1a70] sm:$0xff]  ;;  %2375 = vmatpush.msrb.mxu1 %v835_v41  ;;  %2271 = vmatmul.f32.vlgmr.msra.gmra.mxu0 %v3424_v40  ;;  %v3427_v41 = vld [vmem:[#allocation2 + $0x18] sm:$0xff] }
 0x2ad   :  { %v1091_v10 = vld [vmem:[#allocation5 + $0x1eb0] sm:$0xff]  ;;  %2399 = vmatpush.msrb.mxu2 %v955_v14  ;;  %2340 = vmatmul.f32.vlgmr.msra.gmra.mxu3 %v3427_v41 }
 0x2ae   :  { %v691_v8 = vld [vmem:[#allocation5 + $0x1230] sm:$0xff]  ;;  %2421 = vmatpush.msrb.mxu3 %v1091_v10  ;;  %v1996_v10 = vpop.f32.mrf.mxu0 }
 0x2af   :  { %v827_v15 = vld [vmem:[#allocation5 + $0x1670] sm:$0xff]  ;;  %2354 = vmatpush.msrb.mxu0 %v691_v8 }
 0x2b0   :  { %v947_v50 = vld [vmem:[#allocation5 + $0x1a30] sm:$0xff]  ;;  %2376 = vmatpush.msrb.mxu1 %v827_v15  ;;  %v1997_v15 = vadd.f32 %v1996_v10, %v1974_v30 }
 0x2b1   :  { %v1083_v23 = vld [vmem:[#allocation5 + $0x1e70] sm:$0xff]  ;;  %2400 = vmatpush.msrb.mxu2 %v947_v50  ;;  %v3430_v50 = vld [vmem:[#allocation2 + $0x8] sm:$0xff] }
 0x2b2   :  { %v683_v18 = vld [vmem:[#allocation5 + $0x11f0] sm:$0xff]  ;;  %2422 = vmatpush.msrb.mxu3 %v1083_v23  ;;  %2294 = vmatmul.f32.vlgmr.msra.gmra.mxu1 %v3430_v50 }
 0x2b3   :  { %v819_v32 = vld [vmem:[#allocation5 + $0x1630] sm:$0xff]  ;;  %2355 = vmatpush.msrb.mxu0 %v683_v18 }
 0x2b4   :  { %v939_v37 = vld [vmem:[#allocation5 + $0x19f0] sm:$0xff]  ;;  %2377 = vmatpush.msrb.mxu1 %v819_v32 }
 0x2b5   :  { %v1075_v53 = vld [vmem:[#allocation5 + $0x1e30] sm:$0xff]  ;;  %2401 = vmatpush.msrb.mxu2 %v939_v37  ;;  %v2020_v37 = vadd.f32 %v2019_v7, %v1997_v15  ;;  %v3441_v15 = vld [vmem:[#allocation2 + $0x58] sm:$0xff] }
 0x2b6   :  { %v3419_v33 = vld [vmem:[#allocation2 + $0x10] sm:$0xff]  ;;  %2423 = vmatpush.msrb.mxu3 %v1075_v53  ;;  %v2042_v53 = vpop.f32.mrf.mxu2 }
 0x2b7   :  { %2317 = vmatmul.f32.vlgmr.msra.gmra.mxu2 %v3419_v33  ;;  %v675_v60 = vld [vmem:[#allocation5 + $0x11b0] sm:$0xff]  ;;  %v2043_v9 = vadd.f32 %v2042_v53, %v2020_v37  ;;  %2343 = vmatmul.f32.gmra.mxu3 %v3441_v15  ;;  %v3445_v37 = vld [vmem:[#allocation2 + $0x48] sm:$0xff] }
 0x2b8   :  { %v811_v35 = vld [vmem:[#allocation5 + $0x15f0] sm:$0xff]  ;;  %2356 = vmatpush.msrb.mxu0 %v675_v60 }
 0x2b9   :  { %v931_v44 = vld [vmem:[#allocation5 + $0x19b0] sm:$0xff]  ;;  %2378 = vmatpush.msrb.mxu1 %v811_v35 }
 0x2ba   :  { %v1067_v13 = vld [vmem:[#allocation5 + $0x1df0] sm:$0xff]  ;;  %2402 = vmatpush.msrb.mxu2 %v931_v44  ;;  %2297 = vmatmul.f32.gmra.mxu1 %v3445_v37 }
 0x2bb   :  { %v667_v17 = vld [vmem:[#allocation5 + $0x1170] sm:$0xff]  ;;  %2424 = vmatpush.msrb.mxu3 %v1067_v13  ;;  %v2065_v13 = vpop.f32.mrf.mxu3 }
 0x2bc   :  { %v803_v14 = vld [vmem:[#allocation5 + $0x15b0] sm:$0xff]  ;;  %2357 = vmatpush.msrb.mxu0 %v667_v17  ;;  %v3436_v10 = vadd.f32 %v2065_v13, %v2043_v9  ;;  %v2022_v9 = vpop.f32.mrf.mxu1 }
 0x2bd   :  { %v923_v61 = vld [vmem:[#allocation5 + $0x1970] sm:$0xff]  ;;  %2379 = vmatpush.msrb.mxu1 %v803_v14 }
 0x2be   :  { %v1059_v8 = vld [vmem:[#allocation5 + $0x1db0] sm:$0xff]  ;;  %2403 = vmatpush.msrb.mxu2 %v923_v61  ;;  %3789 = vst [vmem:[#allocation21_spill] sm:$0xff] %v3436_v10  ;;  %v3438_v61 = vld [vmem:[#allocation2 + $0x40] sm:$0xff]  ;;  %v1116_v10 = vld [vmem:[#allocation5 + $0x1f78] sm:$0xff] }
 0x2bf   :  { %v659_v23 = vld [vmem:[#allocation5 + $0x1130] sm:$0xff]  ;;  %2425 = vmatpush.msrb.mxu3 %v1059_v8  ;;  %2274 = vmatmul.f32.gmra.mxu0 %v3438_v61 }
 0x2c0   :  { %v795_v57 = vld [vmem:[#allocation5 + $0x1570] sm:$0xff]  ;;  %2358 = vmatpush.msrb.mxu0 %v659_v23 }
 0x2c1   :  { %v915_v18 = vld [vmem:[#allocation5 + $0x1930] sm:$0xff]  ;;  %2380 = vmatpush.msrb.mxu1 %v795_v57 }
 0x2c2   :  { %v1051_v2 = vld [vmem:[#allocation5 + $0x1d70] sm:$0xff]  ;;  %2404 = vmatpush.msrb.mxu2 %v915_v18  ;;  %v1999_v18 = vpop.f32.mrf.mxu0 }
 0x2c3   :  { %v651_v32 = vld [vmem:[#allocation5 + $0x10f0] sm:$0xff]  ;;  %2426 = vmatpush.msrb.mxu3 %v1051_v2 }
 0x2c4   :  { %v787_v30 = vld [vmem:[#allocation5 + $0x1530] sm:$0xff]  ;;  %2359 = vmatpush.msrb.mxu0 %v651_v32  ;;  %v2000_v32 = vadd.f32 %v1999_v18, %v3422_v48  ;;  %v492_v48 = vld [vmem:[#allocation5 + $0xbf8] sm:$0xff] }
 0x2c5   :  { %v907_v47 = vld [vmem:[#allocation5 + $0x18f0] sm:$0xff]  ;;  %2381 = vmatpush.msrb.mxu1 %v787_v30 }
 0x2c6   :  { %v1043_v60 = vld [vmem:[#allocation5 + $0x1d30] sm:$0xff]  ;;  %2405 = vmatpush.msrb.mxu2 %v907_v47  ;;  %v2023_v13 = vadd.f32 %v2022_v9, %v2000_v32  ;;  %v356_v9 = vld [vmem:[#allocation5 + $0x7b8] sm:$0xff] }
 0x2c7   :  { %v3433_v35 = vld [vmem:[#allocation2 + $0x50] sm:$0xff]  ;;  %2427 = vmatpush.msrb.mxu3 %v1043_v60 }
 0x2c8   :  { %2320 = vmatmul.f32.gmra.mxu2 %v3433_v35  ;;  %v643_v44 = vld [vmem:[#allocation5 + $0x10b0] sm:$0xff] }
 0x2c9   :  { %v779_v17 = vld [vmem:[#allocation5 + $0x14f0] sm:$0xff]  ;;  %2360 = vmatpush.msrb.mxu0 %v643_v44  ;;  %v236_v44 = vld [vmem:[#allocation5 + $0x3f8] sm:$0xff] }
 0x2ca   :  { %v899_v14 = vld [vmem:[#allocation5 + $0x18b0] sm:$0xff]  ;;  %2382 = vmatpush.msrb.mxu1 %v779_v17  ;;  %v2045_v17 = vpop.f32.mrf.mxu2 }
 0x2cb   :  { %v1035_v8 = vld [vmem:[#allocation5 + $0x1cf0] sm:$0xff]  ;;  %2406 = vmatpush.msrb.mxu2 %v899_v14  ;;  %v2046_v18 = vadd.f32 %v2045_v17, %v2023_v13  ;;  %v612_v13 = vld [vmem:[#allocation5 + $0xfb8] sm:$0xff]  ;;  %v3459_v17 = vld [vmem:[#allocation2 + $0x28] sm:$0xff] }
 0x2cc   :  { %v635_v23 = vld [vmem:[#allocation5 + $0x1070] sm:$0xff]  ;;  %2428 = vmatpush.msrb.mxu3 %v1035_v8 }
 0x2cd   :  { %v771_v57 = vld [vmem:[#allocation5 + $0x14b0] sm:$0xff]  ;;  %2361 = vmatpush.msrb.mxu0 %v635_v23  ;;  %v228_v23 = vld [vmem:[#allocation5 + $0x3b8] sm:$0xff] }
 0x2ce   :  { %v891_v2 = vld [vmem:[#allocation5 + $0x1870] sm:$0xff]  ;;  %2383 = vmatpush.msrb.mxu1 %v771_v57  ;;  %v2068_v57 = vpop.f32.mrf.mxu3 }
 0x2cf   :  { %v1027_v7 = vld [vmem:[#allocation5 + $0x1cb0] sm:$0xff]  ;;  %2407 = vmatpush.msrb.mxu2 %v891_v2  ;;  %v364_v2 = vld [vmem:[#allocation5 + $0x7f8] sm:$0xff]  ;;  %v3451_v32 = vadd.f32 %v2068_v57, %v2046_v18 }
 0x2d0   :  { %v627_v53 = vld [vmem:[#allocation5 + $0x1030] sm:$0xff]  ;;  %2429 = vmatpush.msrb.mxu3 %v1027_v7  ;;  %v484_v7 = vld [vmem:[#allocation5 + $0xbb8] sm:$0xff] }
 0x2d1   :  { %v763_v30 = vld [vmem:[#allocation5 + $0x1470] sm:$0xff]  ;;  %2362 = vmatpush.msrb.mxu0 %v627_v53  ;;  %3790 = vst [vmem:[#allocation22_spill] sm:$0xff] %v3451_v32  ;;  %v3453_v53 = vld [vmem:[#allocation2 + $0x20] sm:$0xff]  ;;  %v604_v18 = vld [vmem:[#allocation5 + $0xf78] sm:$0xff] }
 0x2d2   :  { %v883_v47 = vld [vmem:[#allocation5 + $0x1830] sm:$0xff]  ;;  %2384 = vmatpush.msrb.mxu1 %v763_v30  ;;  %2363 = vmatmul.f32.vlgmr.msrb.gmra.mxu0 %v3453_v53  ;;  %v620_v30 = vld [vmem:[#allocation5 + $0xff8] sm:$0xff]  ;;  %v2134_v1 = vpop.f32.mrf.mxu2 }
 0x2d3   :  { %v1019_v60 = vld [vmem:[#allocation5 + $0x1c70] sm:$0xff]  ;;  %2408 = vmatpush.msrb.mxu2 %v883_v47  ;;  %2439 = vmatpush.msra.mxu0 %v236_v44  ;;  %v3456_v47 = vld [vmem:[#allocation2 + $0x38] sm:$0xff] }
 0x2d4   :  { %v755_v14 = vld [vmem:[#allocation5 + $0x1430] sm:$0xff]  ;;  %2430 = vmatpush.msrb.mxu3 %v1019_v60  ;;  %v220_v60 = vld [vmem:[#allocation5 + $0x378] sm:$0xff] }
 0x2d5   :  { %v1011_v8 = vld [vmem:[#allocation5 + $0x1c30] sm:$0xff]  ;;  %2485 = vmatpush.msra.mxu2 %v492_v48  ;;  %2385 = vmatpush.msrb.mxu1 %v755_v14  ;;  %v476_v44 = vld [vmem:[#allocation5 + $0xb78] sm:$0xff] }
 0x2d6   :  { %v3448_v63 = vld [vmem:[#allocation2 + $0x30] sm:$0xff]  ;;  %2431 = vmatpush.msrb.mxu3 %v1011_v8  ;;  %2440 = vmatpush.msra.mxu0 %v228_v23  ;;  %v212_v48 = vld [vmem:[#allocation5 + $0x338] sm:$0xff] }
 0x2d7   :  { %2409 = vmatmul.f32.vlgmr.msrb.gmra.mxu2 %v3448_v63  ;;  %2432 = vmatmul.f32.vlgmr.msrb.gmra.mxu3 %v3456_v47  ;;  %v348_v14 = vld [vmem:[#allocation5 + $0x778] sm:$0xff] }
 0x2d8   :  { %2462 = vmatpush.msra.mxu1 %v364_v2  ;;  %2486 = vmatpush.msra.mxu2 %v484_v7  ;;  %v468_v8 = vld [vmem:[#allocation5 + $0xb38] sm:$0xff] }
 0x2d9   :  { %2508 = vmatpush.msra.mxu3 %v620_v30  ;;  %2386 = vmatmul.f32.vlgmr.msrb.gmra.mxu1 %v3459_v17  ;;  %v204_v23 = vld [vmem:[#allocation5 + $0x2f8] sm:$0xff] }
 0x2da   :  { %2441 = vmatpush.msra.mxu0 %v220_v60  ;;  %2463 = vmatpush.msra.mxu1 %v356_v9  ;;  %v340_v57 = vld [vmem:[#allocation5 + $0x738] sm:$0xff] }
 0x2db   :  { %2487 = vmatpush.msra.mxu2 %v476_v44  ;;  %2509 = vmatpush.msra.mxu3 %v612_v13  ;;  %v460_v2 = vld [vmem:[#allocation5 + $0xaf8] sm:$0xff] }
 0x2dc   :  { %2442 = vmatpush.msra.mxu0 %v212_v48  ;;  %2464 = vmatpush.msra.mxu1 %v348_v14  ;;  %v596_v7 = vld [vmem:[#allocation5 + $0xf38] sm:$0xff] }
 0x2dd   :  { %2488 = vmatpush.msra.mxu2 %v468_v8  ;;  %2510 = vmatpush.msra.mxu3 %v604_v18  ;;  %v196_v30 = vld [vmem:[#allocation5 + $0x2b8] sm:$0xff] }
 0x2de   :  { %2443 = vmatpush.msra.mxu0 %v204_v23  ;;  %2465 = vmatpush.msra.mxu1 %v340_v57  ;;  %v332_v60 = vld [vmem:[#allocation5 + $0x6f8] sm:$0xff] }
 0x2df   :  { %2412 = vmatmul.f32.gmra.mxu2 %v3400_v62  ;;  %v452_v9 = vld [vmem:[#allocation5 + $0xab8] sm:$0xff]  ;;  %2511 = vmatpush.msra.mxu3 %v596_v7 }
 0x2e0   :  { %2489 = vmatpush.msra.mxu2 %v460_v2  ;;  %2366 = vmatmul.f32.gmra.mxu0 %v3403_v56  ;;  %v588_v44 = vld [vmem:[#allocation5 + $0xef8] sm:$0xff] }
 0x2e1   :  { %2435 = vmatmul.f32.gmra.mxu3 %v3406_v49  ;;  %2444 = vmatpush.msra.mxu0 %v196_v30  ;;  %v188_v13 = vld [vmem:[#allocation5 + $0x278] sm:$0xff] }
 0x2e2   :  { %v324_v48 = vld [vmem:[#allocation5 + $0x6b8] sm:$0xff]  ;;  %2466 = vmatpush.msra.mxu1 %v332_v60  ;;  %2490 = vmatpush.msra.mxu2 %v452_v9 }
 0x2e3   :  { %v444_v14 = vld [vmem:[#allocation5 + $0xa78] sm:$0xff]  ;;  %2512 = vmatpush.msra.mxu3 %v588_v44  ;;  %2389 = vmatmul.f32.gmra.mxu1 %v3409_v24 }
 0x2e4   :  { %v580_v8 = vld [vmem:[#allocation5 + $0xeb8] sm:$0xff]  ;;  %2445 = vmatpush.msra.mxu0 %v188_v13  ;;  %2467 = vmatpush.msra.mxu1 %v324_v48 }
 0x2e5   :  { %v180_v62 = vld [vmem:[#allocation5 + $0x238] sm:$0xff]  ;;  %2491 = vmatpush.msra.mxu2 %v444_v14  ;;  %2513 = vmatpush.msra.mxu3 %v580_v8 }
 0x2e6   :  { %v316_v18 = vld [vmem:[#allocation5 + $0x678] sm:$0xff]  ;;  %2446 = vmatpush.msra.mxu0 %v180_v62 }
 0x2e7   :  { %v436_v23 = vld [vmem:[#allocation5 + $0xa38] sm:$0xff]  ;;  %2468 = vmatpush.msra.mxu1 %v316_v18 }
 0x2e8   :  { %v572_v57 = vld [vmem:[#allocation5 + $0xe78] sm:$0xff]  ;;  %2492 = vmatpush.msra.mxu2 %v436_v23 }
 0x2e9   :  { %v172_v56 = vld [vmem:[#allocation5 + $0x1f8] sm:$0xff]  ;;  %2514 = vmatpush.msra.mxu3 %v572_v57 }
 0x2ea   :  { %v308_v49 = vld [vmem:[#allocation5 + $0x638] sm:$0xff]  ;;  %2447 = vmatpush.msra.mxu0 %v172_v56 }
 0x2eb   :  { %v428_v2 = vld [vmem:[#allocation5 + $0x9f8] sm:$0xff]  ;;  %2469 = vmatpush.msra.mxu1 %v308_v49 }
 0x2ec   :  { %v564_v7 = vld [vmem:[#allocation5 + $0xe38] sm:$0xff]  ;;  %2493 = vmatpush.msra.mxu2 %v428_v2 }
 0x2ed   :  { %v164_v30 = vld [vmem:[#allocation5 + $0x1b8] sm:$0xff]  ;;  %2515 = vmatpush.msra.mxu3 %v564_v7 }
 0x2ee   :  { %v300_v60 = vld [vmem:[#allocation5 + $0x5f8] sm:$0xff]  ;;  %2448 = vmatpush.msra.mxu0 %v164_v30 }
 0x2ef   :  { %v420_v24 = vld [vmem:[#allocation5 + $0x9b8] sm:$0xff]  ;;  %2470 = vmatpush.msra.mxu1 %v300_v60 }
 0x2f0   :  { %v556_v9 = vld [vmem:[#allocation5 + $0xdf8] sm:$0xff]  ;;  %2494 = vmatpush.msra.mxu2 %v420_v24 }
 0x2f1   :  { %v156_v44 = vld [vmem:[#allocation5 + $0x178] sm:$0xff]  ;;  %2516 = vmatpush.msra.mxu3 %v556_v9 }
 0x2f2   :  { %v292_v13 = vld [vmem:[#allocation5 + $0x5b8] sm:$0xff]  ;;  %2449 = vmatpush.msra.mxu0 %v156_v44 }
 0x2f3   :  { %v412_v48 = vld [vmem:[#allocation5 + $0x978] sm:$0xff]  ;;  %2471 = vmatpush.msra.mxu1 %v292_v13 }
 0x2f4   :  { %v548_v14 = vld [vmem:[#allocation5 + $0xdb8] sm:$0xff]  ;;  %2495 = vmatpush.msra.mxu2 %v412_v48 }
 0x2f5   :  { %v148_v8 = vld [vmem:[#allocation5 + $0x138] sm:$0xff]  ;;  %2517 = vmatpush.msra.mxu3 %v548_v14 }
 0x2f6   :  { %v284_v62 = vld [vmem:[#allocation5 + $0x578] sm:$0xff]  ;;  %2450 = vmatpush.msra.mxu0 %v148_v8 }
 0x2f7   :  { %v404_v18 = vld [vmem:[#allocation5 + $0x938] sm:$0xff]  ;;  %2472 = vmatpush.msra.mxu1 %v284_v62 }
 0x2f8   :  { %v540_v23 = vld [vmem:[#allocation5 + $0xd78] sm:$0xff]  ;;  %2496 = vmatpush.msra.mxu2 %v404_v18 }
 0x2f9   :  { %v140_v57 = vld [vmem:[#allocation5 + $0xf8] sm:$0xff]  ;;  %2518 = vmatpush.msra.mxu3 %v540_v23  ;;  %v3782_v23 = vperm.slane %v3412_v51, 5 }
 0x2fa   :  { %v276_v56 = vld [vmem:[#allocation5 + $0x538] sm:$0xff]  ;;  %2451 = vmatpush.msra.mxu0 %v140_v57 }
 0x2fb   :  { %v396_v49 = vld [vmem:[#allocation5 + $0x8f8] sm:$0xff]  ;;  %2473 = vmatpush.msra.mxu1 %v276_v56 }
 0x2fc   :  { %v532_v2 = vld [vmem:[#allocation5 + $0xd38] sm:$0xff]  ;;  %2497 = vmatpush.msra.mxu2 %v396_v49 }
 0x2fd   :  { %v132_v7 = vld [vmem:[#allocation5 + $0xb8] sm:$0xff]  ;;  %2519 = vmatpush.msra.mxu3 %v532_v2 }
 0x2fe   :  { %v268_v30 = vld [vmem:[#allocation5 + $0x4f8] sm:$0xff]  ;;  %2452 = vmatpush.msra.mxu0 %v132_v7 }
 0x2ff   :  { %v388_v60 = vld [vmem:[#allocation5 + $0x8b8] sm:$0xff]  ;;  %2474 = vmatpush.msra.mxu1 %v268_v30 }
 0x300   :  { %v524_v24 = vld [vmem:[#allocation5 + $0xcf8] sm:$0xff]  ;;  %2498 = vmatpush.msra.mxu2 %v388_v60  ;;  %v2088_v60 = vpop.f32.mrf.mxu0 }
 0x301   :  { %v124_v9 = vld [vmem:[#allocation5 + $0x78] sm:$0xff]  ;;  %2520 = vmatpush.msra.mxu3 %v524_v24 }
 0x302   :  { %v260_v44 = vld [vmem:[#allocation5 + $0x4b8] sm:$0xff]  ;;  %2453 = vmatpush.msra.mxu0 %v124_v9 }
 0x303   :  { %v380_v13 = vld [vmem:[#allocation5 + $0x878] sm:$0xff]  ;;  %2475 = vmatpush.msra.mxu1 %v260_v44  ;;  %v2089_v44 = vadd.f32 %v2088_v60, %v3782_v23  ;;  %v2157_v23 = vpop.f32.mrf.mxu3 }
 0x304   :  { %v516_v48 = vld [vmem:[#allocation5 + $0xcb8] sm:$0xff]  ;;  %2499 = vmatpush.msra.mxu2 %v380_v13 }
 0x305   :  { %v116_v14 = vld [vmem:[#allocation5 + $0x38] sm:$0xff]  ;;  %2521 = vmatpush.msra.mxu3 %v516_v48 }
 0x306   :  { %v252_v8 = vld [vmem:[#allocation5 + $0x478] sm:$0xff]  ;;  %2454 = vmatpush.msra.mxu0 %v116_v14 }
 0x307   :  { %v372_v62 = vld [vmem:[#allocation5 + $0x838] sm:$0xff]  ;;  %2476 = vmatpush.msra.mxu1 %v252_v8  ;;  %2455 = vmatmul.f32.vlgmr.msra.gmra.mxu0 %v3424_v40 }
 0x308   :  { %v508_v18 = vld [vmem:[#allocation5 + $0xc78] sm:$0xff]  ;;  %2500 = vmatpush.msra.mxu2 %v372_v62  ;;  %v2111_v62 = vpop.f32.mrf.mxu1 }
 0x309   :  { %v748_v57 = vld [vmem:[#allocation5 + $0x13f8] sm:$0xff]  ;;  %2522 = vmatpush.msra.mxu3 %v508_v18  ;;  %2501 = vmatmul.f32.vlgmr.msra.gmra.mxu2 %v3419_v33 }
 0x30a   :  { %v1004_v56 = vld [vmem:[#allocation5 + $0x1bf8] sm:$0xff]  ;;  %2531 = vmatpush.msrb.mxu0 %v748_v57  ;;  %v2112_v57 = vadd.f32 %v2111_v62, %v2089_v44 }
 0x30b   :  { %v244_v49 = vld [vmem:[#allocation5 + $0x438] sm:$0xff]  ;;  %2577 = vmatpush.msrb.mxu2 %v1004_v56 }
 0x30c   :  { %v500_v2 = vld [vmem:[#allocation5 + $0xc38] sm:$0xff]  ;;  %2477 = vmatpush.msra.mxu1 %v244_v49  ;;  %v2135_v60 = vadd.f32 %v2134_v1, %v2112_v57  ;;  %v2091_v1 = vpop.f32.mrf.mxu0 }
 0x30d   :  { %v740_v7 = vld [vmem:[#allocation5 + $0x13b8] sm:$0xff]  ;;  %2523 = vmatpush.msra.mxu3 %v500_v2  ;;  %2478 = vmatmul.f32.vlgmr.msra.gmra.mxu1 %v3430_v50 }
 0x30e   :  { %v876_v30 = vld [vmem:[#allocation5 + $0x17f8] sm:$0xff]  ;;  %2532 = vmatpush.msrb.mxu0 %v740_v7  ;;  %v3469_v44 = vadd.f32 %v2157_v23, %v2135_v60  ;;  %2524 = vmatmul.f32.vlgmr.msra.gmra.mxu3 %v3427_v41 }
 0x30f   :  { %v996_v24 = vld [vmem:[#allocation5 + $0x1bb8] sm:$0xff]  ;;  %2554 = vmatpush.msrb.mxu1 %v876_v30  ;;  %2458 = vmatmul.f32.gmra.mxu0 %v3438_v61 }
 0x310   :  { %v1132_v9 = vld [vmem:[#allocation5 + $0x1ff8] sm:$0xff]  ;;  %2578 = vmatpush.msrb.mxu2 %v996_v24 }
 0x311   :  { %v732_v13 = vld [vmem:[#allocation5 + $0x1378] sm:$0xff]  ;;  %2600 = vmatpush.msrb.mxu3 %v1132_v9  ;;  %2504 = vmatmul.f32.gmra.mxu2 %v3433_v35 }
 0x312   :  { %v868_v48 = vld [vmem:[#allocation5 + $0x17b8] sm:$0xff]  ;;  %2533 = vmatpush.msrb.mxu0 %v732_v13 }
 0x313   :  { %v988_v14 = vld [vmem:[#allocation5 + $0x1b78] sm:$0xff]  ;;  %2555 = vmatpush.msrb.mxu1 %v868_v48 }
 0x314   :  { %v1124_v8 = vld [vmem:[#allocation5 + $0x1fb8] sm:$0xff]  ;;  %2579 = vmatpush.msrb.mxu2 %v988_v14 }
 0x315   :  { %v724_v18 = vld [vmem:[#allocation5 + $0x1338] sm:$0xff]  ;;  %2601 = vmatpush.msrb.mxu3 %v1124_v8  ;;  %2481 = vmatmul.f32.gmra.mxu1 %v3445_v37 }
 0x316   :  { %v860_v32 = vld [vmem:[#allocation5 + $0x1778] sm:$0xff]  ;;  %2534 = vmatpush.msrb.mxu0 %v724_v18  ;;  %v3791_v18 = vperm.slane %v3412_v51, 5  ;;  %2527 = vmatmul.f32.gmra.mxu3 %v3441_v15 }
 0x317   :  { %v980_v56 = vld [vmem:[#allocation5 + $0x1b38] sm:$0xff]  ;;  %2556 = vmatpush.msrb.mxu1 %v860_v32  ;;  %2602 = vmatpush.msrb.mxu3 %v1116_v10 }
 0x318   :  { %v716_v49 = vld [vmem:[#allocation5 + $0x12f8] sm:$0xff]  ;;  %2580 = vmatpush.msrb.mxu2 %v980_v56  ;;  %v2092_v10 = vadd.f32 %v2091_v1, %v3791_v18 }
 0x319   :  { %v852_v2 = vld [vmem:[#allocation5 + $0x1738] sm:$0xff]  ;;  %2535 = vmatpush.msrb.mxu0 %v716_v49 }
 0x31a   :  { %v972_v7 = vld [vmem:[#allocation5 + $0x1af8] sm:$0xff]  ;;  %2557 = vmatpush.msrb.mxu1 %v852_v2  ;;  %v2114_v2 = vpop.f32.mrf.mxu1 }
 0x31b   :  { %v1108_v30 = vld [vmem:[#allocation5 + $0x1f38] sm:$0xff]  ;;  %2581 = vmatpush.msrb.mxu2 %v972_v7  ;;  %v2115_v60 = vadd.f32 %v2114_v2, %v2092_v10 }
 0x31c   :  { %v708_v24 = vld [vmem:[#allocation5 + $0x12b8] sm:$0xff]  ;;  %2603 = vmatpush.msrb.mxu3 %v1108_v30 }
 0x31d   :  { %v844_v9 = vld [vmem:[#allocation5 + $0x16f8] sm:$0xff]  ;;  %2536 = vmatpush.msrb.mxu0 %v708_v24  ;;  %v2137_v24 = vpop.f32.mrf.mxu2 }
 0x31e   :  { %v964_v13 = vld [vmem:[#allocation5 + $0x1ab8] sm:$0xff]  ;;  %2558 = vmatpush.msrb.mxu1 %v844_v9 }
 0x31f   :  { %v1100_v48 = vld [vmem:[#allocation5 + $0x1ef8] sm:$0xff]  ;;  %2582 = vmatpush.msrb.mxu2 %v964_v13 }
 0x320   :  { %v700_v14 = vld [vmem:[#allocation5 + $0x1278] sm:$0xff]  ;;  %2604 = vmatpush.msrb.mxu3 %v1100_v48  ;;  %v2138_v48 = vadd.f32 %v2137_v24, %v2115_v60 }
 0x321   :  { %v836_v8 = vld [vmem:[#allocation5 + $0x16b8] sm:$0xff]  ;;  %2537 = vmatpush.msrb.mxu0 %v700_v14  ;;  %v2160_v14 = vpop.f32.mrf.mxu3 }
 0x322   :  { %v956_v32 = vld [vmem:[#allocation5 + $0x1a78] sm:$0xff]  ;;  %2559 = vmatpush.msrb.mxu1 %v836_v8 }
 0x323   :  { %v1092_v62 = vld [vmem:[#allocation5 + $0x1eb8] sm:$0xff]  ;;  %2583 = vmatpush.msrb.mxu2 %v956_v32  ;;  %v3475_v32 = vadd.f32 %v2160_v14, %v2138_v48 }
 0x324   :  { %v692_v23 = vld [vmem:[#allocation5 + $0x1238] sm:$0xff]  ;;  %2605 = vmatpush.msrb.mxu3 %v1092_v62 }
 0x325   :  { %v828_v57 = vld [vmem:[#allocation5 + $0x1678] sm:$0xff]  ;;  %2538 = vmatpush.msrb.mxu0 %v692_v23 }
 0x326   :  { %v948_v56 = vld [vmem:[#allocation5 + $0x1a38] sm:$0xff]  ;;  %2560 = vmatpush.msrb.mxu1 %v828_v57 }
 0x327   :  { %v1084_v49 = vld [vmem:[#allocation5 + $0x1e78] sm:$0xff]  ;;  %2584 = vmatpush.msrb.mxu2 %v948_v56 }
 0x328   :  { %v684_v7 = vld [vmem:[#allocation5 + $0x11f8] sm:$0xff]  ;;  %2606 = vmatpush.msrb.mxu3 %v1084_v49 }
 0x329   :  { %v820_v30 = vld [vmem:[#allocation5 + $0x1638] sm:$0xff]  ;;  %2539 = vmatpush.msrb.mxu0 %v684_v7 }
 0x32a   :  { %v940_v9 = vld [vmem:[#allocation5 + $0x19f8] sm:$0xff]  ;;  %2561 = vmatpush.msrb.mxu1 %v820_v30 }
 0x32b   :  { %v1076_v13 = vld [vmem:[#allocation5 + $0x1e38] sm:$0xff]  ;;  %2585 = vmatpush.msrb.mxu2 %v940_v9 }
 0x32c   :  { %v676_v8 = vld [vmem:[#allocation5 + $0x11b8] sm:$0xff]  ;;  %2607 = vmatpush.msrb.mxu3 %v1076_v13 }
 0x32d   :  { %v812_v1 = vld [vmem:[#allocation5 + $0x15f8] sm:$0xff]  ;;  %2540 = vmatpush.msrb.mxu0 %v676_v8 }
 0x32e   :  { %v932_v62 = vld [vmem:[#allocation5 + $0x19b8] sm:$0xff]  ;;  %2562 = vmatpush.msrb.mxu1 %v812_v1 }
 0x32f   :  { %v1068_v18 = vld [vmem:[#allocation5 + $0x1df8] sm:$0xff]  ;;  %2586 = vmatpush.msrb.mxu2 %v932_v62 }
 0x330   :  { %v668_v10 = vld [vmem:[#allocation5 + $0x1178] sm:$0xff]  ;;  %2608 = vmatpush.msrb.mxu3 %v1068_v18 }
 0x331   :  { %v804_v23 = vld [vmem:[#allocation5 + $0x15b8] sm:$0xff]  ;;  %2541 = vmatpush.msrb.mxu0 %v668_v10  ;;  %v2917_v10 = vld [vmem:[#allocation2 + $0x60] sm:$0xff] }
 0x332   :  { %v924_v33 = vld [vmem:[#allocation5 + $0x1978] sm:$0xff]  ;;  %2563 = vmatpush.msrb.mxu1 %v804_v23  ;;  %v2918_v23 = vld [vmem:[#allocation2 + $0x70] sm:$0xff] }
 0x333   :  { %v1060_v40 = vld [vmem:[#allocation5 + $0x1db8] sm:$0xff]  ;;  %2587 = vmatpush.msrb.mxu2 %v924_v33  ;;  %v2919_v33 = vld [vmem:[#allocation2 + $0x68] sm:$0xff] }
 0x334   :  { %v660_v57 = vld [vmem:[#allocation5 + $0x1138] sm:$0xff]  ;;  %2609 = vmatpush.msrb.mxu3 %v1060_v40 }
 0x335   :  { %v796_v56 = vld [vmem:[#allocation5 + $0x1578] sm:$0xff]  ;;  %2542 = vmatpush.msrb.mxu0 %v660_v57  ;;  %v2180_v57 = vpop.f32.mrf.mxu0 }
 0x336   :  { %v916_v49 = vld [vmem:[#allocation5 + $0x1938] sm:$0xff]  ;;  %2564 = vmatpush.msrb.mxu1 %v796_v56  ;;  %v3487_v56 = vpop.f32.mrf.mxu1 }
 0x337   :  { %v1052_v2 = vld [vmem:[#allocation5 + $0x1d78] sm:$0xff]  ;;  %2588 = vmatpush.msrb.mxu2 %v916_v49 }
 0x338   :  { %v652_v50 = vld [vmem:[#allocation5 + $0x10f8] sm:$0xff]  ;;  %2610 = vmatpush.msrb.mxu3 %v1052_v2 }
 0x339   :  { %v788_v41 = vld [vmem:[#allocation5 + $0x1538] sm:$0xff]  ;;  %2543 = vmatpush.msrb.mxu0 %v652_v50 }
 0x33a   :  { %v908_v60 = vld [vmem:[#allocation5 + $0x18f8] sm:$0xff]  ;;  %2565 = vmatpush.msrb.mxu1 %v788_v41 }
 0x33b   :  { %v1044_v7 = vld [vmem:[#allocation5 + $0x1d38] sm:$0xff]  ;;  %2589 = vmatpush.msrb.mxu2 %v908_v60 }
 0x33c   :  { %v644_v30 = vld [vmem:[#allocation5 + $0x10b8] sm:$0xff]  ;;  %2611 = vmatpush.msrb.mxu3 %v1044_v7 }
 0x33d   :  { %v780_v24 = vld [vmem:[#allocation5 + $0x14f8] sm:$0xff]  ;;  %2544 = vmatpush.msrb.mxu0 %v644_v30  ;;  %v3493_v49 = vpop.f32.mrf.mxu0 }
 0x33e   :  { %v900_v9 = vld [vmem:[#allocation5 + $0x18b8] sm:$0xff]  ;;  %2566 = vmatpush.msrb.mxu1 %v780_v24 }
 0x33f   :  { %v1036_v13 = vld [vmem:[#allocation5 + $0x1cf8] sm:$0xff]  ;;  %2590 = vmatpush.msrb.mxu2 %v900_v9  ;;  %v1136_v9 = vperm.slane %v3412_v51, 1 }
 0x340   :  { %v636_v48 = vld [vmem:[#allocation5 + $0x1078] sm:$0xff]  ;;  %2612 = vmatpush.msrb.mxu3 %v1036_v13 }
 0x341   :  { %v772_v14 = vld [vmem:[#allocation5 + $0x14b8] sm:$0xff]  ;;  %2545 = vmatpush.msrb.mxu0 %v636_v48  ;;  %v1135_v48 = vperm.slane %v3412_v51, 0 }
 0x342   :  { %v892_v8 = vld [vmem:[#allocation5 + $0x1878] sm:$0xff]  ;;  %2567 = vmatpush.msrb.mxu1 %v772_v14 }
 0x343   :  { %v1028_v61 = vld [vmem:[#allocation5 + $0x1cb8] sm:$0xff]  ;;  %2591 = vmatpush.msrb.mxu2 %v892_v8  ;;  %v1353_v8 = vadd.f32 %v3277_v36, %v1136_v9  ;;  %v1356_v36 = vadd.f32 %v3289_v59, %v1136_v9 }
 0x344   :  { %v628_v35 = vld [vmem:[#allocation5 + $0x1038] sm:$0xff]  ;;  %2613 = vmatpush.msrb.mxu3 %v1028_v61 }
 0x345   :  { %v764_v1 = vld [vmem:[#allocation5 + $0x1478] sm:$0xff]  ;;  %2546 = vmatpush.msrb.mxu0 %v628_v35  ;;  %v2272_v2 = vpop.f32.mrf.mxu0  ;;  %v1169_v35 = vadd.f32 %v3237_v3, %v1135_v48  ;;  %v1172_v3 = vadd.f32 %v3245_v34, %v1135_v48 }
 0x346   :  { %v884_v62 = vld [vmem:[#allocation5 + $0x1838] sm:$0xff]  ;;  %2568 = vmatpush.msrb.mxu1 %v764_v1  ;;  %2547 = vmatmul.f32.vlgmr.msrb.gmra.mxu0 %v3453_v53  ;;  %v3489_v53 = vpop.f32.mrf.mxu2 }
 0x347   :  { %v1020_v18 = vld [vmem:[#allocation5 + $0x1c78] sm:$0xff]  ;;  %2592 = vmatpush.msrb.mxu2 %v884_v62  ;;  %v1376_v62 = vadd.f32 %v3279_v38, %v1353_v8 }
 0x348   :  { %v756_v37 = vld [vmem:[#allocation5 + $0x1438] sm:$0xff]  ;;  %2614 = vmatpush.msrb.mxu3 %v1020_v18  ;;  %2593 = vmatmul.f32.vlgmr.msrb.gmra.mxu2 %v3448_v63  ;;  %v3491_v63 = vpop.f32.mrf.mxu3  ;;  %v1192_v18 = vadd.f32 %v3239_v12, %v1169_v35 }
 0x349   :  { %v1012_v15 = vld [vmem:[#allocation5 + $0x1c38] sm:$0xff]  ;;  %2569 = vmatpush.msrb.mxu1 %v756_v37 }
 0x34a   :  { %2615 = vmatpush.msrb.mxu3 %v1012_v15  ;;  %2570 = vmatmul.f32.vlgmr.msrb.gmra.mxu1 %v3459_v17  ;;  %v2920_v40 = vld [vmem:[#allocation2 + $0x78] sm:$0xff]  ;;  %v3495_v17 = vpop.f32.mrf.mxu1  ;;  %v1399_v15 = vadd.f32 %v3282_v42, %v1376_v62  ;;  %v1379_v42 = vadd.f32 %v3291_v46, %v1356_v36 }
 0x34b   :  { %2616 = vmatmul.f32.vlgmr.msrb.gmra.mxu3 %v3456_v47 }
 0x34c   :  { %v1402_v34 = vadd.f32 %v3296_v6, %v1379_v42 }
 0x34d   :  { %v2275_v30 = vpop.f32.mrf.mxu0 }
 0x34e   :  { %2550 = vmatmul.f32.gmra.mxu0 %v2917_v10  ;;  %v3497_v47 = vpop.f32.mrf.mxu2  ;;  %v1141_v10 = vperm.slane %v3412_v51, 6  ;;  %v1195_v51 = vadd.f32 %v3247_v39, %v1172_v3 }
 0x350   :  { %2596 = vmatmul.f32.gmra.mxu2 %v2918_v23  ;;  %v3499_v50 = vpop.f32.mrf.mxu3  ;;  %v2273_v38 = vadd.f32 %v2272_v2, %v1141_v10  ;;  %v2276_v46 = vadd.f32 %v2275_v30, %v1141_v10 }
 0x351   :  { %3792 = vst [vmem:[#allocation23_spill] sm:$0xff] %v3499_v50  ;;  %v1422_v50 = vadd.f32 %v3286_v28, %v1399_v15  ;;  %v1218_v28 = vadd.f32 %v3249_v43, %v1195_v51 }
 0x352   :  { %2573 = vmatmul.f32.gmra.mxu1 %v2919_v33  ;;  %v2295_v41 = vpop.f32.mrf.mxu1  ;;  %v1215_v33 = vadd.f32 %v3241_v16, %v1192_v18  ;;  %v2921_v18 = vld [vmem:[#allocation7] sm:$0xff] }
 0x353   :  { %2619 = vmatmul.f32.gmra.mxu3 %v2920_v40  ;;  %v1445_v35 = vadd.f32 %v3309_v31, %v1422_v50  ;;  %v2296_v16 = vadd.f32 %v2295_v41, %v2273_v38  ;;  %v1142_v39 = vperm.slane %v2921_v18, 7  ;;  %v1425_v50 = vadd.f32 %v3304_v19, %v1402_v34 }
 0x354   :  { %v1238_v12 = vadd.f32 %v3243_v26, %v1215_v33 }
 0x355   :  { %v2364_v61 = vpop.f32.mrf.mxu0  ;;  %v1468_v26 = vadd.f32 %v3311_v45, %v1445_v35  ;;  %v1448_v45 = vadd.f32 %v3317_v4, %v1425_v50 }
 0x356   :  { %v2318_v60 = vpop.f32.mrf.mxu2  ;;  %v1261_v59 = vadd.f32 %v3254_v55, %v1238_v12  ;;  %v1241_v55 = vadd.f32 %v3251_v27, %v1218_v28  ;;  %v3794_v28 = vld [vmem:[#allocation19_spill] sm:$0xff] }
 0x357   :  { %v2319_v48 = vadd.f32 %v2318_v60, %v2296_v16  ;;  %v1491_v6 = vadd.f32 %v3313_v22, %v1468_v26  ;;  %v2181_v60 = vadd.f32 %v2180_v57, %v3469_v44 }
 0x358   :  { %v2341_v7 = vpop.f32.mrf.mxu3  ;;  %v1284_v31 = vadd.f32 %v3258_v0, %v1261_v59  ;;  %v1264_v30 = vadd.f32 %v3265_v52, %v1241_v55 }
 0x359   :  { %v2342_v33 = vadd.f32 %v2341_v7, %v2319_v48  ;;  %v3540_v0 = vadd.f32 %v3315_v54, %v1491_v6  ;;  %v3795_v48 = vld [vmem:[#allocation16_spill] sm:$0xff] }
 0x35a   :  { %v2298_v24 = vpop.f32.mrf.mxu1  ;;  %v1307_v3 = vadd.f32 %v3260_v5, %v1284_v31  ;;  %v2204_v5 = vadd.f32 %v3487_v56, %v2181_v60  ;;  %v1287_v4 = vadd.f32 %v3268_v21, %v1264_v30  ;;  %v2184_v21 = vadd.f32 %v3493_v49, %v3475_v32 }
 0x35b   :  { %v2299_v43 = vadd.f32 %v2298_v24, %v2276_v46  ;;  %v2365_v38 = vadd.f32 %v2364_v61, %v2342_v33  ;;  %v1471_v24 = vadd.f32 %v3319_v20, %v1448_v45  ;;  %v2642_v52 = vmul.f32 %v3540_v0, %v3540_v0 }
 0x35c   :  { %v3543_v7 = vadd.f32 %v3263_v11, %v1307_v3  ;;  %v2227_v61 = vadd.f32 %v3489_v53, %v2204_v5  ;;  %v1310_v56 = vadd.f32 %v3271_v29, %v1287_v4  ;;  %v3793_v53 = vld [vmem:[#allocation17_spill] sm:$0xff]  ;;  %v2644_v32 = vmul.f32 %v3794_v28, %v3794_v28  ;;  %v3798_v4 = vld [vmem:[#allocation20_spill] sm:$0xff] }
 0x35d   :  { %v2367_v40 = vpop.f32.mrf.mxu0  ;;  %v1494_v11 = vadd.f32 %v3323_v25, %v1471_v24 }
 0x35e   :  { %v2321_v13 = vpop.f32.mrf.mxu2  ;;  %v2623_v51 = vadd.f32 %v3540_v0, %v3543_v7  ;;  %v3569_v49 = vadd.f32 %v3491_v63, %v2227_v61  ;;  %v3572_v46 = vadd.f32 %v3795_v48, %v1310_v56  ;;  %v3800_v56 = vld [vmem:[#allocation22_spill] sm:$0xff] }
 0x35f   :  { %v2322_v27 = vadd.f32 %v2321_v13, %v2299_v43  ;;  %v2641_v13 = vmul.f32 %v3543_v7, %v3543_v7 }
 0x360   :  { %v2344_v14 = vpop.f32.mrf.mxu3  ;;  %v2624_v29 = vadd.f32 %v2623_v51, %v3349_v58  ;;  %v2646_v43 = vmul.f32 %v3569_v49, %v3569_v49 }
 0x361   :  { %v2345_v57 = vadd.f32 %v2344_v14, %v2322_v27  ;;  %v2657_v14 = vadd.f32 %v2642_v52, %v2641_v13 }
 0x362   :  { %v2387_v1 = vpop.f32.mrf.mxu1 }
 0x363   :  { %v2388_v54 = vadd.f32 %v2387_v1, %v2365_v38  ;;  %v2643_v1 = vmul.f32 %v3349_v58, %v3349_v58  ;;  %v2368_v16 = vadd.f32 %v2367_v40, %v2345_v57 }
 0x365   :  { %v2658_v18 = vadd.f32 %v2657_v14, %v2643_v1 }
 0x366   :  { %v3507_v37 = vpop.f32.mrf.mxu2 }
 0x367   :  { %v2411_v35 = vadd.f32 %v3507_v37, %v2388_v54  ;;  %v2207_v37 = vadd.f32 %v3495_v17, %v2184_v21  ;;  %v2659_v33 = vadd.f32 %v2658_v18, %v2644_v32  ;;  %v2653_v21 = vmul.f32 %v3800_v56, %v3800_v56 }
 0x368   :  { %v3511_v23 = vpop.f32.mrf.mxu3 }
 0x369   :  { %v3579_v55 = vadd.f32 %v3511_v23, %v2411_v35  ;;  %v2230_v3 = vadd.f32 %v3497_v47, %v2207_v37 }
 0x36a   :  { %v3517_v8 = vpop.f32.mrf.mxu1 }
 0x36b   :  { %v2391_v63 = vadd.f32 %v3517_v8, %v2368_v16  ;;  %v3797_v8 = vld [vmem:[#allocation18_spill] sm:$0xff]  ;;  %v2647_v24 = vmul.f32 %v3579_v55, %v3579_v55 }
 0x36c   :  { %v2651_v60 = vmul.f32 %v3797_v8, %v3797_v8 }
 0x36e   :  { %v3523_v62 = vpop.f32.mrf.mxu2 }
 0x36f   :  { %v2414_v27 = vadd.f32 %v3523_v62, %v2391_v63 }
 0x370   :  { %v3528_v2 = vpop.f32.mrf.mxu3 }
 0x371   :  { %v3611_v14 = vadd.f32 %v3528_v2, %v2414_v27 }
 0x373   :  { %v2655_v48 = vmul.f32 %v3611_v14, %v3611_v14 }
 0x384   :  { %v2456_v9 = vpop.f32.mrf.mxu0 }
 0x385   :  { %v2457_v36 = vadd.f32 %v2456_v9, %v1142_v39  ;;  %v3563_v9 = vadd.f32 %v3793_v53, %v1494_v11 }
 0x387   :  { %v2632_v23 = vadd.f32 %v3563_v9, %v3572_v46 }
 0x389   :  { %v2633_v47 = vadd.f32 %v2632_v23, %v3797_v8 }
 0x38a   :  { %v2479_v15 = vpop.f32.mrf.mxu1 }
 0x38b   :  { %v2480_v22 = vadd.f32 %v2479_v15, %v2457_v36  ;;  %v3796_v15 = vld [vmem:[#allocation21_spill] sm:$0xff]  ;;  %v2649_v36 = vmul.f32 %v3572_v46, %v3572_v46 }
 0x38c   :  { %v2502_v41 = vpop.f32.mrf.mxu2  ;;  %v2459_v19 = vpop.f32.mrf.mxu0  ;;  %v2645_v31 = vmul.f32 %v3796_v15, %v3796_v15 }
 0x38d   :  { %v2503_v12 = vadd.f32 %v2502_v41, %v2480_v22  ;;  %v2460_v42 = vadd.f32 %v2459_v19, %v1142_v39  ;;  %v2625_v39 = vadd.f32 %v2624_v29, %v3794_v28  ;;  %v2650_v41 = vmul.f32 %v3563_v9, %v3563_v9 }
 0x38e   :  { %v2660_v19 = vadd.f32 %v2659_v33, %v2645_v31 }
 0x38f   :  { %v2626_v17 = vadd.f32 %v2625_v39, %v3796_v15  ;;  %v2666_v5 = vadd.f32 %v2650_v41, %v2649_v36 }
 0x390   :  { %v2661_v54 = vadd.f32 %v2660_v19, %v2646_v43 }
 0x391   :  { %v2525_v10 = vpop.f32.mrf.mxu3  ;;  %v2667_v61 = vadd.f32 %v2666_v5, %v2651_v60 }
 0x392   :  { %v2482_v44 = vpop.f32.mrf.mxu1  ;;  %v2526_v59 = vadd.f32 %v2525_v10, %v2503_v12  ;;  %v2627_v10 = vadd.f32 %v2626_v17, %v3569_v49  ;;  %v3799_v12 = vld [vmem:[#allocation23_spill] sm:$0xff]  ;;  %v2662_v16 = vadd.f32 %v2661_v54, %v2647_v24 }
 0x393   :  { %v2483_v25 = vadd.f32 %v2482_v44, %v2460_v42  ;;  %v2652_v44 = vmul.f32 %v3798_v4, %v3798_v4  ;;  %v3602_v42 = vadd.f32 %v3799_v12, %v2230_v3 }
 0x394   :  { %v2505_v20 = vpop.f32.mrf.mxu2  ;;  %v2628_v62 = vadd.f32 %v2627_v10, %v3579_v55 }
 0x395   :  { %v2506_v6 = vadd.f32 %v2505_v20, %v2483_v25  ;;  %v2634_v20 = vadd.f32 %v2633_v47, %v3798_v4 }
 0x397   :  { %v2635_v25 = vadd.f32 %v2634_v20, %v3800_v56 }
 0x399   :  { %v2528_v34 = vpop.f32.mrf.mxu3  ;;  %v2636_v2 = vadd.f32 %v2635_v25, %v3602_v42 }
 0x39a   :  { %v2529_v38 = vadd.f32 %v2528_v34, %v2506_v6  ;;  %v2654_v34 = vmul.f32 %v3602_v42, %v3602_v42 }
 0x39b   :  { %v2637_v39 = vadd.f32 %v2636_v2, %v3611_v14 }
 0x3c3   :  { %v2548_v26 = vpop.f32.mrf.mxu0 }
 0x3c4   :  { %v2549_v40 = vadd.f32 %v2548_v26, %v2526_v59  ;;  %v2668_v59 = vadd.f32 %v2667_v61, %v2652_v44  ;;  %v3638_v44 = vld [vmem:[#allocation8] sm:$0xff] }
 0x3c5   :  { %v2741_v12 = vperm.slane %v3638_v44, 0  ;;  %v2744_v61 = vperm.slane %v3638_v44, 3  ;;  %v2745_v20 = vperm.slane %v3638_v44, 4 }
 0x3c6   :  { %v2669_v26 = vadd.f32 %v2668_v59, %v2653_v21  ;;  %v2746_v21 = vperm.slane %v3638_v44, 5 }
 0x3c7   :  { %v2571_v50 = vpop.f32.mrf.mxu1 }
 0x3c8   :  { %v2572_v45 = vadd.f32 %v2571_v50, %v2549_v40  ;;  %v2670_v31 = vadd.f32 %v2669_v26, %v2654_v34 }
 0x3ca   :  { %v2671_v6 = vadd.f32 %v2670_v31, %v2655_v48 }
 0x3cb   :  { %v2594_v30 = vpop.f32.mrf.mxu2  ;;  %v2551_v52 = vpop.f32.mrf.mxu0 }
 0x3cc   :  { %v2595_v22 = vadd.f32 %v2594_v30, %v2572_v45  ;;  %v2552_v13 = vadd.f32 %v2551_v52, %v2529_v38 }
 0x3ce   :  { %v2617_v57 = vpop.f32.mrf.mxu3 }
 0x3cf   :  { %v3604_v11 = vadd.f32 %v2617_v57, %v2595_v22  ;;  %v2574_v51 = vpop.f32.mrf.mxu1  ;;  %v3641_v57 = vld [vmem:[#allocation10] sm:$0xff] }
 0x3d0   :  { %v2575_v53 = vadd.f32 %v2574_v51, %v2552_v13  ;;  %v2742_v13 = vperm.slane %v3638_v44, 1  ;;  %v2747_v51 = vperm.slane %v3638_v44, 6  ;;  %v2776_v59 = vperm.slane %v3641_v57, 1 }
 0x3d1   :  { %v2629_v1 = vadd.f32 %v2628_v62, %v3604_v11  ;;  %v2648_v35 = vmul.f32 %v3604_v11, %v3604_v11  ;;  %v2743_v62 = vperm.slane %v3638_v44, 2  ;;  %v2777_v25 = vperm.slane %v3641_v57, 2 }
 0x3d2   :  { %v2778_v34 = vperm.slane %v3641_v57, 3  ;;  %v2780_v26 = vperm.slane %v3641_v57, 5  ;;  %v2781_v2 = vperm.slane %v3641_v57, 6  ;;  %v2782_v48 = vperm.slane %v3641_v57, 7 }
 0x3d3   :  { %2630 = vadd.xlane.f32.xlu0 %v2629_v1  ;;  %v2663_v29 = vadd.f32 %v2662_v16, %v2648_v35  ;;  %v2597_v32 = vpop.f32.mrf.mxu2  ;;  %v2748_v35 = vperm.slane %v3638_v44, 7  ;;  %v2775_v16 = vperm.slane %v3641_v57, 0 }
 0x3d4   :  { %v2598_v37 = vadd.f32 %v2597_v32, %v2575_v53  ;;  %v2779_v53 = vperm.slane %v3641_v57, 4 }
 0x3d5   :  { %2664 = vadd.xlane.f32.xlu1 %v2663_v29 }
 0x3d6   :  { %v2620_v40 = vpop.f32.mrf.mxu3 }
 0x3d7   :  { %v3622_v18 = vadd.f32 %v2620_v40, %v2598_v37 }
 0x3d9   :  { %v2638_v50 = vadd.f32 %v2637_v39, %v3622_v18  ;;  %v2656_v63 = vmul.f32 %v3622_v18, %v3622_v18 }
 0x3db   :  { %2639 = vadd.xlane.f32.xlu0 %v2638_v50  ;;  %v2672_v41 = vadd.f32 %v2671_v6, %v2656_v63 }
 0x3dd   :  { %2673 = vadd.xlane.f32.xlu1 %v2672_v41 }
 0x446   :  { %v2631_v33 = vpop.xlane.xlu0 %2630 }
 0x447   :  { %v3628_v17 = vmul.f32 0.0009765625, %v2631_v33 }
 0x448   :  { %v2665_v43 = vpop.xlane.xlu1 %2664 }
 0x449   :  { %v2677_v36 = vmul.f32 0.0009765625, %v2665_v43  ;;  %v2679_v3 = vmul.f32 %v3628_v17, %v3628_v17  ;;  %v2685_v37 = vsub.f32 %v3543_v7, %v3628_v17  ;;  %v2686_v40 = vsub.f32 %v3540_v0, %v3628_v17 }
 0x44a   :  { %v2687_v50 = vsub.f32 %v3349_v58, %v3628_v17  ;;  %v2688_v63 = vsub.f32 %v3794_v28, %v3628_v17  ;;  %v2689_v6 = vsub.f32 %v3796_v15, %v3628_v17  ;;  %v2690_v7 = vsub.f32 %v3569_v49, %v3628_v17 }
 0x44b   :  { %v2681_v45 = vsub.f32 %v2677_v36, %v2679_v3  ;;  %v2691_v0 = vsub.f32 %v3579_v55, %v3628_v17  ;;  %v2692_v41 = vsub.f32 %v3604_v11, %v3628_v17 }
 0x44d   :  { %v2683_v23 = vmax.f32 %v2681_v45, 0.0 }
 0x44e   :  { %v2640_v60 = vpop.xlane.xlu0 %2639 }
 0x44f   :  { %v2701_v30 = vadd.f32 1e-06, %v2683_v23  ;;  %v3632_v10 = vmul.f32 0.0009765625, %v2640_v60 }
 0x450   :  { %v2674_v19 = vpop.xlane.xlu1 %2673 }
 0x451   :  { %2868 = vrsqrt.f32 %v2701_v30  ;;  %v2678_v27 = vmul.f32 0.0009765625, %v2674_v19  ;;  %v2680_v38 = vmul.f32 %v3632_v10, %v3632_v10  ;;  %vm2709_vm1 = vweird.f32 %v2701_v30 }
 0x453   :  { %v2682_v22 = vsub.f32 %v2678_v27, %v2680_v38 }
 0x455   :  { %v2684_v24 = vmax.f32 %v2682_v22, 0.0 }
 0x457   :  { %v2869_v5 = vpop.eup %2868  ;;  %v3636_v47 = vadd.f32 1e-06, %v2684_v24 }
 0x458   :  { %v2704_v52 = vmul.f32 %v2869_v5, %v2701_v30  ;;  %vm2710_vm0 = vweird.f32 %v2869_v5 }
 0x459   :  { %2870 = vrsqrt.f32 %v3636_v47  ;;  %vm2711_vm2 = vmor %vm2709_vm1, %vm2710_vm0  ;;  %vm2719_vm4 = vweird.f32 %v3636_v47 }
 0x45a   :  { %v2705_v54 = vmul.f32 %v2869_v5, %v2704_v52 }
 0x45c   :  { %v2706_v1 = vmul.f32 0.5, %v2705_v54 }
 0x45e   :  { %v2707_v29 = vsub.f32 1.5, %v2706_v1 }
 0x45f   :  { %v3656_v32 = vpop.eup %2870 }
 0x460   :  { %v2708_v39 = vmul.f32 %v2869_v5, %v2707_v29  ;;  %v2714_v31 = vmul.f32 %v3656_v32, %v3636_v47  ;;  %vm2720_vm3 = vweird.f32 %v3656_v32  ;;  %v2699_v47 = vsub.f32 %v3611_v14, %v3632_v10 }
 0x461   :  { %vm2721_vm5 = vmor %vm2719_vm4, %vm2720_vm3 }
 0x462   :  { %v2712_v33 = vsel %vm2711_vm2, %v2869_v5, %v2708_v39  ;;  %v2715_v43 = vmul.f32 %v3656_v32, %v2714_v31 }
 0x463   :  { %v2723_v58 = vmul.f32 %v2712_v33, %v2685_v37  ;;  %v2724_v36 = vmul.f32 %v2712_v33, %v2686_v40  ;;  %v2725_v3 = vmul.f32 %v2712_v33, %v2687_v50  ;;  %v2726_v28 = vmul.f32 %v2712_v33, %v2688_v63 }
 0x464   :  { %v2727_v45 = vmul.f32 %v2712_v33, %v2689_v6  ;;  %v2728_v23 = vmul.f32 %v2712_v33, %v2690_v7  ;;  %v2729_v15 = vmul.f32 %v2712_v33, %v2691_v0  ;;  %v2730_v60 = vmul.f32 %v2712_v33, %v2692_v41 }
 0x465   :  { %v2757_v49 = vmul.f32 %v2741_v12, %v2723_v58  ;;  %v2758_v55 = vmul.f32 %v2742_v13, %v2724_v36  ;;  %v2759_v11 = vmul.f32 %v2743_v62, %v2725_v3  ;;  %v2760_v17 = vmul.f32 %v2744_v61, %v2726_v28 }
 0x466   :  { %v2761_v30 = vmul.f32 %v2745_v20, %v2727_v45  ;;  %v2762_v19 = vmul.f32 %v2746_v21, %v2728_v23  ;;  %v2763_v27 = vmul.f32 %v2747_v51, %v2729_v15  ;;  %v2764_v38 = vmul.f32 %v2748_v35, %v2730_v60 }
 0x467   :  { %v2791_v22 = vadd.f32 %v2775_v16, %v2757_v49  ;;  %v2792_v24 = vadd.f32 %v2776_v59, %v2758_v55  ;;  %v2793_v5 = vadd.f32 %v2777_v25, %v2759_v11  ;;  %v2794_v52 = vadd.f32 %v2778_v34, %v2760_v17 }
 0x468   :  { %v2795_v54 = vadd.f32 %v2779_v53, %v2761_v30  ;;  %v2796_v1 = vadd.f32 %v2780_v26, %v2762_v19  ;;  %v2797_v29 = vadd.f32 %v2781_v2, %v2763_v27  ;;  %v2798_v31 = vadd.f32 %v2782_v48, %v2764_v38 }
 0x469   :  { %v2807_v37 = vmax.f32 %v2791_v22, 0.0  ;;  %v2808_v40 = vmax.f32 %v2792_v24, 0.0  ;;  %v2809_v39 = vmax.f32 %v2793_v5, 0.0  ;;  %v2810_v50 = vmax.f32 %v2794_v52, 0.0 }
 0x46a   :  { %v2811_v63 = vmax.f32 %v2795_v54, 0.0  ;;  %v2716_v6 = vmul.f32 0.5, %v2715_v43  ;;  %v2812_v7 = vmax.f32 %v2796_v1, 0.0  ;;  %v2813_v0 = vmax.f32 %v2797_v29, 0.0 }
 0x46b   :  { %2823 = vst [vmem:[#allocation11] sm:$0xff] %v2807_v37  ;;  %v2814_v33 = vmax.f32 %v2798_v31, 0.0  ;;  %v2693_v58 = vsub.f32 %v3572_v46, %v3632_v10  ;;  %v2694_v43 = vsub.f32 %v3563_v9, %v3632_v10  ;;  %v2695_v3 = vsub.f32 %v3797_v8, %v3632_v10 }
 0x46c   :  { %2824 = vst [vmem:[#allocation11 + $0x8] sm:$0xff] %v2808_v40  ;;  %v2717_v41 = vsub.f32 1.5, %v2716_v6  ;;  %v2696_v28 = vsub.f32 %v3798_v4, %v3632_v10  ;;  %v2697_v45 = vsub.f32 %v3800_v56, %v3632_v10  ;;  %v2698_v46 = vsub.f32 %v3602_v42, %v3632_v10 }
 0x46d   :  { %2825 = vst [vmem:[#allocation11 + $0x10] sm:$0xff] %v2809_v39  ;;  %v2700_v9 = vsub.f32 %v3622_v18, %v3632_v10 }
 0x46e   :  { %2826 = vst [vmem:[#allocation11 + $0x18] sm:$0xff] %v2810_v50  ;;  %v2718_v36 = vmul.f32 %v3656_v32, %v2717_v41 }
 0x46f   :  { %2827 = vst [vmem:[#allocation11 + $0x20] sm:$0xff] %v2811_v63 }
 0x470   :  { %2828 = vst [vmem:[#allocation11 + $0x28] sm:$0xff] %v2812_v7  ;;  %v2722_v23 = vsel %vm2721_vm5, %v3656_v32, %v2718_v36 }
 0x471   :  { %2829 = vst [vmem:[#allocation11 + $0x30] sm:$0xff] %v2813_v0  ;;  %v2731_v8 = vmul.f32 %v2722_v23, %v2693_v58  ;;  %v2732_v15 = vmul.f32 %v2722_v23, %v2694_v43  ;;  %v2733_v4 = vmul.f32 %v2722_v23, %v2695_v3  ;;  %v2734_v60 = vmul.f32 %v2722_v23, %v2696_v28 }
 0x472   :  { %2830 = vst [vmem:[#allocation11 + $0x38] sm:$0xff] %v2814_v33  ;;  %v2735_v49 = vmul.f32 %v2722_v23, %v2697_v45  ;;  %v2736_v56 = vmul.f32 %v2722_v23, %v2698_v46  ;;  %v2737_v55 = vmul.f32 %v2722_v23, %v2699_v47  ;;  %v2738_v11 = vmul.f32 %v2722_v23, %v2700_v9 }
 0x473   :  { %v2765_v42 = vmul.f32 %v2741_v12, %v2731_v8  ;;  %v2766_v14 = vmul.f32 %v2742_v13, %v2732_v15  ;;  %v2767_v18 = vmul.f32 %v2743_v62, %v2733_v4  ;;  %v2768_v10 = vmul.f32 %v2744_v61, %v2734_v60 }
 0x474   :  { %v2769_v32 = vmul.f32 %v2745_v20, %v2735_v49  ;;  %v2770_v17 = vmul.f32 %v2746_v21, %v2736_v56  ;;  %v2771_v30 = vmul.f32 %v2747_v51, %v2737_v55  ;;  %v2772_v12 = vmul.f32 %v2748_v35, %v2738_v11 }
 0x475   :  { %v2799_v13 = vadd.f32 %v2775_v16, %v2765_v42  ;;  %v2800_v62 = vadd.f32 %v2776_v59, %v2766_v14  ;;  %v2801_v61 = vadd.f32 %v2777_v25, %v2767_v18  ;;  %v2802_v20 = vadd.f32 %v2778_v34, %v2768_v10 }
 0x476   :  { %v2803_v21 = vadd.f32 %v2779_v53, %v2769_v32  ;;  %v2804_v51 = vadd.f32 %v2780_v26, %v2770_v17  ;;  %v2805_v44 = vadd.f32 %v2781_v2, %v2771_v30  ;;  %v2806_v59 = vadd.f32 %v2782_v48, %v2772_v12 }
 0x477   :  { %v2815_v35 = vmax.f32 %v2799_v13, 0.0  ;;  %v2816_v16 = vmax.f32 %v2800_v62, 0.0  ;;  %v2817_v19 = vmax.f32 %v2801_v61, 0.0  ;;  %v2818_v27 = vmax.f32 %v2802_v20, 0.0 }
 0x478   :  { %v2819_v25 = vmax.f32 %v2803_v21, 0.0  ;;  %v2820_v38 = vmax.f32 %v2804_v51, 0.0  ;;  %v2821_v34 = vmax.f32 %v2805_v44, 0.0  ;;  %v2822_v53 = vmax.f32 %v2806_v59, 0.0 }
 0x479   :  { %2831 = vst [vmem:[#allocation11 + $0x40] sm:$0xff] %v2815_v35 }
 0x47a   :  { %2832 = vst [vmem:[#allocation11 + $0x48] sm:$0xff] %v2816_v16 }
 0x47b   :  { %2833 = vst [vmem:[#allocation11 + $0x50] sm:$0xff] %v2817_v19 }
 0x47c   :  { %2834 = vst [vmem:[#allocation11 + $0x58] sm:$0xff] %v2818_v27 }
 0x47d   :  { %2835 = vst [vmem:[#allocation11 + $0x60] sm:$0xff] %v2819_v25 }
 0x47e   :  { %2836 = vst [vmem:[#allocation11 + $0x68] sm:$0xff] %v2820_v38 }
 0x47f   :  { %2837 = vst [vmem:[#allocation11 + $0x70] sm:$0xff] %v2821_v34 }
 0x480   :  { %2838 = vst [vmem:[#allocation11 + $0x78] sm:$0xff] %v2822_v53 }
 0x481   :  { %2851 = dma.vmem_to_hbm [thread:$0]  %s2844_s4, 2048, %s2846_s19, [#allocation4], %s3075_s26, %s3075_s26, %s3076_s27  }
 0x482   :  { %3072 = dma.done.wait [#allocation4], 2048  }
 0x483   :  { %3073 = vsyncadd [#allocation4], 4294965248 }
 0x484   :  { %2856 = vsyncpa [#allocation3], 1 }
 0x485   :  { %2857 = vsyncpa [#allocation6], 1 }
 0x486   :  { %2858 = vsyncpa [#allocation9], 1 }
 0x487   :  { %2859 = vsyncpa [#allocation4], 1 }

// kernel: forward.1
= control target key start
LH: loop header
LB: loop body
LE: loop exit
PB: predicated region body
PF: predicated region fallthrough
CT: control target
= control target key end

     0   :  { %10 = vsyncpa [#allocation3], 0  ;;  %s3770_s0 = inlined_call_operand.hbm [shape: f32[16,1024], index: 0, kind: input, shape index: {}]   ;;  %s3771_s1 = inlined_call_operand.hbm [shape: f32[1024,1024], index: 1, kind: input, shape index: {}]   ;;  %s3772_s2 = inlined_call_operand.hbm [shape: f32[1,1024], index: 2, kind: input, shape index: {}]   ;;  %s3773_s3 = inlined_call_operand.hbm [shape: f32[1,1024], index: 3, kind: input, shape index: {}]   ;;  %s3774_s4 = inlined_call_operand.hbm [shape: f32[1,1024], index: 4, kind: input, shape index: {}]   ;;  %s3775_s5 = inlined_call_operand.hbm [shape: f32[16,1024], index: 5, kind: output, shape index: {}]  }
   0x1   :  { %11 = vsyncpa [#allocation6], 0 }
   0x2   :  { %12 = vsyncpa [#allocation9], 0 }
   0x3   :  { %13 = vsyncpa [#allocation4], 0  ;;  %s31_s20 = sshll.u32 %s3771_s1, 4  ;;  %s3074_s21 = smov [#allocation5]   ;;  %s32_s20 = int_to_ptr.hbm [resolvable:$true] %s31_s20 }
   0x4   :  { %s33_s22 = sshll.u32 %s3074_s21, 4  ;;  %s56_s25 = sshll.u32 %s3773_s3, 4  ;;  %s34_s22 = int_to_ptr.vmem [resolvable:$true] %s33_s22  ;;  %s57_s25 = int_to_ptr.hbm [resolvable:$true] %s56_s25 }
   0x5   :  { %s3075_s26 = smov 1024   ;;  %s3076_s27 = smov 64  }
   0x6   :  { %39 = dma.hbm_to_vmem [thread:$0]  %s32_s20, 131072, %s34_s22, [#allocation6], %s3075_s26, %s3075_s26, %s3076_s27  }
   0x7   :  { %s3077_s28 = smov [#allocation8]   ;;  %s18_s1 = sshll.u32 %s3770_s0, 4  ;;  %s19_s1 = int_to_ptr.hbm [resolvable:$true] %s18_s1 }
   0x8   :  { %s58_s29 = sshll.u32 %s3077_s28, 4  ;;  %s45_s3 = sshll.u32 %s3772_s2, 4  ;;  %s59_s29 = int_to_ptr.vmem [resolvable:$true] %s58_s29  ;;  %s46_s3 = int_to_ptr.hbm [resolvable:$true] %s45_s3 }
   0x9   :  { %61 = dma.hbm_to_vmem [thread:$0]  %s57_s25, 128, %s59_s29, [#allocation9]  }
   0xa   :  { %s3078_s9 = smov [#allocation2]   ;;  %s3079_s11 = smov [#allocation7]  }
   0xb   :  { %s20_s10 = sshll.u32 %s3078_s9, 4  ;;  %s47_s12 = sshll.u32 %s3079_s11, 4  ;;  %s21_s10 = int_to_ptr.vmem [resolvable:$true] %s20_s10  ;;  %s48_s12 = int_to_ptr.vmem [resolvable:$true] %s47_s12 }
   0xc   :  { %26 = dma.hbm_to_vmem [thread:$0]  %s19_s1, 2048, %s21_s10, [#allocation3], %s3075_s26, %s3075_s26, %s3076_s27  }
   0xd   :  { %s67_s0 = sshll.u32 %s3774_s4, 4  ;;  %s3080_s15 = smov [#allocation10]   ;;  %s68_s0 = int_to_ptr.hbm [resolvable:$true] %s67_s0 }
   0xe   :  { %50 = dma.hbm_to_vmem [thread:$0]  %s46_s3, 128, %s48_s12, [#allocation6]  }
   0xf   :  { %s69_s16 = sshll.u32 %s3080_s15, 4  ;;  %s70_s16 = int_to_ptr.vmem [resolvable:$true] %s69_s16 }
  0x10   :  { %72 = dma.hbm_to_vmem [thread:$0]  %s68_s0, 128, %s70_s16, [#allocation9]  }
  0x11   :  { %3066 = dma.done.wait [#allocation3], 2048  }
  0x12   :  { %3067 = vsyncadd [#allocation3], 4294965248 }
  0x13   :  { %3068 = dma.done.wait [#allocation6], 131200  }
  0x14   :  { %3069 = vsyncadd [#allocation6], 4294836096 }
  0x15   :  { %3070 = dma.done.wait [#allocation9], 256  }
  0x16   :  { %3071 = vsyncadd [#allocation9], 4294967040  ;;  %v229_v0 = vld [vmem:[#allocation5 + $0x3c0] sm:$0xff]  ;;  %s3081_s2 = smov [#allocation11]   ;;  %s2845_s19 = sshll.u32 %s3775_s5, 4  ;;  %s2846_s19 = int_to_ptr.hbm [resolvable:$true] %s2845_s19 }
  0x17   :  { %v485_v1 = vld [vmem:[#allocation5 + $0xbc0] sm:$0xff]  ;;  %1151 = vmatpush.msra.mxu0 %v229_v0  ;;  %s2843_s4 = sshll.u32 %s3081_s2, 4  ;;  %s2844_s4 = int_to_ptr.vmem [resolvable:$true] %s2843_s4 }
  0x18   :  { %v221_v2 = vld [vmem:[#allocation5 + $0x380] sm:$0xff]  ;;  %1197 = vmatpush.msra.mxu2 %v485_v1 }
  0x19   :  { %v357_v3 = vld [vmem:[#allocation5 + $0x7c0] sm:$0xff]  ;;  %1152 = vmatpush.msra.mxu0 %v221_v2 }
  0x1a   :  { %v477_v4 = vld [vmem:[#allocation5 + $0xb80] sm:$0xff]  ;;  %1174 = vmatpush.msra.mxu1 %v357_v3 }
  0x1b   :  { %v613_v5 = vld [vmem:[#allocation5 + $0xfc0] sm:$0xff]  ;;  %1198 = vmatpush.msra.mxu2 %v477_v4 }
  0x1c   :  { %1220 = vmatpush.msra.mxu3 %v613_v5  ;;  %v213_v6 = vld [vmem:[#allocation5 + $0x340] sm:$0xff] }
  0x1d   :  { %v349_v7 = vld [vmem:[#allocation5 + $0x780] sm:$0xff]  ;;  %1153 = vmatpush.msra.mxu0 %v213_v6 }
  0x1e   :  { %v469_v8 = vld [vmem:[#allocation5 + $0xb40] sm:$0xff]  ;;  %1175 = vmatpush.msra.mxu1 %v349_v7 }
  0x1f   :  { %v605_v9 = vld [vmem:[#allocation5 + $0xf80] sm:$0xff]  ;;  %1199 = vmatpush.msra.mxu2 %v469_v8 }
  0x20   :  { %v341_v10 = vld [vmem:[#allocation5 + $0x740] sm:$0xff]  ;;  %1221 = vmatpush.msra.mxu3 %v605_v9 }
  0x21   :  { %v205_v11 = vld [vmem:[#allocation5 + $0x300] sm:$0xff]  ;;  %1176 = vmatpush.msra.mxu1 %v341_v10 }
  0x22   :  { %v461_v12 = vld [vmem:[#allocation5 + $0xb00] sm:$0xff]  ;;  %1154 = vmatpush.msra.mxu0 %v205_v11 }
  0x23   :  { %v597_v13 = vld [vmem:[#allocation5 + $0xf40] sm:$0xff]  ;;  %1200 = vmatpush.msra.mxu2 %v461_v12 }
  0x24   :  { %v333_v14 = vld [vmem:[#allocation5 + $0x700] sm:$0xff]  ;;  %1222 = vmatpush.msra.mxu3 %v597_v13 }
  0x25   :  { %v589_v15 = vld [vmem:[#allocation5 + $0xf00] sm:$0xff]  ;;  %1177 = vmatpush.msra.mxu1 %v333_v14 }
  0x26   :  { %v197_v16 = vld [vmem:[#allocation5 + $0x2c0] sm:$0xff]  ;;  %1223 = vmatpush.msra.mxu3 %v589_v15 }
  0x27   :  { %v453_v17 = vld [vmem:[#allocation5 + $0xac0] sm:$0xff]  ;;  %1155 = vmatpush.msra.mxu0 %v197_v16 }
  0x28   :  { %v325_v18 = vld [vmem:[#allocation5 + $0x6c0] sm:$0xff]  ;;  %1201 = vmatpush.msra.mxu2 %v453_v17 }
  0x29   :  { %v581_v19 = vld [vmem:[#allocation5 + $0xec0] sm:$0xff]  ;;  %1178 = vmatpush.msra.mxu1 %v325_v18 }
  0x2a   :  { %v189_v20 = vld [vmem:[#allocation5 + $0x280] sm:$0xff]  ;;  %1224 = vmatpush.msra.mxu3 %v581_v19 }
  0x2b   :  { %v445_v21 = vld [vmem:[#allocation5 + $0xa80] sm:$0xff]  ;;  %1156 = vmatpush.msra.mxu0 %v189_v20 }
  0x2c   :  { %v317_v22 = vld [vmem:[#allocation5 + $0x680] sm:$0xff]  ;;  %1202 = vmatpush.msra.mxu2 %v445_v21 }
  0x2d   :  { %v573_v23 = vld [vmem:[#allocation5 + $0xe80] sm:$0xff]  ;;  %1179 = vmatpush.msra.mxu1 %v317_v22 }
  0x2e   :  { %v181_v24 = vld [vmem:[#allocation5 + $0x240] sm:$0xff]  ;;  %1225 = vmatpush.msra.mxu3 %v573_v23 }
  0x2f   :  { %v437_v25 = vld [vmem:[#allocation5 + $0xa40] sm:$0xff]  ;;  %1157 = vmatpush.msra.mxu0 %v181_v24 }
  0x30   :  { %v309_v26 = vld [vmem:[#allocation5 + $0x640] sm:$0xff]  ;;  %1203 = vmatpush.msra.mxu2 %v437_v25 }
  0x31   :  { %v565_v27 = vld [vmem:[#allocation5 + $0xe40] sm:$0xff]  ;;  %1180 = vmatpush.msra.mxu1 %v309_v26 }
  0x32   :  { %v173_v28 = vld [vmem:[#allocation5 + $0x200] sm:$0xff]  ;;  %1226 = vmatpush.msra.mxu3 %v565_v27 }
  0x33   :  { %v429_v29 = vld [vmem:[#allocation5 + $0xa00] sm:$0xff]  ;;  %1158 = vmatpush.msra.mxu0 %v173_v28 }
  0x34   :  { %v301_v30 = vld [vmem:[#allocation5 + $0x600] sm:$0xff]  ;;  %1204 = vmatpush.msra.mxu2 %v429_v29 }
  0x35   :  { %v557_v31 = vld [vmem:[#allocation5 + $0xe00] sm:$0xff]  ;;  %1181 = vmatpush.msra.mxu1 %v301_v30 }
  0x36   :  { %v165_v32 = vld [vmem:[#allocation5 + $0x1c0] sm:$0xff]  ;;  %1227 = vmatpush.msra.mxu3 %v557_v31 }
  0x37   :  { %v421_v33 = vld [vmem:[#allocation5 + $0x9c0] sm:$0xff]  ;;  %1159 = vmatpush.msra.mxu0 %v165_v32 }
  0x38   :  { %v293_v34 = vld [vmem:[#allocation5 + $0x5c0] sm:$0xff]  ;;  %1205 = vmatpush.msra.mxu2 %v421_v33 }
  0x39   :  { %v549_v35 = vld [vmem:[#allocation5 + $0xdc0] sm:$0xff]  ;;  %1182 = vmatpush.msra.mxu1 %v293_v34 }
  0x3a   :  { %v157_v36 = vld [vmem:[#allocation5 + $0x180] sm:$0xff]  ;;  %1228 = vmatpush.msra.mxu3 %v549_v35 }
  0x3b   :  { %v413_v37 = vld [vmem:[#allocation5 + $0x980] sm:$0xff]  ;;  %1160 = vmatpush.msra.mxu0 %v157_v36 }
  0x3c   :  { %v285_v38 = vld [vmem:[#allocation5 + $0x580] sm:$0xff]  ;;  %1206 = vmatpush.msra.mxu2 %v413_v37 }
  0x3d   :  { %v541_v39 = vld [vmem:[#allocation5 + $0xd80] sm:$0xff]  ;;  %1183 = vmatpush.msra.mxu1 %v285_v38 }
  0x3e   :  { %v149_v40 = vld [vmem:[#allocation5 + $0x140] sm:$0xff]  ;;  %1229 = vmatpush.msra.mxu3 %v541_v39 }
  0x3f   :  { %v405_v41 = vld [vmem:[#allocation5 + $0x940] sm:$0xff]  ;;  %1161 = vmatpush.msra.mxu0 %v149_v40 }
  0x40   :  { %v277_v42 = vld [vmem:[#allocation5 + $0x540] sm:$0xff]  ;;  %1207 = vmatpush.msra.mxu2 %v405_v41 }
  0x41   :  { %v533_v43 = vld [vmem:[#allocation5 + $0xd40] sm:$0xff]  ;;  %1184 = vmatpush.msra.mxu1 %v277_v42 }
  0x42   :  { %v141_v44 = vld [vmem:[#allocation5 + $0x100] sm:$0xff]  ;;  %1230 = vmatpush.msra.mxu3 %v533_v43 }
  0x43   :  { %v397_v45 = vld [vmem:[#allocation5 + $0x900] sm:$0xff]  ;;  %1162 = vmatpush.msra.mxu0 %v141_v44 }
  0x44   :  { %v269_v46 = vld [vmem:[#allocation5 + $0x500] sm:$0xff]  ;;  %1208 = vmatpush.msra.mxu2 %v397_v45 }
  0x45   :  { %v525_v47 = vld [vmem:[#allocation5 + $0xd00] sm:$0xff]  ;;  %1185 = vmatpush.msra.mxu1 %v269_v46  ;;  %v3133_v46 = vld [vmem:[#allocation2 + $0x10] sm:$0xff] }
  0x46   :  { %v133_v48 = vld [vmem:[#allocation5 + $0xc0] sm:$0xff]  ;;  %1231 = vmatpush.msra.mxu3 %v525_v47 }
  0x47   :  { %v389_v49 = vld [vmem:[#allocation5 + $0x8c0] sm:$0xff]  ;;  %1163 = vmatpush.msra.mxu0 %v133_v48 }
  0x48   :  { %v261_v50 = vld [vmem:[#allocation5 + $0x4c0] sm:$0xff]  ;;  %1209 = vmatpush.msra.mxu2 %v389_v49 }
  0x49   :  { %v517_v51 = vld [vmem:[#allocation5 + $0xcc0] sm:$0xff]  ;;  %1186 = vmatpush.msra.mxu1 %v261_v50 }
  0x4a   :  { %v125_v52 = vld [vmem:[#allocation5 + $0x80] sm:$0xff]  ;;  %1232 = vmatpush.msra.mxu3 %v517_v51 }
  0x4b   :  { %v381_v53 = vld [vmem:[#allocation5 + $0x880] sm:$0xff]  ;;  %1164 = vmatpush.msra.mxu0 %v125_v52  ;;  %v3138_v52 = vld [vmem:[#allocation2 + $0x18] sm:$0xff] }
  0x4c   :  { %v253_v54 = vld [vmem:[#allocation5 + $0x480] sm:$0xff]  ;;  %1210 = vmatpush.msra.mxu2 %v381_v53 }
  0x4d   :  { %v509_v55 = vld [vmem:[#allocation5 + $0xc80] sm:$0xff]  ;;  %1187 = vmatpush.msra.mxu1 %v253_v54 }
  0x4e   :  { %v117_v56 = vld [vmem:[#allocation5 + $0x40] sm:$0xff]  ;;  %1233 = vmatpush.msra.mxu3 %v509_v55 }
  0x4f   :  { %v373_v57 = vld [vmem:[#allocation5 + $0x840] sm:$0xff]  ;;  %1165 = vmatpush.msra.mxu0 %v117_v56 }
  0x50   :  { %v245_v58 = vld [vmem:[#allocation5 + $0x440] sm:$0xff]  ;;  %1211 = vmatpush.msra.mxu2 %v373_v57  ;;  %v3141_v57 = vld [vmem:[#allocation2 + $0x8] sm:$0xff] }
  0x51   :  { %v501_v59 = vld [vmem:[#allocation5 + $0xc40] sm:$0xff]  ;;  %1188 = vmatpush.msra.mxu1 %v245_v58 }
  0x52   :  { %v109_v60 = vld [vmem:[#allocation5] sm:$0xff]  ;;  %1234 = vmatpush.msra.mxu3 %v501_v59 }
  0x53   :  { %v365_v61 = vld [vmem:[#allocation5 + $0x800] sm:$0xff]  ;;  %1166 = vmatpush.msra.mxu0 %v109_v60 }
  0x54   :  { %v741_v62 = vld [vmem:[#allocation5 + $0x13c0] sm:$0xff]  ;;  %1212 = vmatpush.msra.mxu2 %v365_v61 }
  0x55   :  { %v997_v63 = vld [vmem:[#allocation5 + $0x1bc0] sm:$0xff]  ;;  %1243 = vmatpush.msrb.mxu0 %v741_v62  ;;  %1213 = vmatmul.f32.vlgmr.msra.gmra.mxu2 %v3133_v46 }
  0x56   :  { %v237_v0 = vld [vmem:[#allocation5 + $0x400] sm:$0xff]  ;;  %1289 = vmatpush.msrb.mxu2 %v997_v63 }
  0x57   :  { %v493_v1 = vld [vmem:[#allocation5 + $0xc00] sm:$0xff]  ;;  %1189 = vmatpush.msra.mxu1 %v237_v0 }
  0x58   :  { %v733_v2 = vld [vmem:[#allocation5 + $0x1380] sm:$0xff]  ;;  %1235 = vmatpush.msra.mxu3 %v493_v1  ;;  %1190 = vmatmul.f32.vlgmr.msra.gmra.mxu1 %v3141_v57 }
  0x59   :  { %v869_v3 = vld [vmem:[#allocation5 + $0x17c0] sm:$0xff]  ;;  %1244 = vmatpush.msrb.mxu0 %v733_v2  ;;  %1236 = vmatmul.f32.vlgmr.msra.gmra.mxu3 %v3138_v52  ;;  %v3145_v2 = vld [vmem:[#allocation2 + $0x50] sm:$0xff] }
  0x5a   :  { %v989_v4 = vld [vmem:[#allocation5 + $0x1b80] sm:$0xff]  ;;  %1266 = vmatpush.msrb.mxu1 %v869_v3  ;;  %v230_v3 = vld [vmem:[#allocation5 + $0x3c8] sm:$0xff] }
  0x5b   :  { %v1125_v5 = vld [vmem:[#allocation5 + $0x1fc0] sm:$0xff]  ;;  %1290 = vmatpush.msrb.mxu2 %v989_v4  ;;  %v486_v4 = vld [vmem:[#allocation5 + $0xbc8] sm:$0xff] }
  0x5c   :  { %v725_v6 = vld [vmem:[#allocation5 + $0x1340] sm:$0xff]  ;;  %1312 = vmatpush.msrb.mxu3 %v1125_v5 }
  0x5d   :  { %v861_v7 = vld [vmem:[#allocation5 + $0x1780] sm:$0xff]  ;;  %1245 = vmatpush.msrb.mxu0 %v725_v6  ;;  %1216 = vmatmul.f32.gmra.mxu2 %v3145_v2 }
  0x5e   :  { %v981_v8 = vld [vmem:[#allocation5 + $0x1b40] sm:$0xff]  ;;  %1267 = vmatpush.msrb.mxu1 %v861_v7 }
  0x5f   :  { %v1117_v9 = vld [vmem:[#allocation5 + $0x1f80] sm:$0xff]  ;;  %1291 = vmatpush.msrb.mxu2 %v981_v8  ;;  %v3150_v8 = vld [vmem:[#allocation2 + $0x58] sm:$0xff] }
  0x60   :  { %v717_v10 = vld [vmem:[#allocation5 + $0x1300] sm:$0xff]  ;;  %1313 = vmatpush.msrb.mxu3 %v1117_v9  ;;  %v222_v9 = vld [vmem:[#allocation5 + $0x388] sm:$0xff] }
  0x61   :  { %v853_v11 = vld [vmem:[#allocation5 + $0x1740] sm:$0xff]  ;;  %1246 = vmatpush.msrb.mxu0 %v717_v10  ;;  %v358_v10 = vld [vmem:[#allocation5 + $0x7c8] sm:$0xff]  ;;  %1239 = vmatmul.f32.gmra.mxu3 %v3150_v8 }
  0x62   :  { %v973_v12 = vld [vmem:[#allocation5 + $0x1b00] sm:$0xff]  ;;  %1268 = vmatpush.msrb.mxu1 %v853_v11  ;;  %v478_v11 = vld [vmem:[#allocation5 + $0xb88] sm:$0xff] }
  0x63   :  { %v1109_v13 = vld [vmem:[#allocation5 + $0x1f40] sm:$0xff]  ;;  %1292 = vmatpush.msrb.mxu2 %v973_v12  ;;  %v614_v12 = vld [vmem:[#allocation5 + $0xfc8] sm:$0xff] }
  0x64   :  { %v709_v14 = vld [vmem:[#allocation5 + $0x12c0] sm:$0xff]  ;;  %1314 = vmatpush.msrb.mxu3 %v1109_v13  ;;  %v3153_v13 = vld [vmem:[#allocation2 + $0x48] sm:$0xff] }
  0x65   :  { %v845_v15 = vld [vmem:[#allocation5 + $0x1700] sm:$0xff]  ;;  %1247 = vmatpush.msrb.mxu0 %v709_v14  ;;  %v214_v14 = vld [vmem:[#allocation5 + $0x348] sm:$0xff]  ;;  %1193 = vmatmul.f32.gmra.mxu1 %v3153_v13 }
  0x66   :  { %v965_v16 = vld [vmem:[#allocation5 + $0x1ac0] sm:$0xff]  ;;  %1269 = vmatpush.msrb.mxu1 %v845_v15  ;;  %v350_v15 = vld [vmem:[#allocation5 + $0x788] sm:$0xff] }
  0x67   :  { %v1101_v17 = vld [vmem:[#allocation5 + $0x1f00] sm:$0xff]  ;;  %1293 = vmatpush.msrb.mxu2 %v965_v16  ;;  %v470_v16 = vld [vmem:[#allocation5 + $0xb48] sm:$0xff] }
  0x68   :  { %v701_v18 = vld [vmem:[#allocation5 + $0x1280] sm:$0xff]  ;;  %1315 = vmatpush.msrb.mxu3 %v1101_v17  ;;  %v606_v17 = vld [vmem:[#allocation5 + $0xf88] sm:$0xff] }
  0x69   :  { %v837_v19 = vld [vmem:[#allocation5 + $0x16c0] sm:$0xff]  ;;  %1248 = vmatpush.msrb.mxu0 %v701_v18  ;;  %v206_v18 = vld [vmem:[#allocation5 + $0x308] sm:$0xff] }
  0x6a   :  { %v957_v20 = vld [vmem:[#allocation5 + $0x1a80] sm:$0xff]  ;;  %1270 = vmatpush.msrb.mxu1 %v837_v19  ;;  %v342_v19 = vld [vmem:[#allocation5 + $0x748] sm:$0xff] }
  0x6b   :  { %v1093_v21 = vld [vmem:[#allocation5 + $0x1ec0] sm:$0xff]  ;;  %1294 = vmatpush.msrb.mxu2 %v957_v20  ;;  %v462_v20 = vld [vmem:[#allocation5 + $0xb08] sm:$0xff] }
  0x6c   :  { %v693_v22 = vld [vmem:[#allocation5 + $0x1240] sm:$0xff]  ;;  %1316 = vmatpush.msrb.mxu3 %v1093_v21  ;;  %v598_v21 = vld [vmem:[#allocation5 + $0xf48] sm:$0xff] }
  0x6d   :  { %v829_v23 = vld [vmem:[#allocation5 + $0x1680] sm:$0xff]  ;;  %1249 = vmatpush.msrb.mxu0 %v693_v22  ;;  %v3157_v22 = vld [vmem:[#allocation2 + $0x30] sm:$0xff] }
  0x6e   :  { %v949_v24 = vld [vmem:[#allocation5 + $0x1a40] sm:$0xff]  ;;  %1271 = vmatpush.msrb.mxu1 %v829_v23  ;;  %v198_v23 = vld [vmem:[#allocation5 + $0x2c8] sm:$0xff] }
  0x6f   :  { %v1085_v25 = vld [vmem:[#allocation5 + $0x1e80] sm:$0xff]  ;;  %1295 = vmatpush.msrb.mxu2 %v949_v24  ;;  %v334_v24 = vld [vmem:[#allocation5 + $0x708] sm:$0xff] }
  0x70   :  { %v685_v26 = vld [vmem:[#allocation5 + $0x1200] sm:$0xff]  ;;  %1317 = vmatpush.msrb.mxu3 %v1085_v25  ;;  %v454_v25 = vld [vmem:[#allocation5 + $0xac8] sm:$0xff] }
  0x71   :  { %v821_v27 = vld [vmem:[#allocation5 + $0x1640] sm:$0xff]  ;;  %1250 = vmatpush.msrb.mxu0 %v685_v26  ;;  %v590_v26 = vld [vmem:[#allocation5 + $0xf08] sm:$0xff] }
  0x72   :  { %v941_v28 = vld [vmem:[#allocation5 + $0x1a00] sm:$0xff]  ;;  %1272 = vmatpush.msrb.mxu1 %v821_v27 }
  0x73   :  { %v1077_v29 = vld [vmem:[#allocation5 + $0x1e40] sm:$0xff]  ;;  %1296 = vmatpush.msrb.mxu2 %v941_v28  ;;  %v3162_v28 = vld [vmem:[#allocation2 + $0x38] sm:$0xff] }
  0x74   :  { %v677_v30 = vld [vmem:[#allocation5 + $0x11c0] sm:$0xff]  ;;  %1318 = vmatpush.msrb.mxu3 %v1077_v29  ;;  %v190_v29 = vld [vmem:[#allocation5 + $0x288] sm:$0xff] }
  0x75   :  { %v813_v31 = vld [vmem:[#allocation5 + $0x1600] sm:$0xff]  ;;  %1251 = vmatpush.msrb.mxu0 %v677_v30  ;;  %v326_v30 = vld [vmem:[#allocation5 + $0x6c8] sm:$0xff] }
  0x76   :  { %v933_v32 = vld [vmem:[#allocation5 + $0x19c0] sm:$0xff]  ;;  %1273 = vmatpush.msrb.mxu1 %v813_v31  ;;  %v446_v31 = vld [vmem:[#allocation5 + $0xa88] sm:$0xff] }
  0x77   :  { %v1069_v33 = vld [vmem:[#allocation5 + $0x1e00] sm:$0xff]  ;;  %1297 = vmatpush.msrb.mxu2 %v933_v32  ;;  %v582_v32 = vld [vmem:[#allocation5 + $0xec8] sm:$0xff] }
  0x78   :  { %v669_v34 = vld [vmem:[#allocation5 + $0x1180] sm:$0xff]  ;;  %1319 = vmatpush.msrb.mxu3 %v1069_v33  ;;  %v3165_v33 = vld [vmem:[#allocation2 + $0x28] sm:$0xff] }
  0x79   :  { %v805_v35 = vld [vmem:[#allocation5 + $0x15c0] sm:$0xff]  ;;  %1252 = vmatpush.msrb.mxu0 %v669_v34  ;;  %v182_v34 = vld [vmem:[#allocation5 + $0x248] sm:$0xff] }
  0x7a   :  { %v925_v36 = vld [vmem:[#allocation5 + $0x1980] sm:$0xff]  ;;  %1274 = vmatpush.msrb.mxu1 %v805_v35  ;;  %v318_v35 = vld [vmem:[#allocation5 + $0x688] sm:$0xff] }
  0x7b   :  { %v1061_v37 = vld [vmem:[#allocation5 + $0x1dc0] sm:$0xff]  ;;  %1298 = vmatpush.msrb.mxu2 %v925_v36  ;;  %v438_v36 = vld [vmem:[#allocation5 + $0xa48] sm:$0xff] }
  0x7c   :  { %v661_v38 = vld [vmem:[#allocation5 + $0x1140] sm:$0xff]  ;;  %1320 = vmatpush.msrb.mxu3 %v1061_v37  ;;  %v574_v37 = vld [vmem:[#allocation5 + $0xe88] sm:$0xff] }
  0x7d   :  { %v797_v39 = vld [vmem:[#allocation5 + $0x1580] sm:$0xff]  ;;  %1253 = vmatpush.msrb.mxu0 %v661_v38  ;;  %v174_v38 = vld [vmem:[#allocation5 + $0x208] sm:$0xff] }
  0x7e   :  { %v917_v40 = vld [vmem:[#allocation5 + $0x1940] sm:$0xff]  ;;  %1275 = vmatpush.msrb.mxu1 %v797_v39  ;;  %v310_v39 = vld [vmem:[#allocation5 + $0x648] sm:$0xff] }
  0x7f   :  { %v1053_v41 = vld [vmem:[#allocation5 + $0x1d80] sm:$0xff]  ;;  %1299 = vmatpush.msrb.mxu2 %v917_v40  ;;  %v430_v40 = vld [vmem:[#allocation5 + $0xa08] sm:$0xff] }
  0x80   :  { %v653_v42 = vld [vmem:[#allocation5 + $0x1100] sm:$0xff]  ;;  %1321 = vmatpush.msrb.mxu3 %v1053_v41  ;;  %v566_v41 = vld [vmem:[#allocation5 + $0xe48] sm:$0xff] }
  0x81   :  { %v789_v43 = vld [vmem:[#allocation5 + $0x1540] sm:$0xff]  ;;  %1254 = vmatpush.msrb.mxu0 %v653_v42  ;;  %v166_v42 = vld [vmem:[#allocation5 + $0x1c8] sm:$0xff] }
  0x82   :  { %v909_v44 = vld [vmem:[#allocation5 + $0x1900] sm:$0xff]  ;;  %1276 = vmatpush.msrb.mxu1 %v789_v43  ;;  %v302_v43 = vld [vmem:[#allocation5 + $0x608] sm:$0xff] }
  0x83   :  { %v1045_v45 = vld [vmem:[#allocation5 + $0x1d40] sm:$0xff]  ;;  %1300 = vmatpush.msrb.mxu2 %v909_v44  ;;  %v422_v44 = vld [vmem:[#allocation5 + $0x9c8] sm:$0xff] }
  0x84   :  { %v645_v47 = vld [vmem:[#allocation5 + $0x10c0] sm:$0xff]  ;;  %1322 = vmatpush.msrb.mxu3 %v1045_v45  ;;  %v558_v45 = vld [vmem:[#allocation5 + $0xe08] sm:$0xff] }
  0x85   :  { %v781_v48 = vld [vmem:[#allocation5 + $0x1500] sm:$0xff]  ;;  %1255 = vmatpush.msrb.mxu0 %v645_v47  ;;  %v158_v47 = vld [vmem:[#allocation5 + $0x188] sm:$0xff] }
  0x86   :  { %v901_v49 = vld [vmem:[#allocation5 + $0x18c0] sm:$0xff]  ;;  %1277 = vmatpush.msrb.mxu1 %v781_v48  ;;  %v294_v48 = vld [vmem:[#allocation5 + $0x5c8] sm:$0xff] }
  0x87   :  { %v1037_v50 = vld [vmem:[#allocation5 + $0x1d00] sm:$0xff]  ;;  %1301 = vmatpush.msrb.mxu2 %v901_v49  ;;  %v414_v49 = vld [vmem:[#allocation5 + $0x988] sm:$0xff] }
  0x88   :  { %v3135_v51 = vld [vmem:[#allocation2] sm:$0xff]  ;;  %1323 = vmatpush.msrb.mxu3 %v1037_v50  ;;  %v550_v50 = vld [vmem:[#allocation5 + $0xdc8] sm:$0xff] }
  0x89   :  { %v637_v53 = vld [vmem:[#allocation5 + $0x1080] sm:$0xff]  ;;  %1167 = vmatmul.f32.vlgmr.msra.gmra.mxu0 %v3135_v51 }
  0x8a   :  { %v773_v54 = vld [vmem:[#allocation5 + $0x14c0] sm:$0xff]  ;;  %1256 = vmatpush.msrb.mxu0 %v637_v53  ;;  %v150_v53 = vld [vmem:[#allocation5 + $0x148] sm:$0xff] }
  0x8b   :  { %v893_v55 = vld [vmem:[#allocation5 + $0x1880] sm:$0xff]  ;;  %1278 = vmatpush.msrb.mxu1 %v773_v54  ;;  %v286_v54 = vld [vmem:[#allocation5 + $0x588] sm:$0xff] }
  0x8c   :  { %v1029_v56 = vld [vmem:[#allocation5 + $0x1cc0] sm:$0xff]  ;;  %1302 = vmatpush.msrb.mxu2 %v893_v55  ;;  %v406_v55 = vld [vmem:[#allocation5 + $0x948] sm:$0xff] }
  0x8d   :  { %v629_v58 = vld [vmem:[#allocation5 + $0x1040] sm:$0xff]  ;;  %1324 = vmatpush.msrb.mxu3 %v1029_v56  ;;  %v542_v56 = vld [vmem:[#allocation5 + $0xd88] sm:$0xff] }
  0x8e   :  { %v765_v59 = vld [vmem:[#allocation5 + $0x1480] sm:$0xff]  ;;  %1257 = vmatpush.msrb.mxu0 %v629_v58  ;;  %v142_v58 = vld [vmem:[#allocation5 + $0x108] sm:$0xff] }
  0x8f   :  { %v885_v60 = vld [vmem:[#allocation5 + $0x1840] sm:$0xff]  ;;  %1279 = vmatpush.msrb.mxu1 %v765_v59  ;;  %v278_v59 = vld [vmem:[#allocation5 + $0x548] sm:$0xff] }
  0x90   :  { %v1021_v61 = vld [vmem:[#allocation5 + $0x1c80] sm:$0xff]  ;;  %1303 = vmatpush.msrb.mxu2 %v885_v60  ;;  %v398_v60 = vld [vmem:[#allocation5 + $0x908] sm:$0xff] }
  0x91   :  { %v621_v62 = vld [vmem:[#allocation5 + $0x1000] sm:$0xff]  ;;  %1325 = vmatpush.msrb.mxu3 %v1021_v61  ;;  %v534_v61 = vld [vmem:[#allocation5 + $0xd48] sm:$0xff] }
  0x92   :  { %v757_v63 = vld [vmem:[#allocation5 + $0x1440] sm:$0xff]  ;;  %1258 = vmatpush.msrb.mxu0 %v621_v62  ;;  %v134_v62 = vld [vmem:[#allocation5 + $0xc8] sm:$0xff] }
  0x93   :  { %v877_v0 = vld [vmem:[#allocation5 + $0x1800] sm:$0xff]  ;;  %1280 = vmatpush.msrb.mxu1 %v757_v63  ;;  %v270_v63 = vld [vmem:[#allocation5 + $0x508] sm:$0xff] }
  0x94   :  { %v1013_v1 = vld [vmem:[#allocation5 + $0x1c40] sm:$0xff]  ;;  %1304 = vmatpush.msrb.mxu2 %v877_v0  ;;  %1335 = vmatpush.msra.mxu0 %v230_v3  ;;  %v390_v0 = vld [vmem:[#allocation5 + $0x8c8] sm:$0xff] }
  0x95   :  { %v749_v5 = vld [vmem:[#allocation5 + $0x1400] sm:$0xff]  ;;  %1326 = vmatpush.msrb.mxu3 %v1013_v1  ;;  %1305 = vmatmul.f32.vlgmr.msrb.gmra.mxu2 %v3157_v22  ;;  %v526_v1 = vld [vmem:[#allocation5 + $0xd08] sm:$0xff] }
  0x96   :  { %v1005_v6 = vld [vmem:[#allocation5 + $0x1c00] sm:$0xff]  ;;  %1381 = vmatpush.msra.mxu2 %v486_v4  ;;  %1281 = vmatpush.msrb.mxu1 %v749_v5  ;;  %v126_v3 = vld [vmem:[#allocation5 + $0x88] sm:$0xff] }
  0x97   :  { %v3147_v7 = vld [vmem:[#allocation2 + $0x40] sm:$0xff]  ;;  %1327 = vmatpush.msrb.mxu3 %v1005_v6  ;;  %1336 = vmatpush.msra.mxu0 %v222_v9  ;;  %v262_v4 = vld [vmem:[#allocation5 + $0x4c8] sm:$0xff] }
  0x98   :  { %1170 = vmatmul.f32.gmra.mxu0 %v3147_v7  ;;  %1358 = vmatpush.msra.mxu1 %v358_v10  ;;  %v3159_v27 = vld [vmem:[#allocation2 + $0x20] sm:$0xff]  ;;  %v382_v5 = vld [vmem:[#allocation5 + $0x888] sm:$0xff] }
  0x99   :  { %1382 = vmatpush.msra.mxu2 %v478_v11  ;;  %1404 = vmatpush.msra.mxu3 %v614_v12  ;;  %v518_v6 = vld [vmem:[#allocation5 + $0xcc8] sm:$0xff] }
  0x9a   :  { %1337 = vmatpush.msra.mxu0 %v214_v14  ;;  %1359 = vmatpush.msra.mxu1 %v350_v15  ;;  %v118_v9 = vld [vmem:[#allocation5 + $0x48] sm:$0xff] }
  0x9b   :  { %1383 = vmatpush.msra.mxu2 %v470_v16  ;;  %1405 = vmatpush.msra.mxu3 %v606_v17  ;;  %v254_v10 = vld [vmem:[#allocation5 + $0x488] sm:$0xff] }
  0x9c   :  { %1338 = vmatpush.msra.mxu0 %v206_v18  ;;  %1360 = vmatpush.msra.mxu1 %v342_v19  ;;  %v374_v11 = vld [vmem:[#allocation5 + $0x848] sm:$0xff]  ;;  %v3169_v18 = vld [vmem:[#allocation2 + $0x70] sm:$0xff] }
  0x9d   :  { %1384 = vmatpush.msra.mxu2 %v462_v20  ;;  %1406 = vmatpush.msra.mxu3 %v598_v21  ;;  %v510_v12 = vld [vmem:[#allocation5 + $0xc88] sm:$0xff] }
  0x9e   :  { %1339 = vmatpush.msra.mxu0 %v198_v23  ;;  %1361 = vmatpush.msra.mxu1 %v334_v24  ;;  %v110_v14 = vld [vmem:[#allocation5 + $0x8] sm:$0xff]  ;;  %v3171_v24 = vld [vmem:[#allocation2 + $0x60] sm:$0xff] }
  0x9f   :  { %1385 = vmatpush.msra.mxu2 %v454_v25  ;;  %1407 = vmatpush.msra.mxu3 %v590_v26  ;;  %v246_v15 = vld [vmem:[#allocation5 + $0x448] sm:$0xff]  ;;  %v3174_v25 = vld [vmem:[#allocation2 + $0x78] sm:$0xff] }
  0xa0   :  { %1259 = vmatmul.f32.vlgmr.msrb.gmra.mxu0 %v3159_v27  ;;  %1328 = vmatmul.f32.vlgmr.msrb.gmra.mxu3 %v3162_v28  ;;  %v366_v16 = vld [vmem:[#allocation5 + $0x808] sm:$0xff] }
  0xa1   :  { %1340 = vmatpush.msra.mxu0 %v190_v29  ;;  %1362 = vmatpush.msra.mxu1 %v326_v30  ;;  %v502_v17 = vld [vmem:[#allocation5 + $0xc48] sm:$0xff] }
  0xa2   :  { %1386 = vmatpush.msra.mxu2 %v446_v31  ;;  %1408 = vmatpush.msra.mxu3 %v582_v32  ;;  %v742_v19 = vld [vmem:[#allocation5 + $0x13c8] sm:$0xff] }
  0xa3   :  { %1282 = vmatmul.f32.vlgmr.msrb.gmra.mxu1 %v3165_v33  ;;  %1341 = vmatpush.msra.mxu0 %v182_v34  ;;  %v998_v20 = vld [vmem:[#allocation5 + $0x1bc8] sm:$0xff] }
  0xa4   :  { %1363 = vmatpush.msra.mxu1 %v318_v35  ;;  %1387 = vmatpush.msra.mxu2 %v438_v36  ;;  %v238_v21 = vld [vmem:[#allocation5 + $0x408] sm:$0xff] }
  0xa5   :  { %1409 = vmatpush.msra.mxu3 %v574_v37  ;;  %1342 = vmatpush.msra.mxu0 %v174_v38  ;;  %v494_v23 = vld [vmem:[#allocation5 + $0xc08] sm:$0xff] }
  0xa6   :  { %1364 = vmatpush.msra.mxu1 %v310_v39  ;;  %1388 = vmatpush.msra.mxu2 %v430_v40  ;;  %v734_v26 = vld [vmem:[#allocation5 + $0x1388] sm:$0xff] }
  0xa7   :  { %1410 = vmatpush.msra.mxu3 %v566_v41  ;;  %1343 = vmatpush.msra.mxu0 %v166_v42  ;;  %v870_v29 = vld [vmem:[#allocation5 + $0x17c8] sm:$0xff] }
  0xa8   :  { %1365 = vmatpush.msra.mxu1 %v302_v43  ;;  %1389 = vmatpush.msra.mxu2 %v422_v44  ;;  %v990_v30 = vld [vmem:[#allocation5 + $0x1b88] sm:$0xff] }
  0xa9   :  { %1411 = vmatpush.msra.mxu3 %v558_v45  ;;  %1344 = vmatpush.msra.mxu0 %v158_v47  ;;  %v1126_v31 = vld [vmem:[#allocation5 + $0x1fc8] sm:$0xff] }
  0xaa   :  { %1366 = vmatpush.msra.mxu1 %v294_v48  ;;  %1390 = vmatpush.msra.mxu2 %v414_v49  ;;  %v3177_v32 = vld [vmem:[#allocation2 + $0x68] sm:$0xff] }
  0xab   :  { %1412 = vmatpush.msra.mxu3 %v550_v50  ;;  %1345 = vmatpush.msra.mxu0 %v150_v53  ;;  %v726_v34 = vld [vmem:[#allocation5 + $0x1348] sm:$0xff] }
  0xac   :  { %1367 = vmatpush.msra.mxu1 %v286_v54  ;;  %1391 = vmatpush.msra.mxu2 %v406_v55  ;;  %v862_v35 = vld [vmem:[#allocation5 + $0x1788] sm:$0xff] }
  0xad   :  { %1413 = vmatpush.msra.mxu3 %v542_v56  ;;  %1346 = vmatpush.msra.mxu0 %v142_v58  ;;  %v982_v36 = vld [vmem:[#allocation5 + $0x1b48] sm:$0xff] }
  0xae   :  { %1368 = vmatpush.msra.mxu1 %v278_v59  ;;  %1392 = vmatpush.msra.mxu2 %v398_v60  ;;  %v1118_v37 = vld [vmem:[#allocation5 + $0x1f88] sm:$0xff] }
  0xaf   :  { %1414 = vmatpush.msra.mxu3 %v534_v61  ;;  %1347 = vmatpush.msra.mxu0 %v134_v62  ;;  %v718_v38 = vld [vmem:[#allocation5 + $0x1308] sm:$0xff] }
  0xb0   :  { %1369 = vmatpush.msra.mxu1 %v270_v63  ;;  %1393 = vmatpush.msra.mxu2 %v390_v0  ;;  %v854_v39 = vld [vmem:[#allocation5 + $0x1748] sm:$0xff] }
  0xb1   :  { %1415 = vmatpush.msra.mxu3 %v526_v1  ;;  %1348 = vmatpush.msra.mxu0 %v126_v3  ;;  %v974_v40 = vld [vmem:[#allocation5 + $0x1b08] sm:$0xff] }
  0xb2   :  { %1370 = vmatpush.msra.mxu1 %v262_v4  ;;  %1394 = vmatpush.msra.mxu2 %v382_v5  ;;  %v1110_v41 = vld [vmem:[#allocation5 + $0x1f48] sm:$0xff] }
  0xb3   :  { %1416 = vmatpush.msra.mxu3 %v518_v6  ;;  %1349 = vmatpush.msra.mxu0 %v118_v9  ;;  %v710_v42 = vld [vmem:[#allocation5 + $0x12c8] sm:$0xff] }
  0xb4   :  { %1371 = vmatpush.msra.mxu1 %v254_v10  ;;  %1395 = vmatpush.msra.mxu2 %v374_v11  ;;  %v846_v43 = vld [vmem:[#allocation5 + $0x1708] sm:$0xff] }
  0xb5   :  { %1417 = vmatpush.msra.mxu3 %v510_v12  ;;  %1350 = vmatpush.msra.mxu0 %v110_v14  ;;  %v966_v44 = vld [vmem:[#allocation5 + $0x1ac8] sm:$0xff] }
  0xb6   :  { %1372 = vmatpush.msra.mxu1 %v246_v15  ;;  %1396 = vmatpush.msra.mxu2 %v366_v16  ;;  %v1102_v45 = vld [vmem:[#allocation5 + $0x1f08] sm:$0xff] }
  0xb7   :  { %1418 = vmatpush.msra.mxu3 %v502_v17  ;;  %1308 = vmatmul.f32.gmra.mxu2 %v3169_v18  ;;  %v702_v47 = vld [vmem:[#allocation5 + $0x1288] sm:$0xff] }
  0xb8   :  { %1427 = vmatpush.msrb.mxu0 %v742_v19  ;;  %1473 = vmatpush.msrb.mxu2 %v998_v20  ;;  %v838_v48 = vld [vmem:[#allocation5 + $0x16c8] sm:$0xff] }
  0xb9   :  { %1373 = vmatpush.msra.mxu1 %v238_v21  ;;  %1419 = vmatpush.msra.mxu3 %v494_v23  ;;  %v958_v49 = vld [vmem:[#allocation5 + $0x1a88] sm:$0xff] }
  0xba   :  { %1262 = vmatmul.f32.gmra.mxu0 %v3171_v24  ;;  %1331 = vmatmul.f32.gmra.mxu3 %v3174_v25  ;;  %v1094_v50 = vld [vmem:[#allocation5 + $0x1ec8] sm:$0xff] }
  0xbb   :  { %1428 = vmatpush.msrb.mxu0 %v734_v26  ;;  %1450 = vmatpush.msrb.mxu1 %v870_v29  ;;  %v694_v53 = vld [vmem:[#allocation5 + $0x1248] sm:$0xff] }
  0xbc   :  { %1474 = vmatpush.msrb.mxu2 %v990_v30  ;;  %1496 = vmatpush.msrb.mxu3 %v1126_v31  ;;  %v830_v54 = vld [vmem:[#allocation5 + $0x1688] sm:$0xff] }
  0xbd   :  { %1285 = vmatmul.f32.gmra.mxu1 %v3177_v32  ;;  %1429 = vmatpush.msrb.mxu0 %v726_v34  ;;  %v950_v55 = vld [vmem:[#allocation5 + $0x1a48] sm:$0xff] }
  0xbe   :  { %1451 = vmatpush.msrb.mxu1 %v862_v35  ;;  %1475 = vmatpush.msrb.mxu2 %v982_v36  ;;  %v1086_v56 = vld [vmem:[#allocation5 + $0x1e88] sm:$0xff] }
  0xbf   :  { %1497 = vmatpush.msrb.mxu3 %v1118_v37  ;;  %1430 = vmatpush.msrb.mxu0 %v718_v38  ;;  %v686_v58 = vld [vmem:[#allocation5 + $0x1208] sm:$0xff] }
  0xc0   :  { %1452 = vmatpush.msrb.mxu1 %v854_v39  ;;  %1476 = vmatpush.msrb.mxu2 %v974_v40  ;;  %v822_v59 = vld [vmem:[#allocation5 + $0x1648] sm:$0xff]  ;;  %v359_v39 = vld [vmem:[#allocation5 + $0x7d0] sm:$0xff] }
  0xc1   :  { %1498 = vmatpush.msrb.mxu3 %v1110_v41  ;;  %1431 = vmatpush.msrb.mxu0 %v710_v42  ;;  %v942_v60 = vld [vmem:[#allocation5 + $0x1a08] sm:$0xff]  ;;  %v479_v40 = vld [vmem:[#allocation5 + $0xb90] sm:$0xff] }
  0xc2   :  { %1453 = vmatpush.msrb.mxu1 %v846_v43  ;;  %1477 = vmatpush.msrb.mxu2 %v966_v44  ;;  %v1078_v61 = vld [vmem:[#allocation5 + $0x1e48] sm:$0xff]  ;;  %v615_v41 = vld [vmem:[#allocation5 + $0xfd0] sm:$0xff] }
  0xc3   :  { %1499 = vmatpush.msrb.mxu3 %v1102_v45  ;;  %1432 = vmatpush.msrb.mxu0 %v702_v47  ;;  %v678_v62 = vld [vmem:[#allocation5 + $0x11c8] sm:$0xff]  ;;  %v215_v42 = vld [vmem:[#allocation5 + $0x350] sm:$0xff] }
  0xc4   :  { %1454 = vmatpush.msrb.mxu1 %v838_v48  ;;  %1478 = vmatpush.msrb.mxu2 %v958_v49  ;;  %v814_v63 = vld [vmem:[#allocation5 + $0x1608] sm:$0xff]  ;;  %v351_v43 = vld [vmem:[#allocation5 + $0x790] sm:$0xff] }
  0xc5   :  { %1500 = vmatpush.msrb.mxu3 %v1094_v50  ;;  %1433 = vmatpush.msrb.mxu0 %v694_v53  ;;  %v934_v0 = vld [vmem:[#allocation5 + $0x19c8] sm:$0xff]  ;;  %v471_v44 = vld [vmem:[#allocation5 + $0xb50] sm:$0xff] }
  0xc6   :  { %1455 = vmatpush.msrb.mxu1 %v830_v54  ;;  %1479 = vmatpush.msrb.mxu2 %v950_v55  ;;  %v1070_v1 = vld [vmem:[#allocation5 + $0x1e08] sm:$0xff]  ;;  %v607_v45 = vld [vmem:[#allocation5 + $0xf90] sm:$0xff] }
  0xc7   :  { %1501 = vmatpush.msrb.mxu3 %v1086_v56  ;;  %1434 = vmatpush.msrb.mxu0 %v686_v58  ;;  %v670_v3 = vld [vmem:[#allocation5 + $0x1188] sm:$0xff]  ;;  %v343_v47 = vld [vmem:[#allocation5 + $0x750] sm:$0xff] }
  0xc8   :  { %1456 = vmatpush.msrb.mxu1 %v822_v59  ;;  %1480 = vmatpush.msrb.mxu2 %v942_v60  ;;  %v806_v4 = vld [vmem:[#allocation5 + $0x15c8] sm:$0xff]  ;;  %v463_v48 = vld [vmem:[#allocation5 + $0xb10] sm:$0xff] }
  0xc9   :  { %1502 = vmatpush.msrb.mxu3 %v1078_v61  ;;  %1397 = vmatmul.f32.vlgmr.msra.gmra.mxu2 %v3133_v46  ;;  %v926_v5 = vld [vmem:[#allocation5 + $0x1988] sm:$0xff]  ;;  %v599_v49 = vld [vmem:[#allocation5 + $0xf50] sm:$0xff] }
  0xca   :  { %1435 = vmatpush.msrb.mxu0 %v678_v62  ;;  %1457 = vmatpush.msrb.mxu1 %v814_v63  ;;  %v1062_v6 = vld [vmem:[#allocation5 + $0x1dc8] sm:$0xff]  ;;  %v455_v50 = vld [vmem:[#allocation5 + $0xad0] sm:$0xff] }
  0xcb   :  { %1481 = vmatpush.msrb.mxu2 %v934_v0  ;;  %1503 = vmatpush.msrb.mxu3 %v1070_v1  ;;  %v662_v9 = vld [vmem:[#allocation5 + $0x1148] sm:$0xff]  ;;  %v591_v53 = vld [vmem:[#allocation5 + $0xf10] sm:$0xff] }
  0xcc   :  { %1351 = vmatmul.f32.vlgmr.msra.gmra.mxu0 %v3135_v51  ;;  %1420 = vmatmul.f32.vlgmr.msra.gmra.mxu3 %v3138_v52  ;;  %v798_v10 = vld [vmem:[#allocation5 + $0x1588] sm:$0xff]  ;;  %v327_v54 = vld [vmem:[#allocation5 + $0x6d0] sm:$0xff] }
  0xcd   :  { %1436 = vmatpush.msrb.mxu0 %v670_v3  ;;  %1458 = vmatpush.msrb.mxu1 %v806_v4  ;;  %v918_v11 = vld [vmem:[#allocation5 + $0x1948] sm:$0xff]  ;;  %v447_v55 = vld [vmem:[#allocation5 + $0xa90] sm:$0xff] }
  0xce   :  { %1482 = vmatpush.msrb.mxu2 %v926_v5  ;;  %v1054_v12 = vld [vmem:[#allocation5 + $0x1d88] sm:$0xff]  ;;  %1504 = vmatpush.msrb.mxu3 %v1062_v6  ;;  %v583_v56 = vld [vmem:[#allocation5 + $0xed0] sm:$0xff] }
  0xcf   :  { %1374 = vmatmul.f32.vlgmr.msra.gmra.mxu1 %v3141_v57  ;;  %v654_v46 = vld [vmem:[#allocation5 + $0x1108] sm:$0xff]  ;;  %1437 = vmatpush.msrb.mxu0 %v662_v9  ;;  %v183_v58 = vld [vmem:[#allocation5 + $0x250] sm:$0xff] }
  0xd0   :  { %v790_v14 = vld [vmem:[#allocation5 + $0x1548] sm:$0xff]  ;;  %1459 = vmatpush.msrb.mxu1 %v798_v10  ;;  %1483 = vmatpush.msrb.mxu2 %v918_v11  ;;  %v319_v59 = vld [vmem:[#allocation5 + $0x690] sm:$0xff] }
  0xd1   :  { %v910_v15 = vld [vmem:[#allocation5 + $0x1908] sm:$0xff]  ;;  %1505 = vmatpush.msrb.mxu3 %v1054_v12  ;;  %1438 = vmatpush.msrb.mxu0 %v654_v46  ;;  %v439_v60 = vld [vmem:[#allocation5 + $0xa50] sm:$0xff] }
  0xd2   :  { %v1046_v16 = vld [vmem:[#allocation5 + $0x1d48] sm:$0xff]  ;;  %1460 = vmatpush.msrb.mxu1 %v790_v14  ;;  %1484 = vmatpush.msrb.mxu2 %v910_v15  ;;  %v575_v61 = vld [vmem:[#allocation5 + $0xe90] sm:$0xff] }
  0xd3   :  { %v646_v51 = vld [vmem:[#allocation5 + $0x10c8] sm:$0xff]  ;;  %1506 = vmatpush.msrb.mxu3 %v1046_v16  ;;  %1400 = vmatmul.f32.gmra.mxu2 %v3145_v2  ;;  %v175_v62 = vld [vmem:[#allocation5 + $0x210] sm:$0xff] }
  0xd4   :  { %v782_v52 = vld [vmem:[#allocation5 + $0x1508] sm:$0xff]  ;;  %1439 = vmatpush.msrb.mxu0 %v646_v51  ;;  %1423 = vmatmul.f32.gmra.mxu3 %v3150_v8  ;;  %v487_v8 = vld [vmem:[#allocation5 + $0xbd0] sm:$0xff] }
  0xd5   :  { %v902_v17 = vld [vmem:[#allocation5 + $0x18c8] sm:$0xff]  ;;  %1461 = vmatpush.msrb.mxu1 %v782_v52  ;;  %1354 = vmatmul.f32.gmra.mxu0 %v3147_v7  ;;  %v231_v7 = vld [vmem:[#allocation5 + $0x3d0] sm:$0xff] }
  0xd6   :  { %v1038_v19 = vld [vmem:[#allocation5 + $0x1d08] sm:$0xff]  ;;  %1485 = vmatpush.msrb.mxu2 %v902_v17  ;;  %v311_v63 = vld [vmem:[#allocation5 + $0x650] sm:$0xff] }
  0xd7   :  { %v638_v57 = vld [vmem:[#allocation5 + $0x1088] sm:$0xff]  ;;  %1507 = vmatpush.msrb.mxu3 %v1038_v19  ;;  %1377 = vmatmul.f32.gmra.mxu1 %v3153_v13  ;;  %v223_v13 = vld [vmem:[#allocation5 + $0x390] sm:$0xff] }
  0xd8   :  { %v774_v20 = vld [vmem:[#allocation5 + $0x14c8] sm:$0xff]  ;;  %1440 = vmatpush.msrb.mxu0 %v638_v57  ;;  %v431_v0 = vld [vmem:[#allocation5 + $0xa10] sm:$0xff] }
  0xd9   :  { %v894_v21 = vld [vmem:[#allocation5 + $0x1888] sm:$0xff]  ;;  %1462 = vmatpush.msrb.mxu1 %v774_v20  ;;  %v567_v1 = vld [vmem:[#allocation5 + $0xe50] sm:$0xff] }
  0xda   :  { %v1030_v23 = vld [vmem:[#allocation5 + $0x1cc8] sm:$0xff]  ;;  %1486 = vmatpush.msrb.mxu2 %v894_v21  ;;  %v167_v3 = vld [vmem:[#allocation5 + $0x1d0] sm:$0xff] }
  0xdb   :  { %v630_v26 = vld [vmem:[#allocation5 + $0x1048] sm:$0xff]  ;;  %1508 = vmatpush.msrb.mxu3 %v1030_v23  ;;  %v303_v4 = vld [vmem:[#allocation5 + $0x610] sm:$0xff] }
  0xdc   :  { %v766_v29 = vld [vmem:[#allocation5 + $0x1488] sm:$0xff]  ;;  %1441 = vmatpush.msrb.mxu0 %v630_v26  ;;  %v423_v5 = vld [vmem:[#allocation5 + $0x9d0] sm:$0xff] }
  0xdd   :  { %v886_v30 = vld [vmem:[#allocation5 + $0x1848] sm:$0xff]  ;;  %1463 = vmatpush.msrb.mxu1 %v766_v29  ;;  %v559_v6 = vld [vmem:[#allocation5 + $0xe10] sm:$0xff] }
  0xde   :  { %v1022_v31 = vld [vmem:[#allocation5 + $0x1c88] sm:$0xff]  ;;  %1487 = vmatpush.msrb.mxu2 %v886_v30  ;;  %v159_v9 = vld [vmem:[#allocation5 + $0x190] sm:$0xff] }
  0xdf   :  { %v622_v2 = vld [vmem:[#allocation5 + $0x1008] sm:$0xff]  ;;  %1509 = vmatpush.msrb.mxu3 %v1022_v31  ;;  %v295_v10 = vld [vmem:[#allocation5 + $0x5d0] sm:$0xff] }
  0xe0   :  { %v758_v34 = vld [vmem:[#allocation5 + $0x1448] sm:$0xff]  ;;  %1442 = vmatpush.msrb.mxu0 %v622_v2  ;;  %v415_v11 = vld [vmem:[#allocation5 + $0x990] sm:$0xff] }
  0xe1   :  { %v878_v35 = vld [vmem:[#allocation5 + $0x1808] sm:$0xff]  ;;  %1464 = vmatpush.msrb.mxu1 %v758_v34  ;;  %1443 = vmatmul.f32.vlgmr.msrb.gmra.mxu0 %v3159_v27  ;;  %v199_v27 = vld [vmem:[#allocation5 + $0x2d0] sm:$0xff] }
  0xe2   :  { %v1014_v36 = vld [vmem:[#allocation5 + $0x1c48] sm:$0xff]  ;;  %1488 = vmatpush.msrb.mxu2 %v878_v35  ;;  %1519 = vmatpush.msra.mxu0 %v231_v7  ;;  %v551_v12 = vld [vmem:[#allocation5 + $0xdd0] sm:$0xff] }
  0xe3   :  { %v750_v37 = vld [vmem:[#allocation5 + $0x1408] sm:$0xff]  ;;  %1510 = vmatpush.msrb.mxu3 %v1014_v36  ;;  %1489 = vmatmul.f32.vlgmr.msrb.gmra.mxu2 %v3157_v22  ;;  %v207_v22 = vld [vmem:[#allocation5 + $0x310] sm:$0xff] }
  0xe4   :  { %v1006_v38 = vld [vmem:[#allocation5 + $0x1c08] sm:$0xff]  ;;  %1565 = vmatpush.msra.mxu2 %v487_v8  ;;  %1465 = vmatpush.msrb.mxu1 %v750_v37  ;;  %v151_v46 = vld [vmem:[#allocation5 + $0x150] sm:$0xff] }
  0xe5   :  { %1511 = vmatpush.msrb.mxu3 %v1006_v38  ;;  %1520 = vmatpush.msra.mxu0 %v223_v13  ;;  %v287_v14 = vld [vmem:[#allocation5 + $0x590] sm:$0xff] }
  0xe6   :  { %1512 = vmatmul.f32.vlgmr.msrb.gmra.mxu3 %v3162_v28  ;;  %1542 = vmatpush.msra.mxu1 %v359_v39  ;;  %v335_v28 = vld [vmem:[#allocation5 + $0x710] sm:$0xff] }
  0xe7   :  { %1566 = vmatpush.msra.mxu2 %v479_v40  ;;  %1588 = vmatpush.msra.mxu3 %v615_v41  ;;  %v407_v15 = vld [vmem:[#allocation5 + $0x950] sm:$0xff] }
  0xe8   :  { %1466 = vmatmul.f32.vlgmr.msrb.gmra.mxu1 %v3165_v33  ;;  %1521 = vmatpush.msra.mxu0 %v215_v42  ;;  %v191_v33 = vld [vmem:[#allocation5 + $0x290] sm:$0xff] }
  0xe9   :  { %1543 = vmatpush.msra.mxu1 %v351_v43  ;;  %1567 = vmatpush.msra.mxu2 %v471_v44  ;;  %v543_v16 = vld [vmem:[#allocation5 + $0xd90] sm:$0xff] }
  0xea   :  { %1589 = vmatpush.msra.mxu3 %v607_v45  ;;  %1522 = vmatpush.msra.mxu0 %v207_v22  ;;  %v143_v51 = vld [vmem:[#allocation5 + $0x110] sm:$0xff] }
  0xeb   :  { %1544 = vmatpush.msra.mxu1 %v343_v47  ;;  %1568 = vmatpush.msra.mxu2 %v463_v48  ;;  %v279_v52 = vld [vmem:[#allocation5 + $0x550] sm:$0xff] }
  0xec   :  { %1590 = vmatpush.msra.mxu3 %v599_v49  ;;  %1492 = vmatmul.f32.gmra.mxu2 %v3169_v18  ;;  %v399_v17 = vld [vmem:[#allocation5 + $0x910] sm:$0xff] }
  0xed   :  { %1523 = vmatpush.msra.mxu0 %v199_v27  ;;  %1545 = vmatpush.msra.mxu1 %v335_v28  ;;  %v535_v19 = vld [vmem:[#allocation5 + $0xd50] sm:$0xff] }
  0xee   :  { %1569 = vmatpush.msra.mxu2 %v455_v50  ;;  %1591 = vmatpush.msra.mxu3 %v591_v53  ;;  %v135_v57 = vld [vmem:[#allocation5 + $0xd0] sm:$0xff] }
  0xef   :  { %1446 = vmatmul.f32.gmra.mxu0 %v3171_v24  ;;  %1515 = vmatmul.f32.gmra.mxu3 %v3174_v25  ;;  %v271_v20 = vld [vmem:[#allocation5 + $0x510] sm:$0xff] }
  0xf0   :  { %1524 = vmatpush.msra.mxu0 %v191_v33  ;;  %1546 = vmatpush.msra.mxu1 %v327_v54  ;;  %v391_v21 = vld [vmem:[#allocation5 + $0x8d0] sm:$0xff] }
  0xf1   :  { %1570 = vmatpush.msra.mxu2 %v447_v55  ;;  %1592 = vmatpush.msra.mxu3 %v583_v56  ;;  %v527_v23 = vld [vmem:[#allocation5 + $0xd10] sm:$0xff] }
  0xf2   :  { %1469 = vmatmul.f32.gmra.mxu1 %v3177_v32  ;;  %1525 = vmatpush.msra.mxu0 %v183_v58  ;;  %v127_v26 = vld [vmem:[#allocation5 + $0x90] sm:$0xff] }
  0xf3   :  { %1547 = vmatpush.msra.mxu1 %v319_v59  ;;  %1571 = vmatpush.msra.mxu2 %v439_v60  ;;  %v263_v29 = vld [vmem:[#allocation5 + $0x4d0] sm:$0xff] }
  0xf4   :  { %1593 = vmatpush.msra.mxu3 %v575_v61  ;;  %1526 = vmatpush.msra.mxu0 %v175_v62  ;;  %v383_v30 = vld [vmem:[#allocation5 + $0x890] sm:$0xff] }
  0xf5   :  { %1548 = vmatpush.msra.mxu1 %v311_v63  ;;  %1572 = vmatpush.msra.mxu2 %v431_v0  ;;  %v519_v31 = vld [vmem:[#allocation5 + $0xcd0] sm:$0xff] }
  0xf6   :  { %1594 = vmatpush.msra.mxu3 %v567_v1  ;;  %1527 = vmatpush.msra.mxu0 %v167_v3  ;;  %v119_v2 = vld [vmem:[#allocation5 + $0x50] sm:$0xff] }
  0xf7   :  { %1549 = vmatpush.msra.mxu1 %v303_v4  ;;  %1573 = vmatpush.msra.mxu2 %v423_v5  ;;  %v255_v34 = vld [vmem:[#allocation5 + $0x490] sm:$0xff] }
  0xf8   :  { %1595 = vmatpush.msra.mxu3 %v559_v6  ;;  %1528 = vmatpush.msra.mxu0 %v159_v9  ;;  %v375_v35 = vld [vmem:[#allocation5 + $0x850] sm:$0xff] }
  0xf9   :  { %1550 = vmatpush.msra.mxu1 %v295_v10  ;;  %1574 = vmatpush.msra.mxu2 %v415_v11  ;;  %v511_v36 = vld [vmem:[#allocation5 + $0xc90] sm:$0xff] }
  0xfa   :  { %1596 = vmatpush.msra.mxu3 %v551_v12  ;;  %1529 = vmatpush.msra.mxu0 %v151_v46  ;;  %v111_v7 = vld [vmem:[#allocation5 + $0x10] sm:$0xff] }
  0xfb   :  { %1551 = vmatpush.msra.mxu1 %v287_v14  ;;  %1575 = vmatpush.msra.mxu2 %v407_v15  ;;  %v247_v8 = vld [vmem:[#allocation5 + $0x450] sm:$0xff] }
  0xfc   :  { %1597 = vmatpush.msra.mxu3 %v543_v16  ;;  %1530 = vmatpush.msra.mxu0 %v143_v51  ;;  %v367_v37 = vld [vmem:[#allocation5 + $0x810] sm:$0xff]  ;;  %v3200_v51 = vld [vmem:[#allocation2] sm:$0xff] }
  0xfd   :  { %1552 = vmatpush.msra.mxu1 %v279_v52  ;;  %1576 = vmatpush.msra.mxu2 %v399_v17  ;;  %v503_v38 = vld [vmem:[#allocation5 + $0xc50] sm:$0xff]  ;;  %v3203_v17 = vld [vmem:[#allocation2 + $0x18] sm:$0xff] }
  0xfe   :  { %1598 = vmatpush.msra.mxu3 %v535_v19  ;;  %1531 = vmatpush.msra.mxu0 %v135_v57  ;;  %v743_v13 = vld [vmem:[#allocation5 + $0x13d0] sm:$0xff] }
  0xff   :  { %1553 = vmatpush.msra.mxu1 %v271_v20  ;;  %1577 = vmatpush.msra.mxu2 %v391_v21  ;;  %v999_v39 = vld [vmem:[#allocation5 + $0x1bd0] sm:$0xff] }
 0x100   :  { %1599 = vmatpush.msra.mxu3 %v527_v23  ;;  %1532 = vmatpush.msra.mxu0 %v127_v26  ;;  %v239_v40 = vld [vmem:[#allocation5 + $0x410] sm:$0xff]  ;;  %v3206_v23 = vld [vmem:[#allocation2 + $0x8] sm:$0xff] }
 0x101   :  { %1554 = vmatpush.msra.mxu1 %v263_v29  ;;  %1578 = vmatpush.msra.mxu2 %v383_v30  ;;  %v495_v41 = vld [vmem:[#allocation5 + $0xc10] sm:$0xff] }
 0x102   :  { %1600 = vmatpush.msra.mxu3 %v519_v31  ;;  %1533 = vmatpush.msra.mxu0 %v119_v2  ;;  %v735_v42 = vld [vmem:[#allocation5 + $0x1390] sm:$0xff] }
 0x103   :  { %1555 = vmatpush.msra.mxu1 %v255_v34  ;;  %1579 = vmatpush.msra.mxu2 %v375_v35  ;;  %v871_v43 = vld [vmem:[#allocation5 + $0x17d0] sm:$0xff] }
 0x104   :  { %1601 = vmatpush.msra.mxu3 %v511_v36  ;;  %1534 = vmatpush.msra.mxu0 %v111_v7  ;;  %v991_v44 = vld [vmem:[#allocation5 + $0x1b90] sm:$0xff] }
 0x105   :  { %1556 = vmatpush.msra.mxu1 %v247_v8  ;;  %1580 = vmatpush.msra.mxu2 %v367_v37  ;;  %v1127_v45 = vld [vmem:[#allocation5 + $0x1fd0] sm:$0xff] }
 0x106   :  { %1602 = vmatpush.msra.mxu3 %v503_v38  ;;  %1611 = vmatpush.msrb.mxu0 %v743_v13  ;;  %v727_v22 = vld [vmem:[#allocation5 + $0x1350] sm:$0xff]  ;;  %v3212_v13 = vld [vmem:[#allocation2 + $0x40] sm:$0xff] }
 0x107   :  { %1657 = vmatpush.msrb.mxu2 %v999_v39  ;;  %1557 = vmatpush.msra.mxu1 %v239_v40  ;;  %v863_v47 = vld [vmem:[#allocation5 + $0x1790] sm:$0xff]  ;;  %v3215_v40 = vld [vmem:[#allocation2 + $0x58] sm:$0xff] }
 0x108   :  { %1603 = vmatpush.msra.mxu3 %v495_v41  ;;  %1612 = vmatpush.msrb.mxu0 %v735_v42  ;;  %v983_v48 = vld [vmem:[#allocation5 + $0x1b50] sm:$0xff] }
 0x109   :  { %1634 = vmatpush.msrb.mxu1 %v871_v43  ;;  %v1119_v49 = vld [vmem:[#allocation5 + $0x1f90] sm:$0xff]  ;;  %1658 = vmatpush.msrb.mxu2 %v991_v44 }
 0x10a   :  { %1680 = vmatpush.msrb.mxu3 %v1127_v45  ;;  %v719_v27 = vld [vmem:[#allocation5 + $0x1310] sm:$0xff]  ;;  %1613 = vmatpush.msrb.mxu0 %v727_v22  ;;  %v3218_v45 = vld [vmem:[#allocation2 + $0x48] sm:$0xff] }
 0x10b   :  { %v855_v28 = vld [vmem:[#allocation5 + $0x1750] sm:$0xff]  ;;  %1635 = vmatpush.msrb.mxu1 %v863_v47  ;;  %1659 = vmatpush.msrb.mxu2 %v983_v48 }
 0x10c   :  { %v975_v50 = vld [vmem:[#allocation5 + $0x1b10] sm:$0xff]  ;;  %1681 = vmatpush.msrb.mxu3 %v1119_v49  ;;  %1614 = vmatpush.msrb.mxu0 %v719_v27  ;;  %v232_v27 = vld [vmem:[#allocation5 + $0x3d8] sm:$0xff] }
 0x10d   :  { %v1111_v53 = vld [vmem:[#allocation5 + $0x1f50] sm:$0xff]  ;;  %1636 = vmatpush.msrb.mxu1 %v855_v28  ;;  %1660 = vmatpush.msrb.mxu2 %v975_v50  ;;  %v488_v28 = vld [vmem:[#allocation5 + $0xbd8] sm:$0xff] }
 0x10e   :  { %v711_v33 = vld [vmem:[#allocation5 + $0x12d0] sm:$0xff]  ;;  %1682 = vmatpush.msrb.mxu3 %v1111_v53  ;;  %1535 = vmatmul.f32.vlgmr.msra.gmra.mxu0 %v3200_v51 }
 0x10f   :  { %v847_v54 = vld [vmem:[#allocation5 + $0x1710] sm:$0xff]  ;;  %1615 = vmatpush.msrb.mxu0 %v711_v33  ;;  %1604 = vmatmul.f32.vlgmr.msra.gmra.mxu3 %v3203_v17 }
 0x110   :  { %v967_v55 = vld [vmem:[#allocation5 + $0x1ad0] sm:$0xff]  ;;  %1637 = vmatpush.msrb.mxu1 %v847_v54  ;;  %v224_v54 = vld [vmem:[#allocation5 + $0x398] sm:$0xff] }
 0x111   :  { %v1103_v56 = vld [vmem:[#allocation5 + $0x1f10] sm:$0xff]  ;;  %1661 = vmatpush.msrb.mxu2 %v967_v55  ;;  %1558 = vmatmul.f32.vlgmr.msra.gmra.mxu1 %v3206_v23  ;;  %v360_v55 = vld [vmem:[#allocation5 + $0x7d8] sm:$0xff] }
 0x112   :  { %v703_v58 = vld [vmem:[#allocation5 + $0x1290] sm:$0xff]  ;;  %1683 = vmatpush.msrb.mxu3 %v1103_v56  ;;  %v480_v56 = vld [vmem:[#allocation5 + $0xb98] sm:$0xff] }
 0x113   :  { %v839_v59 = vld [vmem:[#allocation5 + $0x16d0] sm:$0xff]  ;;  %1616 = vmatpush.msrb.mxu0 %v703_v58  ;;  %v3224_v58 = vld [vmem:[#allocation2 + $0x20] sm:$0xff] }
 0x114   :  { %v959_v60 = vld [vmem:[#allocation5 + $0x1a90] sm:$0xff]  ;;  %1638 = vmatpush.msrb.mxu1 %v839_v59  ;;  %v616_v59 = vld [vmem:[#allocation5 + $0xfd8] sm:$0xff] }
 0x115   :  { %v1095_v61 = vld [vmem:[#allocation5 + $0x1ed0] sm:$0xff]  ;;  %1662 = vmatpush.msrb.mxu2 %v959_v60  ;;  %v3227_v60 = vld [vmem:[#allocation2 + $0x38] sm:$0xff] }
 0x116   :  { %v695_v62 = vld [vmem:[#allocation5 + $0x1250] sm:$0xff]  ;;  %1684 = vmatpush.msrb.mxu3 %v1095_v61  ;;  %1538 = vmatmul.f32.gmra.mxu0 %v3212_v13  ;;  %v216_v61 = vld [vmem:[#allocation5 + $0x358] sm:$0xff] }
 0x117   :  { %v831_v63 = vld [vmem:[#allocation5 + $0x1690] sm:$0xff]  ;;  %1617 = vmatpush.msrb.mxu0 %v695_v62  ;;  %1607 = vmatmul.f32.gmra.mxu3 %v3215_v40  ;;  %v352_v62 = vld [vmem:[#allocation5 + $0x798] sm:$0xff] }
 0x118   :  { %v951_v0 = vld [vmem:[#allocation5 + $0x1a50] sm:$0xff]  ;;  %1639 = vmatpush.msrb.mxu1 %v831_v63  ;;  %v472_v63 = vld [vmem:[#allocation5 + $0xb58] sm:$0xff] }
 0x119   :  { %v1087_v1 = vld [vmem:[#allocation5 + $0x1e90] sm:$0xff]  ;;  %1663 = vmatpush.msrb.mxu2 %v951_v0  ;;  %1561 = vmatmul.f32.gmra.mxu1 %v3218_v45  ;;  %v608_v0 = vld [vmem:[#allocation5 + $0xf98] sm:$0xff] }
 0x11a   :  { %v687_v3 = vld [vmem:[#allocation5 + $0x1210] sm:$0xff]  ;;  %1685 = vmatpush.msrb.mxu3 %v1087_v1  ;;  %v3230_v1 = vld [vmem:[#allocation2 + $0x28] sm:$0xff] }
 0x11b   :  { %v823_v4 = vld [vmem:[#allocation5 + $0x1650] sm:$0xff]  ;;  %1618 = vmatpush.msrb.mxu0 %v687_v3  ;;  %v208_v3 = vld [vmem:[#allocation5 + $0x318] sm:$0xff] }
 0x11c   :  { %v943_v5 = vld [vmem:[#allocation5 + $0x1a10] sm:$0xff]  ;;  %1640 = vmatpush.msrb.mxu1 %v823_v4  ;;  %v344_v4 = vld [vmem:[#allocation5 + $0x758] sm:$0xff] }
 0x11d   :  { %v1079_v6 = vld [vmem:[#allocation5 + $0x1e50] sm:$0xff]  ;;  %1664 = vmatpush.msrb.mxu2 %v943_v5  ;;  %v464_v5 = vld [vmem:[#allocation5 + $0xb18] sm:$0xff] }
 0x11e   :  { %v679_v9 = vld [vmem:[#allocation5 + $0x11d0] sm:$0xff]  ;;  %1686 = vmatpush.msrb.mxu3 %v1079_v6  ;;  %v600_v6 = vld [vmem:[#allocation5 + $0xf58] sm:$0xff] }
 0x11f   :  { %v815_v10 = vld [vmem:[#allocation5 + $0x1610] sm:$0xff]  ;;  %1619 = vmatpush.msrb.mxu0 %v679_v9  ;;  %v200_v9 = vld [vmem:[#allocation5 + $0x2d8] sm:$0xff] }
 0x120   :  { %v935_v11 = vld [vmem:[#allocation5 + $0x19d0] sm:$0xff]  ;;  %1641 = vmatpush.msrb.mxu1 %v815_v10  ;;  %v336_v10 = vld [vmem:[#allocation5 + $0x718] sm:$0xff] }
 0x121   :  { %v1071_v12 = vld [vmem:[#allocation5 + $0x1e10] sm:$0xff]  ;;  %1665 = vmatpush.msrb.mxu2 %v935_v11  ;;  %v456_v11 = vld [vmem:[#allocation5 + $0xad8] sm:$0xff] }
 0x122   :  { %v3197_v46 = vld [vmem:[#allocation2 + $0x10] sm:$0xff]  ;;  %1687 = vmatpush.msrb.mxu3 %v1071_v12  ;;  %v592_v12 = vld [vmem:[#allocation5 + $0xf18] sm:$0xff] }
 0x123   :  { %1581 = vmatmul.f32.vlgmr.msra.gmra.mxu2 %v3197_v46  ;;  %v671_v14 = vld [vmem:[#allocation5 + $0x1190] sm:$0xff] }
 0x124   :  { %v807_v15 = vld [vmem:[#allocation5 + $0x15d0] sm:$0xff]  ;;  %1620 = vmatpush.msrb.mxu0 %v671_v14  ;;  %v192_v14 = vld [vmem:[#allocation5 + $0x298] sm:$0xff] }
 0x125   :  { %v927_v16 = vld [vmem:[#allocation5 + $0x1990] sm:$0xff]  ;;  %1642 = vmatpush.msrb.mxu1 %v807_v15  ;;  %v328_v15 = vld [vmem:[#allocation5 + $0x6d8] sm:$0xff] }
 0x126   :  { %v1063_v52 = vld [vmem:[#allocation5 + $0x1dd0] sm:$0xff]  ;;  %1666 = vmatpush.msrb.mxu2 %v927_v16  ;;  %v448_v16 = vld [vmem:[#allocation5 + $0xa98] sm:$0xff] }
 0x127   :  { %v663_v19 = vld [vmem:[#allocation5 + $0x1150] sm:$0xff]  ;;  %1688 = vmatpush.msrb.mxu3 %v1063_v52  ;;  %v584_v52 = vld [vmem:[#allocation5 + $0xed8] sm:$0xff] }
 0x128   :  { %v799_v57 = vld [vmem:[#allocation5 + $0x1590] sm:$0xff]  ;;  %1621 = vmatpush.msrb.mxu0 %v663_v19  ;;  %v184_v19 = vld [vmem:[#allocation5 + $0x258] sm:$0xff] }
 0x129   :  { %v919_v20 = vld [vmem:[#allocation5 + $0x1950] sm:$0xff]  ;;  %1643 = vmatpush.msrb.mxu1 %v799_v57  ;;  %v320_v57 = vld [vmem:[#allocation5 + $0x698] sm:$0xff] }
 0x12a   :  { %v1055_v21 = vld [vmem:[#allocation5 + $0x1d90] sm:$0xff]  ;;  %1667 = vmatpush.msrb.mxu2 %v919_v20  ;;  %v440_v20 = vld [vmem:[#allocation5 + $0xa58] sm:$0xff] }
 0x12b   :  { %v655_v26 = vld [vmem:[#allocation5 + $0x1110] sm:$0xff]  ;;  %1689 = vmatpush.msrb.mxu3 %v1055_v21  ;;  %v576_v21 = vld [vmem:[#allocation5 + $0xe98] sm:$0xff] }
 0x12c   :  { %v791_v29 = vld [vmem:[#allocation5 + $0x1550] sm:$0xff]  ;;  %1622 = vmatpush.msrb.mxu0 %v655_v26  ;;  %v312_v26 = vld [vmem:[#allocation5 + $0x658] sm:$0xff] }
 0x12d   :  { %v911_v30 = vld [vmem:[#allocation5 + $0x1910] sm:$0xff]  ;;  %1644 = vmatpush.msrb.mxu1 %v791_v29  ;;  %v432_v29 = vld [vmem:[#allocation5 + $0xa18] sm:$0xff] }
 0x12e   :  { %v1047_v31 = vld [vmem:[#allocation5 + $0x1d50] sm:$0xff]  ;;  %1668 = vmatpush.msrb.mxu2 %v911_v30  ;;  %v568_v30 = vld [vmem:[#allocation5 + $0xe58] sm:$0xff] }
 0x12f   :  { %v647_v2 = vld [vmem:[#allocation5 + $0x10d0] sm:$0xff]  ;;  %1690 = vmatpush.msrb.mxu3 %v1047_v31  ;;  %v424_v31 = vld [vmem:[#allocation5 + $0x9d8] sm:$0xff] }
 0x130   :  { %v783_v34 = vld [vmem:[#allocation5 + $0x1510] sm:$0xff]  ;;  %1623 = vmatpush.msrb.mxu0 %v647_v2  ;;  %v560_v2 = vld [vmem:[#allocation5 + $0xe18] sm:$0xff] }
 0x131   :  { %v903_v35 = vld [vmem:[#allocation5 + $0x18d0] sm:$0xff]  ;;  %1645 = vmatpush.msrb.mxu1 %v783_v34  ;;  %v160_v34 = vld [vmem:[#allocation5 + $0x198] sm:$0xff] }
 0x132   :  { %v1039_v36 = vld [vmem:[#allocation5 + $0x1d10] sm:$0xff]  ;;  %1669 = vmatpush.msrb.mxu2 %v903_v35  ;;  %v296_v35 = vld [vmem:[#allocation5 + $0x5d8] sm:$0xff] }
 0x133   :  { %v3209_v7 = vld [vmem:[#allocation2 + $0x50] sm:$0xff]  ;;  %1691 = vmatpush.msrb.mxu3 %v1039_v36  ;;  %v552_v36 = vld [vmem:[#allocation5 + $0xdd8] sm:$0xff] }
 0x134   :  { %1584 = vmatmul.f32.gmra.mxu2 %v3209_v7  ;;  %v639_v8 = vld [vmem:[#allocation5 + $0x1090] sm:$0xff] }
 0x135   :  { %v775_v37 = vld [vmem:[#allocation5 + $0x14d0] sm:$0xff]  ;;  %1624 = vmatpush.msrb.mxu0 %v639_v8  ;;  %v152_v8 = vld [vmem:[#allocation5 + $0x158] sm:$0xff] }
 0x136   :  { %v895_v38 = vld [vmem:[#allocation5 + $0x1890] sm:$0xff]  ;;  %1646 = vmatpush.msrb.mxu1 %v775_v37  ;;  %v288_v37 = vld [vmem:[#allocation5 + $0x598] sm:$0xff] }
 0x137   :  { %v1031_v39 = vld [vmem:[#allocation5 + $0x1cd0] sm:$0xff]  ;;  %1670 = vmatpush.msrb.mxu2 %v895_v38  ;;  %v408_v38 = vld [vmem:[#allocation5 + $0x958] sm:$0xff] }
 0x138   :  { %v631_v41 = vld [vmem:[#allocation5 + $0x1050] sm:$0xff]  ;;  %1692 = vmatpush.msrb.mxu3 %v1031_v39  ;;  %v544_v39 = vld [vmem:[#allocation5 + $0xd98] sm:$0xff] }
 0x139   :  { %v767_v42 = vld [vmem:[#allocation5 + $0x1490] sm:$0xff]  ;;  %1625 = vmatpush.msrb.mxu0 %v631_v41  ;;  %v144_v41 = vld [vmem:[#allocation5 + $0x118] sm:$0xff] }
 0x13a   :  { %v887_v43 = vld [vmem:[#allocation5 + $0x1850] sm:$0xff]  ;;  %1647 = vmatpush.msrb.mxu1 %v767_v42  ;;  %v280_v42 = vld [vmem:[#allocation5 + $0x558] sm:$0xff] }
 0x13b   :  { %v1023_v44 = vld [vmem:[#allocation5 + $0x1c90] sm:$0xff]  ;;  %1671 = vmatpush.msrb.mxu2 %v887_v43  ;;  %v400_v43 = vld [vmem:[#allocation5 + $0x918] sm:$0xff] }
 0x13c   :  { %v623_v22 = vld [vmem:[#allocation5 + $0x1010] sm:$0xff]  ;;  %1693 = vmatpush.msrb.mxu3 %v1023_v44  ;;  %v536_v44 = vld [vmem:[#allocation5 + $0xd58] sm:$0xff] }
 0x13d   :  { %v759_v47 = vld [vmem:[#allocation5 + $0x1450] sm:$0xff]  ;;  %1626 = vmatpush.msrb.mxu0 %v623_v22  ;;  %v136_v22 = vld [vmem:[#allocation5 + $0xd8] sm:$0xff] }
 0x13e   :  { %v879_v48 = vld [vmem:[#allocation5 + $0x1810] sm:$0xff]  ;;  %1648 = vmatpush.msrb.mxu1 %v759_v47  ;;  %1627 = vmatmul.f32.vlgmr.msrb.gmra.mxu0 %v3224_v58  ;;  %v272_v47 = vld [vmem:[#allocation5 + $0x518] sm:$0xff] }
 0x13f   :  { %v1015_v49 = vld [vmem:[#allocation5 + $0x1c50] sm:$0xff]  ;;  %1672 = vmatpush.msrb.mxu2 %v879_v48  ;;  %1703 = vmatpush.msra.mxu0 %v232_v27  ;;  %v392_v48 = vld [vmem:[#allocation5 + $0x8d8] sm:$0xff] }
 0x140   :  { %v751_v50 = vld [vmem:[#allocation5 + $0x1410] sm:$0xff]  ;;  %1694 = vmatpush.msrb.mxu3 %v1015_v49  ;;  %v528_v49 = vld [vmem:[#allocation5 + $0xd18] sm:$0xff] }
 0x141   :  { %v1007_v53 = vld [vmem:[#allocation5 + $0x1c10] sm:$0xff]  ;;  %1749 = vmatpush.msra.mxu2 %v488_v28  ;;  %1649 = vmatpush.msrb.mxu1 %v751_v50  ;;  %v128_v27 = vld [vmem:[#allocation5 + $0x98] sm:$0xff] }
 0x142   :  { %v3221_v33 = vld [vmem:[#allocation2 + $0x30] sm:$0xff]  ;;  %1695 = vmatpush.msrb.mxu3 %v1007_v53  ;;  %1704 = vmatpush.msra.mxu0 %v224_v54  ;;  %v264_v28 = vld [vmem:[#allocation5 + $0x4d8] sm:$0xff] }
 0x143   :  { %1673 = vmatmul.f32.vlgmr.msrb.gmra.mxu2 %v3221_v33  ;;  %1696 = vmatmul.f32.vlgmr.msrb.gmra.mxu3 %v3227_v60  ;;  %v384_v50 = vld [vmem:[#allocation5 + $0x898] sm:$0xff] }
 0x144   :  { %1726 = vmatpush.msra.mxu1 %v360_v55  ;;  %1750 = vmatpush.msra.mxu2 %v480_v56  ;;  %v520_v53 = vld [vmem:[#allocation5 + $0xcd8] sm:$0xff] }
 0x145   :  { %1772 = vmatpush.msra.mxu3 %v616_v59  ;;  %1650 = vmatmul.f32.vlgmr.msrb.gmra.mxu1 %v3230_v1  ;;  %v120_v54 = vld [vmem:[#allocation5 + $0x58] sm:$0xff] }
 0x146   :  { %1705 = vmatpush.msra.mxu0 %v216_v61  ;;  %1727 = vmatpush.msra.mxu1 %v352_v62  ;;  %v256_v55 = vld [vmem:[#allocation5 + $0x498] sm:$0xff] }
 0x147   :  { %1751 = vmatpush.msra.mxu2 %v472_v63  ;;  %1773 = vmatpush.msra.mxu3 %v608_v0  ;;  %v376_v56 = vld [vmem:[#allocation5 + $0x858] sm:$0xff] }
 0x148   :  { %1706 = vmatpush.msra.mxu0 %v208_v3  ;;  %1728 = vmatpush.msra.mxu1 %v344_v4  ;;  %v512_v59 = vld [vmem:[#allocation5 + $0xc98] sm:$0xff]  ;;  %v3237_v3 = vpop.f32.mrf.mxu0 }
 0x149   :  { %1752 = vmatpush.msra.mxu2 %v464_v5  ;;  %1774 = vmatpush.msra.mxu3 %v600_v6  ;;  %v112_v61 = vld [vmem:[#allocation5 + $0x18] sm:$0xff] }
 0x14a   :  { %1707 = vmatpush.msra.mxu0 %v200_v9  ;;  %1729 = vmatpush.msra.mxu1 %v336_v10  ;;  %v248_v62 = vld [vmem:[#allocation5 + $0x458] sm:$0xff] }
 0x14b   :  { %1676 = vmatmul.f32.gmra.mxu2 %v3169_v18  ;;  %1775 = vmatpush.msra.mxu3 %v592_v12  ;;  %v176_v18 = vld [vmem:[#allocation5 + $0x218] sm:$0xff]  ;;  %v3239_v12 = vpop.f32.mrf.mxu1 }
 0x14c   :  { %1753 = vmatpush.msra.mxu2 %v456_v11  ;;  %1630 = vmatmul.f32.gmra.mxu0 %v3171_v24  ;;  %v168_v24 = vld [vmem:[#allocation5 + $0x1d8] sm:$0xff] }
 0x14d   :  { %1699 = vmatmul.f32.gmra.mxu3 %v3174_v25  ;;  %1708 = vmatpush.msra.mxu0 %v192_v14  ;;  %v304_v25 = vld [vmem:[#allocation5 + $0x618] sm:$0xff] }
 0x14e   :  { %1730 = vmatpush.msra.mxu1 %v328_v15  ;;  %1754 = vmatpush.msra.mxu2 %v448_v16  ;;  %v368_v63 = vld [vmem:[#allocation5 + $0x818] sm:$0xff]  ;;  %v3241_v16 = vpop.f32.mrf.mxu2 }
 0x14f   :  { %1776 = vmatpush.msra.mxu3 %v584_v52  ;;  %1653 = vmatmul.f32.gmra.mxu1 %v3177_v32  ;;  %v416_v32 = vld [vmem:[#allocation5 + $0x998] sm:$0xff] }
 0x150   :  { %1709 = vmatpush.msra.mxu0 %v184_v19  ;;  %1731 = vmatpush.msra.mxu1 %v320_v57  ;;  %v504_v0 = vld [vmem:[#allocation5 + $0xc58] sm:$0xff] }
 0x151   :  { %1755 = vmatpush.msra.mxu2 %v440_v20  ;;  %1777 = vmatpush.msra.mxu3 %v576_v21  ;;  %v744_v4 = vld [vmem:[#allocation5 + $0x13d8] sm:$0xff] }
 0x152   :  { %1710 = vmatpush.msra.mxu0 %v176_v18  ;;  %1732 = vmatpush.msra.mxu1 %v312_v26  ;;  %v1000_v5 = vld [vmem:[#allocation5 + $0x1bd8] sm:$0xff]  ;;  %v3243_v26 = vpop.f32.mrf.mxu3 }
 0x153   :  { %1756 = vmatpush.msra.mxu2 %v432_v29  ;;  %1778 = vmatpush.msra.mxu3 %v568_v30  ;;  %v240_v6 = vld [vmem:[#allocation5 + $0x418] sm:$0xff] }
 0x154   :  { %1711 = vmatpush.msra.mxu0 %v168_v24  ;;  %1733 = vmatpush.msra.mxu1 %v304_v25  ;;  %v496_v9 = vld [vmem:[#allocation5 + $0xc18] sm:$0xff] }
 0x155   :  { %1757 = vmatpush.msra.mxu2 %v424_v31  ;;  %1779 = vmatpush.msra.mxu3 %v560_v2  ;;  %v736_v10 = vld [vmem:[#allocation5 + $0x1398] sm:$0xff] }
 0x156   :  { %1712 = vmatpush.msra.mxu0 %v160_v34  ;;  %1734 = vmatpush.msra.mxu1 %v296_v35  ;;  %v872_v11 = vld [vmem:[#allocation5 + $0x17d8] sm:$0xff]  ;;  %v3245_v34 = vpop.f32.mrf.mxu0 }
 0x157   :  { %1758 = vmatpush.msra.mxu2 %v416_v32  ;;  %1780 = vmatpush.msra.mxu3 %v552_v36  ;;  %v992_v14 = vld [vmem:[#allocation5 + $0x1b98] sm:$0xff] }
 0x158   :  { %1713 = vmatpush.msra.mxu0 %v152_v8  ;;  %1735 = vmatpush.msra.mxu1 %v288_v37  ;;  %v1128_v15 = vld [vmem:[#allocation5 + $0x1fd8] sm:$0xff] }
 0x159   :  { %1759 = vmatpush.msra.mxu2 %v408_v38  ;;  %1781 = vmatpush.msra.mxu3 %v544_v39  ;;  %v728_v52 = vld [vmem:[#allocation5 + $0x1358] sm:$0xff]  ;;  %v3247_v39 = vpop.f32.mrf.mxu1 }
 0x15a   :  { %1714 = vmatpush.msra.mxu0 %v144_v41  ;;  %1736 = vmatpush.msra.mxu1 %v280_v42  ;;  %v864_v19 = vld [vmem:[#allocation5 + $0x1798] sm:$0xff] }
 0x15b   :  { %1760 = vmatpush.msra.mxu2 %v400_v43  ;;  %1782 = vmatpush.msra.mxu3 %v536_v44  ;;  %v984_v57 = vld [vmem:[#allocation5 + $0x1b58] sm:$0xff]  ;;  %v3249_v43 = vpop.f32.mrf.mxu2 }
 0x15c   :  { %1715 = vmatpush.msra.mxu0 %v136_v22  ;;  %1737 = vmatpush.msra.mxu1 %v272_v47  ;;  %v1120_v20 = vld [vmem:[#allocation5 + $0x1f98] sm:$0xff] }
 0x15d   :  { %1761 = vmatpush.msra.mxu2 %v392_v48  ;;  %1783 = vmatpush.msra.mxu3 %v528_v49  ;;  %v720_v21 = vld [vmem:[#allocation5 + $0x1318] sm:$0xff] }
 0x15e   :  { %1716 = vmatpush.msra.mxu0 %v128_v27  ;;  %1738 = vmatpush.msra.mxu1 %v264_v28  ;;  %v856_v18 = vld [vmem:[#allocation5 + $0x1758] sm:$0xff]  ;;  %v3251_v27 = vpop.f32.mrf.mxu3 }
 0x15f   :  { %1762 = vmatpush.msra.mxu2 %v384_v50  ;;  %1784 = vmatpush.msra.mxu3 %v520_v53  ;;  %v976_v29 = vld [vmem:[#allocation5 + $0x1b18] sm:$0xff] }
 0x160   :  { %1717 = vmatpush.msra.mxu0 %v120_v54  ;;  %1739 = vmatpush.msra.mxu1 %v256_v55  ;;  %v1112_v30 = vld [vmem:[#allocation5 + $0x1f58] sm:$0xff]  ;;  %v3254_v55 = vpop.f32.mrf.mxu0 }
 0x161   :  { %1763 = vmatpush.msra.mxu2 %v376_v56  ;;  %1785 = vmatpush.msra.mxu3 %v512_v59  ;;  %v712_v24 = vld [vmem:[#allocation5 + $0x12d8] sm:$0xff] }
 0x162   :  { %1718 = vmatpush.msra.mxu0 %v112_v61  ;;  %1740 = vmatpush.msra.mxu1 %v248_v62  ;;  %v848_v25 = vld [vmem:[#allocation5 + $0x1718] sm:$0xff] }
 0x163   :  { %1764 = vmatpush.msra.mxu2 %v368_v63  ;;  %1786 = vmatpush.msra.mxu3 %v504_v0  ;;  %v968_v31 = vld [vmem:[#allocation5 + $0x1ad8] sm:$0xff]  ;;  %v3258_v0 = vpop.f32.mrf.mxu1 }
 0x164   :  { %1795 = vmatpush.msrb.mxu0 %v744_v4  ;;  %1741 = vmatpush.msra.mxu1 %v240_v6  ;;  %v1104_v2 = vld [vmem:[#allocation5 + $0x1f18] sm:$0xff] }
 0x165   :  { %1841 = vmatpush.msrb.mxu2 %v1000_v5  ;;  %1787 = vmatpush.msra.mxu3 %v496_v9  ;;  %v704_v35 = vld [vmem:[#allocation5 + $0x1298] sm:$0xff]  ;;  %v3260_v5 = vpop.f32.mrf.mxu2 }
 0x166   :  { %1796 = vmatpush.msrb.mxu0 %v736_v10  ;;  %1818 = vmatpush.msrb.mxu1 %v872_v11  ;;  %v840_v32 = vld [vmem:[#allocation5 + $0x16d8] sm:$0xff]  ;;  %v3263_v11 = vpop.f32.mrf.mxu3 }
 0x167   :  { %1842 = vmatpush.msrb.mxu2 %v992_v14  ;;  %1864 = vmatpush.msrb.mxu3 %v1128_v15  ;;  %v960_v36 = vld [vmem:[#allocation5 + $0x1a98] sm:$0xff] }
 0x168   :  { %1797 = vmatpush.msrb.mxu0 %v728_v52  ;;  %1819 = vmatpush.msrb.mxu1 %v864_v19  ;;  %v1096_v8 = vld [vmem:[#allocation5 + $0x1ed8] sm:$0xff]  ;;  %v3265_v52 = vpop.f32.mrf.mxu0 }
 0x169   :  { %1843 = vmatpush.msrb.mxu2 %v984_v57  ;;  %1865 = vmatpush.msrb.mxu3 %v1120_v20  ;;  %v696_v37 = vld [vmem:[#allocation5 + $0x1258] sm:$0xff] }
 0x16a   :  { %1798 = vmatpush.msrb.mxu0 %v720_v21  ;;  %1820 = vmatpush.msrb.mxu1 %v856_v18  ;;  %v832_v38 = vld [vmem:[#allocation5 + $0x1698] sm:$0xff] }
 0x16b   :  { %1844 = vmatpush.msrb.mxu2 %v976_v29  ;;  %1866 = vmatpush.msrb.mxu3 %v1112_v30  ;;  %v952_v41 = vld [vmem:[#allocation5 + $0x1a58] sm:$0xff]  ;;  %v3268_v21 = vpop.f32.mrf.mxu1 }
 0x16c   :  { %1799 = vmatpush.msrb.mxu0 %v712_v24  ;;  %1821 = vmatpush.msrb.mxu1 %v848_v25  ;;  %v1088_v42 = vld [vmem:[#allocation5 + $0x1e98] sm:$0xff] }
 0x16d   :  { %1845 = vmatpush.msrb.mxu2 %v968_v31  ;;  %1867 = vmatpush.msrb.mxu3 %v1104_v2  ;;  %v688_v44 = vld [vmem:[#allocation5 + $0x1218] sm:$0xff]  ;;  %v3271_v29 = vpop.f32.mrf.mxu2 }
 0x16e   :  { %1800 = vmatpush.msrb.mxu0 %v704_v35  ;;  %1822 = vmatpush.msrb.mxu1 %v840_v32  ;;  %v824_v22 = vld [vmem:[#allocation5 + $0x1658] sm:$0xff]  ;;  %v3275_v35 = vpop.f32.mrf.mxu3 }
 0x16f   :  { %1846 = vmatpush.msrb.mxu2 %v960_v36  ;;  %1868 = vmatpush.msrb.mxu3 %v1096_v8  ;;  %v944_v47 = vld [vmem:[#allocation5 + $0x1a18] sm:$0xff]  ;;  %3783 = vst [vmem:[#allocation16_spill] sm:$0xff] %v3275_v35  ;;  %v489_v8 = vld [vmem:[#allocation5 + $0xbe0] sm:$0xff]  ;;  %v978_v35 = vld [vmem:[#allocation5 + $0x1b28] sm:$0xff] }
 0x170   :  { %1801 = vmatpush.msrb.mxu0 %v696_v37  ;;  %1823 = vmatpush.msrb.mxu1 %v832_v38  ;;  %v1080_v48 = vld [vmem:[#allocation5 + $0x1e58] sm:$0xff]  ;;  %v3277_v36 = vpop.f32.mrf.mxu0 }
 0x171   :  { %1847 = vmatpush.msrb.mxu2 %v952_v41  ;;  %1869 = vmatpush.msrb.mxu3 %v1088_v42  ;;  %v680_v49 = vld [vmem:[#allocation5 + $0x11d8] sm:$0xff]  ;;  %v225_v41 = vld [vmem:[#allocation5 + $0x3a0] sm:$0xff] }
 0x172   :  { %1802 = vmatpush.msrb.mxu0 %v688_v44  ;;  %1824 = vmatpush.msrb.mxu1 %v824_v22  ;;  %v816_v28 = vld [vmem:[#allocation5 + $0x1618] sm:$0xff]  ;;  %v361_v44 = vld [vmem:[#allocation5 + $0x7e0] sm:$0xff] }
 0x173   :  { %v936_v50 = vld [vmem:[#allocation5 + $0x19d8] sm:$0xff]  ;;  %1848 = vmatpush.msrb.mxu2 %v944_v47  ;;  %1870 = vmatpush.msrb.mxu3 %v1080_v48  ;;  %v3279_v38 = vpop.f32.mrf.mxu1  ;;  %v481_v22 = vld [vmem:[#allocation5 + $0xba0] sm:$0xff] }
 0x174   :  { %v1072_v53 = vld [vmem:[#allocation5 + $0x1e18] sm:$0xff]  ;;  %1765 = vmatmul.f32.vlgmr.msra.gmra.mxu2 %v3197_v46  ;;  %1803 = vmatpush.msrb.mxu0 %v680_v49  ;;  %v617_v47 = vld [vmem:[#allocation5 + $0xfe0] sm:$0xff] }
 0x175   :  { %v672_v54 = vld [vmem:[#allocation5 + $0x1198] sm:$0xff]  ;;  %1825 = vmatpush.msrb.mxu1 %v816_v28  ;;  %1849 = vmatpush.msrb.mxu2 %v936_v50  ;;  %v3282_v42 = vpop.f32.mrf.mxu2  ;;  %v217_v48 = vld [vmem:[#allocation5 + $0x360] sm:$0xff] }
 0x176   :  { %v808_v56 = vld [vmem:[#allocation5 + $0x15d8] sm:$0xff]  ;;  %1871 = vmatpush.msrb.mxu3 %v1072_v53  ;;  %1719 = vmatmul.f32.vlgmr.msra.gmra.mxu0 %v3200_v51  ;;  %v353_v49 = vld [vmem:[#allocation5 + $0x7a0] sm:$0xff]  ;;  %v3286_v28 = vpop.f32.mrf.mxu3 }
 0x177   :  { %v928_v59 = vld [vmem:[#allocation5 + $0x1998] sm:$0xff]  ;;  %1788 = vmatmul.f32.vlgmr.msra.gmra.mxu3 %v3203_v17  ;;  %1804 = vmatpush.msrb.mxu0 %v672_v54  ;;  %v609_v50 = vld [vmem:[#allocation5 + $0xfa0] sm:$0xff] }
 0x178   :  { %v1064_v61 = vld [vmem:[#allocation5 + $0x1dd8] sm:$0xff]  ;;  %1826 = vmatpush.msrb.mxu1 %v808_v56  ;;  %1850 = vmatpush.msrb.mxu2 %v928_v59  ;;  %v209_v53 = vld [vmem:[#allocation5 + $0x320] sm:$0xff]  ;;  %v3289_v59 = vpop.f32.mrf.mxu0 }
 0x179   :  { %v664_v62 = vld [vmem:[#allocation5 + $0x1158] sm:$0xff]  ;;  %1872 = vmatpush.msrb.mxu3 %v1064_v61  ;;  %1742 = vmatmul.f32.vlgmr.msra.gmra.mxu1 %v3206_v23  ;;  %v345_v54 = vld [vmem:[#allocation5 + $0x760] sm:$0xff] }
 0x17a   :  { %v800_v63 = vld [vmem:[#allocation5 + $0x1598] sm:$0xff]  ;;  %1805 = vmatpush.msrb.mxu0 %v664_v62  ;;  %v601_v56 = vld [vmem:[#allocation5 + $0xf60] sm:$0xff] }
 0x17b   :  { %v920_v46 = vld [vmem:[#allocation5 + $0x1958] sm:$0xff]  ;;  %1827 = vmatpush.msrb.mxu1 %v800_v63  ;;  %v337_v61 = vld [vmem:[#allocation5 + $0x720] sm:$0xff] }
 0x17c   :  { %v1056_v4 = vld [vmem:[#allocation5 + $0x1d98] sm:$0xff]  ;;  %1851 = vmatpush.msrb.mxu2 %v920_v46  ;;  %v457_v62 = vld [vmem:[#allocation5 + $0xae0] sm:$0xff]  ;;  %v3291_v46 = vpop.f32.mrf.mxu1 }
 0x17d   :  { %v656_v6 = vld [vmem:[#allocation5 + $0x1118] sm:$0xff]  ;;  %1873 = vmatpush.msrb.mxu3 %v1056_v4  ;;  %1768 = vmatmul.f32.gmra.mxu2 %v3209_v7  ;;  %v593_v63 = vld [vmem:[#allocation5 + $0xf20] sm:$0xff] }
 0x17e   :  { %v792_v9 = vld [vmem:[#allocation5 + $0x1558] sm:$0xff]  ;;  %1806 = vmatpush.msrb.mxu0 %v656_v6  ;;  %v193_v4 = vld [vmem:[#allocation5 + $0x2a0] sm:$0xff]  ;;  %v3296_v6 = vpop.f32.mrf.mxu2 }
 0x17f   :  { %v912_v51 = vld [vmem:[#allocation5 + $0x1918] sm:$0xff]  ;;  %1828 = vmatpush.msrb.mxu1 %v792_v9  ;;  %1722 = vmatmul.f32.gmra.mxu0 %v3212_v13  ;;  %v329_v9 = vld [vmem:[#allocation5 + $0x6e0] sm:$0xff] }
 0x180   :  { %v1048_v17 = vld [vmem:[#allocation5 + $0x1d58] sm:$0xff]  ;;  %1852 = vmatpush.msrb.mxu2 %v912_v51  ;;  %1791 = vmatmul.f32.gmra.mxu3 %v3215_v40  ;;  %v233_v40 = vld [vmem:[#allocation5 + $0x3e0] sm:$0xff] }
 0x181   :  { %v648_v10 = vld [vmem:[#allocation5 + $0x10d8] sm:$0xff]  ;;  %1874 = vmatpush.msrb.mxu3 %v1048_v17  ;;  %1745 = vmatmul.f32.gmra.mxu1 %v3218_v45  ;;  %v449_v51 = vld [vmem:[#allocation5 + $0xaa0] sm:$0xff] }
 0x182   :  { %v784_v14 = vld [vmem:[#allocation5 + $0x1518] sm:$0xff]  ;;  %1807 = vmatpush.msrb.mxu0 %v648_v10  ;;  %v3298_v17 = vld [vmem:[#allocation2 + $0x60] sm:$0xff] }
 0x183   :  { %v904_v15 = vld [vmem:[#allocation5 + $0x18d8] sm:$0xff]  ;;  %1829 = vmatpush.msrb.mxu1 %v784_v14  ;;  %v585_v10 = vld [vmem:[#allocation5 + $0xee0] sm:$0xff] }
 0x184   :  { %v1040_v23 = vld [vmem:[#allocation5 + $0x1d18] sm:$0xff]  ;;  %1853 = vmatpush.msrb.mxu2 %v904_v15  ;;  %v185_v15 = vld [vmem:[#allocation5 + $0x260] sm:$0xff] }
 0x185   :  { %v640_v19 = vld [vmem:[#allocation5 + $0x1098] sm:$0xff]  ;;  %1875 = vmatpush.msrb.mxu3 %v1040_v23  ;;  %v321_v23 = vld [vmem:[#allocation5 + $0x6a0] sm:$0xff] }
 0x186   :  { %v776_v57 = vld [vmem:[#allocation5 + $0x14d8] sm:$0xff]  ;;  %1808 = vmatpush.msrb.mxu0 %v640_v19  ;;  %v3304_v19 = vpop.f32.mrf.mxu3 }
 0x187   :  { %v896_v20 = vld [vmem:[#allocation5 + $0x1898] sm:$0xff]  ;;  %1830 = vmatpush.msrb.mxu1 %v776_v57  ;;  %v441_v57 = vld [vmem:[#allocation5 + $0xa60] sm:$0xff] }
 0x188   :  { %v1032_v18 = vld [vmem:[#allocation5 + $0x1cd8] sm:$0xff]  ;;  %1854 = vmatpush.msrb.mxu2 %v896_v20  ;;  %v577_v20 = vld [vmem:[#allocation5 + $0xea0] sm:$0xff] }
 0x189   :  { %v632_v30 = vld [vmem:[#allocation5 + $0x1058] sm:$0xff]  ;;  %1876 = vmatpush.msrb.mxu3 %v1032_v18  ;;  %v3306_v18 = vld [vmem:[#allocation2 + $0x68] sm:$0xff] }
 0x18a   :  { %v768_v24 = vld [vmem:[#allocation5 + $0x1498] sm:$0xff]  ;;  %1809 = vmatpush.msrb.mxu0 %v632_v30  ;;  %v177_v30 = vld [vmem:[#allocation5 + $0x220] sm:$0xff] }
 0x18b   :  { %v888_v7 = vld [vmem:[#allocation5 + $0x1858] sm:$0xff]  ;;  %1831 = vmatpush.msrb.mxu1 %v768_v24  ;;  %v313_v24 = vld [vmem:[#allocation5 + $0x660] sm:$0xff] }
 0x18c   :  { %v1024_v25 = vld [vmem:[#allocation5 + $0x1c98] sm:$0xff]  ;;  %1855 = vmatpush.msrb.mxu2 %v888_v7  ;;  %v433_v7 = vld [vmem:[#allocation5 + $0xa20] sm:$0xff] }
 0x18d   :  { %v624_v31 = vld [vmem:[#allocation5 + $0x1018] sm:$0xff]  ;;  %1877 = vmatpush.msrb.mxu3 %v1024_v25  ;;  %v569_v25 = vld [vmem:[#allocation5 + $0xe60] sm:$0xff] }
 0x18e   :  { %v760_v2 = vld [vmem:[#allocation5 + $0x1458] sm:$0xff]  ;;  %1810 = vmatpush.msrb.mxu0 %v624_v31  ;;  %v3309_v31 = vpop.f32.mrf.mxu0 }
 0x18f   :  { %v880_v13 = vld [vmem:[#allocation5 + $0x1818] sm:$0xff]  ;;  %1832 = vmatpush.msrb.mxu1 %v760_v2  ;;  %1811 = vmatmul.f32.vlgmr.msrb.gmra.mxu0 %v3224_v58  ;;  %v465_v58 = vld [vmem:[#allocation5 + $0xb20] sm:$0xff] }
 0x190   :  { %v1016_v32 = vld [vmem:[#allocation5 + $0x1c58] sm:$0xff]  ;;  %1856 = vmatpush.msrb.mxu2 %v880_v13  ;;  %1887 = vmatpush.msra.mxu0 %v233_v40  ;;  %v169_v2 = vld [vmem:[#allocation5 + $0x1e0] sm:$0xff] }
 0x191   :  { %v752_v37 = vld [vmem:[#allocation5 + $0x1418] sm:$0xff]  ;;  %1878 = vmatpush.msrb.mxu3 %v1016_v32  ;;  %1857 = vmatmul.f32.vlgmr.msrb.gmra.mxu2 %v3221_v33  ;;  %v473_v33 = vld [vmem:[#allocation5 + $0xb60] sm:$0xff] }
 0x192   :  { %v1008_v45 = vld [vmem:[#allocation5 + $0x1c18] sm:$0xff]  ;;  %1933 = vmatpush.msra.mxu2 %v489_v8  ;;  %1833 = vmatpush.msrb.mxu1 %v752_v37  ;;  %v305_v13 = vld [vmem:[#allocation5 + $0x620] sm:$0xff] }
 0x193   :  { %1879 = vmatpush.msrb.mxu3 %v1008_v45  ;;  %1888 = vmatpush.msra.mxu0 %v225_v41  ;;  %v3301_v14 = vld [vmem:[#allocation2 + $0x78] sm:$0xff]  ;;  %v425_v32 = vld [vmem:[#allocation5 + $0x9e0] sm:$0xff]  ;;  %v3311_v45 = vpop.f32.mrf.mxu1 }
 0x194   :  { %1880 = vmatmul.f32.vlgmr.msrb.gmra.mxu3 %v3227_v60  ;;  %1910 = vmatpush.msra.mxu1 %v361_v44  ;;  %v201_v60 = vld [vmem:[#allocation5 + $0x2e0] sm:$0xff] }
 0x195   :  { %1934 = vmatpush.msra.mxu2 %v481_v22  ;;  %1956 = vmatpush.msra.mxu3 %v617_v47  ;;  %v561_v40 = vld [vmem:[#allocation5 + $0xe20] sm:$0xff]  ;;  %v3313_v22 = vpop.f32.mrf.mxu2 }
 0x196   :  { %1834 = vmatmul.f32.vlgmr.msrb.gmra.mxu1 %v3230_v1  ;;  %1889 = vmatpush.msra.mxu0 %v217_v48  ;;  %v3293_v1 = vld [vmem:[#allocation2 + $0x70] sm:$0xff]  ;;  %v161_v8 = vld [vmem:[#allocation5 + $0x1a0] sm:$0xff] }
 0x197   :  { %1911 = vmatpush.msra.mxu1 %v353_v49  ;;  %1935 = vmatpush.msra.mxu2 %v473_v33  ;;  %v297_v37 = vld [vmem:[#allocation5 + $0x5e0] sm:$0xff] }
 0x198   :  { %1957 = vmatpush.msra.mxu3 %v609_v50  ;;  %1890 = vmatpush.msra.mxu0 %v209_v53  ;;  %v417_v41 = vld [vmem:[#allocation5 + $0x9a0] sm:$0xff] }
 0x199   :  { %1912 = vmatpush.msra.mxu1 %v345_v54  ;;  %1936 = vmatpush.msra.mxu2 %v465_v58  ;;  %v553_v44 = vld [vmem:[#allocation5 + $0xde0] sm:$0xff]  ;;  %v3315_v54 = vpop.f32.mrf.mxu3 }
 0x19a   :  { %1958 = vmatpush.msra.mxu3 %v601_v56  ;;  %1860 = vmatmul.f32.gmra.mxu2 %v3293_v1  ;;  %v153_v47 = vld [vmem:[#allocation5 + $0x160] sm:$0xff] }
 0x19b   :  { %1891 = vmatpush.msra.mxu0 %v201_v60  ;;  %1913 = vmatpush.msra.mxu1 %v337_v61  ;;  %v289_v48 = vld [vmem:[#allocation5 + $0x5a0] sm:$0xff] }
 0x19c   :  { %1937 = vmatpush.msra.mxu2 %v457_v62  ;;  %1959 = vmatpush.msra.mxu3 %v593_v63  ;;  %v409_v49 = vld [vmem:[#allocation5 + $0x960] sm:$0xff] }
 0x19d   :  { %1814 = vmatmul.f32.gmra.mxu0 %v3298_v17  ;;  %1883 = vmatmul.f32.gmra.mxu3 %v3301_v14  ;;  %v545_v33 = vld [vmem:[#allocation5 + $0xda0] sm:$0xff] }
 0x19e   :  { %1892 = vmatpush.msra.mxu0 %v193_v4  ;;  %1914 = vmatpush.msra.mxu1 %v329_v9  ;;  %v145_v50 = vld [vmem:[#allocation5 + $0x120] sm:$0xff]  ;;  %v3317_v4 = vpop.f32.mrf.mxu0 }
 0x19f   :  { %1938 = vmatpush.msra.mxu2 %v449_v51  ;;  %1960 = vmatpush.msra.mxu3 %v585_v10  ;;  %v281_v53 = vld [vmem:[#allocation5 + $0x560] sm:$0xff] }
 0x1a0   :  { %1837 = vmatmul.f32.gmra.mxu1 %v3306_v18  ;;  %1893 = vmatpush.msra.mxu0 %v185_v15  ;;  %v401_v58 = vld [vmem:[#allocation5 + $0x920] sm:$0xff] }
 0x1a1   :  { %1915 = vmatpush.msra.mxu1 %v321_v23  ;;  %1939 = vmatpush.msra.mxu2 %v441_v57  ;;  %v537_v56 = vld [vmem:[#allocation5 + $0xd60] sm:$0xff] }
 0x1a2   :  { %1961 = vmatpush.msra.mxu3 %v577_v20  ;;  %1894 = vmatpush.msra.mxu0 %v177_v30  ;;  %v137_v60 = vld [vmem:[#allocation5 + $0xe0] sm:$0xff]  ;;  %v3319_v20 = vpop.f32.mrf.mxu1 }
 0x1a3   :  { %1916 = vmatpush.msra.mxu1 %v313_v24  ;;  %1940 = vmatpush.msra.mxu2 %v433_v7  ;;  %v273_v61 = vld [vmem:[#allocation5 + $0x520] sm:$0xff] }
 0x1a4   :  { %1962 = vmatpush.msra.mxu3 %v569_v25  ;;  %1895 = vmatpush.msra.mxu0 %v169_v2  ;;  %v393_v62 = vld [vmem:[#allocation5 + $0x8e0] sm:$0xff]  ;;  %v3323_v25 = vpop.f32.mrf.mxu2 }
 0x1a5   :  { %1917 = vmatpush.msra.mxu1 %v305_v13  ;;  %1941 = vmatpush.msra.mxu2 %v425_v32  ;;  %v529_v63 = vld [vmem:[#allocation5 + $0xd20] sm:$0xff] }
 0x1a6   :  { %1963 = vmatpush.msra.mxu3 %v561_v40  ;;  %1896 = vmatpush.msra.mxu0 %v161_v8  ;;  %v129_v9 = vld [vmem:[#allocation5 + $0xa0] sm:$0xff] }
 0x1a7   :  { %1918 = vmatpush.msra.mxu1 %v297_v37  ;;  %1942 = vmatpush.msra.mxu2 %v417_v41  ;;  %v265_v51 = vld [vmem:[#allocation5 + $0x4e0] sm:$0xff] }
 0x1a8   :  { %1964 = vmatpush.msra.mxu3 %v553_v44  ;;  %1897 = vmatpush.msra.mxu0 %v153_v47  ;;  %v385_v10 = vld [vmem:[#allocation5 + $0x8a0] sm:$0xff]  ;;  %v3326_v44 = vpop.f32.mrf.mxu3 }
 0x1a9   :  { %1919 = vmatpush.msra.mxu1 %v289_v48  ;;  %1943 = vmatpush.msra.mxu2 %v409_v49  ;;  %v521_v15 = vld [vmem:[#allocation5 + $0xce0] sm:$0xff]  ;;  %3784 = vst [vmem:[#allocation17_spill] sm:$0xff] %v3326_v44  ;;  %v1114_v44 = vld [vmem:[#allocation5 + $0x1f68] sm:$0xff] }
 0x1aa   :  { %1965 = vmatpush.msra.mxu3 %v545_v33  ;;  %1898 = vmatpush.msra.mxu0 %v145_v50  ;;  %v121_v23 = vld [vmem:[#allocation5 + $0x60] sm:$0xff]  ;;  %v1536_v50 = vpop.f32.mrf.mxu0 }
 0x1ab   :  { %1920 = vmatpush.msra.mxu1 %v281_v53  ;;  %1944 = vmatpush.msra.mxu2 %v401_v58  ;;  %v257_v57 = vld [vmem:[#allocation5 + $0x4a0] sm:$0xff] }
 0x1ac   :  { %1966 = vmatpush.msra.mxu3 %v537_v56  ;;  %1899 = vmatpush.msra.mxu0 %v137_v60  ;;  %v377_v30 = vld [vmem:[#allocation5 + $0x860] sm:$0xff] }
 0x1ad   :  { %1921 = vmatpush.msra.mxu1 %v273_v61  ;;  %1945 = vmatpush.msra.mxu2 %v393_v62  ;;  %v513_v24 = vld [vmem:[#allocation5 + $0xca0] sm:$0xff] }
 0x1ae   :  { %1967 = vmatpush.msra.mxu3 %v529_v63  ;;  %1900 = vmatpush.msra.mxu0 %v129_v9  ;;  %v3321_v7 = vld [vmem:[#allocation7] sm:$0xff]  ;;  %v1559_v9 = vpop.f32.mrf.mxu1 }
 0x1af   :  { %1922 = vmatpush.msra.mxu1 %v265_v51  ;;  %1946 = vmatpush.msra.mxu2 %v385_v10  ;;  %v113_v2 = vld [vmem:[#allocation5 + $0x20] sm:$0xff]  ;;  %v1137_v8 = vperm.slane %v3321_v7, 2 }
 0x1b0   :  { %1968 = vmatpush.msra.mxu3 %v521_v15  ;;  %v249_v13 = vld [vmem:[#allocation5 + $0x460] sm:$0xff]  ;;  %1901 = vmatpush.msra.mxu0 %v121_v23  ;;  %v1582_v23 = vpop.f32.mrf.mxu2 }
 0x1b1   :  { %1923 = vmatpush.msra.mxu1 %v257_v57  ;;  %v369_v32 = vld [vmem:[#allocation5 + $0x820] sm:$0xff]  ;;  %1947 = vmatpush.msra.mxu2 %v377_v30  ;;  %v1537_v56 = vadd.f32 %v1536_v50, %v1137_v8 }
 0x1b2   :  { %v505_v40 = vld [vmem:[#allocation5 + $0xc60] sm:$0xff]  ;;  %1969 = vmatpush.msra.mxu3 %v513_v24  ;;  %1902 = vmatpush.msra.mxu0 %v113_v2 }
 0x1b3   :  { %v745_v37 = vld [vmem:[#allocation5 + $0x13e0] sm:$0xff]  ;;  %1924 = vmatpush.msra.mxu1 %v249_v13  ;;  %1948 = vmatpush.msra.mxu2 %v369_v32  ;;  %v1560_v15 = vadd.f32 %v1559_v9, %v1537_v56 }
 0x1b4   :  { %v1001_v41 = vld [vmem:[#allocation5 + $0x1be0] sm:$0xff]  ;;  %1970 = vmatpush.msra.mxu3 %v505_v40  ;;  %1979 = vmatpush.msrb.mxu0 %v745_v37  ;;  %v1605_v37 = vpop.f32.mrf.mxu3 }
 0x1b5   :  { %v241_v47 = vld [vmem:[#allocation5 + $0x420] sm:$0xff]  ;;  %2025 = vmatpush.msrb.mxu2 %v1001_v41  ;;  %v1583_v13 = vadd.f32 %v1582_v23, %v1560_v15 }
 0x1b6   :  { %v497_v48 = vld [vmem:[#allocation5 + $0xc20] sm:$0xff]  ;;  %1925 = vmatpush.msra.mxu1 %v241_v47 }
 0x1b7   :  { %v737_v49 = vld [vmem:[#allocation5 + $0x13a0] sm:$0xff]  ;;  %1971 = vmatpush.msra.mxu3 %v497_v48  ;;  %v1606_v48 = vadd.f32 %v1605_v37, %v1583_v13  ;;  %v3332_v13 = vld [vmem:[#allocation2 + $0x10] sm:$0xff] }
 0x1b8   :  { %v873_v33 = vld [vmem:[#allocation5 + $0x17e0] sm:$0xff]  ;;  %1980 = vmatpush.msrb.mxu0 %v737_v49  ;;  %1949 = vmatmul.f32.vlgmr.msra.gmra.mxu2 %v3332_v13 }
 0x1b9   :  { %v993_v53 = vld [vmem:[#allocation5 + $0x1ba0] sm:$0xff]  ;;  %2002 = vmatpush.msrb.mxu1 %v873_v33 }
 0x1ba   :  { %v1129_v58 = vld [vmem:[#allocation5 + $0x1fe0] sm:$0xff]  ;;  %2026 = vmatpush.msrb.mxu2 %v993_v53 }
 0x1bb   :  { %v729_v60 = vld [vmem:[#allocation5 + $0x1360] sm:$0xff]  ;;  %2048 = vmatpush.msrb.mxu3 %v1129_v58  ;;  %v1539_v58 = vpop.f32.mrf.mxu0 }
 0x1bc   :  { %v865_v61 = vld [vmem:[#allocation5 + $0x17a0] sm:$0xff]  ;;  %1981 = vmatpush.msrb.mxu0 %v729_v60 }
 0x1bd   :  { %v985_v62 = vld [vmem:[#allocation5 + $0x1b60] sm:$0xff]  ;;  %2003 = vmatpush.msrb.mxu1 %v865_v61  ;;  %v1540_v61 = vadd.f32 %v1539_v58, %v1137_v8 }
 0x1be   :  { %v1121_v63 = vld [vmem:[#allocation5 + $0x1fa0] sm:$0xff]  ;;  %2027 = vmatpush.msrb.mxu2 %v985_v62 }
 0x1bf   :  { %v721_v51 = vld [vmem:[#allocation5 + $0x1320] sm:$0xff]  ;;  %2049 = vmatpush.msrb.mxu3 %v1121_v63 }
 0x1c0   :  { %v857_v10 = vld [vmem:[#allocation5 + $0x1760] sm:$0xff]  ;;  %1982 = vmatpush.msrb.mxu0 %v721_v51 }
 0x1c1   :  { %v977_v57 = vld [vmem:[#allocation5 + $0x1b20] sm:$0xff]  ;;  %2004 = vmatpush.msrb.mxu1 %v857_v10  ;;  %v1562_v10 = vpop.f32.mrf.mxu1 }
 0x1c2   :  { %v1113_v30 = vld [vmem:[#allocation5 + $0x1f60] sm:$0xff]  ;;  %2028 = vmatpush.msrb.mxu2 %v977_v57  ;;  %v1563_v23 = vadd.f32 %v1562_v10, %v1540_v61  ;;  %v1585_v57 = vpop.f32.mrf.mxu2 }
 0x1c3   :  { %v713_v24 = vld [vmem:[#allocation5 + $0x12e0] sm:$0xff]  ;;  %2050 = vmatpush.msrb.mxu3 %v1113_v30 }
 0x1c4   :  { %v849_v2 = vld [vmem:[#allocation5 + $0x1720] sm:$0xff]  ;;  %1983 = vmatpush.msrb.mxu0 %v713_v24 }
 0x1c5   :  { %v969_v32 = vld [vmem:[#allocation5 + $0x1ae0] sm:$0xff]  ;;  %2005 = vmatpush.msrb.mxu1 %v849_v2  ;;  %v1586_v2 = vadd.f32 %v1585_v57, %v1563_v23 }
 0x1c6   :  { %v1105_v40 = vld [vmem:[#allocation5 + $0x1f20] sm:$0xff]  ;;  %2029 = vmatpush.msrb.mxu2 %v969_v32 }
 0x1c7   :  { %v705_v41 = vld [vmem:[#allocation5 + $0x12a0] sm:$0xff]  ;;  %2051 = vmatpush.msrb.mxu3 %v1105_v40  ;;  %v1608_v40 = vpop.f32.mrf.mxu3 }
 0x1c8   :  { %v841_v47 = vld [vmem:[#allocation5 + $0x16e0] sm:$0xff]  ;;  %1984 = vmatpush.msrb.mxu0 %v705_v41 }
 0x1c9   :  { %v961_v49 = vld [vmem:[#allocation5 + $0x1aa0] sm:$0xff]  ;;  %2006 = vmatpush.msrb.mxu1 %v841_v47  ;;  %v3335_v47 = vadd.f32 %v1608_v40, %v1586_v2  ;;  %v1651_v23 = vpop.f32.mrf.mxu1  ;;  %v3346_v40 = vld [vmem:[#allocation2 + $0x50] sm:$0xff] }
 0x1ca   :  { %v1097_v33 = vld [vmem:[#allocation5 + $0x1ee0] sm:$0xff]  ;;  %2030 = vmatpush.msrb.mxu2 %v961_v49 }
 0x1cb   :  { %v697_v50 = vld [vmem:[#allocation5 + $0x1260] sm:$0xff]  ;;  %2052 = vmatpush.msrb.mxu3 %v1097_v33  ;;  %1952 = vmatmul.f32.gmra.mxu2 %v3346_v40 }
 0x1cc   :  { %v833_v53 = vld [vmem:[#allocation5 + $0x16a0] sm:$0xff]  ;;  %1985 = vmatpush.msrb.mxu0 %v697_v50  ;;  %v3340_v50 = vld [vmem:[#allocation2 + $0x18] sm:$0xff] }
 0x1cd   :  { %v953_v56 = vld [vmem:[#allocation5 + $0x1a60] sm:$0xff]  ;;  %2007 = vmatpush.msrb.mxu1 %v833_v53  ;;  %1972 = vmatmul.f32.vlgmr.msra.gmra.mxu3 %v3340_v50 }
 0x1ce   :  { %v1089_v60 = vld [vmem:[#allocation5 + $0x1ea0] sm:$0xff]  ;;  %2031 = vmatpush.msrb.mxu2 %v953_v56  ;;  %v1628_v56 = vpop.f32.mrf.mxu0 }
 0x1cf   :  { %v689_v62 = vld [vmem:[#allocation5 + $0x1220] sm:$0xff]  ;;  %2053 = vmatpush.msrb.mxu3 %v1089_v60 }
 0x1d0   :  { %v825_v63 = vld [vmem:[#allocation5 + $0x1660] sm:$0xff]  ;;  %1986 = vmatpush.msrb.mxu0 %v689_v62  ;;  %v1629_v62 = vadd.f32 %v1628_v56, %v1606_v48 }
 0x1d1   :  { %v945_v9 = vld [vmem:[#allocation5 + $0x1a20] sm:$0xff]  ;;  %2008 = vmatpush.msrb.mxu1 %v825_v63  ;;  %v3343_v63 = vld [vmem:[#allocation2 + $0x8] sm:$0xff] }
 0x1d2   :  { %v1081_v51 = vld [vmem:[#allocation5 + $0x1e60] sm:$0xff]  ;;  %2032 = vmatpush.msrb.mxu2 %v945_v9  ;;  %1926 = vmatmul.f32.vlgmr.msra.gmra.mxu1 %v3343_v63 }
 0x1d3   :  { %v681_v15 = vld [vmem:[#allocation5 + $0x11e0] sm:$0xff]  ;;  %2054 = vmatpush.msrb.mxu3 %v1081_v51 }
 0x1d4   :  { %v817_v30 = vld [vmem:[#allocation5 + $0x1620] sm:$0xff]  ;;  %1987 = vmatpush.msrb.mxu0 %v681_v15 }
 0x1d5   :  { %v937_v24 = vld [vmem:[#allocation5 + $0x19e0] sm:$0xff]  ;;  %2009 = vmatpush.msrb.mxu1 %v817_v30  ;;  %v1652_v30 = vadd.f32 %v1651_v23, %v1629_v62 }
 0x1d6   :  { %v1073_v8 = vld [vmem:[#allocation5 + $0x1e20] sm:$0xff]  ;;  %2033 = vmatpush.msrb.mxu2 %v937_v24  ;;  %v1674_v24 = vpop.f32.mrf.mxu2 }
 0x1d7   :  { %v673_v32 = vld [vmem:[#allocation5 + $0x11a0] sm:$0xff]  ;;  %2055 = vmatpush.msrb.mxu3 %v1073_v8 }
 0x1d8   :  { %v809_v37 = vld [vmem:[#allocation5 + $0x15e0] sm:$0xff]  ;;  %1988 = vmatpush.msrb.mxu0 %v673_v32  ;;  %v1675_v32 = vadd.f32 %v1674_v24, %v1652_v30 }
 0x1d9   :  { %v929_v41 = vld [vmem:[#allocation5 + $0x19a0] sm:$0xff]  ;;  %2010 = vmatpush.msrb.mxu1 %v809_v37 }
 0x1da   :  { %v3337_v49 = vld [vmem:[#allocation2] sm:$0xff]  ;;  %2034 = vmatpush.msrb.mxu2 %v929_v41  ;;  %v1697_v41 = vpop.f32.mrf.mxu3 }
 0x1db   :  { %1903 = vmatmul.f32.vlgmr.msra.gmra.mxu0 %v3337_v49  ;;  %v1065_v33 = vld [vmem:[#allocation5 + $0x1de0] sm:$0xff] }
 0x1dc   :  { %v665_v53 = vld [vmem:[#allocation5 + $0x1160] sm:$0xff]  ;;  %2056 = vmatpush.msrb.mxu3 %v1065_v33 }
 0x1dd   :  { %v801_v58 = vld [vmem:[#allocation5 + $0x15a0] sm:$0xff]  ;;  %1989 = vmatpush.msrb.mxu0 %v665_v53 }
 0x1de   :  { %v921_v60 = vld [vmem:[#allocation5 + $0x1960] sm:$0xff]  ;;  %2011 = vmatpush.msrb.mxu1 %v801_v58  ;;  %v3349_v58 = vadd.f32 %v1697_v41, %v1675_v32  ;;  %v234_v32 = vld [vmem:[#allocation5 + $0x3e8] sm:$0xff]  ;;  %v1677_v41 = vpop.f32.mrf.mxu2 }
 0x1df   :  { %v1057_v61 = vld [vmem:[#allocation5 + $0x1da0] sm:$0xff]  ;;  %2035 = vmatpush.msrb.mxu2 %v921_v60 }
 0x1e0   :  { %v657_v9 = vld [vmem:[#allocation5 + $0x1120] sm:$0xff]  ;;  %2057 = vmatpush.msrb.mxu3 %v1057_v61  ;;  %v3354_v61 = vld [vmem:[#allocation2 + $0x58] sm:$0xff] }
 0x1e1   :  { %v793_v51 = vld [vmem:[#allocation5 + $0x1560] sm:$0xff]  ;;  %1990 = vmatpush.msrb.mxu0 %v657_v9  ;;  %1975 = vmatmul.f32.gmra.mxu3 %v3354_v61 }
 0x1e2   :  { %v913_v10 = vld [vmem:[#allocation5 + $0x1920] sm:$0xff]  ;;  %2012 = vmatpush.msrb.mxu1 %v793_v51  ;;  %v1631_v51 = vpop.f32.mrf.mxu0 }
 0x1e3   :  { %v1049_v15 = vld [vmem:[#allocation5 + $0x1d60] sm:$0xff]  ;;  %2036 = vmatpush.msrb.mxu2 %v913_v10  ;;  %v1632_v23 = vadd.f32 %v1631_v51, %v3335_v47  ;;  %v490_v47 = vld [vmem:[#allocation5 + $0xbe8] sm:$0xff]  ;;  %v3361_v51 = vld [vmem:[#allocation2 + $0x30] sm:$0xff] }
 0x1e4   :  { %v649_v57 = vld [vmem:[#allocation5 + $0x10e0] sm:$0xff]  ;;  %2058 = vmatpush.msrb.mxu3 %v1049_v15 }
 0x1e5   :  { %v785_v48 = vld [vmem:[#allocation5 + $0x1520] sm:$0xff]  ;;  %1991 = vmatpush.msrb.mxu0 %v649_v57  ;;  %v3358_v57 = vld [vmem:[#allocation2 + $0x48] sm:$0xff] }
 0x1e6   :  { %v905_v8 = vld [vmem:[#allocation5 + $0x18e0] sm:$0xff]  ;;  %2013 = vmatpush.msrb.mxu1 %v785_v48 }
 0x1e7   :  { %v1041_v2 = vld [vmem:[#allocation5 + $0x1d20] sm:$0xff]  ;;  %2037 = vmatpush.msrb.mxu2 %v905_v8  ;;  %1929 = vmatmul.f32.gmra.mxu1 %v3358_v57 }
 0x1e8   :  { %v641_v37 = vld [vmem:[#allocation5 + $0x10a0] sm:$0xff]  ;;  %2059 = vmatpush.msrb.mxu3 %v1041_v2  ;;  %v1654_v2 = vpop.f32.mrf.mxu1 }
 0x1e9   :  { %v777_v33 = vld [vmem:[#allocation5 + $0x14e0] sm:$0xff]  ;;  %1992 = vmatpush.msrb.mxu0 %v641_v37  ;;  %v1655_v37 = vadd.f32 %v1654_v2, %v1632_v23  ;;  %v354_v2 = vld [vmem:[#allocation5 + $0x7a8] sm:$0xff] }
 0x1ea   :  { %v897_v53 = vld [vmem:[#allocation5 + $0x18a0] sm:$0xff]  ;;  %2014 = vmatpush.msrb.mxu1 %v777_v33 }
 0x1eb   :  { %v3351_v56 = vld [vmem:[#allocation2 + $0x40] sm:$0xff]  ;;  %2038 = vmatpush.msrb.mxu2 %v897_v53 }
 0x1ec   :  { %1906 = vmatmul.f32.gmra.mxu0 %v3351_v56  ;;  %v1033_v60 = vld [vmem:[#allocation5 + $0x1ce0] sm:$0xff] }
 0x1ed   :  { %v633_v62 = vld [vmem:[#allocation5 + $0x1060] sm:$0xff]  ;;  %2060 = vmatpush.msrb.mxu3 %v1033_v60  ;;  %v1678_v60 = vadd.f32 %v1677_v41, %v1655_v37  ;;  %v610_v37 = vld [vmem:[#allocation5 + $0xfa8] sm:$0xff] }
 0x1ee   :  { %v769_v9 = vld [vmem:[#allocation5 + $0x14a0] sm:$0xff]  ;;  %1993 = vmatpush.msrb.mxu0 %v633_v62  ;;  %v226_v62 = vld [vmem:[#allocation5 + $0x3a8] sm:$0xff] }
 0x1ef   :  { %v889_v10 = vld [vmem:[#allocation5 + $0x1860] sm:$0xff]  ;;  %2015 = vmatpush.msrb.mxu1 %v769_v9  ;;  %v1700_v9 = vpop.f32.mrf.mxu3  ;;  %v3372_v41 = vld [vmem:[#allocation2 + $0x28] sm:$0xff] }
 0x1f0   :  { %v1025_v15 = vld [vmem:[#allocation5 + $0x1ca0] sm:$0xff]  ;;  %2039 = vmatpush.msrb.mxu2 %v889_v10  ;;  %v362_v10 = vld [vmem:[#allocation5 + $0x7e8] sm:$0xff]  ;;  %v3364_v23 = vadd.f32 %v1700_v9, %v1678_v60 }
 0x1f1   :  { %v625_v30 = vld [vmem:[#allocation5 + $0x1020] sm:$0xff]  ;;  %2061 = vmatpush.msrb.mxu3 %v1025_v15  ;;  %v482_v15 = vld [vmem:[#allocation5 + $0xba8] sm:$0xff] }
 0x1f2   :  { %v761_v24 = vld [vmem:[#allocation5 + $0x1460] sm:$0xff]  ;;  %1994 = vmatpush.msrb.mxu0 %v625_v30  ;;  %3785 = vst [vmem:[#allocation18_spill] sm:$0xff] %v3364_v23  ;;  %v602_v60 = vld [vmem:[#allocation5 + $0xf68] sm:$0xff] }
 0x1f3   :  { %v881_v48 = vld [vmem:[#allocation5 + $0x1820] sm:$0xff]  ;;  %2016 = vmatpush.msrb.mxu1 %v761_v24  ;;  %v618_v24 = vld [vmem:[#allocation5 + $0xfe8] sm:$0xff] }
 0x1f4   :  { %v1017_v8 = vld [vmem:[#allocation5 + $0x1c60] sm:$0xff]  ;;  %2040 = vmatpush.msrb.mxu2 %v881_v48  ;;  %2071 = vmatpush.msra.mxu0 %v234_v32  ;;  %v3369_v48 = vld [vmem:[#allocation2 + $0x38] sm:$0xff]  ;;  %v474_v32 = vld [vmem:[#allocation5 + $0xb68] sm:$0xff] }
 0x1f5   :  { %v753_v33 = vld [vmem:[#allocation5 + $0x1420] sm:$0xff]  ;;  %2062 = vmatpush.msrb.mxu3 %v1017_v8  ;;  %2041 = vmatmul.f32.vlgmr.msrb.gmra.mxu2 %v3361_v51  ;;  %v218_v8 = vld [vmem:[#allocation5 + $0x368] sm:$0xff] }
 0x1f6   :  { %v1009_v53 = vld [vmem:[#allocation5 + $0x1c20] sm:$0xff]  ;;  %2117 = vmatpush.msra.mxu2 %v490_v47  ;;  %2017 = vmatpush.msrb.mxu1 %v753_v33  ;;  %v210_v47 = vld [vmem:[#allocation5 + $0x328] sm:$0xff] }
 0x1f7   :  { %2063 = vmatpush.msrb.mxu3 %v1009_v53  ;;  %v3366_v30 = vld [vmem:[#allocation2 + $0x20] sm:$0xff]  ;;  %2072 = vmatpush.msra.mxu0 %v226_v62  ;;  %v346_v33 = vld [vmem:[#allocation5 + $0x768] sm:$0xff] }
 0x1f8   :  { %1995 = vmatmul.f32.vlgmr.msrb.gmra.mxu0 %v3366_v30  ;;  %2064 = vmatmul.f32.vlgmr.msrb.gmra.mxu3 %v3369_v48  ;;  %v466_v53 = vld [vmem:[#allocation5 + $0xb28] sm:$0xff] }
 0x1f9   :  { %2094 = vmatpush.msra.mxu1 %v362_v10  ;;  %2118 = vmatpush.msra.mxu2 %v482_v15  ;;  %v202_v62 = vld [vmem:[#allocation5 + $0x2e8] sm:$0xff] }
 0x1fa   :  { %2140 = vmatpush.msra.mxu3 %v618_v24  ;;  %2018 = vmatmul.f32.vlgmr.msrb.gmra.mxu1 %v3372_v41  ;;  %v338_v9 = vld [vmem:[#allocation5 + $0x728] sm:$0xff] }
 0x1fb   :  { %2073 = vmatpush.msra.mxu0 %v218_v8  ;;  %2095 = vmatpush.msra.mxu1 %v354_v2  ;;  %v458_v10 = vld [vmem:[#allocation5 + $0xae8] sm:$0xff] }
 0x1fc   :  { %2119 = vmatpush.msra.mxu2 %v474_v32  ;;  %2141 = vmatpush.msra.mxu3 %v610_v37  ;;  %v594_v15 = vld [vmem:[#allocation5 + $0xf28] sm:$0xff] }
 0x1fd   :  { %2074 = vmatpush.msra.mxu0 %v210_v47  ;;  %2096 = vmatpush.msra.mxu1 %v346_v33  ;;  %v194_v24 = vld [vmem:[#allocation5 + $0x2a8] sm:$0xff] }
 0x1fe   :  { %2120 = vmatpush.msra.mxu2 %v466_v53  ;;  %2142 = vmatpush.msra.mxu3 %v602_v60  ;;  %v330_v8 = vld [vmem:[#allocation5 + $0x6e8] sm:$0xff] }
 0x1ff   :  { %2044 = vmatmul.f32.gmra.mxu2 %v3293_v1  ;;  %2075 = vmatpush.msra.mxu0 %v202_v62  ;;  %v450_v2 = vld [vmem:[#allocation5 + $0xaa8] sm:$0xff] }
 0x200   :  { %2097 = vmatpush.msra.mxu1 %v338_v9  ;;  %2121 = vmatpush.msra.mxu2 %v458_v10  ;;  %v586_v32 = vld [vmem:[#allocation5 + $0xee8] sm:$0xff] }
 0x201   :  { %2143 = vmatpush.msra.mxu3 %v594_v15  ;;  %1998 = vmatmul.f32.gmra.mxu0 %v3298_v17  ;;  %v186_v37 = vld [vmem:[#allocation5 + $0x268] sm:$0xff] }
 0x202   :  { %2067 = vmatmul.f32.gmra.mxu3 %v3301_v14  ;;  %2076 = vmatpush.msra.mxu0 %v194_v24  ;;  %v322_v47 = vld [vmem:[#allocation5 + $0x6a8] sm:$0xff] }
 0x203   :  { %2098 = vmatpush.msra.mxu1 %v330_v8  ;;  %2122 = vmatpush.msra.mxu2 %v450_v2  ;;  %v442_v33 = vld [vmem:[#allocation5 + $0xa68] sm:$0xff] }
 0x204   :  { %v578_v53 = vld [vmem:[#allocation5 + $0xea8] sm:$0xff]  ;;  %2144 = vmatpush.msra.mxu3 %v586_v32  ;;  %2021 = vmatmul.f32.gmra.mxu1 %v3306_v18 }
 0x205   :  { %v178_v1 = vld [vmem:[#allocation5 + $0x228] sm:$0xff]  ;;  %2077 = vmatpush.msra.mxu0 %v186_v37  ;;  %2099 = vmatpush.msra.mxu1 %v322_v47 }
 0x206   :  { %v314_v60 = vld [vmem:[#allocation5 + $0x668] sm:$0xff]  ;;  %2123 = vmatpush.msra.mxu2 %v442_v33  ;;  %2145 = vmatpush.msra.mxu3 %v578_v53 }
 0x207   :  { %v434_v62 = vld [vmem:[#allocation5 + $0xa28] sm:$0xff]  ;;  %2078 = vmatpush.msra.mxu0 %v178_v1  ;;  %2100 = vmatpush.msra.mxu1 %v314_v60 }
 0x208   :  { %v570_v9 = vld [vmem:[#allocation5 + $0xe68] sm:$0xff]  ;;  %2124 = vmatpush.msra.mxu2 %v434_v62 }
 0x209   :  { %v170_v17 = vld [vmem:[#allocation5 + $0x1e8] sm:$0xff]  ;;  %2146 = vmatpush.msra.mxu3 %v570_v9 }
 0x20a   :  { %v306_v14 = vld [vmem:[#allocation5 + $0x628] sm:$0xff]  ;;  %2079 = vmatpush.msra.mxu0 %v170_v17 }
 0x20b   :  { %v426_v10 = vld [vmem:[#allocation5 + $0x9e8] sm:$0xff]  ;;  %2101 = vmatpush.msra.mxu1 %v306_v14 }
 0x20c   :  { %v562_v15 = vld [vmem:[#allocation5 + $0xe28] sm:$0xff]  ;;  %2125 = vmatpush.msra.mxu2 %v426_v10 }
 0x20d   :  { %v162_v24 = vld [vmem:[#allocation5 + $0x1a8] sm:$0xff]  ;;  %2147 = vmatpush.msra.mxu3 %v562_v15 }
 0x20e   :  { %v298_v8 = vld [vmem:[#allocation5 + $0x5e8] sm:$0xff]  ;;  %2080 = vmatpush.msra.mxu0 %v162_v24 }
 0x20f   :  { %v418_v18 = vld [vmem:[#allocation5 + $0x9a8] sm:$0xff]  ;;  %2102 = vmatpush.msra.mxu1 %v298_v8 }
 0x210   :  { %v554_v2 = vld [vmem:[#allocation5 + $0xde8] sm:$0xff]  ;;  %2126 = vmatpush.msra.mxu2 %v418_v18 }
 0x211   :  { %v154_v32 = vld [vmem:[#allocation5 + $0x168] sm:$0xff]  ;;  %2148 = vmatpush.msra.mxu3 %v554_v2 }
 0x212   :  { %v290_v37 = vld [vmem:[#allocation5 + $0x5a8] sm:$0xff]  ;;  %2081 = vmatpush.msra.mxu0 %v154_v32 }
 0x213   :  { %v410_v47 = vld [vmem:[#allocation5 + $0x968] sm:$0xff]  ;;  %2103 = vmatpush.msra.mxu1 %v290_v37 }
 0x214   :  { %v546_v33 = vld [vmem:[#allocation5 + $0xda8] sm:$0xff]  ;;  %2127 = vmatpush.msra.mxu2 %v410_v47 }
 0x215   :  { %v146_v53 = vld [vmem:[#allocation5 + $0x128] sm:$0xff]  ;;  %2149 = vmatpush.msra.mxu3 %v546_v33 }
 0x216   :  { %v282_v1 = vld [vmem:[#allocation5 + $0x568] sm:$0xff]  ;;  %2082 = vmatpush.msra.mxu0 %v146_v53 }
 0x217   :  { %v402_v60 = vld [vmem:[#allocation5 + $0x928] sm:$0xff]  ;;  %2104 = vmatpush.msra.mxu1 %v282_v1 }
 0x218   :  { %v538_v62 = vld [vmem:[#allocation5 + $0xd68] sm:$0xff]  ;;  %2128 = vmatpush.msra.mxu2 %v402_v60 }
 0x219   :  { %v138_v9 = vld [vmem:[#allocation5 + $0xe8] sm:$0xff]  ;;  %2150 = vmatpush.msra.mxu3 %v538_v62  ;;  %v3777_v62 = vperm.slane %v3321_v7, 3 }
 0x21a   :  { %v274_v17 = vld [vmem:[#allocation5 + $0x528] sm:$0xff]  ;;  %2083 = vmatpush.msra.mxu0 %v138_v9 }
 0x21b   :  { %v394_v14 = vld [vmem:[#allocation5 + $0x8e8] sm:$0xff]  ;;  %2105 = vmatpush.msra.mxu1 %v274_v17 }
 0x21c   :  { %v530_v10 = vld [vmem:[#allocation5 + $0xd28] sm:$0xff]  ;;  %2129 = vmatpush.msra.mxu2 %v394_v14 }
 0x21d   :  { %v130_v15 = vld [vmem:[#allocation5 + $0xa8] sm:$0xff]  ;;  %2151 = vmatpush.msra.mxu3 %v530_v10 }
 0x21e   :  { %v266_v24 = vld [vmem:[#allocation5 + $0x4e8] sm:$0xff]  ;;  %2084 = vmatpush.msra.mxu0 %v130_v15 }
 0x21f   :  { %v386_v8 = vld [vmem:[#allocation5 + $0x8a8] sm:$0xff]  ;;  %2106 = vmatpush.msra.mxu1 %v266_v24 }
 0x220   :  { %v522_v18 = vld [vmem:[#allocation5 + $0xce8] sm:$0xff]  ;;  %2130 = vmatpush.msra.mxu2 %v386_v8  ;;  %v1720_v8 = vpop.f32.mrf.mxu0 }
 0x221   :  { %v122_v2 = vld [vmem:[#allocation5 + $0x68] sm:$0xff]  ;;  %2152 = vmatpush.msra.mxu3 %v522_v18 }
 0x222   :  { %v258_v32 = vld [vmem:[#allocation5 + $0x4a8] sm:$0xff]  ;;  %2085 = vmatpush.msra.mxu0 %v122_v2 }
 0x223   :  { %v378_v37 = vld [vmem:[#allocation5 + $0x868] sm:$0xff]  ;;  %2107 = vmatpush.msra.mxu1 %v258_v32  ;;  %v1721_v32 = vadd.f32 %v1720_v8, %v3777_v62  ;;  %v1789_v62 = vpop.f32.mrf.mxu3 }
 0x224   :  { %v514_v47 = vld [vmem:[#allocation5 + $0xca8] sm:$0xff]  ;;  %2131 = vmatpush.msra.mxu2 %v378_v37 }
 0x225   :  { %v114_v33 = vld [vmem:[#allocation5 + $0x28] sm:$0xff]  ;;  %2153 = vmatpush.msra.mxu3 %v514_v47 }
 0x226   :  { %v250_v53 = vld [vmem:[#allocation5 + $0x468] sm:$0xff]  ;;  %2086 = vmatpush.msra.mxu0 %v114_v33 }
 0x227   :  { %v370_v1 = vld [vmem:[#allocation5 + $0x828] sm:$0xff]  ;;  %2108 = vmatpush.msra.mxu1 %v250_v53  ;;  %2087 = vmatmul.f32.vlgmr.msra.gmra.mxu0 %v3337_v49 }
 0x228   :  { %v506_v60 = vld [vmem:[#allocation5 + $0xc68] sm:$0xff]  ;;  %2132 = vmatpush.msra.mxu2 %v370_v1  ;;  %v1743_v1 = vpop.f32.mrf.mxu1 }
 0x229   :  { %v746_v9 = vld [vmem:[#allocation5 + $0x13e8] sm:$0xff]  ;;  %2154 = vmatpush.msra.mxu3 %v506_v60  ;;  %2133 = vmatmul.f32.vlgmr.msra.gmra.mxu2 %v3332_v13 }
 0x22a   :  { %v1002_v17 = vld [vmem:[#allocation5 + $0x1be8] sm:$0xff]  ;;  %2163 = vmatpush.msrb.mxu0 %v746_v9  ;;  %v1744_v9 = vadd.f32 %v1743_v1, %v1721_v32  ;;  %v1723_v1 = vpop.f32.mrf.mxu0 }
 0x22b   :  { %v242_v14 = vld [vmem:[#allocation5 + $0x428] sm:$0xff]  ;;  %2209 = vmatpush.msrb.mxu2 %v1002_v17  ;;  %v1766_v17 = vpop.f32.mrf.mxu2 }
 0x22c   :  { %v498_v10 = vld [vmem:[#allocation5 + $0xc28] sm:$0xff]  ;;  %2109 = vmatpush.msra.mxu1 %v242_v14  ;;  %v1767_v8 = vadd.f32 %v1766_v17, %v1744_v9  ;;  %v3786_v9 = vperm.slane %v3321_v7, 3 }
 0x22d   :  { %v738_v15 = vld [vmem:[#allocation5 + $0x13a8] sm:$0xff]  ;;  %2155 = vmatpush.msra.mxu3 %v498_v10  ;;  %2110 = vmatmul.f32.vlgmr.msra.gmra.mxu1 %v3343_v63 }
 0x22e   :  { %v874_v24 = vld [vmem:[#allocation5 + $0x17e8] sm:$0xff]  ;;  %2164 = vmatpush.msrb.mxu0 %v738_v15  ;;  %v1790_v32 = vadd.f32 %v1789_v62, %v1767_v8  ;;  %2156 = vmatmul.f32.vlgmr.msra.gmra.mxu3 %v3340_v50 }
 0x22f   :  { %v994_v18 = vld [vmem:[#allocation5 + $0x1ba8] sm:$0xff]  ;;  %2186 = vmatpush.msrb.mxu1 %v874_v24  ;;  %2090 = vmatmul.f32.gmra.mxu0 %v3351_v56 }
 0x230   :  { %v1130_v2 = vld [vmem:[#allocation5 + $0x1fe8] sm:$0xff]  ;;  %2210 = vmatpush.msrb.mxu2 %v994_v18 }
 0x231   :  { %v730_v37 = vld [vmem:[#allocation5 + $0x1368] sm:$0xff]  ;;  %2232 = vmatpush.msrb.mxu3 %v1130_v2  ;;  %2136 = vmatmul.f32.gmra.mxu2 %v3346_v40 }
 0x232   :  { %v866_v47 = vld [vmem:[#allocation5 + $0x17a8] sm:$0xff]  ;;  %2165 = vmatpush.msrb.mxu0 %v730_v37 }
 0x233   :  { %v986_v33 = vld [vmem:[#allocation5 + $0x1b68] sm:$0xff]  ;;  %2187 = vmatpush.msrb.mxu1 %v866_v47 }
 0x234   :  { %v1122_v53 = vld [vmem:[#allocation5 + $0x1fa8] sm:$0xff]  ;;  %2211 = vmatpush.msrb.mxu2 %v986_v33 }
 0x235   :  { %v722_v60 = vld [vmem:[#allocation5 + $0x1328] sm:$0xff]  ;;  %2233 = vmatpush.msrb.mxu3 %v1122_v53  ;;  %2113 = vmatmul.f32.gmra.mxu1 %v3358_v57 }
 0x236   :  { %v858_v23 = vld [vmem:[#allocation5 + $0x1768] sm:$0xff]  ;;  %2166 = vmatpush.msrb.mxu0 %v722_v60  ;;  %2212 = vmatpush.msrb.mxu2 %v978_v35  ;;  %v1724_v35 = vadd.f32 %v1723_v1, %v3786_v9 }
 0x237   :  { %v714_v14 = vld [vmem:[#allocation5 + $0x12e8] sm:$0xff]  ;;  %2188 = vmatpush.msrb.mxu1 %v858_v23  ;;  %2234 = vmatpush.msrb.mxu3 %v1114_v44 }
 0x238   :  { %v850_v10 = vld [vmem:[#allocation5 + $0x1728] sm:$0xff]  ;;  %2167 = vmatpush.msrb.mxu0 %v714_v14  ;;  %2159 = vmatmul.f32.gmra.mxu3 %v3354_v61  ;;  %v235_v61 = vld [vmem:[#allocation5 + $0x3f0] sm:$0xff] }
 0x239   :  { %v970_v15 = vld [vmem:[#allocation5 + $0x1ae8] sm:$0xff]  ;;  %2189 = vmatpush.msrb.mxu1 %v850_v10  ;;  %v1746_v10 = vpop.f32.mrf.mxu1 }
 0x23a   :  { %v1106_v24 = vld [vmem:[#allocation5 + $0x1f28] sm:$0xff]  ;;  %2213 = vmatpush.msrb.mxu2 %v970_v15  ;;  %v1747_v15 = vadd.f32 %v1746_v10, %v1724_v35 }
 0x23b   :  { %v706_v18 = vld [vmem:[#allocation5 + $0x12a8] sm:$0xff]  ;;  %2235 = vmatpush.msrb.mxu3 %v1106_v24  ;;  %v1769_v24 = vpop.f32.mrf.mxu2 }
 0x23c   :  { %v842_v2 = vld [vmem:[#allocation5 + $0x16e8] sm:$0xff]  ;;  %2168 = vmatpush.msrb.mxu0 %v706_v18 }
 0x23d   :  { %v962_v37 = vld [vmem:[#allocation5 + $0x1aa8] sm:$0xff]  ;;  %2190 = vmatpush.msrb.mxu1 %v842_v2 }
 0x23e   :  { %v1098_v47 = vld [vmem:[#allocation5 + $0x1ee8] sm:$0xff]  ;;  %2214 = vmatpush.msrb.mxu2 %v962_v37  ;;  %v1770_v37 = vadd.f32 %v1769_v24, %v1747_v15 }
 0x23f   :  { %v698_v33 = vld [vmem:[#allocation5 + $0x1268] sm:$0xff]  ;;  %2236 = vmatpush.msrb.mxu3 %v1098_v47 }
 0x240   :  { %v834_v53 = vld [vmem:[#allocation5 + $0x16a8] sm:$0xff]  ;;  %2169 = vmatpush.msrb.mxu0 %v698_v33  ;;  %v1792_v33 = vpop.f32.mrf.mxu3 }
 0x241   :  { %v954_v23 = vld [vmem:[#allocation5 + $0x1a68] sm:$0xff]  ;;  %2191 = vmatpush.msrb.mxu1 %v834_v53  ;;  %v1835_v15 = vpop.f32.mrf.mxu1 }
 0x242   :  { %v1090_v60 = vld [vmem:[#allocation5 + $0x1ea8] sm:$0xff]  ;;  %2215 = vmatpush.msrb.mxu2 %v954_v23  ;;  %v1793_v23 = vadd.f32 %v1792_v33, %v1770_v37 }
 0x243   :  { %v690_v44 = vld [vmem:[#allocation5 + $0x1228] sm:$0xff]  ;;  %2237 = vmatpush.msrb.mxu3 %v1090_v60 }
 0x244   :  { %v826_v62 = vld [vmem:[#allocation5 + $0x1668] sm:$0xff]  ;;  %2170 = vmatpush.msrb.mxu0 %v690_v44  ;;  %v1812_v44 = vpop.f32.mrf.mxu0 }
 0x245   :  { %v946_v17 = vld [vmem:[#allocation5 + $0x1a28] sm:$0xff]  ;;  %2192 = vmatpush.msrb.mxu1 %v826_v62 }
 0x246   :  { %v1082_v14 = vld [vmem:[#allocation5 + $0x1e68] sm:$0xff]  ;;  %2216 = vmatpush.msrb.mxu2 %v946_v17  ;;  %v1813_v17 = vadd.f32 %v1812_v44, %v1790_v32 }
 0x247   :  { %v682_v8 = vld [vmem:[#allocation5 + $0x11e8] sm:$0xff]  ;;  %2238 = vmatpush.msrb.mxu3 %v1082_v14 }
 0x248   :  { %v818_v18 = vld [vmem:[#allocation5 + $0x1628] sm:$0xff]  ;;  %2171 = vmatpush.msrb.mxu0 %v682_v8  ;;  %v1836_v24 = vadd.f32 %v1835_v15, %v1813_v17 }
 0x249   :  { %v938_v2 = vld [vmem:[#allocation5 + $0x19e8] sm:$0xff]  ;;  %2193 = vmatpush.msrb.mxu1 %v818_v18  ;;  %v1858_v18 = vpop.f32.mrf.mxu2 }
 0x24a   :  { %v1074_v7 = vld [vmem:[#allocation5 + $0x1e28] sm:$0xff]  ;;  %2217 = vmatpush.msrb.mxu2 %v938_v2  ;;  %v1859_v63 = vadd.f32 %v1858_v18, %v1836_v24  ;;  %v227_v18 = vld [vmem:[#allocation5 + $0x3b0] sm:$0xff] }
 0x24b   :  { %v674_v47 = vld [vmem:[#allocation5 + $0x11a8] sm:$0xff]  ;;  %2239 = vmatpush.msrb.mxu3 %v1074_v7 }
 0x24c   :  { %v810_v53 = vld [vmem:[#allocation5 + $0x15e8] sm:$0xff]  ;;  %2172 = vmatpush.msrb.mxu0 %v674_v47  ;;  %v1881_v47 = vpop.f32.mrf.mxu3  ;;  %v1815_v44 = vpop.f32.mrf.mxu0 }
 0x24d   :  { %v930_v1 = vld [vmem:[#allocation5 + $0x19a8] sm:$0xff]  ;;  %2194 = vmatpush.msrb.mxu1 %v810_v53 }
 0x24e   :  { %v1066_v60 = vld [vmem:[#allocation5 + $0x1de8] sm:$0xff]  ;;  %2218 = vmatpush.msrb.mxu2 %v930_v1  ;;  %v3389_v1 = vadd.f32 %v1881_v47, %v1859_v63  ;;  %v219_v47 = vld [vmem:[#allocation5 + $0x370] sm:$0xff] }
 0x24f   :  { %v666_v9 = vld [vmem:[#allocation5 + $0x1168] sm:$0xff]  ;;  %2240 = vmatpush.msrb.mxu3 %v1066_v60 }
 0x250   :  { %v802_v35 = vld [vmem:[#allocation5 + $0x15a8] sm:$0xff]  ;;  %2173 = vmatpush.msrb.mxu0 %v666_v9  ;;  %3787 = vst [vmem:[#allocation19_spill] sm:$0xff] %v3389_v1 }
 0x251   :  { %v922_v13 = vld [vmem:[#allocation5 + $0x1968] sm:$0xff]  ;;  %2195 = vmatpush.msrb.mxu1 %v802_v35  ;;  %v1861_v15 = vpop.f32.mrf.mxu2 }
 0x252   :  { %v1058_v62 = vld [vmem:[#allocation5 + $0x1da8] sm:$0xff]  ;;  %2219 = vmatpush.msrb.mxu2 %v922_v13 }
 0x253   :  { %v658_v14 = vld [vmem:[#allocation5 + $0x1128] sm:$0xff]  ;;  %2241 = vmatpush.msrb.mxu3 %v1058_v62  ;;  %v1816_v62 = vadd.f32 %v1815_v44, %v1793_v23  ;;  %v603_v44 = vld [vmem:[#allocation5 + $0xf70] sm:$0xff] }
 0x254   :  { %v794_v10 = vld [vmem:[#allocation5 + $0x1568] sm:$0xff]  ;;  %2174 = vmatpush.msrb.mxu0 %v658_v14 }
 0x255   :  { %v914_v49 = vld [vmem:[#allocation5 + $0x1928] sm:$0xff]  ;;  %2196 = vmatpush.msrb.mxu1 %v794_v10 }
 0x256   :  { %v1050_v8 = vld [vmem:[#allocation5 + $0x1d68] sm:$0xff]  ;;  %2220 = vmatpush.msrb.mxu2 %v914_v49  ;;  %v1838_v49 = vpop.f32.mrf.mxu1 }
 0x257   :  { %v650_v50 = vld [vmem:[#allocation5 + $0x10e8] sm:$0xff]  ;;  %2242 = vmatpush.msrb.mxu3 %v1050_v8  ;;  %v1839_v8 = vadd.f32 %v1838_v49, %v1816_v62  ;;  %v3400_v62 = vld [vmem:[#allocation2 + $0x70] sm:$0xff]  ;;  %v3406_v49 = vld [vmem:[#allocation2 + $0x78] sm:$0xff] }
 0x258   :  { %v786_v2 = vld [vmem:[#allocation5 + $0x1528] sm:$0xff]  ;;  %2175 = vmatpush.msrb.mxu0 %v650_v50  ;;  %v491_v50 = vld [vmem:[#allocation5 + $0xbf0] sm:$0xff] }
 0x259   :  { %v906_v7 = vld [vmem:[#allocation5 + $0x18e8] sm:$0xff]  ;;  %2197 = vmatpush.msrb.mxu1 %v786_v2  ;;  %v1862_v57 = vadd.f32 %v1861_v15, %v1839_v8  ;;  %v1884_v2 = vpop.f32.mrf.mxu3  ;;  %v323_v8 = vld [vmem:[#allocation5 + $0x6b0] sm:$0xff] }
 0x25a   :  { %v1042_v32 = vld [vmem:[#allocation5 + $0x1d28] sm:$0xff]  ;;  %2221 = vmatpush.msrb.mxu2 %v906_v7  ;;  %v363_v7 = vld [vmem:[#allocation5 + $0x7f0] sm:$0xff] }
 0x25b   :  { %v642_v37 = vld [vmem:[#allocation5 + $0x10a8] sm:$0xff]  ;;  %2243 = vmatpush.msrb.mxu3 %v1042_v32  ;;  %v483_v32 = vld [vmem:[#allocation5 + $0xbb0] sm:$0xff]  ;;  %v3395_v63 = vadd.f32 %v1884_v2, %v1862_v57 }
 0x25c   :  { %v778_v33 = vld [vmem:[#allocation5 + $0x14e8] sm:$0xff]  ;;  %2176 = vmatpush.msrb.mxu0 %v642_v37  ;;  %v619_v37 = vld [vmem:[#allocation5 + $0xff0] sm:$0xff] }
 0x25d   :  { %v898_v53 = vld [vmem:[#allocation5 + $0x18a8] sm:$0xff]  ;;  %2198 = vmatpush.msrb.mxu1 %v778_v33  ;;  %3788 = vst [vmem:[#allocation20_spill] sm:$0xff] %v3395_v63  ;;  %v355_v33 = vld [vmem:[#allocation5 + $0x7b0] sm:$0xff] }
 0x25e   :  { %v1034_v60 = vld [vmem:[#allocation5 + $0x1ce8] sm:$0xff]  ;;  %2222 = vmatpush.msrb.mxu2 %v898_v53  ;;  %v611_v53 = vld [vmem:[#allocation5 + $0xfb0] sm:$0xff] }
 0x25f   :  { %v634_v9 = vld [vmem:[#allocation5 + $0x1068] sm:$0xff]  ;;  %2244 = vmatpush.msrb.mxu3 %v1034_v60  ;;  %v211_v60 = vld [vmem:[#allocation5 + $0x330] sm:$0xff] }
 0x260   :  { %v770_v35 = vld [vmem:[#allocation5 + $0x14a8] sm:$0xff]  ;;  %2177 = vmatpush.msrb.mxu0 %v634_v9  ;;  %v347_v9 = vld [vmem:[#allocation5 + $0x770] sm:$0xff] }
 0x261   :  { %v890_v40 = vld [vmem:[#allocation5 + $0x1868] sm:$0xff]  ;;  %2199 = vmatpush.msrb.mxu1 %v770_v35  ;;  %v467_v35 = vld [vmem:[#allocation5 + $0xb30] sm:$0xff] }
 0x262   :  { %v1026_v13 = vld [vmem:[#allocation5 + $0x1ca8] sm:$0xff]  ;;  %2223 = vmatpush.msrb.mxu2 %v890_v40  ;;  %v459_v40 = vld [vmem:[#allocation5 + $0xaf0] sm:$0xff] }
 0x263   :  { %v626_v17 = vld [vmem:[#allocation5 + $0x1028] sm:$0xff]  ;;  %2245 = vmatpush.msrb.mxu3 %v1026_v13  ;;  %v595_v13 = vld [vmem:[#allocation5 + $0xf30] sm:$0xff] }
 0x264   :  { %v762_v14 = vld [vmem:[#allocation5 + $0x1468] sm:$0xff]  ;;  %2178 = vmatpush.msrb.mxu0 %v626_v17  ;;  %v331_v17 = vld [vmem:[#allocation5 + $0x6f0] sm:$0xff] }
 0x265   :  { %v882_v56 = vld [vmem:[#allocation5 + $0x1828] sm:$0xff]  ;;  %2200 = vmatpush.msrb.mxu1 %v762_v14  ;;  %2179 = vmatmul.f32.vlgmr.msrb.gmra.mxu0 %v3366_v30  ;;  %v203_v30 = vld [vmem:[#allocation5 + $0x2f0] sm:$0xff] }
 0x266   :  { %v1018_v10 = vld [vmem:[#allocation5 + $0x1c68] sm:$0xff]  ;;  %2224 = vmatpush.msrb.mxu2 %v882_v56  ;;  %2255 = vmatpush.msra.mxu0 %v235_v61  ;;  %v451_v14 = vld [vmem:[#allocation5 + $0xab0] sm:$0xff]  ;;  %v3403_v56 = vld [vmem:[#allocation2 + $0x60] sm:$0xff] }
 0x267   :  { %v754_v24 = vld [vmem:[#allocation5 + $0x1428] sm:$0xff]  ;;  %2246 = vmatpush.msrb.mxu3 %v1018_v10  ;;  %2225 = vmatmul.f32.vlgmr.msrb.gmra.mxu2 %v3361_v51  ;;  %v475_v51 = vld [vmem:[#allocation5 + $0xb70] sm:$0xff] }
 0x268   :  { %v1010_v23 = vld [vmem:[#allocation5 + $0x1c28] sm:$0xff]  ;;  %2301 = vmatpush.msra.mxu2 %v491_v50  ;;  %2201 = vmatpush.msrb.mxu1 %v754_v24  ;;  %v587_v10 = vld [vmem:[#allocation5 + $0xef0] sm:$0xff] }
 0x269   :  { %2247 = vmatpush.msrb.mxu3 %v1010_v23  ;;  %2256 = vmatpush.msra.mxu0 %v227_v18  ;;  %v187_v61 = vld [vmem:[#allocation5 + $0x270] sm:$0xff]  ;;  %v3409_v24 = vld [vmem:[#allocation2 + $0x68] sm:$0xff] }
 0x26a   :  { %2248 = vmatmul.f32.vlgmr.msrb.gmra.mxu3 %v3369_v48  ;;  %2278 = vmatpush.msra.mxu1 %v363_v7  ;;  %v339_v48 = vld [vmem:[#allocation5 + $0x730] sm:$0xff] }
 0x26b   :  { %2302 = vmatpush.msra.mxu2 %v483_v32  ;;  %2324 = vmatpush.msra.mxu3 %v619_v37  ;;  %v443_v15 = vld [vmem:[#allocation5 + $0xa70] sm:$0xff] }
 0x26c   :  { %2202 = vmatmul.f32.vlgmr.msrb.gmra.mxu1 %v3372_v41  ;;  %2257 = vmatpush.msra.mxu0 %v219_v47  ;;  %v195_v41 = vld [vmem:[#allocation5 + $0x2b0] sm:$0xff] }
 0x26d   :  { %2279 = vmatpush.msra.mxu1 %v355_v33  ;;  %2303 = vmatpush.msra.mxu2 %v475_v51  ;;  %v579_v50 = vld [vmem:[#allocation5 + $0xeb0] sm:$0xff] }
 0x26e   :  { %2325 = vmatpush.msra.mxu3 %v611_v53  ;;  %2258 = vmatpush.msra.mxu0 %v211_v60  ;;  %v179_v23 = vld [vmem:[#allocation5 + $0x230] sm:$0xff] }
 0x26f   :  { %2280 = vmatpush.msra.mxu1 %v347_v9  ;;  %2304 = vmatpush.msra.mxu2 %v467_v35  ;;  %v315_v57 = vld [vmem:[#allocation5 + $0x670] sm:$0xff] }
 0x270   :  { %2326 = vmatpush.msra.mxu3 %v603_v44  ;;  %2228 = vmatmul.f32.gmra.mxu2 %v3400_v62  ;;  %v435_v18 = vld [vmem:[#allocation5 + $0xa30] sm:$0xff] }
 0x271   :  { %2259 = vmatpush.msra.mxu0 %v203_v30  ;;  %2281 = vmatpush.msra.mxu1 %v339_v48  ;;  %v571_v2 = vld [vmem:[#allocation5 + $0xe70] sm:$0xff] }
 0x272   :  { %2305 = vmatpush.msra.mxu2 %v459_v40  ;;  %2327 = vmatpush.msra.mxu3 %v595_v13  ;;  %v171_v7 = vld [vmem:[#allocation5 + $0x1f0] sm:$0xff] }
 0x273   :  { %2182 = vmatmul.f32.gmra.mxu0 %v3403_v56  ;;  %2251 = vmatmul.f32.gmra.mxu3 %v3406_v49  ;;  %v307_v32 = vld [vmem:[#allocation5 + $0x630] sm:$0xff] }
 0x274   :  { %2260 = vmatpush.msra.mxu0 %v195_v41  ;;  %2282 = vmatpush.msra.mxu1 %v331_v17  ;;  %v427_v37 = vld [vmem:[#allocation5 + $0x9f0] sm:$0xff] }
 0x275   :  { %2306 = vmatpush.msra.mxu2 %v451_v14  ;;  %2328 = vmatpush.msra.mxu3 %v587_v10  ;;  %v563_v47 = vld [vmem:[#allocation5 + $0xe30] sm:$0xff] }
 0x276   :  { %2205 = vmatmul.f32.gmra.mxu1 %v3409_v24  ;;  %2261 = vmatpush.msra.mxu0 %v187_v61  ;;  %v163_v33 = vld [vmem:[#allocation5 + $0x1b0] sm:$0xff] }
 0x277   :  { %2283 = vmatpush.msra.mxu1 %v323_v8  ;;  %2307 = vmatpush.msra.mxu2 %v443_v15  ;;  %v299_v51 = vld [vmem:[#allocation5 + $0x5f0] sm:$0xff] }
 0x278   :  { %2329 = vmatpush.msra.mxu3 %v579_v50  ;;  %2262 = vmatpush.msra.mxu0 %v179_v23  ;;  %v419_v53 = vld [vmem:[#allocation5 + $0x9b0] sm:$0xff] }
 0x279   :  { %2284 = vmatpush.msra.mxu1 %v315_v57  ;;  %2308 = vmatpush.msra.mxu2 %v435_v18  ;;  %v555_v60 = vld [vmem:[#allocation5 + $0xdf0] sm:$0xff] }
 0x27a   :  { %2330 = vmatpush.msra.mxu3 %v571_v2  ;;  %2263 = vmatpush.msra.mxu0 %v171_v7  ;;  %v155_v9 = vld [vmem:[#allocation5 + $0x170] sm:$0xff] }
 0x27b   :  { %2285 = vmatpush.msra.mxu1 %v307_v32  ;;  %2309 = vmatpush.msra.mxu2 %v427_v37  ;;  %v291_v35 = vld [vmem:[#allocation5 + $0x5b0] sm:$0xff] }
 0x27c   :  { %2331 = vmatpush.msra.mxu3 %v563_v47  ;;  %2264 = vmatpush.msra.mxu0 %v163_v33  ;;  %v411_v44 = vld [vmem:[#allocation5 + $0x970] sm:$0xff] }
 0x27d   :  { %2286 = vmatpush.msra.mxu1 %v299_v51  ;;  %v547_v30 = vld [vmem:[#allocation5 + $0xdb0] sm:$0xff]  ;;  %2310 = vmatpush.msra.mxu2 %v419_v53  ;;  %v3412_v51 = vld [vmem:[#allocation7] sm:$0xff] }
 0x27e   :  { %2332 = vmatpush.msra.mxu3 %v555_v60  ;;  %v147_v48 = vld [vmem:[#allocation5 + $0x130] sm:$0xff]  ;;  %2265 = vmatpush.msra.mxu0 %v155_v9  ;;  %v1139_v53 = vperm.slane %v3412_v51, 4 }
 0x27f   :  { %v283_v40 = vld [vmem:[#allocation5 + $0x570] sm:$0xff]  ;;  %2287 = vmatpush.msra.mxu1 %v291_v35  ;;  %2311 = vmatpush.msra.mxu2 %v411_v44 }
 0x280   :  { %v403_v13 = vld [vmem:[#allocation5 + $0x930] sm:$0xff]  ;;  %2333 = vmatpush.msra.mxu3 %v547_v30  ;;  %2266 = vmatpush.msra.mxu0 %v147_v48 }
 0x281   :  { %v539_v41 = vld [vmem:[#allocation5 + $0xd70] sm:$0xff]  ;;  %2288 = vmatpush.msra.mxu1 %v283_v40  ;;  %2312 = vmatpush.msra.mxu2 %v403_v13  ;;  %v1904_v40 = vpop.f32.mrf.mxu0 }
 0x282   :  { %v139_v17 = vld [vmem:[#allocation5 + $0xf0] sm:$0xff]  ;;  %2334 = vmatpush.msra.mxu3 %v539_v41 }
 0x283   :  { %v275_v14 = vld [vmem:[#allocation5 + $0x530] sm:$0xff]  ;;  %2267 = vmatpush.msra.mxu0 %v139_v17  ;;  %v1905_v17 = vadd.f32 %v1904_v40, %v1139_v53 }
 0x284   :  { %v395_v10 = vld [vmem:[#allocation5 + $0x8f0] sm:$0xff]  ;;  %2289 = vmatpush.msra.mxu1 %v275_v14 }
 0x285   :  { %v531_v61 = vld [vmem:[#allocation5 + $0xd30] sm:$0xff]  ;;  %2313 = vmatpush.msra.mxu2 %v395_v10 }
 0x286   :  { %v131_v8 = vld [vmem:[#allocation5 + $0xb0] sm:$0xff]  ;;  %2335 = vmatpush.msra.mxu3 %v531_v61 }
 0x287   :  { %v267_v15 = vld [vmem:[#allocation5 + $0x4f0] sm:$0xff]  ;;  %2268 = vmatpush.msra.mxu0 %v131_v8 }
 0x288   :  { %v387_v50 = vld [vmem:[#allocation5 + $0x8b0] sm:$0xff]  ;;  %2290 = vmatpush.msra.mxu1 %v267_v15  ;;  %v1927_v15 = vpop.f32.mrf.mxu1 }
 0x289   :  { %v523_v23 = vld [vmem:[#allocation5 + $0xcf0] sm:$0xff]  ;;  %2314 = vmatpush.msra.mxu2 %v387_v50 }
 0x28a   :  { %v123_v57 = vld [vmem:[#allocation5 + $0x70] sm:$0xff]  ;;  %2336 = vmatpush.msra.mxu3 %v523_v23 }
 0x28b   :  { %v259_v18 = vld [vmem:[#allocation5 + $0x4b0] sm:$0xff]  ;;  %2269 = vmatpush.msra.mxu0 %v123_v57  ;;  %v1928_v57 = vadd.f32 %v1927_v15, %v1905_v17  ;;  %v1907_v17 = vpop.f32.mrf.mxu0 }
 0x28c   :  { %v379_v2 = vld [vmem:[#allocation5 + $0x870] sm:$0xff]  ;;  %2291 = vmatpush.msra.mxu1 %v259_v18  ;;  %v1950_v18 = vpop.f32.mrf.mxu2 }
 0x28d   :  { %v515_v7 = vld [vmem:[#allocation5 + $0xcb0] sm:$0xff]  ;;  %2315 = vmatpush.msra.mxu2 %v379_v2 }
 0x28e   :  { %v115_v32 = vld [vmem:[#allocation5 + $0x30] sm:$0xff]  ;;  %2337 = vmatpush.msra.mxu3 %v515_v7 }
 0x28f   :  { %v251_v37 = vld [vmem:[#allocation5 + $0x470] sm:$0xff]  ;;  %2270 = vmatpush.msra.mxu0 %v115_v32 }
 0x290   :  { %v371_v47 = vld [vmem:[#allocation5 + $0x830] sm:$0xff]  ;;  %2292 = vmatpush.msra.mxu1 %v251_v37 }
 0x291   :  { %v507_v33 = vld [vmem:[#allocation5 + $0xc70] sm:$0xff]  ;;  %2316 = vmatpush.msra.mxu2 %v371_v47  ;;  %v1951_v47 = vadd.f32 %v1950_v18, %v1928_v57  ;;  %v1930_v57 = vpop.f32.mrf.mxu1 }
 0x292   :  { %v747_v60 = vld [vmem:[#allocation5 + $0x13f0] sm:$0xff]  ;;  %2338 = vmatpush.msra.mxu3 %v507_v33 }
 0x293   :  { %v1003_v9 = vld [vmem:[#allocation5 + $0x1bf0] sm:$0xff]  ;;  %2347 = vmatpush.msrb.mxu0 %v747_v60 }
 0x294   :  { %v243_v35 = vld [vmem:[#allocation5 + $0x430] sm:$0xff]  ;;  %2393 = vmatpush.msrb.mxu2 %v1003_v9  ;;  %v1973_v9 = vpop.f32.mrf.mxu3 }
 0x295   :  { %v499_v44 = vld [vmem:[#allocation5 + $0xc30] sm:$0xff]  ;;  %2293 = vmatpush.msra.mxu1 %v243_v35 }
 0x296   :  { %v739_v30 = vld [vmem:[#allocation5 + $0x13b0] sm:$0xff]  ;;  %2339 = vmatpush.msra.mxu3 %v499_v44 }
 0x297   :  { %v875_v48 = vld [vmem:[#allocation5 + $0x17f0] sm:$0xff]  ;;  %2348 = vmatpush.msrb.mxu0 %v739_v30  ;;  %v1974_v30 = vadd.f32 %v1973_v9, %v1951_v47 }
 0x298   :  { %v995_v13 = vld [vmem:[#allocation5 + $0x1bb0] sm:$0xff]  ;;  %2370 = vmatpush.msrb.mxu1 %v875_v48 }
 0x299   :  { %v1131_v41 = vld [vmem:[#allocation5 + $0x1ff0] sm:$0xff]  ;;  %2394 = vmatpush.msrb.mxu2 %v995_v13 }
 0x29a   :  { %v731_v14 = vld [vmem:[#allocation5 + $0x1370] sm:$0xff]  ;;  %2416 = vmatpush.msrb.mxu3 %v1131_v41 }
 0x29b   :  { %v867_v10 = vld [vmem:[#allocation5 + $0x17b0] sm:$0xff]  ;;  %2349 = vmatpush.msrb.mxu0 %v731_v14 }
 0x29c   :  { %v987_v61 = vld [vmem:[#allocation5 + $0x1b70] sm:$0xff]  ;;  %2371 = vmatpush.msrb.mxu1 %v867_v10  ;;  %v1976_v9 = vpop.f32.mrf.mxu3 }
 0x29d   :  { %v1123_v8 = vld [vmem:[#allocation5 + $0x1fb0] sm:$0xff]  ;;  %2395 = vmatpush.msrb.mxu2 %v987_v61  ;;  %v1908_v61 = vadd.f32 %v1907_v17, %v1139_v53 }
 0x29e   :  { %v723_v50 = vld [vmem:[#allocation5 + $0x1330] sm:$0xff]  ;;  %2417 = vmatpush.msrb.mxu3 %v1123_v8 }
 0x29f   :  { %v859_v23 = vld [vmem:[#allocation5 + $0x1770] sm:$0xff]  ;;  %2350 = vmatpush.msrb.mxu0 %v723_v50 }
 0x2a0   :  { %v979_v2 = vld [vmem:[#allocation5 + $0x1b30] sm:$0xff]  ;;  %2372 = vmatpush.msrb.mxu1 %v859_v23 }
 0x2a1   :  { %v1115_v7 = vld [vmem:[#allocation5 + $0x1f70] sm:$0xff]  ;;  %2396 = vmatpush.msrb.mxu2 %v979_v2  ;;  %v1931_v2 = vadd.f32 %v1930_v57, %v1908_v61 }
 0x2a2   :  { %v715_v32 = vld [vmem:[#allocation5 + $0x12f0] sm:$0xff]  ;;  %2418 = vmatpush.msrb.mxu3 %v1115_v7  ;;  %v1953_v7 = vpop.f32.mrf.mxu2 }
 0x2a3   :  { %v851_v37 = vld [vmem:[#allocation5 + $0x1730] sm:$0xff]  ;;  %2351 = vmatpush.msrb.mxu0 %v715_v32  ;;  %v1954_v47 = vadd.f32 %v1953_v7, %v1931_v2  ;;  %v2019_v7 = vpop.f32.mrf.mxu1 }
 0x2a4   :  { %v971_v33 = vld [vmem:[#allocation5 + $0x1af0] sm:$0xff]  ;;  %2373 = vmatpush.msrb.mxu1 %v851_v37 }
 0x2a5   :  { %v1107_v60 = vld [vmem:[#allocation5 + $0x1f30] sm:$0xff]  ;;  %2397 = vmatpush.msrb.mxu2 %v971_v33 }
 0x2a6   :  { %v707_v35 = vld [vmem:[#allocation5 + $0x12b0] sm:$0xff]  ;;  %2419 = vmatpush.msrb.mxu3 %v1107_v60 }
 0x2a7   :  { %v843_v44 = vld [vmem:[#allocation5 + $0x16f0] sm:$0xff]  ;;  %2352 = vmatpush.msrb.mxu0 %v707_v35 }
 0x2a8   :  { %v963_v48 = vld [vmem:[#allocation5 + $0x1ab0] sm:$0xff]  ;;  %2374 = vmatpush.msrb.mxu1 %v843_v44 }
 0x2a9   :  { %v1099_v40 = vld [vmem:[#allocation5 + $0x1ef0] sm:$0xff]  ;;  %2398 = vmatpush.msrb.mxu2 %v963_v48  ;;  %v3422_v48 = vadd.f32 %v1976_v9, %v1954_v47 }
 0x2aa   :  { %v699_v13 = vld [vmem:[#allocation5 + $0x1270] sm:$0xff]  ;;  %2420 = vmatpush.msrb.mxu3 %v1099_v40  ;;  %v3424_v40 = vld [vmem:[#allocation2] sm:$0xff] }
 0x2ab   :  { %v835_v41 = vld [vmem:[#allocation5 + $0x16b0] sm:$0xff]  ;;  %2353 = vmatpush.msrb.mxu0 %v699_v13 }
 0x2ac   :  { %v955_v14 = vld [vmem:[#allocation5 + $0x1a70] sm:$0xff]  ;;  %2375 = vmatpush.msrb.mxu1 %v835_v41  ;;  %2271 = vmatmul.f32.vlgmr.msra.gmra.mxu0 %v3424_v40  ;;  %v3427_v41 = vld [vmem:[#allocation2 + $0x18] sm:$0xff] }
 0x2ad   :  { %v1091_v10 = vld [vmem:[#allocation5 + $0x1eb0] sm:$0xff]  ;;  %2399 = vmatpush.msrb.mxu2 %v955_v14  ;;  %2340 = vmatmul.f32.vlgmr.msra.gmra.mxu3 %v3427_v41 }
 0x2ae   :  { %v691_v8 = vld [vmem:[#allocation5 + $0x1230] sm:$0xff]  ;;  %2421 = vmatpush.msrb.mxu3 %v1091_v10  ;;  %v1996_v10 = vpop.f32.mrf.mxu0 }
 0x2af   :  { %v827_v15 = vld [vmem:[#allocation5 + $0x1670] sm:$0xff]  ;;  %2354 = vmatpush.msrb.mxu0 %v691_v8 }
 0x2b0   :  { %v947_v50 = vld [vmem:[#allocation5 + $0x1a30] sm:$0xff]  ;;  %2376 = vmatpush.msrb.mxu1 %v827_v15  ;;  %v1997_v15 = vadd.f32 %v1996_v10, %v1974_v30 }
 0x2b1   :  { %v1083_v23 = vld [vmem:[#allocation5 + $0x1e70] sm:$0xff]  ;;  %2400 = vmatpush.msrb.mxu2 %v947_v50  ;;  %v3430_v50 = vld [vmem:[#allocation2 + $0x8] sm:$0xff] }
 0x2b2   :  { %v683_v18 = vld [vmem:[#allocation5 + $0x11f0] sm:$0xff]  ;;  %2422 = vmatpush.msrb.mxu3 %v1083_v23  ;;  %2294 = vmatmul.f32.vlgmr.msra.gmra.mxu1 %v3430_v50 }
 0x2b3   :  { %v819_v32 = vld [vmem:[#allocation5 + $0x1630] sm:$0xff]  ;;  %2355 = vmatpush.msrb.mxu0 %v683_v18 }
 0x2b4   :  { %v939_v37 = vld [vmem:[#allocation5 + $0x19f0] sm:$0xff]  ;;  %2377 = vmatpush.msrb.mxu1 %v819_v32 }
 0x2b5   :  { %v1075_v53 = vld [vmem:[#allocation5 + $0x1e30] sm:$0xff]  ;;  %2401 = vmatpush.msrb.mxu2 %v939_v37  ;;  %v2020_v37 = vadd.f32 %v2019_v7, %v1997_v15  ;;  %v3441_v15 = vld [vmem:[#allocation2 + $0x58] sm:$0xff] }
 0x2b6   :  { %v3419_v33 = vld [vmem:[#allocation2 + $0x10] sm:$0xff]  ;;  %2423 = vmatpush.msrb.mxu3 %v1075_v53  ;;  %v2042_v53 = vpop.f32.mrf.mxu2 }
 0x2b7   :  { %2317 = vmatmul.f32.vlgmr.msra.gmra.mxu2 %v3419_v33  ;;  %v675_v60 = vld [vmem:[#allocation5 + $0x11b0] sm:$0xff]  ;;  %v2043_v9 = vadd.f32 %v2042_v53, %v2020_v37  ;;  %2343 = vmatmul.f32.gmra.mxu3 %v3441_v15  ;;  %v3445_v37 = vld [vmem:[#allocation2 + $0x48] sm:$0xff] }
 0x2b8   :  { %v811_v35 = vld [vmem:[#allocation5 + $0x15f0] sm:$0xff]  ;;  %2356 = vmatpush.msrb.mxu0 %v675_v60 }
 0x2b9   :  { %v931_v44 = vld [vmem:[#allocation5 + $0x19b0] sm:$0xff]  ;;  %2378 = vmatpush.msrb.mxu1 %v811_v35 }
 0x2ba   :  { %v1067_v13 = vld [vmem:[#allocation5 + $0x1df0] sm:$0xff]  ;;  %2402 = vmatpush.msrb.mxu2 %v931_v44  ;;  %2297 = vmatmul.f32.gmra.mxu1 %v3445_v37 }
 0x2bb   :  { %v667_v17 = vld [vmem:[#allocation5 + $0x1170] sm:$0xff]  ;;  %2424 = vmatpush.msrb.mxu3 %v1067_v13  ;;  %v2065_v13 = vpop.f32.mrf.mxu3 }
 0x2bc   :  { %v803_v14 = vld [vmem:[#allocation5 + $0x15b0] sm:$0xff]  ;;  %2357 = vmatpush.msrb.mxu0 %v667_v17  ;;  %v3436_v10 = vadd.f32 %v2065_v13, %v2043_v9  ;;  %v2022_v9 = vpop.f32.mrf.mxu1 }
 0x2bd   :  { %v923_v61 = vld [vmem:[#allocation5 + $0x1970] sm:$0xff]  ;;  %2379 = vmatpush.msrb.mxu1 %v803_v14 }
 0x2be   :  { %v1059_v8 = vld [vmem:[#allocation5 + $0x1db0] sm:$0xff]  ;;  %2403 = vmatpush.msrb.mxu2 %v923_v61  ;;  %3789 = vst [vmem:[#allocation21_spill] sm:$0xff] %v3436_v10  ;;  %v3438_v61 = vld [vmem:[#allocation2 + $0x40] sm:$0xff]  ;;  %v1116_v10 = vld [vmem:[#allocation5 + $0x1f78] sm:$0xff] }
 0x2bf   :  { %v659_v23 = vld [vmem:[#allocation5 + $0x1130] sm:$0xff]  ;;  %2425 = vmatpush.msrb.mxu3 %v1059_v8  ;;  %2274 = vmatmul.f32.gmra.mxu0 %v3438_v61 }
 0x2c0   :  { %v795_v57 = vld [vmem:[#allocation5 + $0x1570] sm:$0xff]  ;;  %2358 = vmatpush.msrb.mxu0 %v659_v23 }
 0x2c1   :  { %v915_v18 = vld [vmem:[#allocation5 + $0x1930] sm:$0xff]  ;;  %2380 = vmatpush.msrb.mxu1 %v795_v57 }
 0x2c2   :  { %v1051_v2 = vld [vmem:[#allocation5 + $0x1d70] sm:$0xff]  ;;  %2404 = vmatpush.msrb.mxu2 %v915_v18  ;;  %v1999_v18 = vpop.f32.mrf.mxu0 }
 0x2c3   :  { %v651_v32 = vld [vmem:[#allocation5 + $0x10f0] sm:$0xff]  ;;  %2426 = vmatpush.msrb.mxu3 %v1051_v2 }
 0x2c4   :  { %v787_v30 = vld [vmem:[#allocation5 + $0x1530] sm:$0xff]  ;;  %2359 = vmatpush.msrb.mxu0 %v651_v32  ;;  %v2000_v32 = vadd.f32 %v1999_v18, %v3422_v48  ;;  %v492_v48 = vld [vmem:[#allocation5 + $0xbf8] sm:$0xff] }
 0x2c5   :  { %v907_v47 = vld [vmem:[#allocation5 + $0x18f0] sm:$0xff]  ;;  %2381 = vmatpush.msrb.mxu1 %v787_v30 }
 0x2c6   :  { %v1043_v60 = vld [vmem:[#allocation5 + $0x1d30] sm:$0xff]  ;;  %2405 = vmatpush.msrb.mxu2 %v907_v47  ;;  %v2023_v13 = vadd.f32 %v2022_v9, %v2000_v32  ;;  %v356_v9 = vld [vmem:[#allocation5 + $0x7b8] sm:$0xff] }
 0x2c7   :  { %v3433_v35 = vld [vmem:[#allocation2 + $0x50] sm:$0xff]  ;;  %2427 = vmatpush.msrb.mxu3 %v1043_v60 }
 0x2c8   :  { %2320 = vmatmul.f32.gmra.mxu2 %v3433_v35  ;;  %v643_v44 = vld [vmem:[#allocation5 + $0x10b0] sm:$0xff] }
 0x2c9   :  { %v779_v17 = vld [vmem:[#allocation5 + $0x14f0] sm:$0xff]  ;;  %2360 = vmatpush.msrb.mxu0 %v643_v44  ;;  %v236_v44 = vld [vmem:[#allocation5 + $0x3f8] sm:$0xff] }
 0x2ca   :  { %v899_v14 = vld [vmem:[#allocation5 + $0x18b0] sm:$0xff]  ;;  %2382 = vmatpush.msrb.mxu1 %v779_v17  ;;  %v2045_v17 = vpop.f32.mrf.mxu2 }
 0x2cb   :  { %v1035_v8 = vld [vmem:[#allocation5 + $0x1cf0] sm:$0xff]  ;;  %2406 = vmatpush.msrb.mxu2 %v899_v14  ;;  %v2046_v18 = vadd.f32 %v2045_v17, %v2023_v13  ;;  %v612_v13 = vld [vmem:[#allocation5 + $0xfb8] sm:$0xff]  ;;  %v3459_v17 = vld [vmem:[#allocation2 + $0x28] sm:$0xff] }
 0x2cc   :  { %v635_v23 = vld [vmem:[#allocation5 + $0x1070] sm:$0xff]  ;;  %2428 = vmatpush.msrb.mxu3 %v1035_v8 }
 0x2cd   :  { %v771_v57 = vld [vmem:[#allocation5 + $0x14b0] sm:$0xff]  ;;  %2361 = vmatpush.msrb.mxu0 %v635_v23  ;;  %v228_v23 = vld [vmem:[#allocation5 + $0x3b8] sm:$0xff] }
 0x2ce   :  { %v891_v2 = vld [vmem:[#allocation5 + $0x1870] sm:$0xff]  ;;  %2383 = vmatpush.msrb.mxu1 %v771_v57  ;;  %v2068_v57 = vpop.f32.mrf.mxu3 }
 0x2cf   :  { %v1027_v7 = vld [vmem:[#allocation5 + $0x1cb0] sm:$0xff]  ;;  %2407 = vmatpush.msrb.mxu2 %v891_v2  ;;  %v364_v2 = vld [vmem:[#allocation5 + $0x7f8] sm:$0xff]  ;;  %v3451_v32 = vadd.f32 %v2068_v57, %v2046_v18 }
 0x2d0   :  { %v627_v53 = vld [vmem:[#allocation5 + $0x1030] sm:$0xff]  ;;  %2429 = vmatpush.msrb.mxu3 %v1027_v7  ;;  %v484_v7 = vld [vmem:[#allocation5 + $0xbb8] sm:$0xff] }
 0x2d1   :  { %v763_v30 = vld [vmem:[#allocation5 + $0x1470] sm:$0xff]  ;;  %2362 = vmatpush.msrb.mxu0 %v627_v53  ;;  %3790 = vst [vmem:[#allocation22_spill] sm:$0xff] %v3451_v32  ;;  %v3453_v53 = vld [vmem:[#allocation2 + $0x20] sm:$0xff]  ;;  %v604_v18 = vld [vmem:[#allocation5 + $0xf78] sm:$0xff] }
 0x2d2   :  { %v883_v47 = vld [vmem:[#allocation5 + $0x1830] sm:$0xff]  ;;  %2384 = vmatpush.msrb.mxu1 %v763_v30  ;;  %2363 = vmatmul.f32.vlgmr.msrb.gmra.mxu0 %v3453_v53  ;;  %v620_v30 = vld [vmem:[#allocation5 + $0xff8] sm:$0xff]  ;;  %v2134_v1 = vpop.f32.mrf.mxu2 }
 0x2d3   :  { %v1019_v60 = vld [vmem:[#allocation5 + $0x1c70] sm:$0xff]  ;;  %2408 = vmatpush.msrb.mxu2 %v883_v47  ;;  %2439 = vmatpush.msra.mxu0 %v236_v44  ;;  %v3456_v47 = vld [vmem:[#allocation2 + $0x38] sm:$0xff] }
 0x2d4   :  { %v755_v14 = vld [vmem:[#allocation5 + $0x1430] sm:$0xff]  ;;  %2430 = vmatpush.msrb.mxu3 %v1019_v60  ;;  %v220_v60 = vld [vmem:[#allocation5 + $0x378] sm:$0xff] }
 0x2d5   :  { %v1011_v8 = vld [vmem:[#allocation5 + $0x1c30] sm:$0xff]  ;;  %2485 = vmatpush.msra.mxu2 %v492_v48  ;;  %2385 = vmatpush.msrb.mxu1 %v755_v14  ;;  %v476_v44 = vld [vmem:[#allocation5 + $0xb78] sm:$0xff] }
 0x2d6   :  { %v3448_v63 = vld [vmem:[#allocation2 + $0x30] sm:$0xff]  ;;  %2431 = vmatpush.msrb.mxu3 %v1011_v8  ;;  %2440 = vmatpush.msra.mxu0 %v228_v23  ;;  %v212_v48 = vld [vmem:[#allocation5 + $0x338] sm:$0xff] }
 0x2d7   :  { %2409 = vmatmul.f32.vlgmr.msrb.gmra.mxu2 %v3448_v63  ;;  %2432 = vmatmul.f32.vlgmr.msrb.gmra.mxu3 %v3456_v47  ;;  %v348_v14 = vld [vmem:[#allocation5 + $0x778] sm:$0xff] }
 0x2d8   :  { %2462 = vmatpush.msra.mxu1 %v364_v2  ;;  %2486 = vmatpush.msra.mxu2 %v484_v7  ;;  %v468_v8 = vld [vmem:[#allocation5 + $0xb38] sm:$0xff] }
 0x2d9   :  { %2508 = vmatpush.msra.mxu3 %v620_v30  ;;  %2386 = vmatmul.f32.vlgmr.msrb.gmra.mxu1 %v3459_v17  ;;  %v204_v23 = vld [vmem:[#allocation5 + $0x2f8] sm:$0xff] }
 0x2da   :  { %2441 = vmatpush.msra.mxu0 %v220_v60  ;;  %2463 = vmatpush.msra.mxu1 %v356_v9  ;;  %v340_v57 = vld [vmem:[#allocation5 + $0x738] sm:$0xff] }
 0x2db   :  { %2487 = vmatpush.msra.mxu2 %v476_v44  ;;  %2509 = vmatpush.msra.mxu3 %v612_v13  ;;  %v460_v2 = vld [vmem:[#allocation5 + $0xaf8] sm:$0xff] }
 0x2dc   :  { %2442 = vmatpush.msra.mxu0 %v212_v48  ;;  %2464 = vmatpush.msra.mxu1 %v348_v14  ;;  %v596_v7 = vld [vmem:[#allocation5 + $0xf38] sm:$0xff] }
 0x2dd   :  { %2488 = vmatpush.msra.mxu2 %v468_v8  ;;  %2510 = vmatpush.msra.mxu3 %v604_v18  ;;  %v196_v30 = vld [vmem:[#allocation5 + $0x2b8] sm:$0xff] }
 0x2de   :  { %2443 = vmatpush.msra.mxu0 %v204_v23  ;;  %2465 = vmatpush.msra.mxu1 %v340_v57  ;;  %v332_v60 = vld [vmem:[#allocation5 + $0x6f8] sm:$0xff] }
 0x2df   :  { %2412 = vmatmul.f32.gmra.mxu2 %v3400_v62  ;;  %v452_v9 = vld [vmem:[#allocation5 + $0xab8] sm:$0xff]  ;;  %2511 = vmatpush.msra.mxu3 %v596_v7 }
 0x2e0   :  { %2489 = vmatpush.msra.mxu2 %v460_v2  ;;  %2366 = vmatmul.f32.gmra.mxu0 %v3403_v56  ;;  %v588_v44 = vld [vmem:[#allocation5 + $0xef8] sm:$0xff] }
 0x2e1   :  { %2435 = vmatmul.f32.gmra.mxu3 %v3406_v49  ;;  %2444 = vmatpush.msra.mxu0 %v196_v30  ;;  %v188_v13 = vld [vmem:[#allocation5 + $0x278] sm:$0xff] }
 0x2e2   :  { %v324_v48 = vld [vmem:[#allocation5 + $0x6b8] sm:$0xff]  ;;  %2466 = vmatpush.msra.mxu1 %v332_v60  ;;  %2490 = vmatpush.msra.mxu2 %v452_v9 }
 0x2e3   :  { %v444_v14 = vld [vmem:[#allocation5 + $0xa78] sm:$0xff]  ;;  %2512 = vmatpush.msra.mxu3 %v588_v44  ;;  %2389 = vmatmul.f32.gmra.mxu1 %v3409_v24 }
 0x2e4   :  { %v580_v8 = vld [vmem:[#allocation5 + $0xeb8] sm:$0xff]  ;;  %2445 = vmatpush.msra.mxu0 %v188_v13  ;;  %2467 = vmatpush.msra.mxu1 %v324_v48 }
 0x2e5   :  { %v180_v62 = vld [vmem:[#allocation5 + $0x238] sm:$0xff]  ;;  %2491 = vmatpush.msra.mxu2 %v444_v14  ;;  %2513 = vmatpush.msra.mxu3 %v580_v8 }
 0x2e6   :  { %v316_v18 = vld [vmem:[#allocation5 + $0x678] sm:$0xff]  ;;  %2446 = vmatpush.msra.mxu0 %v180_v62 }
 0x2e7   :  { %v436_v23 = vld [vmem:[#allocation5 + $0xa38] sm:$0xff]  ;;  %2468 = vmatpush.msra.mxu1 %v316_v18 }
 0x2e8   :  { %v572_v57 = vld [vmem:[#allocation5 + $0xe78] sm:$0xff]  ;;  %2492 = vmatpush.msra.mxu2 %v436_v23 }
 0x2e9   :  { %v172_v56 = vld [vmem:[#allocation5 + $0x1f8] sm:$0xff]  ;;  %2514 = vmatpush.msra.mxu3 %v572_v57 }
 0x2ea   :  { %v308_v49 = vld [vmem:[#allocation5 + $0x638] sm:$0xff]  ;;  %2447 = vmatpush.msra.mxu0 %v172_v56 }
 0x2eb   :  { %v428_v2 = vld [vmem:[#allocation5 + $0x9f8] sm:$0xff]  ;;  %2469 = vmatpush.msra.mxu1 %v308_v49 }
 0x2ec   :  { %v564_v7 = vld [vmem:[#allocation5 + $0xe38] sm:$0xff]  ;;  %2493 = vmatpush.msra.mxu2 %v428_v2 }
 0x2ed   :  { %v164_v30 = vld [vmem:[#allocation5 + $0x1b8] sm:$0xff]  ;;  %2515 = vmatpush.msra.mxu3 %v564_v7 }
 0x2ee   :  { %v300_v60 = vld [vmem:[#allocation5 + $0x5f8] sm:$0xff]  ;;  %2448 = vmatpush.msra.mxu0 %v164_v30 }
 0x2ef   :  { %v420_v24 = vld [vmem:[#allocation5 + $0x9b8] sm:$0xff]  ;;  %2470 = vmatpush.msra.mxu1 %v300_v60 }
 0x2f0   :  { %v556_v9 = vld [vmem:[#allocation5 + $0xdf8] sm:$0xff]  ;;  %2494 = vmatpush.msra.mxu2 %v420_v24 }
 0x2f1   :  { %v156_v44 = vld [vmem:[#allocation5 + $0x178] sm:$0xff]  ;;  %2516 = vmatpush.msra.mxu3 %v556_v9 }
 0x2f2   :  { %v292_v13 = vld [vmem:[#allocation5 + $0x5b8] sm:$0xff]  ;;  %2449 = vmatpush.msra.mxu0 %v156_v44 }
 0x2f3   :  { %v412_v48 = vld [vmem:[#allocation5 + $0x978] sm:$0xff]  ;;  %2471 = vmatpush.msra.mxu1 %v292_v13 }
 0x2f4   :  { %v548_v14 = vld [vmem:[#allocation5 + $0xdb8] sm:$0xff]  ;;  %2495 = vmatpush.msra.mxu2 %v412_v48 }
 0x2f5   :  { %v148_v8 = vld [vmem:[#allocation5 + $0x138] sm:$0xff]  ;;  %2517 = vmatpush.msra.mxu3 %v548_v14 }
 0x2f6   :  { %v284_v62 = vld [vmem:[#allocation5 + $0x578] sm:$0xff]  ;;  %2450 = vmatpush.msra.mxu0 %v148_v8 }
 0x2f7   :  { %v404_v18 = vld [vmem:[#allocation5 + $0x938] sm:$0xff]  ;;  %2472 = vmatpush.msra.mxu1 %v284_v62 }
 0x2f8   :  { %v540_v23 = vld [vmem:[#allocation5 + $0xd78] sm:$0xff]  ;;  %2496 = vmatpush.msra.mxu2 %v404_v18 }
 0x2f9   :  { %v140_v57 = vld [vmem:[#allocation5 + $0xf8] sm:$0xff]  ;;  %2518 = vmatpush.msra.mxu3 %v540_v23  ;;  %v3782_v23 = vperm.slane %v3412_v51, 5 }
 0x2fa   :  { %v276_v56 = vld [vmem:[#allocation5 + $0x538] sm:$0xff]  ;;  %2451 = vmatpush.msra.mxu0 %v140_v57 }
 0x2fb   :  { %v396_v49 = vld [vmem:[#allocation5 + $0x8f8] sm:$0xff]  ;;  %2473 = vmatpush.msra.mxu1 %v276_v56 }
 0x2fc   :  { %v532_v2 = vld [vmem:[#allocation5 + $0xd38] sm:$0xff]  ;;  %2497 = vmatpush.msra.mxu2 %v396_v49 }
 0x2fd   :  { %v132_v7 = vld [vmem:[#allocation5 + $0xb8] sm:$0xff]  ;;  %2519 = vmatpush.msra.mxu3 %v532_v2 }
 0x2fe   :  { %v268_v30 = vld [vmem:[#allocation5 + $0x4f8] sm:$0xff]  ;;  %2452 = vmatpush.msra.mxu0 %v132_v7 }
 0x2ff   :  { %v388_v60 = vld [vmem:[#allocation5 + $0x8b8] sm:$0xff]  ;;  %2474 = vmatpush.msra.mxu1 %v268_v30 }
 0x300   :  { %v524_v24 = vld [vmem:[#allocation5 + $0xcf8] sm:$0xff]  ;;  %2498 = vmatpush.msra.mxu2 %v388_v60  ;;  %v2088_v60 = vpop.f32.mrf.mxu0 }
 0x301   :  { %v124_v9 = vld [vmem:[#allocation5 + $0x78] sm:$0xff]  ;;  %2520 = vmatpush.msra.mxu3 %v524_v24 }
 0x302   :  { %v260_v44 = vld [vmem:[#allocation5 + $0x4b8] sm:$0xff]  ;;  %2453 = vmatpush.msra.mxu0 %v124_v9 }
 0x303   :  { %v380_v13 = vld [vmem:[#allocation5 + $0x878] sm:$0xff]  ;;  %2475 = vmatpush.msra.mxu1 %v260_v44  ;;  %v2089_v44 = vadd.f32 %v2088_v60, %v3782_v23  ;;  %v2157_v23 = vpop.f32.mrf.mxu3 }
 0x304   :  { %v516_v48 = vld [vmem:[#allocation5 + $0xcb8] sm:$0xff]  ;;  %2499 = vmatpush.msra.mxu2 %v380_v13 }
 0x305   :  { %v116_v14 = vld [vmem:[#allocation5 + $0x38] sm:$0xff]  ;;  %2521 = vmatpush.msra.mxu3 %v516_v48 }
 0x306   :  { %v252_v8 = vld [vmem:[#allocation5 + $0x478] sm:$0xff]  ;;  %2454 = vmatpush.msra.mxu0 %v116_v14 }
 0x307   :  { %v372_v62 = vld [vmem:[#allocation5 + $0x838] sm:$0xff]  ;;  %2476 = vmatpush.msra.mxu1 %v252_v8  ;;  %2455 = vmatmul.f32.vlgmr.msra.gmra.mxu0 %v3424_v40 }
 0x308   :  { %v508_v18 = vld [vmem:[#allocation5 + $0xc78] sm:$0xff]  ;;  %2500 = vmatpush.msra.mxu2 %v372_v62  ;;  %v2111_v62 = vpop.f32.mrf.mxu1 }
 0x309   :  { %v748_v57 = vld [vmem:[#allocation5 + $0x13f8] sm:$0xff]  ;;  %2522 = vmatpush.msra.mxu3 %v508_v18  ;;  %2501 = vmatmul.f32.vlgmr.msra.gmra.mxu2 %v3419_v33 }
 0x30a   :  { %v1004_v56 = vld [vmem:[#allocation5 + $0x1bf8] sm:$0xff]  ;;  %2531 = vmatpush.msrb.mxu0 %v748_v57  ;;  %v2112_v57 = vadd.f32 %v2111_v62, %v2089_v44 }
 0x30b   :  { %v244_v49 = vld [vmem:[#allocation5 + $0x438] sm:$0xff]  ;;  %2577 = vmatpush.msrb.mxu2 %v1004_v56 }
 0x30c   :  { %v500_v2 = vld [vmem:[#allocation5 + $0xc38] sm:$0xff]  ;;  %2477 = vmatpush.msra.mxu1 %v244_v49  ;;  %v2135_v60 = vadd.f32 %v2134_v1, %v2112_v57  ;;  %v2091_v1 = vpop.f32.mrf.mxu0 }
 0x30d   :  { %v740_v7 = vld [vmem:[#allocation5 + $0x13b8] sm:$0xff]  ;;  %2523 = vmatpush.msra.mxu3 %v500_v2  ;;  %2478 = vmatmul.f32.vlgmr.msra.gmra.mxu1 %v3430_v50 }
 0x30e   :  { %v876_v30 = vld [vmem:[#allocation5 + $0x17f8] sm:$0xff]  ;;  %2532 = vmatpush.msrb.mxu0 %v740_v7  ;;  %v3469_v44 = vadd.f32 %v2157_v23, %v2135_v60  ;;  %2524 = vmatmul.f32.vlgmr.msra.gmra.mxu3 %v3427_v41 }
 0x30f   :  { %v996_v24 = vld [vmem:[#allocation5 + $0x1bb8] sm:$0xff]  ;;  %2554 = vmatpush.msrb.mxu1 %v876_v30  ;;  %2458 = vmatmul.f32.gmra.mxu0 %v3438_v61 }
 0x310   :  { %v1132_v9 = vld [vmem:[#allocation5 + $0x1ff8] sm:$0xff]  ;;  %2578 = vmatpush.msrb.mxu2 %v996_v24 }
 0x311   :  { %v732_v13 = vld [vmem:[#allocation5 + $0x1378] sm:$0xff]  ;;  %2600 = vmatpush.msrb.mxu3 %v1132_v9  ;;  %2504 = vmatmul.f32.gmra.mxu2 %v3433_v35 }
 0x312   :  { %v868_v48 = vld [vmem:[#allocation5 + $0x17b8] sm:$0xff]  ;;  %2533 = vmatpush.msrb.mxu0 %v732_v13 }
 0x313   :  { %v988_v14 = vld [vmem:[#allocation5 + $0x1b78] sm:$0xff]  ;;  %2555 = vmatpush.msrb.mxu1 %v868_v48 }
 0x314   :  { %v1124_v8 = vld [vmem:[#allocation5 + $0x1fb8] sm:$0xff]  ;;  %2579 = vmatpush.msrb.mxu2 %v988_v14 }
 0x315   :  { %v724_v18 = vld [vmem:[#allocation5 + $0x1338] sm:$0xff]  ;;  %2601 = vmatpush.msrb.mxu3 %v1124_v8  ;;  %2481 = vmatmul.f32.gmra.mxu1 %v3445_v37 }
 0x316   :  { %v860_v32 = vld [vmem:[#allocation5 + $0x1778] sm:$0xff]  ;;  %2534 = vmatpush.msrb.mxu0 %v724_v18  ;;  %v3791_v18 = vperm.slane %v3412_v51, 5  ;;  %2527 = vmatmul.f32.gmra.mxu3 %v3441_v15 }
 0x317   :  { %v980_v56 = vld [vmem:[#allocation5 + $0x1b38] sm:$0xff]  ;;  %2556 = vmatpush.msrb.mxu1 %v860_v32  ;;  %2602 = vmatpush.msrb.mxu3 %v1116_v10 }
 0x318   :  { %v716_v49 = vld [vmem:[#allocation5 + $0x12f8] sm:$0xff]  ;;  %2580 = vmatpush.msrb.mxu2 %v980_v56  ;;  %v2092_v10 = vadd.f32 %v2091_v1, %v3791_v18 }
 0x319   :  { %v852_v2 = vld [vmem:[#allocation5 + $0x1738] sm:$0xff]  ;;  %2535 = vmatpush.msrb.mxu0 %v716_v49 }
 0x31a   :  { %v972_v7 = vld [vmem:[#allocation5 + $0x1af8] sm:$0xff]  ;;  %2557 = vmatpush.msrb.mxu1 %v852_v2  ;;  %v2114_v2 = vpop.f32.mrf.mxu1 }
 0x31b   :  { %v1108_v30 = vld [vmem:[#allocation5 + $0x1f38] sm:$0xff]  ;;  %2581 = vmatpush.msrb.mxu2 %v972_v7  ;;  %v2115_v60 = vadd.f32 %v2114_v2, %v2092_v10 }
 0x31c   :  { %v708_v24 = vld [vmem:[#allocation5 + $0x12b8] sm:$0xff]  ;;  %2603 = vmatpush.msrb.mxu3 %v1108_v30 }
 0x31d   :  { %v844_v9 = vld [vmem:[#allocation5 + $0x16f8] sm:$0xff]  ;;  %2536 = vmatpush.msrb.mxu0 %v708_v24  ;;  %v2137_v24 = vpop.f32.mrf.mxu2 }
 0x31e   :  { %v964_v13 = vld [vmem:[#allocation5 + $0x1ab8] sm:$0xff]  ;;  %2558 = vmatpush.msrb.mxu1 %v844_v9 }
 0x31f   :  { %v1100_v48 = vld [vmem:[#allocation5 + $0x1ef8] sm:$0xff]  ;;  %2582 = vmatpush.msrb.mxu2 %v964_v13 }
 0x320   :  { %v700_v14 = vld [vmem:[#allocation5 + $0x1278] sm:$0xff]  ;;  %2604 = vmatpush.msrb.mxu3 %v1100_v48  ;;  %v2138_v48 = vadd.f32 %v2137_v24, %v2115_v60 }
 0x321   :  { %v836_v8 = vld [vmem:[#allocation5 + $0x16b8] sm:$0xff]  ;;  %2537 = vmatpush.msrb.mxu0 %v700_v14  ;;  %v2160_v14 = vpop.f32.mrf.mxu3 }
 0x322   :  { %v956_v32 = vld [vmem:[#allocation5 + $0x1a78] sm:$0xff]  ;;  %2559 = vmatpush.msrb.mxu1 %v836_v8 }
 0x323   :  { %v1092_v62 = vld [vmem:[#allocation5 + $0x1eb8] sm:$0xff]  ;;  %2583 = vmatpush.msrb.mxu2 %v956_v32  ;;  %v3475_v32 = vadd.f32 %v2160_v14, %v2138_v48 }
 0x324   :  { %v692_v23 = vld [vmem:[#allocation5 + $0x1238] sm:$0xff]  ;;  %2605 = vmatpush.msrb.mxu3 %v1092_v62 }
 0x325   :  { %v828_v57 = vld [vmem:[#allocation5 + $0x1678] sm:$0xff]  ;;  %2538 = vmatpush.msrb.mxu0 %v692_v23 }
 0x326   :  { %v948_v56 = vld [vmem:[#allocation5 + $0x1a38] sm:$0xff]  ;;  %2560 = vmatpush.msrb.mxu1 %v828_v57 }
 0x327   :  { %v1084_v49 = vld [vmem:[#allocation5 + $0x1e78] sm:$0xff]  ;;  %2584 = vmatpush.msrb.mxu2 %v948_v56 }
 0x328   :  { %v684_v7 = vld [vmem:[#allocation5 + $0x11f8] sm:$0xff]  ;;  %2606 = vmatpush.msrb.mxu3 %v1084_v49 }
 0x329   :  { %v820_v30 = vld [vmem:[#allocation5 + $0x1638] sm:$0xff]  ;;  %2539 = vmatpush.msrb.mxu0 %v684_v7 }
 0x32a   :  { %v940_v9 = vld [vmem:[#allocation5 + $0x19f8] sm:$0xff]  ;;  %2561 = vmatpush.msrb.mxu1 %v820_v30 }
 0x32b   :  { %v1076_v13 = vld [vmem:[#allocation5 + $0x1e38] sm:$0xff]  ;;  %2585 = vmatpush.msrb.mxu2 %v940_v9 }
 0x32c   :  { %v676_v8 = vld [vmem:[#allocation5 + $0x11b8] sm:$0xff]  ;;  %2607 = vmatpush.msrb.mxu3 %v1076_v13 }
 0x32d   :  { %v812_v1 = vld [vmem:[#allocation5 + $0x15f8] sm:$0xff]  ;;  %2540 = vmatpush.msrb.mxu0 %v676_v8 }
 0x32e   :  { %v932_v62 = vld [vmem:[#allocation5 + $0x19b8] sm:$0xff]  ;;  %2562 = vmatpush.msrb.mxu1 %v812_v1 }
 0x32f   :  { %v1068_v18 = vld [vmem:[#allocation5 + $0x1df8] sm:$0xff]  ;;  %2586 = vmatpush.msrb.mxu2 %v932_v62 }
 0x330   :  { %v668_v10 = vld [vmem:[#allocation5 + $0x1178] sm:$0xff]  ;;  %2608 = vmatpush.msrb.mxu3 %v1068_v18 }
 0x331   :  { %v804_v23 = vld [vmem:[#allocation5 + $0x15b8] sm:$0xff]  ;;  %2541 = vmatpush.msrb.mxu0 %v668_v10  ;;  %v2917_v10 = vld [vmem:[#allocation2 + $0x60] sm:$0xff] }
 0x332   :  { %v924_v33 = vld [vmem:[#allocation5 + $0x1978] sm:$0xff]  ;;  %2563 = vmatpush.msrb.mxu1 %v804_v23  ;;  %v2918_v23 = vld [vmem:[#allocation2 + $0x70] sm:$0xff] }
 0x333   :  { %v1060_v40 = vld [vmem:[#allocation5 + $0x1db8] sm:$0xff]  ;;  %2587 = vmatpush.msrb.mxu2 %v924_v33  ;;  %v2919_v33 = vld [vmem:[#allocation2 + $0x68] sm:$0xff] }
 0x334   :  { %v660_v57 = vld [vmem:[#allocation5 + $0x1138] sm:$0xff]  ;;  %2609 = vmatpush.msrb.mxu3 %v1060_v40 }
 0x335   :  { %v796_v56 = vld [vmem:[#allocation5 + $0x1578] sm:$0xff]  ;;  %2542 = vmatpush.msrb.mxu0 %v660_v57  ;;  %v2180_v57 = vpop.f32.mrf.mxu0 }
 0x336   :  { %v916_v49 = vld [vmem:[#allocation5 + $0x1938] sm:$0xff]  ;;  %2564 = vmatpush.msrb.mxu1 %v796_v56  ;;  %v3487_v56 = vpop.f32.mrf.mxu1 }
 0x337   :  { %v1052_v2 = vld [vmem:[#allocation5 + $0x1d78] sm:$0xff]  ;;  %2588 = vmatpush.msrb.mxu2 %v916_v49 }
 0x338   :  { %v652_v50 = vld [vmem:[#allocation5 + $0x10f8] sm:$0xff]  ;;  %2610 = vmatpush.msrb.mxu3 %v1052_v2 }
 0x339   :  { %v788_v41 = vld [vmem:[#allocation5 + $0x1538] sm:$0xff]  ;;  %2543 = vmatpush.msrb.mxu0 %v652_v50 }
 0x33a   :  { %v908_v60 = vld [vmem:[#allocation5 + $0x18f8] sm:$0xff]  ;;  %2565 = vmatpush.msrb.mxu1 %v788_v41 }
 0x33b   :  { %v1044_v7 = vld [vmem:[#allocation5 + $0x1d38] sm:$0xff]  ;;  %2589 = vmatpush.msrb.mxu2 %v908_v60 }
 0x33c   :  { %v644_v30 = vld [vmem:[#allocation5 + $0x10b8] sm:$0xff]  ;;  %2611 = vmatpush.msrb.mxu3 %v1044_v7 }
 0x33d   :  { %v780_v24 = vld [vmem:[#allocation5 + $0x14f8] sm:$0xff]  ;;  %2544 = vmatpush.msrb.mxu0 %v644_v30  ;;  %v3493_v49 = vpop.f32.mrf.mxu0 }
 0x33e   :  { %v900_v9 = vld [vmem:[#allocation5 + $0x18b8] sm:$0xff]  ;;  %2566 = vmatpush.msrb.mxu1 %v780_v24 }
 0x33f   :  { %v1036_v13 = vld [vmem:[#allocation5 + $0x1cf8] sm:$0xff]  ;;  %2590 = vmatpush.msrb.mxu2 %v900_v9  ;;  %v1136_v9 = vperm.slane %v3412_v51, 1 }
 0x340   :  { %v636_v48 = vld [vmem:[#allocation5 + $0x1078] sm:$0xff]  ;;  %2612 = vmatpush.msrb.mxu3 %v1036_v13 }
 0x341   :  { %v772_v14 = vld [vmem:[#allocation5 + $0x14b8] sm:$0xff]  ;;  %2545 = vmatpush.msrb.mxu0 %v636_v48  ;;  %v1135_v48 = vperm.slane %v3412_v51, 0 }
 0x342   :  { %v892_v8 = vld [vmem:[#allocation5 + $0x1878] sm:$0xff]  ;;  %2567 = vmatpush.msrb.mxu1 %v772_v14 }
 0x343   :  { %v1028_v61 = vld [vmem:[#allocation5 + $0x1cb8] sm:$0xff]  ;;  %2591 = vmatpush.msrb.mxu2 %v892_v8  ;;  %v1353_v8 = vadd.f32 %v3277_v36, %v1136_v9  ;;  %v1356_v36 = vadd.f32 %v3289_v59, %v1136_v9 }
 0x344   :  { %v628_v35 = vld [vmem:[#allocation5 + $0x1038] sm:$0xff]  ;;  %2613 = vmatpush.msrb.mxu3 %v1028_v61 }
 0x345   :  { %v764_v1 = vld [vmem:[#allocation5 + $0x1478] sm:$0xff]  ;;  %2546 = vmatpush.msrb.mxu0 %v628_v35  ;;  %v2272_v2 = vpop.f32.mrf.mxu0  ;;  %v1169_v35 = vadd.f32 %v3237_v3, %v1135_v48  ;;  %v1172_v3 = vadd.f32 %v3245_v34, %v1135_v48 }
 0x346   :  { %v884_v62 = vld [vmem:[#allocation5 + $0x1838] sm:$0xff]  ;;  %2568 = vmatpush.msrb.mxu1 %v764_v1  ;;  %2547 = vmatmul.f32.vlgmr.msrb.gmra.mxu0 %v3453_v53  ;;  %v3489_v53 = vpop.f32.mrf.mxu2 }
 0x347   :  { %v1020_v18 = vld [vmem:[#allocation5 + $0x1c78] sm:$0xff]  ;;  %2592 = vmatpush.msrb.mxu2 %v884_v62  ;;  %v1376_v62 = vadd.f32 %v3279_v38, %v1353_v8 }
 0x348   :  { %v756_v37 = vld [vmem:[#allocation5 + $0x1438] sm:$0xff]  ;;  %2614 = vmatpush.msrb.mxu3 %v1020_v18  ;;  %2593 = vmatmul.f32.vlgmr.msrb.gmra.mxu2 %v3448_v63  ;;  %v3491_v63 = vpop.f32.mrf.mxu3  ;;  %v1192_v18 = vadd.f32 %v3239_v12, %v1169_v35 }
 0x349   :  { %v1012_v15 = vld [vmem:[#allocation5 + $0x1c38] sm:$0xff]  ;;  %2569 = vmatpush.msrb.mxu1 %v756_v37 }
 0x34a   :  { %2615 = vmatpush.msrb.mxu3 %v1012_v15  ;;  %2570 = vmatmul.f32.vlgmr.msrb.gmra.mxu1 %v3459_v17  ;;  %v2920_v40 = vld [vmem:[#allocation2 + $0x78] sm:$0xff]  ;;  %v3495_v17 = vpop.f32.mrf.mxu1  ;;  %v1399_v15 = vadd.f32 %v3282_v42, %v1376_v62  ;;  %v1379_v42 = vadd.f32 %v3291_v46, %v1356_v36 }
 0x34b   :  { %2616 = vmatmul.f32.vlgmr.msrb.gmra.mxu3 %v3456_v47 }
 0x34c   :  { %v1402_v34 = vadd.f32 %v3296_v6, %v1379_v42 }
 0x34d   :  { %v2275_v30 = vpop.f32.mrf.mxu0 }
 0x34e   :  { %2550 = vmatmul.f32.gmra.mxu0 %v2917_v10  ;;  %v3497_v47 = vpop.f32.mrf.mxu2  ;;  %v1141_v10 = vperm.slane %v3412_v51, 6  ;;  %v1195_v51 = vadd.f32 %v3247_v39, %v1172_v3 }
 0x350   :  { %2596 = vmatmul.f32.gmra.mxu2 %v2918_v23  ;;  %v3499_v50 = vpop.f32.mrf.mxu3  ;;  %v2273_v38 = vadd.f32 %v2272_v2, %v1141_v10  ;;  %v2276_v46 = vadd.f32 %v2275_v30, %v1141_v10 }
 0x351   :  { %3792 = vst [vmem:[#allocation23_spill] sm:$0xff] %v3499_v50  ;;  %v1422_v50 = vadd.f32 %v3286_v28, %v1399_v15  ;;  %v1218_v28 = vadd.f32 %v3249_v43, %v1195_v51 }
 0x352   :  { %2573 = vmatmul.f32.gmra.mxu1 %v2919_v33  ;;  %v2295_v41 = vpop.f32.mrf.mxu1  ;;  %v1215_v33 = vadd.f32 %v3241_v16, %v1192_v18  ;;  %v2921_v18 = vld [vmem:[#allocation7] sm:$0xff] }
 0x353   :  { %2619 = vmatmul.f32.gmra.mxu3 %v2920_v40  ;;  %v1445_v35 = vadd.f32 %v3309_v31, %v1422_v50  ;;  %v2296_v16 = vadd.f32 %v2295_v41, %v2273_v38  ;;  %v1142_v39 = vperm.slane %v2921_v18, 7  ;;  %v1425_v50 = vadd.f32 %v3304_v19, %v1402_v34 }
 0x354   :  { %v1238_v12 = vadd.f32 %v3243_v26, %v1215_v33 }
 0x355   :  { %v2364_v61 = vpop.f32.mrf.mxu0  ;;  %v1468_v26 = vadd.f32 %v3311_v45, %v1445_v35  ;;  %v1448_v45 = vadd.f32 %v3317_v4, %v1425_v50 }
 0x356   :  { %v2318_v60 = vpop.f32.mrf.mxu2  ;;  %v1261_v59 = vadd.f32 %v3254_v55, %v1238_v12  ;;  %v1241_v55 = vadd.f32 %v3251_v27, %v1218_v28  ;;  %v3794_v28 = vld [vmem:[#allocation19_spill] sm:$0xff] }
 0x357   :  { %v2319_v48 = vadd.f32 %v2318_v60, %v2296_v16  ;;  %v1491_v6 = vadd.f32 %v3313_v22, %v1468_v26  ;;  %v2181_v60 = vadd.f32 %v2180_v57, %v3469_v44 }
 0x358   :  { %v2341_v7 = vpop.f32.mrf.mxu3  ;;  %v1284_v31 = vadd.f32 %v3258_v0, %v1261_v59  ;;  %v1264_v30 = vadd.f32 %v3265_v52, %v1241_v55 }
 0x359   :  { %v2342_v33 = vadd.f32 %v2341_v7, %v2319_v48  ;;  %v3540_v0 = vadd.f32 %v3315_v54, %v1491_v6  ;;  %v3795_v48 = vld [vmem:[#allocation16_spill] sm:$0xff] }
 0x35a   :  { %v2298_v24 = vpop.f32.mrf.mxu1  ;;  %v1307_v3 = vadd.f32 %v3260_v5, %v1284_v31  ;;  %v2204_v5 = vadd.f32 %v3487_v56, %v2181_v60  ;;  %v1287_v4 = vadd.f32 %v3268_v21, %v1264_v30  ;;  %v2184_v21 = vadd.f32 %v3493_v49, %v3475_v32 }
 0x35b   :  { %v2299_v43 = vadd.f32 %v2298_v24, %v2276_v46  ;;  %v2365_v38 = vadd.f32 %v2364_v61, %v2342_v33  ;;  %v1471_v24 = vadd.f32 %v3319_v20, %v1448_v45  ;;  %v2642_v52 = vmul.f32 %v3540_v0, %v3540_v0 }
 0x35c   :  { %v3543_v7 = vadd.f32 %v3263_v11, %v1307_v3  ;;  %v2227_v61 = vadd.f32 %v3489_v53, %v2204_v5  ;;  %v1310_v56 = vadd.f32 %v3271_v29, %v1287_v4  ;;  %v3793_v53 = vld [vmem:[#allocation17_spill] sm:$0xff]  ;;  %v2644_v32 = vmul.f32 %v3794_v28, %v3794_v28  ;;  %v3798_v4 = vld [vmem:[#allocation20_spill] sm:$0xff] }
 0x35d   :  { %v2367_v40 = vpop.f32.mrf.mxu0  ;;  %v1494_v11 = vadd.f32 %v3323_v25, %v1471_v24 }
 0x35e   :  { %v2321_v13 = vpop.f32.mrf.mxu2  ;;  %v2623_v51 = vadd.f32 %v3540_v0, %v3543_v7  ;;  %v3569_v49 = vadd.f32 %v3491_v63, %v2227_v61  ;;  %v3572_v46 = vadd.f32 %v3795_v48, %v1310_v56  ;;  %v3800_v56 = vld [vmem:[#allocation22_spill] sm:$0xff] }
 0x35f   :  { %v2322_v27 = vadd.f32 %v2321_v13, %v2299_v43  ;;  %v2641_v13 = vmul.f32 %v3543_v7, %v3543_v7 }
 0x360   :  { %v2344_v14 = vpop.f32.mrf.mxu3  ;;  %v2624_v29 = vadd.f32 %v2623_v51, %v3349_v58  ;;  %v2646_v43 = vmul.f32 %v3569_v49, %v3569_v49 }
 0x361   :  { %v2345_v57 = vadd.f32 %v2344_v14, %v2322_v27  ;;  %v2657_v14 = vadd.f32 %v2642_v52, %v2641_v13 }
 0x362   :  { %v2387_v1 = vpop.f32.mrf.mxu1 }
 0x363   :  { %v2388_v54 = vadd.f32 %v2387_v1, %v2365_v38  ;;  %v2643_v1 = vmul.f32 %v3349_v58, %v3349_v58  ;;  %v2368_v16 = vadd.f32 %v2367_v40, %v2345_v57 }
 0x365   :  { %v2658_v18 = vadd.f32 %v2657_v14, %v2643_v1 }
 0x366   :  { %v3507_v37 = vpop.f32.mrf.mxu2 }
 0x367   :  { %v2411_v35 = vadd.f32 %v3507_v37, %v2388_v54  ;;  %v2207_v37 = vadd.f32 %v3495_v17, %v2184_v21  ;;  %v2659_v33 = vadd.f32 %v2658_v18, %v2644_v32  ;;  %v2653_v21 = vmul.f32 %v3800_v56, %v3800_v56 }
 0x368   :  { %v3511_v23 = vpop.f32.mrf.mxu3 }
 0x369   :  { %v3579_v55 = vadd.f32 %v3511_v23, %v2411_v35  ;;  %v2230_v3 = vadd.f32 %v3497_v47, %v2207_v37 }
 0x36a   :  { %v3517_v8 = vpop.f32.mrf.mxu1 }
 0x36b   :  { %v2391_v63 = vadd.f32 %v3517_v8, %v2368_v16  ;;  %v3797_v8 = vld [vmem:[#allocation18_spill] sm:$0xff]  ;;  %v2647_v24 = vmul.f32 %v3579_v55, %v3579_v55 }
 0x36c   :  { %v2651_v60 = vmul.f32 %v3797_v8, %v3797_v8 }
 0x36e   :  { %v3523_v62 = vpop.f32.mrf.mxu2 }
 0x36f   :  { %v2414_v27 = vadd.f32 %v3523_v62, %v2391_v63 }
 0x370   :  { %v3528_v2 = vpop.f32.mrf.mxu3 }
 0x371   :  { %v3611_v14 = vadd.f32 %v3528_v2, %v2414_v27 }
 0x373   :  { %v2655_v48 = vmul.f32 %v3611_v14, %v3611_v14 }
 0x384   :  { %v2456_v9 = vpop.f32.mrf.mxu0 }
 0x385   :  { %v2457_v36 = vadd.f32 %v2456_v9, %v1142_v39  ;;  %v3563_v9 = vadd.f32 %v3793_v53, %v1494_v11 }
 0x387   :  { %v2632_v23 = vadd.f32 %v3563_v9, %v3572_v46 }
 0x389   :  { %v2633_v47 = vadd.f32 %v2632_v23, %v3797_v8 }
 0x38a   :  { %v2479_v15 = vpop.f32.mrf.mxu1 }
 0x38b   :  { %v2480_v22 = vadd.f32 %v2479_v15, %v2457_v36  ;;  %v3796_v15 = vld [vmem:[#allocation21_spill] sm:$0xff]  ;;  %v2649_v36 = vmul.f32 %v3572_v46, %v3572_v46 }
 0x38c   :  { %v2502_v41 = vpop.f32.mrf.mxu2  ;;  %v2459_v19 = vpop.f32.mrf.mxu0  ;;  %v2645_v31 = vmul.f32 %v3796_v15, %v3796_v15 }
 0x38d   :  { %v2503_v12 = vadd.f32 %v2502_v41, %v2480_v22  ;;  %v2460_v42 = vadd.f32 %v2459_v19, %v1142_v39  ;;  %v2625_v39 = vadd.f32 %v2624_v29, %v3794_v28  ;;  %v2650_v41 = vmul.f32 %v3563_v9, %v3563_v9 }
 0x38e   :  { %v2660_v19 = vadd.f32 %v2659_v33, %v2645_v31 }
 0x38f   :  { %v2626_v17 = vadd.f32 %v2625_v39, %v3796_v15  ;;  %v2666_v5 = vadd.f32 %v2650_v41, %v2649_v36 }
 0x390   :  { %v2661_v54 = vadd.f32 %v2660_v19, %v2646_v43 }
 0x391   :  { %v2525_v10 = vpop.f32.mrf.mxu3  ;;  %v2667_v61 = vadd.f32 %v2666_v5, %v2651_v60 }
 0x392   :  { %v2482_v44 = vpop.f32.mrf.mxu1  ;;  %v2526_v59 = vadd.f32 %v2525_v10, %v2503_v12  ;;  %v2627_v10 = vadd.f32 %v2626_v17, %v3569_v49  ;;  %v3799_v12 = vld [vmem:[#allocation23_spill] sm:$0xff]  ;;  %v2662_v16 = vadd.f32 %v2661_v54, %v2647_v24 }
 0x393   :  { %v2483_v25 = vadd.f32 %v2482_v44, %v2460_v42  ;;  %v2652_v44 = vmul.f32 %v3798_v4, %v3798_v4  ;;  %v3602_v42 = vadd.f32 %v3799_v12, %v2230_v3 }
 0x394   :  { %v2505_v20 = vpop.f32.mrf.mxu2  ;;  %v2628_v62 = vadd.f32 %v2627_v10, %v3579_v55 }
 0x395   :  { %v2506_v6 = vadd.f32 %v2505_v20, %v2483_v25  ;;  %v2634_v20 = vadd.f32 %v2633_v47, %v3798_v4 }
 0x397   :  { %v2635_v25 = vadd.f32 %v2634_v20, %v3800_v56 }
 0x399   :  { %v2528_v34 = vpop.f32.mrf.mxu3  ;;  %v2636_v2 = vadd.f32 %v2635_v25, %v3602_v42 }
 0x39a   :  { %v2529_v38 = vadd.f32 %v2528_v34, %v2506_v6  ;;  %v2654_v34 = vmul.f32 %v3602_v42, %v3602_v42 }
 0x39b   :  { %v2637_v39 = vadd.f32 %v2636_v2, %v3611_v14 }
 0x3c3   :  { %v2548_v26 = vpop.f32.mrf.mxu0 }
 0x3c4   :  { %v2549_v40 = vadd.f32 %v2548_v26, %v2526_v59  ;;  %v2668_v59 = vadd.f32 %v2667_v61, %v2652_v44  ;;  %v3638_v44 = vld [vmem:[#allocation8] sm:$0xff] }
 0x3c5   :  { %v2741_v12 = vperm.slane %v3638_v44, 0  ;;  %v2744_v61 = vperm.slane %v3638_v44, 3  ;;  %v2745_v20 = vperm.slane %v3638_v44, 4 }
 0x3c6   :  { %v2669_v26 = vadd.f32 %v2668_v59, %v2653_v21  ;;  %v2746_v21 = vperm.slane %v3638_v44, 5 }
 0x3c7   :  { %v2571_v50 = vpop.f32.mrf.mxu1 }
 0x3c8   :  { %v2572_v45 = vadd.f32 %v2571_v50, %v2549_v40  ;;  %v2670_v31 = vadd.f32 %v2669_v26, %v2654_v34 }
 0x3ca   :  { %v2671_v6 = vadd.f32 %v2670_v31, %v2655_v48 }
 0x3cb   :  { %v2594_v30 = vpop.f32.mrf.mxu2  ;;  %v2551_v52 = vpop.f32.mrf.mxu0 }
 0x3cc   :  { %v2595_v22 = vadd.f32 %v2594_v30, %v2572_v45  ;;  %v2552_v13 = vadd.f32 %v2551_v52, %v2529_v38 }
 0x3ce   :  { %v2617_v57 = vpop.f32.mrf.mxu3 }
 0x3cf   :  { %v3604_v11 = vadd.f32 %v2617_v57, %v2595_v22  ;;  %v2574_v51 = vpop.f32.mrf.mxu1  ;;  %v3641_v57 = vld [vmem:[#allocation10] sm:$0xff] }
 0x3d0   :  { %v2575_v53 = vadd.f32 %v2574_v51, %v2552_v13  ;;  %v2742_v13 = vperm.slane %v3638_v44, 1  ;;  %v2747_v51 = vperm.slane %v3638_v44, 6  ;;  %v2776_v59 = vperm.slane %v3641_v57, 1 }
 0x3d1   :  { %v2629_v1 = vadd.f32 %v2628_v62, %v3604_v11  ;;  %v2648_v35 = vmul.f32 %v3604_v11, %v3604_v11  ;;  %v2743_v62 = vperm.slane %v3638_v44, 2  ;;  %v2777_v25 = vperm.slane %v3641_v57, 2 }
 0x3d2   :  { %v2778_v34 = vperm.slane %v3641_v57, 3  ;;  %v2780_v26 = vperm.slane %v3641_v57, 5  ;;  %v2781_v2 = vperm.slane %v3641_v57, 6  ;;  %v2782_v48 = vperm.slane %v3641_v57, 7 }
 0x3d3   :  { %2630 = vadd.xlane.f32.xlu0 %v2629_v1  ;;  %v2663_v29 = vadd.f32 %v2662_v16, %v2648_v35  ;;  %v2597_v32 = vpop.f32.mrf.mxu2  ;;  %v2748_v35 = vperm.slane %v3638_v44, 7  ;;  %v2775_v16 = vperm.slane %v3641_v57, 0 }
 0x3d4   :  { %v2598_v37 = vadd.f32 %v2597_v32, %v2575_v53  ;;  %v2779_v53 = vperm.slane %v3641_v57, 4 }
 0x3d5   :  { %2664 = vadd.xlane.f32.xlu1 %v2663_v29 }
 0x3d6   :  { %v2620_v40 = vpop.f32.mrf.mxu3 }
 0x3d7   :  { %v3622_v18 = vadd.f32 %v2620_v40, %v2598_v37 }
 0x3d9   :  { %v2638_v50 = vadd.f32 %v2637_v39, %v3622_v18  ;;  %v2656_v63 = vmul.f32 %v3622_v18, %v3622_v18 }
 0x3db   :  { %2639 = vadd.xlane.f32.xlu0 %v2638_v50  ;;  %v2672_v41 = vadd.f32 %v2671_v6, %v2656_v63 }
 0x3dd   :  { %2673 = vadd.xlane.f32.xlu1 %v2672_v41 }
 0x446   :  { %v2631_v33 = vpop.xlane.xlu0 %2630 }
 0x447   :  { %v3628_v17 = vmul.f32 0.0009765625, %v2631_v33 }
 0x448   :  { %v2665_v43 = vpop.xlane.xlu1 %2664 }
 0x449   :  { %v2677_v36 = vmul.f32 0.0009765625, %v2665_v43  ;;  %v2679_v3 = vmul.f32 %v3628_v17, %v3628_v17  ;;  %v2685_v37 = vsub.f32 %v3543_v7, %v3628_v17  ;;  %v2686_v40 = vsub.f32 %v3540_v0, %v3628_v17 }
 0x44a   :  { %v2687_v50 = vsub.f32 %v3349_v58, %v3628_v17  ;;  %v2688_v63 = vsub.f32 %v3794_v28, %v3628_v17  ;;  %v2689_v6 = vsub.f32 %v3796_v15, %v3628_v17  ;;  %v2690_v7 = vsub.f32 %v3569_v49, %v3628_v17 }
 0x44b   :  { %v2681_v45 = vsub.f32 %v2677_v36, %v2679_v3  ;;  %v2691_v0 = vsub.f32 %v3579_v55, %v3628_v17  ;;  %v2692_v41 = vsub.f32 %v3604_v11, %v3628_v17 }
 0x44d   :  { %v2683_v23 = vmax.f32 %v2681_v45, 0.0 }
 0x44e   :  { %v2640_v60 = vpop.xlane.xlu0 %2639 }
 0x44f   :  { %v2701_v30 = vadd.f32 1e-06, %v2683_v23  ;;  %v3632_v10 = vmul.f32 0.0009765625, %v2640_v60 }
 0x450   :  { %v2674_v19 = vpop.xlane.xlu1 %2673 }
 0x451   :  { %2868 = vrsqrt.f32 %v2701_v30  ;;  %v2678_v27 = vmul.f32 0.0009765625, %v2674_v19  ;;  %v2680_v38 = vmul.f32 %v3632_v10, %v3632_v10  ;;  %vm2709_vm1 = vweird.f32 %v2701_v30 }
 0x453   :  { %v2682_v22 = vsub.f32 %v2678_v27, %v2680_v38 }
 0x455   :  { %v2684_v24 = vmax.f32 %v2682_v22, 0.0 }
 0x457   :  { %v2869_v5 = vpop.eup %2868  ;;  %v3636_v47 = vadd.f32 1e-06, %v2684_v24 }
 0x458   :  { %v2704_v52 = vmul.f32 %v2869_v5, %v2701_v30  ;;  %vm2710_vm0 = vweird.f32 %v2869_v5 }
 0x459   :  { %2870 = vrsqrt.f32 %v3636_v47  ;;  %vm2711_vm2 = vmor %vm2709_vm1, %vm2710_vm0  ;;  %vm2719_vm4 = vweird.f32 %v3636_v47 }
 0x45a   :  { %v2705_v54 = vmul.f32 %v2869_v5, %v2704_v52 }
 0x45c   :  { %v2706_v1 = vmul.f32 0.5, %v2705_v54 }
 0x45e   :  { %v2707_v29 = vsub.f32 1.5, %v2706_v1 }
 0x45f   :  { %v3656_v32 = vpop.eup %2870 }
 0x460   :  { %v2708_v39 = vmul.f32 %v2869_v5, %v2707_v29  ;;  %v2714_v31 = vmul.f32 %v3656_v32, %v3636_v47  ;;  %vm2720_vm3 = vweird.f32 %v3656_v32  ;;  %v2699_v47 = vsub.f32 %v3611_v14, %v3632_v10 }
 0x461   :  { %vm2721_vm5 = vmor %vm2719_vm4, %vm2720_vm3 }
 0x462   :  { %v2712_v33 = vsel %vm2711_vm2, %v2869_v5, %v2708_v39  ;;  %v2715_v43 = vmul.f32 %v3656_v32, %v2714_v31 }
 0x463   :  { %v2723_v58 = vmul.f32 %v2712_v33, %v2685_v37  ;;  %v2724_v36 = vmul.f32 %v2712_v33, %v2686_v40  ;;  %v2725_v3 = vmul.f32 %v2712_v33, %v2687_v50  ;;  %v2726_v28 = vmul.f32 %v2712_v33, %v2688_v63 }
 0x464   :  { %v2727_v45 = vmul.f32 %v2712_v33, %v2689_v6  ;;  %v2728_v23 = vmul.f32 %v2712_v33, %v2690_v7  ;;  %v2729_v15 = vmul.f32 %v2712_v33, %v2691_v0  ;;  %v2730_v60 = vmul.f32 %v2712_v33, %v2692_v41 }
 0x465   :  { %v2757_v49 = vmul.f32 %v2741_v12, %v2723_v58  ;;  %v2758_v55 = vmul.f32 %v2742_v13, %v2724_v36  ;;  %v2759_v11 = vmul.f32 %v2743_v62, %v2725_v3  ;;  %v2760_v17 = vmul.f32 %v2744_v61, %v2726_v28 }
 0x466   :  { %v2761_v30 = vmul.f32 %v2745_v20, %v2727_v45  ;;  %v2762_v19 = vmul.f32 %v2746_v21, %v2728_v23  ;;  %v2763_v27 = vmul.f32 %v2747_v51, %v2729_v15  ;;  %v2764_v38 = vmul.f32 %v2748_v35, %v2730_v60 }
 0x467   :  { %v2791_v22 = vadd.f32 %v2775_v16, %v2757_v49  ;;  %v2792_v24 = vadd.f32 %v2776_v59, %v2758_v55  ;;  %v2793_v5 = vadd.f32 %v2777_v25, %v2759_v11  ;;  %v2794_v52 = vadd.f32 %v2778_v34, %v2760_v17 }
 0x468   :  { %v2795_v54 = vadd.f32 %v2779_v53, %v2761_v30  ;;  %v2796_v1 = vadd.f32 %v2780_v26, %v2762_v19  ;;  %v2797_v29 = vadd.f32 %v2781_v2, %v2763_v27  ;;  %v2798_v31 = vadd.f32 %v2782_v48, %v2764_v38 }
 0x469   :  { %v2807_v37 = vmax.f32 %v2791_v22, 0.0  ;;  %v2808_v40 = vmax.f32 %v2792_v24, 0.0  ;;  %v2809_v39 = vmax.f32 %v2793_v5, 0.0  ;;  %v2810_v50 = vmax.f32 %v2794_v52, 0.0 }
 0x46a   :  { %v2811_v63 = vmax.f32 %v2795_v54, 0.0  ;;  %v2716_v6 = vmul.f32 0.5, %v2715_v43  ;;  %v2812_v7 = vmax.f32 %v2796_v1, 0.0  ;;  %v2813_v0 = vmax.f32 %v2797_v29, 0.0 }
 0x46b   :  { %2823 = vst [vmem:[#allocation11] sm:$0xff] %v2807_v37  ;;  %v2814_v33 = vmax.f32 %v2798_v31, 0.0  ;;  %v2693_v58 = vsub.f32 %v3572_v46, %v3632_v10  ;;  %v2694_v43 = vsub.f32 %v3563_v9, %v3632_v10  ;;  %v2695_v3 = vsub.f32 %v3797_v8, %v3632_v10 }
 0x46c   :  { %2824 = vst [vmem:[#allocation11 + $0x8] sm:$0xff] %v2808_v40  ;;  %v2717_v41 = vsub.f32 1.5, %v2716_v6  ;;  %v2696_v28 = vsub.f32 %v3798_v4, %v3632_v10  ;;  %v2697_v45 = vsub.f32 %v3800_v56, %v3632_v10  ;;  %v2698_v46 = vsub.f32 %v3602_v42, %v3632_v10 }
 0x46d   :  { %2825 = vst [vmem:[#allocation11 + $0x10] sm:$0xff] %v2809_v39  ;;  %v2700_v9 = vsub.f32 %v3622_v18, %v3632_v10 }
 0x46e   :  { %2826 = vst [vmem:[#allocation11 + $0x18] sm:$0xff] %v2810_v50  ;;  %v2718_v36 = vmul.f32 %v3656_v32, %v2717_v41 }
 0x46f   :  { %2827 = vst [vmem:[#allocation11 + $0x20] sm:$0xff] %v2811_v63 }
 0x470   :  { %2828 = vst [vmem:[#allocation11 + $0x28] sm:$0xff] %v2812_v7  ;;  %v2722_v23 = vsel %vm2721_vm5, %v3656_v32, %v2718_v36 }
 0x471   :  { %2829 = vst [vmem:[#allocation11 + $0x30] sm:$0xff] %v2813_v0  ;;  %v2731_v8 = vmul.f32 %v2722_v23, %v2693_v58  ;;  %v2732_v15 = vmul.f32 %v2722_v23, %v2694_v43  ;;  %v2733_v4 = vmul.f32 %v2722_v23, %v2695_v3  ;;  %v2734_v60 = vmul.f32 %v2722_v23, %v2696_v28 }
 0x472   :  { %2830 = vst [vmem:[#allocation11 + $0x38] sm:$0xff] %v2814_v33  ;;  %v2735_v49 = vmul.f32 %v2722_v23, %v2697_v45  ;;  %v2736_v56 = vmul.f32 %v2722_v23, %v2698_v46  ;;  %v2737_v55 = vmul.f32 %v2722_v23, %v2699_v47  ;;  %v2738_v11 = vmul.f32 %v2722_v23, %v2700_v9 }
 0x473   :  { %v2765_v42 = vmul.f32 %v2741_v12, %v2731_v8  ;;  %v2766_v14 = vmul.f32 %v2742_v13, %v2732_v15  ;;  %v2767_v18 = vmul.f32 %v2743_v62, %v2733_v4  ;;  %v2768_v10 = vmul.f32 %v2744_v61, %v2734_v60 }
 0x474   :  { %v2769_v32 = vmul.f32 %v2745_v20, %v2735_v49  ;;  %v2770_v17 = vmul.f32 %v2746_v21, %v2736_v56  ;;  %v2771_v30 = vmul.f32 %v2747_v51, %v2737_v55  ;;  %v2772_v12 = vmul.f32 %v2748_v35, %v2738_v11 }
 0x475   :  { %v2799_v13 = vadd.f32 %v2775_v16, %v2765_v42  ;;  %v2800_v62 = vadd.f32 %v2776_v59, %v2766_v14  ;;  %v2801_v61 = vadd.f32 %v2777_v25, %v2767_v18  ;;  %v2802_v20 = vadd.f32 %v2778_v34, %v2768_v10 }
 0x476   :  { %v2803_v21 = vadd.f32 %v2779_v53, %v2769_v32  ;;  %v2804_v51 = vadd.f32 %v2780_v26, %v2770_v17  ;;  %v2805_v44 = vadd.f32 %v2781_v2, %v2771_v30  ;;  %v2806_v59 = vadd.f32 %v2782_v48, %v2772_v12 }
 0x477   :  { %v2815_v35 = vmax.f32 %v2799_v13, 0.0  ;;  %v2816_v16 = vmax.f32 %v2800_v62, 0.0  ;;  %v2817_v19 = vmax.f32 %v2801_v61, 0.0  ;;  %v2818_v27 = vmax.f32 %v2802_v20, 0.0 }
 0x478   :  { %v2819_v25 = vmax.f32 %v2803_v21, 0.0  ;;  %v2820_v38 = vmax.f32 %v2804_v51, 0.0  ;;  %v2821_v34 = vmax.f32 %v2805_v44, 0.0  ;;  %v2822_v53 = vmax.f32 %v2806_v59, 0.0 }
 0x479   :  { %2831 = vst [vmem:[#allocation11 + $0x40] sm:$0xff] %v2815_v35 }
 0x47a   :  { %2832 = vst [vmem:[#allocation11 + $0x48] sm:$0xff] %v2816_v16 }
 0x47b   :  { %2833 = vst [vmem:[#allocation11 + $0x50] sm:$0xff] %v2817_v19 }
 0x47c   :  { %2834 = vst [vmem:[#allocation11 + $0x58] sm:$0xff] %v2818_v27 }
 0x47d   :  { %2835 = vst [vmem:[#allocation11 + $0x60] sm:$0xff] %v2819_v25 }
 0x47e   :  { %2836 = vst [vmem:[#allocation11 + $0x68] sm:$0xff] %v2820_v38 }
 0x47f   :  { %2837 = vst [vmem:[#allocation11 + $0x70] sm:$0xff] %v2821_v34 }
 0x480   :  { %2838 = vst [vmem:[#allocation11 + $0x78] sm:$0xff] %v2822_v53 }
 0x481   :  { %2851 = dma.vmem_to_hbm [thread:$0]  %s2844_s4, 2048, %s2846_s19, [#allocation4], %s3075_s26, %s3075_s26, %s3076_s27  }
 0x482   :  { %3072 = dma.done.wait [#allocation4], 2048  }
 0x483   :  { %3073 = vsyncadd [#allocation4], 4294965248 }
 0x484   :  { %2856 = vsyncpa [#allocation3], 1 }
 0x485   :  { %2857 = vsyncpa [#allocation6], 1 }
 0x486   :  { %2858 = vsyncpa [#allocation9], 1 }
 0x487   :  { %2859 = vsyncpa [#allocation4], 1 }

</bundles_post_ra>
